<compile_context>
chip_gen: v5e
topology: v5e:2x2
jax: 0.10.0
libtpu: 0.0.40
codegen_flags: <defaults>
</compile_context>

<pallas_src>
import functools

import jax
import jax.numpy as jnp
from jax.experimental import pallas as pl
from jax.experimental.pallas import tpu as pltpu


def _bdot(a, b):
    """Matmul with bf16 operands and f32 accumulation (MXU-friendly)."""
    return jnp.dot(a.astype(jnp.bfloat16), b.astype(jnp.bfloat16),
                   preferred_element_type=jnp.float32)


def reasoning_kernel(fm_ref, obj_ref, phr_ref, whs_ref, bias_ref,
                     wc_ref, bc_ref, wa_ref, ua_ref, ba_ref, va_ref,
                     us_ref, vs_ref, out_ref, *, kv_blk, score_dtype):
    sd = score_dtype
    Bb, P = bias_ref.shape
    TN, F = obj_ref.shape[1], obj_ref.shape[2]
    T = fm_ref.shape[0] // Bb
    TWOH = wc_ref.shape[1]
    W = phr_ref.shape[1]
    Hb = wa_ref.shape[1]
    K = F + TWOH + W

    phr2 = phr_ref[...]                                    # (Bb*P, W)  f32
    va = va_ref[...].astype(sd)                            # (1, Hb)

    # Query side of SemanticAlignment; b_align folded in once (not per kv block).
    Whb = (_bdot(phr2, wa_ref[...]) + ba_ref[...]).reshape(Bb, P, Hb).astype(sd)

    def scores(vis3, kvb, feat):
        """Additive-attention logits for one kv block -> (Bb, P, kvb) f32."""
        Uv = _bdot(vis3.reshape(Bb * kvb, feat), ua_ref[...]).reshape(Bb, kvb, Hb)
        t = jnp.tanh(Whb[:, :, None, :] + Uv.astype(sd)[:, None, :, :])   # (Bb,P,kvb,Hb)
        return jnp.sum((t * va).astype(jnp.float32), axis=-1)

    def align(load_block, kv, feat, blk):
        """softmax_kv(additive scores) @ vis  ->  (Bb, P, feat) f32."""
        assert kv <= blk or kv % blk == 0
        if kv <= blk:                                      # single kv block
            vis3 = load_block(0, kv)                       # (Bb, kv, feat)
            e = scores(vis3, kv, feat)
            p = jnp.exp(e - jnp.max(e, axis=-1, keepdims=True))
            w = p * pl.reciprocal(jnp.sum(p, axis=-1, keepdims=True), approx=True)
            if kv <= 32:                                   # tiny kv: f32 VPU reduce, no MXU launch
                return jnp.sum(w[..., None] * vis3[:, None, :, :], axis=2)
            return jnp.einsum('bpk,bkf->bpf', w.astype(jnp.bfloat16),
                              vis3.astype(jnp.bfloat16),
                              preferred_element_type=jnp.float32)
        # kv-tiled, flash-style online softmax: keeps the (Bb,P,blk,Hb) tanh
        # intermediate bounded regardless of kv (needed for v7x's 64 MiB VMEM).
        def body(j, carry):
            m_run, l_run, acc = carry
            j0 = pl.multiple_of(j * blk, blk)
            vis3 = load_block(j0, blk)                     # (Bb, blk, feat)
            e = scores(vis3, blk, feat)
            m_new = jnp.maximum(m_run, jnp.max(e, axis=-1, keepdims=True))
            alpha = jnp.exp(m_run - m_new)
            p = jnp.exp(e - m_new)
            l_new = alpha * l_run + jnp.sum(p, axis=-1, keepdims=True)
            pv = jnp.einsum('bpk,bkf->bpf', p.astype(jnp.bfloat16),
                            vis3.astype(jnp.bfloat16),
                            preferred_element_type=jnp.float32)
            return m_new, l_new, alpha * acc + pv
        carry0 = (jnp.full((Bb, P, 1), -jnp.inf, jnp.float32),
                  jnp.zeros((Bb, P, 1), jnp.float32),
                  jnp.zeros((Bb, P, feat), jnp.float32))
        _, l_run, acc = jax.lax.fori_loop(0, kv // blk, body, carry0)
        return acc * pl.reciprocal(l_run, approx=True)

    # ---- SemanticAlignment over the flattened object features (kv = T*N) ----
    aligned_obj = align(lambda j0, n: obj_ref[:, pl.ds(j0, n), :], TN, F, kv_blk)

    # ---- cnnembedded: one fused Linear(4H -> 2H) on the pre-concatenated slab ----
    cnn2 = _bdot(fm_ref[...], wc_ref[...]) + bc_ref[...]                  # (Bb*T, 2H)
    cnn3 = cnn2.reshape(Bb, T, TWOH)
    # TODO(synk): the cnn alignment assumes T (max_frames) fits one kv block.
    aligned_cnn = align(lambda j0, n: cnn3, T, TWOH, max(kv_blk, T))

    # ---- SemanticAttention over grouped [aligned_obj | aligned_cnn | phr] ----
    grouped = jnp.concatenate(
        [aligned_obj, aligned_cnn, phr2.reshape(Bb, P, W)], axis=-1)      # (Bb,P,K)
    Uv_s = _bdot(grouped.reshape(Bb * P, K), us_ref[...]).reshape(Bb, P, Hb)
    tt = jnp.tanh(whs_ref[...][:, None, :] + Uv_s)        # b_attn folded into whs
    e = jnp.sum(tt * vs_ref[...], axis=-1) + bias_ref[...]               # (Bb, P)
    p = jnp.exp(e - jnp.max(e, axis=-1, keepdims=True))
    w_attn = p * pl.reciprocal(jnp.sum(p, axis=-1, keepdims=True), approx=True)
    # Final pooling: P is tiny -> f32 VPU broadcast-multiply-reduce and a single
    # lane-dense (Bb, K) store (no M=1 MXU matmuls, no bf16 copy of grouped).
    out_ref[...] = jnp.sum(w_attn[:, :, None] * grouped, axis=1)


def reasoning_forward(frame, motion, obj, phr, last_hidden, phr_masks, params,
                      *, block_b=None, kv_blk=256, score_dtype=jnp.float32):
    (wc, bc, wa, ua, ba, va, ws, us_cat, bs, vs) = params
    B, T, TWOH = frame.shape
    _, _, N, F = obj.shape
    P, W = phr.shape[1], phr.shape[2]
    Hb = wa.shape[1]
    TN = T * N
    K = F + TWOH + W

    # Batch block: whole batch if it fits one step, else a multiple of 8 so all
    # flattened (Bblk*seq, feat) blocks stay (8,128)-tile friendly.
    if block_b is None:
        block_b = 8
    if block_b >= B:
        block_b = B
    else:
        block_b = max(8, (block_b // 8) * 8)
    grid_b = pl.cdiv(B, block_b)
    B_pad = grid_b * block_b

    # kv tile for the object alignment: largest divisor of T*N that is <= kv_blk.
    kv_blk_obj = TN
    if TN > kv_blk:
        for d in range(kv_blk, 0, -1):
            if TN % d == 0:
                kv_blk_obj = d
                break

    def pad_b(x):
        if B_pad == B:
            return x
        return jnp.pad(x, [(0, B_pad - B)] + [(0, 0)] * (x.ndim - 1))

    # Pre-concatenated frame|motion slab -> single fused Linear(4H, 2H) in-kernel.
    fm_p = pad_b(jnp.concatenate([frame, motion], axis=-1)).reshape(B_pad * T, 2 * TWOH)
    obj_p = pad_b(obj).reshape(B_pad, TN, F)
    phr_p = pad_b(phr).reshape(B_pad * P, W)
    whs_p = pad_b(last_hidden @ ws + bs)          # hoisted query projection, b_attn folded
    bias_p = pad_b(jnp.where(phr_masks, -1e30, 0.0).astype(jnp.float32))  # (B_pad, P)

    bf = lambda x: x.astype(jnp.bfloat16)         # MXU operands; f32 accumulation in-kernel
    weights = [bf(wc), bc, bf(wa), bf(ua), ba, va, bf(us_cat), vs]

    in_specs = [
        pl.BlockSpec((block_b * T, 2 * TWOH), lambda b: (b, 0)),   # frame|motion slab
        pl.BlockSpec((block_b, TN, F), lambda b: (b, 0, 0)),       # object feats (3-D for kv slicing)
        pl.BlockSpec((block_b * P, W), lambda b: (b, 0)),          # phrase feats
        pl.BlockSpec((block_b, Hb), lambda b: (b, 0)),             # query projection
        pl.BlockSpec((block_b, P), lambda b: (b, 0)),              # mask bias
    ] + [pl.BlockSpec(w.shape, lambda b: (0, 0)) for w in weights]

    kernel = functools.partial(reasoning_kernel, kv_blk=kv_blk_obj,
                               score_dtype=score_dtype)

    try:
        kind = jax.devices()[0].device_kind.lower()
    except Exception:
        kind = ""
    vmem_limit = (40 if "7" in kind else 48) * 1024 * 1024

    out = pl.pallas_call(
        kernel,
        out_shape=jax.ShapeDtypeStruct((B_pad, K), jnp.float32),
        grid_spec=pltpu.PrefetchScalarGridSpec(
            num_scalar_prefetch=0,
            grid=(grid_b,),
            in_specs=in_specs,
            out_specs=pl.BlockSpec((block_b, K), lambda b: (b, 0)),
        ),
        compiler_params=pltpu.CompilerParams(
            dimension_semantics=("parallel",),
            vmem_limit_bytes=vmem_limit,
        ),
    )(fm_p, obj_p, phr_p, whs_p, bias_p, *weights)
    return out[:B]


def reference_forward(frame, motion, obj, phr, last_hidden, phr_masks, params):
    """Pure-JAX reference mirroring the PyTorch semantics (and the kernel's
    bf16-operand / f32-accumulation projection matmuls; weighted sums in f32)."""
    (wc, bc, wa, ua, ba, va, ws, us_cat, bs, vs) = params
    B, T, TWOH = frame.shape
    _, _, N, F = obj.shape
    P, W = phr.shape[1], phr.shape[2]
    obj_flat = obj.reshape(B, T * N, F)

    Whb = (_bdot(phr.reshape(B * P, W), wa) + ba).reshape(B, P, -1)

    def align(vis):
        Kv, feat = vis.shape[1], vis.shape[2]
        Uv = _bdot(vis.reshape(B * Kv, feat), ua).reshape(B, Kv, -1)
        t = jnp.tanh(Whb[:, :, None, :] + Uv[:, None, :, :])
        e = jnp.sum(t * va, axis=-1)
        w = jax.nn.softmax(e, axis=-1)
        return jnp.einsum('bpk,bkf->bpf', w, vis)          # f32 weighted sum

    a_obj = align(obj_flat)
    cnn = (_bdot(jnp.concatenate([frame, motion], axis=-1).reshape(B * T, 2 * TWOH), wc)
           + bc).reshape(B, T, TWOH)
    a_cnn = align(cnn)
    grouped = jnp.concatenate([a_obj, a_cnn, phr], axis=-1)
    K = grouped.shape[-1]
    Uv_s = _bdot(grouped.reshape(B * P, K), us_cat).reshape(B, P, -1)
    tt = jnp.tanh((last_hidden @ ws + bs)[:, None, :] + Uv_s)
    e = jnp.sum(tt * vs, axis=-1)
    e = jnp.where(phr_masks, -1e30, e)
    w = jax.nn.softmax(e, axis=-1)
    return jnp.einsum('bp,bpk->bk', w, grouped)


def make_params(key, H, W, F, TWOH):
    """Deterministic synthetic parameters (mirrors the module's __init__ shapes)."""
    Hb = H            # sem_align_hidden_size == sem_attn_hidden_size == hidden_size
    K = F + TWOH + W  # SemanticAttention key size (== word_size + 2*feature_size)
    keys = jax.random.split(key, 8)
    s = 0.1
    n = lambda k, shape: s * jax.random.normal(k, shape, jnp.float32)
    return [
        n(keys[0], (2 * TWOH, TWOH)),     # cnnembedded: Linear(4H, 2H), (in, out) layout
        n(keys[1], (1, TWOH)),            # cnnembedded bias
        n(keys[2], (W, Hb)),              # W_align
        n(keys[3], (F, Hb)),              # U_align
        jnp.ones((1, Hb), jnp.float32),   # b_align (torch.ones)
        n(keys[4], (1, Hb)),              # w_align
        n(keys[5], (H, Hb)),              # W_attn
        n(keys[6], (K, Hb)),              # U_attn over keys = [obj | cnn | phr]
        jnp.ones((1, Hb), jnp.float32),   # b_attn (torch.ones)
        n(keys[7], (1, Hb)),              # w_attn
    ]


if __name__ == "__main__":
    B, T, N = 32, 4, 4          # batch, max_frames, num_boxes
    H, W = 32, 32               # hidden_size, word_size
    F = 2 * H                   # feature_size (must equal 2*hidden for shared alignment)
    TWOH = 2 * H
    P = 8                       # number of phrases

    key = jax.random.PRNGKey(0)
    k_f, k_m, k_o, k_p, k_h, k_w, k_mask = jax.random.split(key, 7)

    frame = jax.random.normal(k_f, (B, T, TWOH), jnp.float32)
    motion = jax.random.normal(k_m, (B, T, TWOH), jnp.float32)
    obj = jax.random.normal(k_o, (B, T, N, F), jnp.float32)
    phr = jax.random.normal(k_p, (B, P, W), jnp.float32)
    last_hidden = jax.random.normal(k_h, (B, H), jnp.float32)
    phr_masks = jax.random.bernoulli(k_mask, 0.3, (B, P))
    phr_masks = phr_masks.at[:, 0].set(False)   # keep >=1 phrase/row (all-masked -> NaN, as in torch)

    params = make_params(k_w, H, W, F, TWOH)
    ref = reference_forward(frame, motion, obj, phr, last_hidden, phr_masks, params)

    # Path 1: single-block alignment (kv = T*N fits one block); grid=(4,) so dual-TC
    # parts get 2 steps per core.
    out = reasoning_forward(frame, motion, obj, phr, last_hidden, phr_masks,
                            params, block_b=8)
    out = jax.block_until_ready(out)
    assert out.shape == (B, F + TWOH + W)
    err = float(jnp.max(jnp.abs(out - ref)))
    assert jnp.allclose(out, ref, atol=2e-2, rtol=2e-2), \
        f"single-block mismatch vs reference: max|err|={err}"

    # Path 2: kv-tiled online-softmax alignment (2 blocks of 8 over T*N = 16),
    # exercising the VMEM-bounded path used at production T*N.
    out_t = reasoning_forward(frame, motion, obj, phr, last_hidden, phr_masks,
                              params, block_b=8, kv_blk=8)
    out_t = jax.block_until_ready(out_t)
    err_t = float(jnp.max(jnp.abs(out_t - ref)))
    assert jnp.allclose(out_t, ref, atol=2e-2, rtol=2e-2), \
        f"kv-tiled mismatch vs reference: max|err|={err_t}"

    print("KERNEL_OK")
</pallas_src>

<mosaic_0001>
module attributes {stable_mosaic.version = 11 : i64} {
  func.func @reasoning_kernel(%arg0: i32, %arg1: memref<32x128xf32, #tpu.memory_space<vmem>>, %arg2: memref<8x16x64xf32, #tpu.memory_space<vmem>>, %arg3: memref<64x32xf32, #tpu.memory_space<vmem>>, %arg4: memref<8x32xf32, #tpu.memory_space<vmem>>, %arg5: memref<8x8xf32, #tpu.memory_space<vmem>>, %arg6: memref<128x64xbf16, #tpu.memory_space<vmem>>, %arg7: memref<1x64xf32, #tpu.memory_space<vmem>>, %arg8: memref<32x32xbf16, #tpu.memory_space<vmem>>, %arg9: memref<64x32xbf16, #tpu.memory_space<vmem>>, %arg10: memref<1x32xf32, #tpu.memory_space<vmem>>, %arg11: memref<1x32xf32, #tpu.memory_space<vmem>>, %arg12: memref<160x32xbf16, #tpu.memory_space<vmem>>, %arg13: memref<1x32xf32, #tpu.memory_space<vmem>>, %arg14: memref<8x160xf32, #tpu.memory_space<vmem>>) attributes {dimension_semantics = [#tpu.dimension_semantics<parallel>], iteration_bounds = array<i64: 4>, scalar_prefetch = 0 : i64, scratch_operands = 0 : i64, tpu.core_type = #tpu.core_type<tc>, window_params = [{transform_indices = @transform_0, window_bounds = array<i64: 32, 128>}, {transform_indices = @transform_1, window_bounds = array<i64: 8, 16, 64>}, {transform_indices = @transform_2, window_bounds = array<i64: 64, 32>}, {transform_indices = @transform_3, window_bounds = array<i64: 8, 32>}, {transform_indices = @transform_4, window_bounds = array<i64: 8, 8>}, {pipeline_mode = #tpu.pipeline_mode<synchronous>, transform_indices = @transform_5, window_bounds = array<i64: 128, 64>}, {pipeline_mode = #tpu.pipeline_mode<synchronous>, transform_indices = @transform_6, window_bounds = array<i64: 1, 64>}, {pipeline_mode = #tpu.pipeline_mode<synchronous>, transform_indices = @transform_7, window_bounds = array<i64: 32, 32>}, {pipeline_mode = #tpu.pipeline_mode<synchronous>, transform_indices = @transform_8, window_bounds = array<i64: 64, 32>}, {pipeline_mode = #tpu.pipeline_mode<synchronous>, transform_indices = @transform_9, window_bounds = array<i64: 1, 32>}, {pipeline_mode = #tpu.pipeline_mode<synchronous>, transform_indices = @transform_10, window_bounds = array<i64: 1, 32>}, {pipeline_mode = #tpu.pipeline_mode<synchronous>, transform_indices = @transform_11, window_bounds = array<i64: 160, 32>}, {pipeline_mode = #tpu.pipeline_mode<synchronous>, transform_indices = @transform_12, window_bounds = array<i64: 1, 32>}, {transform_indices = @transform_13, window_bounds = array<i64: 8, 160>}]} {
    %c0 = arith.constant 0 : index
    %c0_0 = arith.constant 0 : index
    %0 = vector.load %arg3[%c0, %c0_0] : memref<64x32xf32, #tpu.memory_space<vmem>>, vector<64x32xf32>
    %c0_1 = arith.constant 0 : index
    %c0_2 = arith.constant 0 : index
    %1 = vector.load %arg11[%c0_1, %c0_2] : memref<1x32xf32, #tpu.memory_space<vmem>>, vector<1x32xf32>
    %c0_3 = arith.constant 0 : index
    %c0_4 = arith.constant 0 : index
    %2 = vector.load %arg8[%c0_3, %c0_4] : memref<32x32xbf16, #tpu.memory_space<vmem>>, vector<32x32xbf16>
    %3 = arith.truncf %0 : vector<64x32xf32> to vector<64x32xbf16>
    %cst = arith.constant dense<0.000000e+00> : vector<64x32xf32>
    %4 = tpu.matmul %3, %2, %cst {dimension_numbers = #tpu.dot_dimension_numbers<[1], [0], [0], [1], [0, 0, 1, 1], [], []>} : vector<64x32xbf16>, vector<32x32xbf16>, vector<64x32xf32> -> vector<64x32xf32>
    %c0_5 = arith.constant 0 : index
    %c0_6 = arith.constant 0 : index
    %5 = vector.load %arg10[%c0_5, %c0_6] : memref<1x32xf32, #tpu.memory_space<vmem>>, vector<1x32xf32>
    %6 = vector.broadcast %5 : vector<1x32xf32> to vector<64x32xf32>
    %7 = arith.addf %4, %6 : vector<64x32xf32>
    %8 = vector.shape_cast %7 : vector<64x32xf32> to vector<8x8x32xf32>
    %c0_7 = arith.constant 0 : index
    %c0_8 = arith.constant 0 : index
    %c0_9 = arith.constant 0 : index
    %9 = vector.load %arg2[%c0_7, %c0_8, %c0_9] : memref<8x16x64xf32, #tpu.memory_space<vmem>>, vector<8x16x64xf32>
    %10 = vector.shape_cast %9 : vector<8x16x64xf32> to vector<128x64xf32>
    %c0_10 = arith.constant 0 : index
    %c0_11 = arith.constant 0 : index
    %11 = vector.load %arg9[%c0_10, %c0_11] : memref<64x32xbf16, #tpu.memory_space<vmem>>, vector<64x32xbf16>
    %12 = arith.truncf %10 : vector<128x64xf32> to vector<128x64xbf16>
    %cst_12 = arith.constant dense<0.000000e+00> : vector<128x32xf32>
    %13 = tpu.matmul %12, %11, %cst_12 {dimension_numbers = #tpu.dot_dimension_numbers<[1], [0], [0], [1], [0, 0, 1, 1], [], []>} : vector<128x64xbf16>, vector<64x32xbf16>, vector<128x32xf32> -> vector<128x32xf32>
    %14 = vector.shape_cast %13 : vector<128x32xf32> to vector<8x16x32xf32>
    %15 = vector.shape_cast %8 : vector<8x8x32xf32> to vector<8x8x1x32xf32>
    %16 = vector.shape_cast %14 : vector<8x16x32xf32> to vector<8x1x16x32xf32>
    %17 = vector.broadcast %15 : vector<8x8x1x32xf32> to vector<8x8x16x32xf32>
    %18 = vector.broadcast %16 : vector<8x1x16x32xf32> to vector<8x8x16x32xf32>
    %19 = arith.addf %17, %18 : vector<8x8x16x32xf32>
    %20 = math.tanh %19 : vector<8x8x16x32xf32>
    %21 = vector.shape_cast %1 : vector<1x32xf32> to vector<1x1x1x32xf32>
    %22 = vector.broadcast %21 : vector<1x1x1x32xf32> to vector<8x8x16x32xf32>
    %23 = arith.mulf %20, %22 : vector<8x8x16x32xf32>
    %cst_13 = arith.constant dense<0.000000e+00> : vector<8x8x16xf32>
    %24 = vector.multi_reduction <add>, %23, %cst_13 [3] : vector<8x8x16x32xf32> to vector<8x8x16xf32>
    %cst_14 = arith.constant dense<0xFF800000> : vector<8x8xf32>
    %25 = vector.multi_reduction <maximumf>, %24, %cst_14 [2] : vector<8x8x16xf32> to vector<8x8xf32>
    %26 = vector.shape_cast %25 : vector<8x8xf32> to vector<8x8x1xf32>
    %27 = vector.broadcast %26 : vector<8x8x1xf32> to vector<8x8x16xf32>
    %28 = arith.subf %24, %27 : vector<8x8x16xf32>
    %29 = math.exp %28 : vector<8x8x16xf32>
    %cst_15 = arith.constant dense<0.000000e+00> : vector<8x8xf32>
    %30 = vector.multi_reduction <add>, %29, %cst_15 [2] : vector<8x8x16xf32> to vector<8x8xf32>
    %31 = vector.shape_cast %30 : vector<8x8xf32> to vector<8x8x1xf32>
    %32 = tpu.reciprocal %31 {approx = true} : vector<8x8x1xf32> -> vector<8x8x1xf32>
    %33 = vector.broadcast %32 : vector<8x8x1xf32> to vector<8x8x16xf32>
    %34 = arith.mulf %29, %33 : vector<8x8x16xf32>
    %35 = vector.shape_cast %34 : vector<8x8x16xf32> to vector<8x8x16x1xf32>
    %36 = vector.shape_cast %9 : vector<8x16x64xf32> to vector<8x1x16x64xf32>
    %37 = vector.broadcast %35 : vector<8x8x16x1xf32> to vector<8x8x16x64xf32>
    %38 = vector.broadcast %36 : vector<8x1x16x64xf32> to vector<8x8x16x64xf32>
    %39 = arith.mulf %37, %38 : vector<8x8x16x64xf32>
    %cst_16 = arith.constant dense<0.000000e+00> : vector<8x8x64xf32>
    %40 = vector.multi_reduction <add>, %39, %cst_16 [2] : vector<8x8x16x64xf32> to vector<8x8x64xf32>
    %c0_17 = arith.constant 0 : index
    %c0_18 = arith.constant 0 : index
    %41 = vector.load %arg1[%c0_17, %c0_18] : memref<32x128xf32, #tpu.memory_space<vmem>>, vector<32x128xf32>
    %c0_19 = arith.constant 0 : index
    %c0_20 = arith.constant 0 : index
    %42 = vector.load %arg6[%c0_19, %c0_20] : memref<128x64xbf16, #tpu.memory_space<vmem>>, vector<128x64xbf16>
    %43 = arith.truncf %41 : vector<32x128xf32> to vector<32x128xbf16>
    %cst_21 = arith.constant dense<0.000000e+00> : vector<32x64xf32>
    %44 = tpu.matmul %43, %42, %cst_21 {dimension_numbers = #tpu.dot_dimension_numbers<[1], [0], [0], [1], [0, 0, 1, 1], [], []>} : vector<32x128xbf16>, vector<128x64xbf16>, vector<32x64xf32> -> vector<32x64xf32>
    %c0_22 = arith.constant 0 : index
    %c0_23 = arith.constant 0 : index
    %45 = vector.load %arg7[%c0_22, %c0_23] : memref<1x64xf32, #tpu.memory_space<vmem>>, vector<1x64xf32>
    %46 = vector.broadcast %45 : vector<1x64xf32> to vector<32x64xf32>
    %47 = arith.addf %44, %46 : vector<32x64xf32>
    %48 = vector.shape_cast %47 : vector<32x64xf32> to vector<8x4x64xf32>
    %49 = vector.shape_cast %48 : vector<8x4x64xf32> to vector<32x64xf32>
    %c0_24 = arith.constant 0 : index
    %c0_25 = arith.constant 0 : index
    %50 = vector.load %arg9[%c0_24, %c0_25] : memref<64x32xbf16, #tpu.memory_space<vmem>>, vector<64x32xbf16>
    %51 = arith.truncf %49 : vector<32x64xf32> to vector<32x64xbf16>
    %cst_26 = arith.constant dense<0.000000e+00> : vector<32x32xf32>
    %52 = tpu.matmul %51, %50, %cst_26 {dimension_numbers = #tpu.dot_dimension_numbers<[1], [0], [0], [1], [0, 0, 1, 1], [], []>} : vector<32x64xbf16>, vector<64x32xbf16>, vector<32x32xf32> -> vector<32x32xf32>
    %53 = vector.shape_cast %52 : vector<32x32xf32> to vector<8x4x32xf32>
    %54 = vector.shape_cast %8 : vector<8x8x32xf32> to vector<8x8x1x32xf32>
    %55 = vector.shape_cast %53 : vector<8x4x32xf32> to vector<8x1x4x32xf32>
    %56 = vector.broadcast %54 : vector<8x8x1x32xf32> to vector<8x8x4x32xf32>
    %57 = vector.broadcast %55 : vector<8x1x4x32xf32> to vector<8x8x4x32xf32>
    %58 = arith.addf %56, %57 : vector<8x8x4x32xf32>
    %59 = math.tanh %58 : vector<8x8x4x32xf32>
    %60 = vector.shape_cast %1 : vector<1x32xf32> to vector<1x1x1x32xf32>
    %61 = vector.broadcast %60 : vector<1x1x1x32xf32> to vector<8x8x4x32xf32>
    %62 = arith.mulf %59, %61 : vector<8x8x4x32xf32>
    %cst_27 = arith.constant dense<0.000000e+00> : vector<8x8x4xf32>
    %63 = vector.multi_reduction <add>, %62, %cst_27 [3] : vector<8x8x4x32xf32> to vector<8x8x4xf32>
    %cst_28 = arith.constant dense<0xFF800000> : vector<8x8xf32>
    %64 = vector.multi_reduction <maximumf>, %63, %cst_28 [2] : vector<8x8x4xf32> to vector<8x8xf32>
    %65 = vector.shape_cast %64 : vector<8x8xf32> to vector<8x8x1xf32>
    %66 = vector.broadcast %65 : vector<8x8x1xf32> to vector<8x8x4xf32>
    %67 = arith.subf %63, %66 : vector<8x8x4xf32>
    %68 = math.exp %67 : vector<8x8x4xf32>
    %cst_29 = arith.constant dense<0.000000e+00> : vector<8x8xf32>
    %69 = vector.multi_reduction <add>, %68, %cst_29 [2] : vector<8x8x4xf32> to vector<8x8xf32>
    %70 = vector.shape_cast %69 : vector<8x8xf32> to vector<8x8x1xf32>
    %71 = tpu.reciprocal %70 {approx = true} : vector<8x8x1xf32> -> vector<8x8x1xf32>
    %72 = vector.broadcast %71 : vector<8x8x1xf32> to vector<8x8x4xf32>
    %73 = arith.mulf %68, %72 : vector<8x8x4xf32>
    %74 = vector.shape_cast %73 : vector<8x8x4xf32> to vector<8x8x4x1xf32>
    %75 = vector.shape_cast %48 : vector<8x4x64xf32> to vector<8x1x4x64xf32>
    %76 = vector.broadcast %74 : vector<8x8x4x1xf32> to vector<8x8x4x64xf32>
    %77 = vector.broadcast %75 : vector<8x1x4x64xf32> to vector<8x8x4x64xf32>
    %78 = arith.mulf %76, %77 : vector<8x8x4x64xf32>
    %cst_30 = arith.constant dense<0.000000e+00> : vector<8x8x64xf32>
    %79 = vector.multi_reduction <add>, %78, %cst_30 [2] : vector<8x8x4x64xf32> to vector<8x8x64xf32>
    %80 = vector.shape_cast %0 : vector<64x32xf32> to vector<8x8x32xf32>
    %81 = tpu.concatenate %40, %79, %80 in 2 : vector<8x8x64xf32>, vector<8x8x64xf32>, vector<8x8x32xf32> -> vector<8x8x160xf32>
    %82 = vector.shape_cast %81 : vector<8x8x160xf32> to vector<64x160xf32>
    %c0_31 = arith.constant 0 : index
    %c0_32 = arith.constant 0 : index
    %83 = vector.load %arg12[%c0_31, %c0_32] : memref<160x32xbf16, #tpu.memory_space<vmem>>, vector<160x32xbf16>
    %84 = arith.truncf %82 : vector<64x160xf32> to vector<64x160xbf16>
    %cst_33 = arith.constant dense<0.000000e+00> : vector<64x32xf32>
    %85 = tpu.matmul %84, %83, %cst_33 {dimension_numbers = #tpu.dot_dimension_numbers<[1], [0], [0], [1], [0, 0, 1, 1], [], []>} : vector<64x160xbf16>, vector<160x32xbf16>, vector<64x32xf32> -> vector<64x32xf32>
    %86 = vector.shape_cast %85 : vector<64x32xf32> to vector<8x8x32xf32>
    %c0_34 = arith.constant 0 : index
    %c0_35 = arith.constant 0 : index
    %87 = vector.load %arg4[%c0_34, %c0_35] : memref<8x32xf32, #tpu.memory_space<vmem>>, vector<8x32xf32>
    %88 = vector.shape_cast %87 : vector<8x32xf32> to vector<8x1x32xf32>
    %89 = vector.broadcast %88 : vector<8x1x32xf32> to vector<8x8x32xf32>
    %90 = arith.addf %89, %86 : vector<8x8x32xf32>
    %91 = math.tanh %90 : vector<8x8x32xf32>
    %c0_36 = arith.constant 0 : index
    %c0_37 = arith.constant 0 : index
    %92 = vector.load %arg13[%c0_36, %c0_37] : memref<1x32xf32, #tpu.memory_space<vmem>>, vector<1x32xf32>
    %93 = vector.shape_cast %92 : vector<1x32xf32> to vector<1x1x32xf32>
    %94 = vector.broadcast %93 : vector<1x1x32xf32> to vector<8x8x32xf32>
    %95 = arith.mulf %91, %94 : vector<8x8x32xf32>
    %cst_38 = arith.constant dense<0.000000e+00> : vector<8x8xf32>
    %96 = vector.multi_reduction <add>, %95, %cst_38 [2] : vector<8x8x32xf32> to vector<8x8xf32>
    %c0_39 = arith.constant 0 : index
    %c0_40 = arith.constant 0 : index
    %97 = vector.load %arg5[%c0_39, %c0_40] : memref<8x8xf32, #tpu.memory_space<vmem>>, vector<8x8xf32>
    %98 = arith.addf %96, %97 : vector<8x8xf32>
    %cst_41 = arith.constant dense<0xFF800000> : vector<8xf32>
    %99 = vector.multi_reduction <maximumf>, %98, %cst_41 [1] : vector<8x8xf32> to vector<8xf32>
    %100 = vector.shape_cast %99 : vector<8xf32> to vector<8x1xf32>
    %101 = vector.broadcast %100 : vector<8x1xf32> to vector<8x8xf32>
    %102 = arith.subf %98, %101 : vector<8x8xf32>
    %103 = math.exp %102 : vector<8x8xf32>
    %cst_42 = arith.constant dense<0.000000e+00> : vector<8xf32>
    %104 = vector.multi_reduction <add>, %103, %cst_42 [1] : vector<8x8xf32> to vector<8xf32>
    %105 = vector.shape_cast %104 : vector<8xf32> to vector<8x1xf32>
    %106 = tpu.reciprocal %105 {approx = true} : vector<8x1xf32> -> vector<8x1xf32>
    %107 = vector.broadcast %106 : vector<8x1xf32> to vector<8x8xf32>
    %108 = arith.mulf %103, %107 : vector<8x8xf32>
    %109 = vector.shape_cast %108 : vector<8x8xf32> to vector<8x8x1xf32>
    %110 = vector.broadcast %109 : vector<8x8x1xf32> to vector<8x8x160xf32>
    %111 = arith.mulf %110, %81 : vector<8x8x160xf32>
    %cst_43 = arith.constant dense<0.000000e+00> : vector<8x160xf32>
    %112 = vector.multi_reduction <add>, %111, %cst_43 [1] : vector<8x8x160xf32> to vector<8x160xf32>
    %c0_44 = arith.constant 0 : index
    %c0_45 = arith.constant 0 : index
    %113 = vector.load %arg14[%c0_44, %c0_45] : memref<8x160xf32, #tpu.memory_space<vmem>>, vector<8x160xf32>
    tpu.vector_store %arg14[%c0_44, %c0_45], %112 {strides = array<i32>} : memref<8x160xf32, #tpu.memory_space<vmem>>, vector<8x160xf32>,
    return
  }
  func.func @transform_0(%arg0: i32) -> (i32, i32) {
    %c0_i32 = arith.constant 0 : i32
    %c0_i32_0 = arith.constant 0 : i32
    return %arg0, %c0_i32 : i32, i32
  }
  func.func @transform_1(%arg0: i32) -> (i32, i32, i32) {
    %c0_i32 = arith.constant 0 : i32
    %c0_i32_0 = arith.constant 0 : i32
    %c0_i32_1 = arith.constant 0 : i32
    return %arg0, %c0_i32, %c0_i32_0 : i32, i32, i32
  }
  func.func @transform_2(%arg0: i32) -> (i32, i32) {
    %c0_i32 = arith.constant 0 : i32
    %c0_i32_0 = arith.constant 0 : i32
    return %arg0, %c0_i32 : i32, i32
  }
  func.func @transform_3(%arg0: i32) -> (i32, i32) {
    %c0_i32 = arith.constant 0 : i32
    %c0_i32_0 = arith.constant 0 : i32
    return %arg0, %c0_i32 : i32, i32
  }
  func.func @transform_4(%arg0: i32) -> (i32, i32) {
    %c0_i32 = arith.constant 0 : i32
    %c0_i32_0 = arith.constant 0 : i32
    return %arg0, %c0_i32 : i32, i32
  }
  func.func @transform_5(%arg0: i32) -> (i32, i32) {
    %c0_i32 = arith.constant 0 : i32
    %c0_i32_0 = arith.constant 0 : i32
    %c0_i32_1 = arith.constant 0 : i32
    return %c0_i32, %c0_i32_0 : i32, i32
  }
  func.func @transform_6(%arg0: i32) -> (i32, i32) {
    %c0_i32 = arith.constant 0 : i32
    %c0_i32_0 = arith.constant 0 : i32
    %c0_i32_1 = arith.constant 0 : i32
    return %c0_i32, %c0_i32_0 : i32, i32
  }
  func.func @transform_7(%arg0: i32) -> (i32, i32) {
    %c0_i32 = arith.constant 0 : i32
    %c0_i32_0 = arith.constant 0 : i32
    %c0_i32_1 = arith.constant 0 : i32
    return %c0_i32, %c0_i32_0 : i32, i32
  }
  func.func @transform_8(%arg0: i32) -> (i32, i32) {
    %c0_i32 = arith.constant 0 : i32
    %c0_i32_0 = arith.constant 0 : i32
    %c0_i32_1 = arith.constant 0 : i32
    return %c0_i32, %c0_i32_0 : i32, i32
  }
  func.func @transform_9(%arg0: i32) -> (i32, i32) {
    %c0_i32 = arith.constant 0 : i32
    %c0_i32_0 = arith.constant 0 : i32
    %c0_i32_1 = arith.constant 0 : i32
    return %c0_i32, %c0_i32_0 : i32, i32
  }
  func.func @transform_10(%arg0: i32) -> (i32, i32) {
    %c0_i32 = arith.constant 0 : i32
    %c0_i32_0 = arith.constant 0 : i32
    %c0_i32_1 = arith.constant 0 : i32
    return %c0_i32, %c0_i32_0 : i32, i32
  }
  func.func @transform_11(%arg0: i32) -> (i32, i32) {
    %c0_i32 = arith.constant 0 : i32
    %c0_i32_0 = arith.constant 0 : i32
    %c0_i32_1 = arith.constant 0 : i32
    return %c0_i32, %c0_i32_0 : i32, i32
  }
  func.func @transform_12(%arg0: i32) -> (i32, i32) {
    %c0_i32 = arith.constant 0 : i32
    %c0_i32_0 = arith.constant 0 : i32
    %c0_i32_1 = arith.constant 0 : i32
    return %c0_i32, %c0_i32_0 : i32, i32
  }
  func.func @transform_13(%arg0: i32) -> (i32, i32) {
    %c0_i32 = arith.constant 0 : i32
    %c0_i32_0 = arith.constant 0 : i32
    return %arg0, %c0_i32 : i32, i32
  }
}

</mosaic_0001>

<bundles_post_ra>
// kernel: tpu_custom_call.1
= control target key start
LH: loop header
LB: loop body
LE: loop exit
PB: predicated region body
PF: predicated region fallthrough
CT: control target
= control target key end

     0   :  { %s15955_s0 = inlined_call_operand.vmem [shape: f32[128,128], index: 0, kind: input, shape index: {}]   ;;  %s15956_s1 = inlined_call_operand.hbm [shape: f32[32,16,64], index: 1, kind: input, shape index: {}]   ;;  %s15957_s2 = inlined_call_operand.vmem [shape: f32[256,32], index: 2, kind: input, shape index: {}]   ;;  %s15958_s3 = inlined_call_operand.vmem [shape: f32[32,32], index: 3, kind: input, shape index: {}]   ;;  %s15959_s4 = inlined_call_operand.vmem [shape: f32[32,8], index: 4, kind: input, shape index: {}]   ;;  %s15960_s5 = inlined_call_operand.vmem [shape: bf16[128,64], index: 5, kind: input, shape index: {}]   ;;  %s15961_s6 = inlined_call_operand.vmem [shape: f32[1,64], index: 6, kind: input, shape index: {}]   ;;  %s15962_s7 = inlined_call_operand.vmem [shape: bf16[32,32], index: 7, kind: input, shape index: {}]   ;;  %s15963_s8 = inlined_call_operand.vmem [shape: bf16[64,32], index: 8, kind: input, shape index: {}]   ;;  %s15964_s9 = inlined_call_operand.vmem [shape: f32[1,32], index: 9, kind: input, shape index: {}]   ;;  %s15965_s10 = inlined_call_operand.vmem [shape: f32[1,32], index: 10, kind: input, shape index: {}]   ;;  %s15966_s11 = inlined_call_operand.vmem [shape: bf16[160,32], index: 11, kind: input, shape index: {}]   ;;  %s15967_s12 = inlined_call_operand.vmem [shape: f32[1,32], index: 12, kind: input, shape index: {}]   ;;  %s15968_s13 = inlined_call_operand.hbm [shape: f32[32,160], index: 13, kind: output, shape index: {}]  }
   0x1   :  { %16375 = sst [smem:[#allocation251_spill]] %s15968_s13 }
   0x2   :  { %18 = vsyncpa [#allocation3], 0 }
   0x3   :  { %20 = vsyncpa [#allocation3 + $0x1], 0 }
   0x4   :  { %21 = vsyncpa [#allocation4], 0 }
   0x5   :  { %23 = vsyncpa [#allocation4 + $0x1], 0  ;;  %s9919_s25 = smov 0   ;;  %s9921_s26 = smov 0  }
   0x6   :  { %s9923_s27 = smov 0   ;;  %s9925_s28 = smov 0  }
   0x7 LB: > { %16376 = sst [smem:[#allocation8_spill]] %s9831_s25  ;;  %s9940_s29 = sadd.s32 4294967295, %s9843_s28   ;;  %s9843_s28 = sphi %s9925_s28, %s17534_s28   ;;  %s9839_s27 = sphi %s9923_s27, %s17536_s27   ;;  %s9835_s26 = sphi %s9921_s26, %s17538_s26   ;;  %s9831_s25 = sphi %s9919_s25, %s17537_s25  }
   0x8   : > { %16377 = sst [smem:[#allocation9_spill]] %s9839_s27  ;;  %s8653_s30 = sadd.s32 4294967294, %s9843_s28  }
   0x9   : > { %s9944_s14 = sadd.s32 1, %s9843_s28   ;;  %s62_s15 = sadd.s32 1, %s9839_s27 }
   0xa   : > { %16378 = sst [smem:[#allocation10_spill]] %s9944_s14  ;;  %s59_s16 = ssub.s32 %s9843_s28, %s9944_s14 }
   0xb   : > { %p69_p0 = scmp.ne.s32.totalorder %s9839_s27, %s9835_s26  ;;  %p60_p1 = scmp.eq.s32.totalorder %s59_s16, 0 }
   0xc   : > { %p70_p2 = scmp.eq.s32.totalorder %s9843_s28, 0  ;;  %p75_p3 = scmp.ne.s32.totalorder %s9835_s26, %s9831_s25 }
   0xd   : > { %p76_p4 = scmp.eq.s32.totalorder %s9940_s29, 0  ;;  %p345_p7 = scmp.eq.s32.totalorder %s9940_s29, 3 }
   0xe   : > { %s9956_s17 = scalar_select %p60_p1, %s9839_s27, %s62_s15  }
   0xf   : > { %p9958_p5 = por %p70_p2, %p69_p0  ;;  %p9962_p6 = por %p76_p4, %p75_p3 }
  0x10   : > { %16379 = sst [smem:[#allocation11_spill]] %s9956_s17  ;;  %p351_p8 = scmp.eq.s32.totalorder %s8653_s30, 3 }
  0x11   : > { %p8831_p9 = scmp.lt.s32.totalorder %s9843_s28, 4  ;;  %p9968_p10 = por %p345_p7, %p69_p0 }
  0x12   : > { %p9972_p11 = por %p351_p8, %p75_p3  ;;  %s404_s22 = sand.u32 1, %s9839_s27  }
  0x13   : > { %s16382_s20 = scalar_select %p9968_p10, 1, 0 }
  0x14   : > { %s16384_s21 = scalar_select %p9972_p11, 1, 0 }
  0x15   : > { %16383 = sst [smem:[#allocation12_spill]] %s16382_s20  ;;  %s8789_s23 = sshll.u32 %s9843_s28, 7 }
  0x16   : > { %16385 = sst [smem:[#allocation13_spill]] %s16384_s21  ;;  %s8656_s24 = sshll.u32 %s404_s22, 7 }
  0x17   : > { %s414_s17 = scalar_lea.hbm %s15956_s1, %s8789_s23  ;;  %s408_s25 = scalar_lea.vmem [#allocation2], %s8656_s24 }
  0x18   : > { %s415_s14 = sshll.u32 %s414_s17, 4  ;;  %s417_s13 = sshll.u32 %s408_s25, 4  ;;  %s416_s14 = int_to_ptr.hbm [resolvable:$true] %s415_s14  ;;  %s418_s13 = int_to_ptr.vmem [resolvable:$true] %s417_s13 }
  0x19   : > { %p9983_p12 = pnand %p8831_p9, %p9958_p5  ;;  %p8660_p13 = scmp.ge.s32.totalorder %s9843_s28, 1 }
  0x1a   : > { %p448_p0 = scmp.lt.s32.totalorder %s9843_s28, 5  ;;  %s405_s27 = scalar_lea.sflag [#allocation3], %s404_s22 }
  0x1b   : > { %s9747_s21 = sshra.s32 %s416_s14, 4  ;;  %p9751_p2 = pneg %p9983_p12  ;;  %s9748_s21 = int_to_ptr.hbm [resolvable:$true] %s9747_s21 }
  0x1c   : > { %s9749_s20 = scalar_lea.hbm %s9748_s21, 128  ;;  %s9754_s18 = scalar_lea.hbm %s15956_s1, 512 }
  0x1d   : > { %p9750_p1 = scmp.ne.s32.totalorder %s9748_s21, %s9749_s20  ;;  %p9755_p5 = scmp.lt.s32.totalorder %s9748_s21, %s15956_s1 }
  0x1e   : > { %p9756_p7 = scmp.lt.s32.totalorder %s9754_s18, %s9749_s20 }
  0x1f   : > { %p9752_p3 = pnand %p9751_p2, %p9750_p1 }
  0x20   : > { %p9757_p8 = por %p9756_p7, %p9755_p5 }
  0x21   : > { %p9753_p4 = pneg %p9752_p3 }
  0x23   : > { %p9758_p9 = pnand %p9757_p8, %p9753_p4 }
  0x25   : > { %9761 = shalt.err (!%p9758_p9)
}
  0x26   : > { %s9845_s22 = smov 128   ;;  %s9846_s15 = smov 8  }
  0x27   : > { %8826 = dma.hbm_to_vmem [thread:$0]  (!%p9983_p12), %s416_s14, 2048, %s418_s13, %s405_s27, %s9845_s22, %s9845_s22, %s9846_s15  }
  0x28   : > { %p449_p1 = pnand %p8660_p13, %p448_p0 }
  0x2a   : > { %452 = sbr.rel (%p449_p1) target bundleno = 3773 (0xebd), region = 72 }
  0x2f   : > { %s10004_s16 = sand.u32 1, %s9835_s26  }
  0x30   : > { %s8661_s20 = sshll.u32 %s10004_s16, 7  ;;  %s455_s21 = scalar_lea.sflag [#allocation3], %s10004_s16 }
  0x31   : > { %s10008_s25 = scalar_lea.vmem [#allocation2], %s8661_s20 }
  0x32   : > { %9822 = dma.done.wait (%p9962_p6), %s455_s21, 2048  }
  0x33   : > { %9824 = vsyncadd (%p9962_p6), %s455_s21, 4294965248  ;;  %s8665_s13 = sshll.u32 %s9940_s29, 3  ;;  %v8791_v0 = vld [vmem:[%s15962_s7 + $0x8] sm:$0xff]  ;;  %v8795_v1 = vld [vmem:[%s15963_s8 + $0x18] sm:$0xff]  ;;  %vm575_vm0 = vcmask 261120   ;;  %s8663_s20 = sshll.u32 %s9940_s29, 2 }
  0x34   : > { %p528_p12 = scmp.lt.s32.totalorder %s8665_s13, 31  ;;  %v8803_v2 = vld [vmem:[%s15960_s5 + $0x38] sm:$0xff]  ;;  %594 = vmatpush.bf16.msra.mxu0 %v8791_v0  ;;  %v8790_v3 = vld [vmem:[%s15962_s7] sm:$0xff]  ;;  %8815 = vmatpush.bf16.msra.mxu1 %v8795_v1  ;;  %v8794_v5 = vld [vmem:[%s15963_s8 + $0x10] sm:$0xff]  ;;  %p521_p6 = scmp.lt.s32.totalorder %s8663_s20, 15  ;;  %vm673_vm1 = vcmask 523264  }
  0x35   : > { %5132 = vmatpush.bf16.msra.mxu2 %v8803_v2  ;;  %v8802_v6 = vld [vmem:[%s15960_s5 + $0x30] sm:$0xff]  ;;  %5163 = vmatpush.bf16.msra.mxu3 %v8795_v1  ;;  %v8793_v9 = vld [vmem:[%s15963_s8 + $0x8] sm:$0xff]  ;;  %v8792_v11 = vld [vmem:[%s15963_s8] sm:$0xff]  ;;  %vm1843_vm2 = vcmask 130112   ;;  %vm2034_vm3 = vcmask 1041409   ;;  %vm2036_vm4 = vcmask 1042434  }
  0x36   : > { %s17540_s13 = smov (!%p528_p12, %s8665_s13), 31  ;;  %v8801_v10 = vld [vmem:[%s15960_s5 + $0x28] sm:$0xff]  ;;  %v8800_v12 = vld [vmem:[%s15960_s5 + $0x20] sm:$0xff]  ;;  %v619_v13 = vld [vmem:[%s10008_s25 + $0x10] sm:$0xff]  ;;  %s17542_s20 = smov (!%p521_p6, %s8663_s20), 15  ;;  %vm2038_vm5 = vcmask 1043459  }
  0x37   : > { %s8666_s27 = sshll.u32 %s17540_s13, 3  ;;  %v620_v14 = vld [vmem:[%s10008_s25 + $0x18] sm:$0xff]  ;;  %v8798_v19 = vld [vmem:[%s15960_s5 + $0x10] sm:$0xff]  ;;  %s8664_s23 = sshll.u32 %s17542_s20, 3  ;;  %v8797_v21 = vld [vmem:[%s15960_s5 + $0x8] sm:$0xff]  ;;  %vm2040_vm6 = vcmask 1044484  }
  0x38   : > { %s10018_s17 = scalar_lea.vmem %s15957_s2, %s8666_s27  ;;  %595 = vmatpush.bf16.msra.mxu0 %v8790_v3  ;;  %8816 = vmatpush.bf16.msra.mxu1 %v8794_v5  ;;  %v642_v15 = vpack.c.bf16 %v620_v14, %v619_v13  ;;  %v8799_v16 = vld [vmem:[%s15960_s5 + $0x18] sm:$0xff]  ;;  %s524_s21 = scalar_lea.vmem %s15955_s0, %s8664_s23  ;;  %v8796_v22 = vld [vmem:[%s15960_s5] sm:$0xff]  ;;  %v622_v26 = vld [vmem:[%s10008_s25 + $0x28] sm:$0xff]  ;;  %vm2042_vm7 = vcmask 1045509   ;;  %vm2044_vm8 = vcmask 1046534   ;;  %vm2046_vm9 = vcmask 1047559  }
  0x39   : > { %v542_v4 = vld [vmem:[%s10018_s17] sm:$0xff]  ;;  %v543_v7 = vld [vmem:[%s10018_s17 + $0x8] sm:$0xff]  ;;  %5133 = vmatpush.bf16.msra.mxu2 %v8802_v6  ;;  %5164 = vmatpush.bf16.msra.mxu3 %v8794_v5  ;;  %v544_v17 = vld [vmem:[%s10018_s17 + $0x10] sm:$0xff]  ;;  %vm2105_vm10 = vcmask 130048   ;;  %vm5382_vm11 = vcmask 257024   ;;  %vm5767_vm12 = vcmask 31744  }
  0x3a   : > { %v10040_v8 = vpack.c.bf16 %v543_v7, %v542_v4  ;;  %v545_v18 = vld [vmem:[%s10018_s17 + $0x18] sm:$0xff]  ;;  %v5058_v23 = vld [vmem:[%s524_s21] sm:$0xff]  ;;  %v5059_v24 = vld [vmem:[%s524_s21 + $0x8] sm:$0xff]  ;;  %vm7132_vm13 = vcmask 519168   ;;  %s9848_s20 = smov 64   ;;  %p533_p13 = scmp.lt.s32.totalorder %s9940_s29, 3 }
  0x3b   : > { %v10068_v20 = vpack.c.bf16 %v545_v18, %v544_v17  ;;  %v621_v25 = vld [vmem:[%s10008_s25 + $0x20] sm:$0xff]  ;;  %v5078_v27 = vpack.c.bf16 %v5059_v24, %v5058_v23  ;;  %v547_v30 = vld [vmem:[%s10018_s17 + $0x28] sm:$0xff]  ;;  %v5060_v32 = vld [vmem:[%s524_s21 + $0x10] sm:$0xff]  ;;  %vm8202_vm14 = vcmask 64512   ;;  %s8814_s19 = sshll.u32 %s9940_s29, 4  ;;  %s8519_s18 = scalar_lea.sflag [#allocation4], %s10004_s16 }
  0x3c   : > { %16387 = vst [vmem:[#allocation14_spill] sm:$0xff] %v10040_v8  ;;  %702 = vmatpush.bf16.msrb.mxu0 %v8795_v1  ;;  %8817 = vmatpush.bf16.msra.mxu1 %v8793_v9  ;;  %v643_v28 = vpack.c.bf16 %v622_v26, %v621_v25  ;;  %v546_v29 = vld [vmem:[%s10018_s17 + $0x20] sm:$0xff]  ;;  %v5061_v33 = vld [vmem:[%s524_s21 + $0x18] sm:$0xff]  ;;  %v623_v34 = vld [vmem:[%s10008_s25 + $0x30] sm:$0xff] }
  0x3d   : > { %8677 = vmatmul.msk.bf16.vlgmr.msra.gmra.mxu0 %vm575_vm0, %v10040_v8  ;;  %5134 = vmatpush.bf16.msra.mxu2 %v8801_v10  ;;  %16388 = vst [vmem:[#allocation15_spill] sm:$0xff] %v10068_v20  ;;  %v10086_v31 = vpack.c.bf16 %v547_v30, %v546_v29  ;;  %v624_v35 = vld [vmem:[%s10008_s25 + $0x38] sm:$0xff]  ;;  %v5079_v36 = vpack.c.bf16 %v5061_v33, %v5060_v32  ;;  %v548_v38 = vld [vmem:[%s10018_s17 + $0x30] sm:$0xff]  ;;  %v625_v41 = vld [vmem:[%s10008_s25 + $0x40] sm:$0xff] }
  0x3e   : > { %5165 = vmatpush.bf16.msra.mxu3 %v8793_v9  ;;  %v644_v37 = vpack.c.bf16 %v624_v35, %v623_v34  ;;  %v549_v39 = vld [vmem:[%s10018_s17 + $0x38] sm:$0xff]  ;;  %v626_v42 = vld [vmem:[%s10008_s25 + $0x48] sm:$0xff]  ;;  %v617_v44 = vld [vmem:[%s10008_s25] sm:$0xff] }
  0x3f   : > { %16389 = vst [vmem:[#allocation16_spill] sm:$0xff] %v10086_v31  ;;  %v10095_v40 = vpack.c.bf16 %v549_v39, %v548_v38  ;;  %v645_v43 = vpack.c.bf16 %v626_v42, %v625_v41  ;;  %v618_v45 = vld [vmem:[%s10008_s25 + $0x8] sm:$0xff]  ;;  %v627_v47 = vld [vmem:[%s10008_s25 + $0x50] sm:$0xff]  ;;  %v628_v48 = vld [vmem:[%s10008_s25 + $0x58] sm:$0xff] }
  0x40   : > { %703 = vmatpush.bf16.msrb.mxu0 %v8794_v5  ;;  %8818 = vmatpush.bf16.msra.mxu1 %v8792_v11  ;;  %v641_v46 = vpack.c.bf16 %v618_v45, %v617_v44  ;;  %v646_v49 = vpack.c.bf16 %v628_v48, %v627_v47  ;;  %v629_v50 = vld [vmem:[%s10008_s25 + $0x60] sm:$0xff]  ;;  %v630_v51 = vld [vmem:[%s10008_s25 + $0x68] sm:$0xff]  ;;  %v631_v53 = vld [vmem:[%s10008_s25 + $0x70] sm:$0xff] }
  0x41   : > { %5135 = vmatpush.bf16.msra.mxu2 %v8800_v12  ;;  %16390 = vst [vmem:[#allocation17_spill] sm:$0xff] %v10095_v40  ;;  %v647_v52 = vpack.c.bf16 %v630_v51, %v629_v50  ;;  %v632_v54 = vld [vmem:[%s10008_s25 + $0x78] sm:$0xff]  ;;  %v10117_v56 = vld [vmem:[%s15964_s9] ss:$0 sm:$0xff] }
  0x42   : > { %5166 = vmatpush.bf16.msra.mxu3 %v8792_v11  ;;  %v648_v55 = vpack.c.bf16 %v632_v54, %v631_v53  ;;  %v10143_v17 = vld [vmem:[%s15965_s10] ss:$0 sm:$0xff] }
  0x43   : > { %8698 = vmatmul.msk.bf16.vlgmr.msra.gmra.mxu1 %vm673_vm1, %v642_v15  ;;  %v10177_v51 = vld [vmem:[%s15961_s6] ss:$0 sm:$0xff] }
  0x44   : > { %704 = vmatpush.bf16.msrb.mxu0 %v8793_v9 }
  0x45   : > { %5136 = vmatpush.bf16.msra.mxu2 %v8799_v16 }
  0x48   : > { %705 = vmatpush.bf16.msrb.mxu0 %v8792_v11 }
  0x49   : > { %5137 = vmatpush.bf16.msra.mxu2 %v8798_v19 }
  0x4d   : > { %8678 = vmatmul.msk.bf16.gmra.mxu0 %vm575_vm0, %v10068_v20  ;;  %5138 = vmatpush.bf16.msra.mxu2 %v8797_v21 }
  0x51   : > { %5139 = vmatpush.bf16.msra.mxu2 %v8796_v22 }
  0x53   : > { %8699 = vmatmul.msk.bf16.gmra.mxu1 %vm673_vm1, %v643_v28 }
  0x54   : > { %5140 = vmatmul.bf16.vlgmr.msra.gmra.mxu2 %v5078_v27 }
  0x5d   : > { %8679 = vmatmul.msk.bf16.gmra.mxu0 %vm575_vm0, %v10086_v31 }
  0x63   : > { %8700 = vmatmul.msk.bf16.gmra.mxu1 %vm673_vm1, %v644_v37 }
  0x64   : > { %5145 = vmatmul.bf16.gmra.mxu2 %v5079_v36 }
  0x6d   : > { %8680 = vmatmul.msk.bf16.gmra.mxu0 %vm575_vm0, %v10095_v40 }
  0x73   : > { %8701 = vmatmul.msk.bf16.gmra.mxu1 %vm673_vm1, %v645_v43 }
  0x7d   : > { %8697 = vmatmul.msk.bf16.vlgmr.msrb.gmra.mxu0 %vm673_vm1, %v641_v46 }
  0x83   : > { %8702 = vmatmul.msk.bf16.gmra.mxu1 %vm673_vm1, %v646_v49 }
  0x93   : > { %8703 = vmatmul.msk.bf16.gmra.mxu1 %vm673_vm1, %v647_v52 }
  0xa3   : > { %8704 = vmatmul.msk.bf16.gmra.mxu1 %vm673_vm1, %v648_v55 }
  0xba   : > { %v597_v57 = vpop.f32.mrf.mxu0 }
  0xbb   : > { %v10120_v58 = vadd.f32 %v10117_v56, %v597_v57 }
  0xc0   : > { %v712_v1 = vpop.f32.mrf.mxu1 }
  0xc2   : > { %v599_v59 = vpop.f32.mrf.mxu0 }
  0xc3   : > { %v600_v60 = vadd.f32 %v10117_v56, %v599_v59 }
  0xc5   : > { %v10123_v61 = vperm.slane %v600_v60, 0  ;;  %v763_v62 = vrot.slane %v600_v60, 2  ;;  %v762_v63 = vrot.slane %v600_v60, 1  ;;  %v764_v0 = vrot.slane %v600_v60, 3 }
  0xc6   : > { %v766_v2 = vrot.slane %v600_v60, 5  ;;  %v765_v3 = vrot.slane %v600_v60, 4  ;;  %v767_v11 = vrot.slane %v600_v60, 6  ;;  %v768_v19 = vrot.slane %v600_v60, 7 }
  0xc7   : > { %16391 = vst [vmem:[#allocation18_spill] sm:$0xff] %v10123_v61  ;;  %v955_v4 = vadd.f32 %v10123_v61, %v712_v1  ;;  %v10126_v5 = vperm.slane %v763_v62, 0  ;;  %v10128_v6 = vperm.slane %v762_v63, 0  ;;  %v10130_v7 = vperm.slane %v764_v0, 0 }
  0xc8   : > { %v10132_v9 = vperm.slane %v766_v2, 0  ;;  %v10134_v10 = vperm.slane %v765_v3, 0  ;;  %v10146_v21 = vperm.slane %v767_v11, 0  ;;  %v10148_v23 = vpop.f32.mrf.mxu1  ;;  %v10151_v25 = vperm.slane %v768_v19, 0 }
  0xc9   : > { %16392 = vst [vmem:[#allocation19_spill] sm:$0xff] %v10126_v5  ;;  %8882 = vtanh.f32 %v955_v4  ;;  %v959_v12 = vadd.f32 %v10126_v5, %v712_v1  ;;  %v957_v13 = vadd.f32 %v10128_v6, %v712_v1  ;;  %v961_v14 = vadd.f32 %v10130_v7, %v712_v1 }
  0xca   : > { %16393 = vst [vmem:[#allocation20_spill] sm:$0xff] %v10128_v6  ;;  %v602_v15 = vpop.f32.mrf.mxu0  ;;  %v965_v16 = vadd.f32 %v10132_v9, %v712_v1  ;;  %v963_v18 = vadd.f32 %v10134_v10, %v712_v1  ;;  %v967_v27 = vadd.f32 %v10146_v21, %v712_v1  ;;  %v956_v35 = vadd.f32 %v10123_v61, %v10148_v23 }
  0xcb   : > { %16394 = vst [vmem:[#allocation21_spill] sm:$0xff] %v10130_v7  ;;  %8884 = vtanh.f32 %v959_v12  ;;  %v969_v37 = vadd.f32 %v10151_v25, %v712_v1  ;;  %v958_v46 = vadd.f32 %v10128_v6, %v10148_v23  ;;  %v962_v50 = vadd.f32 %v10130_v7, %v10148_v23 }
  0xcc   : > { %16395 = vst [vmem:[#allocation22_spill] sm:$0xff] %v10132_v9  ;;  %8886 = vtanh.f32 %v957_v13  ;;  %v960_v53 = vadd.f32 %v10126_v5, %v10148_v23  ;;  %v10184_v59 = vadd.f32 %v10117_v56, %v602_v15  ;;  %v964_v2 = vadd.f32 %v10134_v10, %v10148_v23 }
  0xcd   : > { %16396 = vst [vmem:[#allocation23_spill] sm:$0xff] %v10134_v10  ;;  %8888 = vtanh.f32 %v961_v14  ;;  %v968_v15 = vadd.f32 %v10146_v21, %v10148_v23  ;;  %v966_v19 = vadd.f32 %v10132_v9, %v10148_v23 }
  0xce   : > { %16397 = vst [vmem:[#allocation24_spill] sm:$0xff] %v10146_v21  ;;  %8890 = vtanh.f32 %v965_v16  ;;  %v770_v12 = vrot.slane %v10184_v59, 2 }
  0xcf   : > { %v8883_v22 = vpop.eup %8882  ;;  %8892 = vtanh.f32 %v963_v18  ;;  %16398 = vst [vmem:[#allocation25_spill] sm:$0xff] %v10151_v25 }
  0xd0   : > { %v1214_v24 = vmul.f32 %v8883_v22, %v10143_v17  ;;  %8894 = vtanh.f32 %v967_v27 }
  0xd1   : > { %v8885_v26 = vpop.eup %8884  ;;  %8896 = vtanh.f32 %v956_v35 }
  0xd2   : > { %v8887_v28 = vpop.eup %8886  ;;  %v10154_v29 = vpop.f32.mrf.mxu0  ;;  %v1374_v30 = vsel %vm575_vm0, %v1214_v24, 0.0  ;;  %v1218_v32 = vmul.f32 %v8885_v26, %v10143_v17  ;;  %8898 = vtanh.f32 %v969_v37  ;;  %v769_v37 = vrot.slane %v10184_v59, 1 }
  0xd3   : > { %v8889_v33 = vpop.eup %8888  ;;  %1375 = vadd.xlane.f32.xlu1 %v1374_v30  ;;  %v1216_v34 = vmul.f32 %v8887_v28, %v10143_v17  ;;  %8900 = vtanh.f32 %v958_v46  ;;  %v10212_v28 = vperm.slane %v770_v12, 0  ;;  %v10215_v30 = vperm.slane %v10184_v59, 0 }
  0xd4   : > { %v1386_v36 = vsel %vm575_vm0, %v1218_v32, 0.0  ;;  %v8891_v38 = vpop.eup %8890  ;;  %v1220_v42 = vmul.f32 %v8889_v33, %v10143_v17  ;;  %8902 = vtanh.f32 %v962_v50  ;;  %v10218_v33 = vpop.f32.mrf.mxu1  ;;  %v773_v46 = vrot.slane %v10184_v59, 5 }
  0xd5   : > { %1387 = vadd.xlane.f32.xlu2 %v1386_v36  ;;  %v1380_v39 = vsel %vm575_vm0, %v1216_v34, 0.0  ;;  %v8893_v41 = vpop.eup %8892  ;;  %v1224_v43 = vmul.f32 %v8891_v38, %v10143_v17  ;;  %8904 = vtanh.f32 %v960_v53  ;;  %16401 = vst [vmem:[#allocation28_spill] sm:$0xff] %v10212_v28  ;;  %v970_v36 = vadd.f32 %v10151_v25, %v10148_v23 }
  0xd6   : > { %1381 = vadd.xlane.f32.xlu0 %v1380_v39  ;;  %v1222_v45 = vmul.f32 %v8893_v41, %v10143_v17  ;;  %v1392_v48 = vsel %vm575_vm0, %v1220_v42, 0.0  ;;  %v8895_v49 = vpop.eup %8894  ;;  %8906 = vtanh.f32 %v964_v2  ;;  %16402 = vst [vmem:[#allocation29_spill] sm:$0xff] %v10215_v30  ;;  %v975_v41 = vadd.f32 %v10212_v28, %v10218_v33 }
  0xd7   : > { %v5141_v44 = vpop.f32.mrf.mxu2  ;;  %v1404_v52 = vsel %vm575_vm0, %v1224_v43, 0.0  ;;  %v8897_v54 = vpop.eup %8896  ;;  %v1226_v60 = vmul.f32 %v8895_v49, %v10143_v17  ;;  %8908 = vtanh.f32 %v968_v15  ;;  %v10236_v50 = vperm.slane %v769_v37, 0 }
  0xd8   : > { %v1398_v55 = vsel %vm575_vm0, %v1222_v45, 0.0  ;;  %v8899_v57 = vpop.eup %8898  ;;  %v10188_v62 = vadd.f32 %v10177_v51, %v5141_v44  ;;  %v1215_v63 = vmul.f32 %v8897_v54, %v10143_v17  ;;  %8910 = vtanh.f32 %v966_v19 }
  0xd9   : > { %v1228_v1 = vmul.f32 %v8899_v57, %v10143_v17  ;;  %v1410_v11 = vsel %vm575_vm0, %v1226_v60, 0.0  ;;  %v8901_v13 = vpop.eup %8900  ;;  %v971_v44 = vadd.f32 %v10215_v30, %v10218_v33  ;;  %v771_v45 = vrot.slane %v10184_v59, 3  ;;  %16403 = vst [vmem:[#allocation30_spill] sm:$0xff] %v10236_v50 }
  0xda   : > { %v10169_v47 = vpop.f32.mrf.mxu0  ;;  %16399 = vst [vmem:[#allocation26_spill] sm:$0xff] %v10188_v62  ;;  %v1377_v18 = vsel %vm575_vm0, %v1215_v63, 0.0  ;;  %v8903_v22 = vpop.eup %8902  ;;  %v1217_v27 = vmul.f32 %v8901_v13, %v10143_v17  ;;  %8912 = vtanh.f32 %v970_v36  ;;  %v10245_v60 = vperm.slane %v773_v46, 0 }
  0xdb   : > { %1393 = vadd.xlane.f32.xlu1 %v1392_v48  ;;  %v1416_v24 = vsel %vm575_vm0, %v1228_v1, 0.0  ;;  %v8905_v26 = vpop.eup %8904  ;;  %v1221_v32 = vmul.f32 %v8903_v22, %v10143_v17  ;;  %8914 = vtanh.f32 %v975_v41  ;;  %v10239_v54 = vperm.slane %v771_v45, 0 }
  0xdc   : > { %v1219_v35 = vmul.f32 %v8905_v26, %v10143_v17  ;;  %v1383_v39 = vsel %vm575_vm0, %v1217_v27, 0.0  ;;  %v8907_v42 = vpop.eup %8906  ;;  %8916 = vtanh.f32 %v971_v44  ;;  %16406 = vst [vmem:[#allocation33_spill] sm:$0xff] %v10245_v60  ;;  %v973_v1 = vadd.f32 %v10236_v50, %v10218_v33  ;;  %v719_v44 = vpop.f32.mrf.mxu1 }
  0xdd   : > { %1405 = vadd.xlane.f32.xlu2 %v1404_v52  ;;  %v1395_v23 = vsel %vm575_vm0, %v1221_v32, 0.0  ;;  %v8909_v48 = vpop.eup %8908  ;;  %v1223_v53 = vmul.f32 %v8907_v42, %v10143_v17  ;;  %16404 = vst [vmem:[#allocation31_spill] sm:$0xff] %v10239_v54  ;;  %v772_v2 = vrot.slane %v10184_v59, 4 }
  0xde   : > { %1399 = vadd.xlane.f32.xlu0 %v1398_v55  ;;  %v1389_v49 = vsel %vm575_vm0, %v1219_v35, 0.0  ;;  %v8911_v52 = vpop.eup %8910  ;;  %v1227_v57 = vmul.f32 %v8909_v48, %v10143_v17  ;;  %8918 = vtanh.f32 %v973_v1  ;;  %v972_v48 = vadd.f32 %v10215_v30, %v719_v44 }
  0xdf   : > { %v5143_v0 = vpop.f32.mrf.mxu2  ;;  %v1401_v12 = vsel %vm575_vm0, %v1223_v53, 0.0  ;;  %v10267_v32 = vperm.slane %v772_v2, 0 }
  0xe0   : > { %v10195_v3 = vadd.f32 %v10177_v51, %v5143_v0  ;;  %v1225_v0 = vmul.f32 %v8911_v52, %v10143_v17  ;;  %v8913_v13 = vpop.eup %8912 }
  0xe1   : > { %v8915_v19 = vpop.eup %8914  ;;  %16408 = vst [vmem:[#allocation35_spill] sm:$0xff] %v10267_v32 }
  0xe2   : > { %16400 = vst [vmem:[#allocation27_spill] sm:$0xff] %v10195_v3  ;;  %v609_v4 = vpop.f32.mrf.mxu0  ;;  %v5151_v16 = vpack.c.bf16 %v10195_v3, %v10188_v62  ;;  %v8917_v26 = vpop.eup %8916  ;;  %v1407_v27 = vsel %vm575_vm0, %v1225_v0, 0.0  ;;  %v1234_v35 = vmul.f32 %v8915_v19, %v10143_v17 }
  0xe3   : > { %v10200_v14 = vadd.f32 %v10117_v56, %v609_v4  ;;  %1411 = vadd.xlane.f32.xlu1 %v1410_v11  ;;  %v1230_v37 = vmul.f32 %v8917_v26, %v10143_v17 }
  0xe4   : > { %8737 = vmatmul.msk.bf16.vlgmr.msra.gmra.mxu3 %vm673_vm1, %v5151_v16  ;;  %v977_v16 = vadd.f32 %v10239_v54, %v10218_v33  ;;  %v8919_v42 = vpop.eup %8918  ;;  %v1434_v45 = vsel %vm575_vm0, %v1234_v35, 0.0  ;;  %v10304_v35 = vadd.f32 %v10117_v56, %v10154_v29 }
  0xe5   : > { %1378 = vadd.xlane.f32.xlu2 %v1377_v18  ;;  %v774_v18 = vrot.slane %v10184_v59, 6  ;;  %v1422_v46 = vsel %vm575_vm0, %v1230_v37, 0.0  ;;  %v1232_v53 = vmul.f32 %v8919_v42, %v10143_v17  ;;  %v791_v21 = vrot.slane %v10200_v14, 2 }
  0xe6   : > { %1417 = vadd.xlane.f32.xlu0 %v1416_v24  ;;  %v981_v24 = vadd.f32 %v10245_v60, %v10218_v33  ;;  %8920 = vtanh.f32 %v977_v16  ;;  %v10312_v29 = vperm.slane %v10304_v35, 0 }
  0xe7   : > { %v5146_v34 = vpop.f32.mrf.mxu2  ;;  %v10272_v36 = vperm.slane %v774_v18, 0  ;;  %v1428_v1 = vsel %vm575_vm0, %v1232_v53, 0.0 }
  0xe8   : > { %v10242_v55 = vadd.f32 %v10177_v51, %v5146_v34  ;;  %v1229_v34 = vmul.f32 %v8913_v13, %v10143_v17  ;;  %8922 = vtanh.f32 %v981_v24  ;;  %v978_v13 = vadd.f32 %v10239_v54, %v719_v44  ;;  %16411 = vst [vmem:[#allocation38_spill] sm:$0xff] %v10312_v29 }
  0xe9   : > { %16409 = vst [vmem:[#allocation36_spill] sm:$0xff] %v10272_v36  ;;  %v976_v24 = vadd.f32 %v10212_v28, %v719_v44 }
  0xea   : > { %v612_v38 = vpop.f32.mrf.mxu0  ;;  %16405 = vst [vmem:[#allocation32_spill] sm:$0xff] %v10242_v55  ;;  %v1419_v41 = vsel %vm575_vm0, %v1229_v34, 0.0  ;;  %v980_v34 = vadd.f32 %v10267_v32, %v719_v44 }
  0xeb   : > { %v10228_v43 = vadd.f32 %v10117_v56, %v612_v38  ;;  %1384 = vadd.xlane.f32.xlu1 %v1383_v39  ;;  %v979_v38 = vadd.f32 %v10267_v32, %v10218_v33  ;;  %v775_v39 = vrot.slane %v10184_v59, 7 }
  0xed   : > { %1396 = vadd.xlane.f32.xlu2 %v1395_v23  ;;  %v983_v23 = vadd.f32 %v10272_v36, %v10218_v33  ;;  %8924 = vtanh.f32 %v979_v38  ;;  %v10284_v52 = vperm.slane %v775_v39, 0  ;;  %v984_v38 = vadd.f32 %v10272_v36, %v719_v44 }
  0xee   : > { %1390 = vadd.xlane.f32.xlu0 %v1389_v49  ;;  %v8921_v49 = vpop.eup %8920 }
  0xef   : > { %v5148_v63 = vpop.f32.mrf.mxu2  ;;  %16410 = vst [vmem:[#allocation37_spill] sm:$0xff] %v10284_v52  ;;  %v8923_v59 = vpop.eup %8922  ;;  %8926 = vtanh.f32 %v983_v23  ;;  %v985_v0 = vadd.f32 %v10284_v52, %v10218_v33 }
  0xf0   : > { %v10252_v4 = vadd.f32 %v10177_v51, %v5148_v63  ;;  %v1413_v51 = vsel %vm575_vm0, %v1227_v57, 0.0  ;;  %v1236_v57 = vmul.f32 %v8921_v49, %v10143_v17  ;;  %8928 = vtanh.f32 %v972_v48 }
  0xf1   : > { %v1240_v63 = vmul.f32 %v8923_v59, %v10143_v17  ;;  %8930 = vtanh.f32 %v985_v0  ;;  %v982_v48 = vadd.f32 %v10245_v60, %v719_v44  ;;  %v777_v49 = vrot.slane %v10304_v35, 2 }
  0xf2   : > { %16407 = vst [vmem:[#allocation34_spill] sm:$0xff] %v10252_v4  ;;  %v614_v11 = vpop.f32.mrf.mxu0  ;;  %v5152_v22 = vpack.c.bf16 %v10252_v4, %v10242_v55  ;;  %v776_v0 = vrot.slane %v10304_v35, 1 }
  0xf3   : > { %v10256_v15 = vadd.f32 %v10117_v56, %v614_v11  ;;  %1402 = vadd.xlane.f32.xlu1 %v1401_v12  ;;  %v8925_v2 = vpop.eup %8924  ;;  %v974_v11 = vadd.f32 %v10236_v50, %v719_v44  ;;  %v1440_v12 = vsel %vm575_vm0, %v1236_v57, 0.0  ;;  %v1452_v18 = vsel %vm575_vm0, %v1240_v63, 0.0  ;;  %v10318_v57 = vpop.f32.mrf.mxu1 }
  0xf4   : > { %8738 = vmatmul.msk.bf16.gmra.mxu3 %vm673_vm1, %v5152_v22  ;;  %v1238_v22 = vmul.f32 %v8925_v2, %v10143_v17  ;;  %v986_v63 = vadd.f32 %v10284_v52, %v719_v44  ;;  %v987_v2 = vadd.f32 %v10312_v29, %v10318_v57 }
  0xf5   : > { %1414 = vadd.xlane.f32.xlu2 %v1413_v51  ;;  %v8927_v16 = vpop.eup %8926  ;;  %8932 = vtanh.f32 %v974_v11  ;;  %v778_v11 = vrot.slane %v10304_v35, 3 }
  0xf6   : > { %1408 = vadd.xlane.f32.xlu0 %v1407_v27  ;;  %v8929_v19 = vpop.eup %8928  ;;  %v1242_v33 = vmul.f32 %v8927_v16, %v10143_v17  ;;  %8934 = vtanh.f32 %v978_v13  ;;  %v1446_v26 = vsel %vm575_vm0, %v1238_v22, 0.0  ;;  %v10327_v16 = vperm.slane %v777_v49, 0 }
  0xf7   : > { %v1231_v51 = vmul.f32 %v8929_v19, %v10143_v17  ;;  %v8931_v27 = vpop.eup %8930  ;;  %8936 = vtanh.f32 %v976_v24  ;;  %v10330_v19 = vperm.slane %v776_v0, 0 }
  0xf8   : > { %v1458_v37 = vsel %vm575_vm0, %v1242_v33, 0.0  ;;  %8938 = vtanh.f32 %v980_v34  ;;  %16412 = vst [vmem:[#allocation39_spill] sm:$0xff] %v10327_v16  ;;  %v10333_v33 = vperm.slane %v778_v11, 0  ;;  %v991_v24 = vadd.f32 %v10327_v16, %v10318_v57 }
  0xf9   : > { %8940 = vtanh.f32 %v984_v38  ;;  %16413 = vst [vmem:[#allocation40_spill] sm:$0xff] %v10330_v19  ;;  %v779_v38 = vrot.slane %v10304_v35, 4 }
  0xfa   : > { %8942 = vtanh.f32 %v982_v48  ;;  %16414 = vst [vmem:[#allocation41_spill] sm:$0xff] %v10333_v33 }
  0xfb   : > { %1420 = vadd.xlane.f32.xlu1 %v1419_v41  ;;  %v8933_v39 = vpop.eup %8932  ;;  %v1425_v41 = vsel %vm575_vm0, %v1231_v51, 0.0  ;;  %8944 = vtanh.f32 %v986_v63 }
  0xfc   : > { %v8935_v42 = vpop.eup %8934  ;;  %v1233_v23 = vmul.f32 %v8933_v39, %v10143_v17  ;;  %8946 = vtanh.f32 %v987_v2 }
  0xfd   : > { %1423 = vadd.xlane.f32.xlu2 %v1422_v46  ;;  %v1237_v46 = vmul.f32 %v8935_v42, %v10143_v17  ;;  %v8937_v53 = vpop.eup %8936  ;;  %v781_v42 = vrot.slane %v10304_v35, 6  ;;  %8948 = vtanh.f32 %v991_v24 }
  0xfe   : > { %1435 = vadd.xlane.f32.xlu0 %v1434_v45  ;;  %v1244_v45 = vmul.f32 %v8931_v27, %v10143_v17  ;;  %v1235_v44 = vmul.f32 %v8937_v53, %v10143_v17 }
  0xff   : > { %v1443_v13 = vsel %vm575_vm0, %v1237_v46, 0.0  ;;  %v10354_v63 = vperm.slane %v781_v42, 0 }
 0x100   : > { %v1464_v59 = vsel %vm575_vm0, %v1244_v45, 0.0  ;;  %v1437_v27 = vsel %vm575_vm0, %v1235_v44, 0.0 }
 0x101   : > { %16417 = vst [vmem:[#allocation44_spill] sm:$0xff] %v10354_v63  ;;  %v999_v44 = vadd.f32 %v10354_v63, %v10318_v57 }
 0x103   : > { %1429 = vadd.xlane.f32.xlu1 %v1428_v1  ;;  %v1431_v1 = vsel %vm575_vm0, %v1233_v23, 0.0 }
 0x105   : > { %1441 = vadd.xlane.f32.xlu2 %v1440_v12  ;;  %v8939_v12 = vpop.eup %8938 }
 0x106   : > { %1453 = vadd.xlane.f32.xlu0 %v1452_v18  ;;  %v8941_v18 = vpop.eup %8940  ;;  %v1239_v22 = vmul.f32 %v8939_v12, %v10143_v17 }
 0x107   : > { %v1243_v51 = vmul.f32 %v8941_v18, %v10143_v17  ;;  %v8943_v34 = vpop.eup %8942 }
 0x108   : > { %v1449_v39 = vsel %vm575_vm0, %v1239_v22, 0.0  ;;  %v8945_v45 = vpop.eup %8944  ;;  %v1241_v49 = vmul.f32 %v8943_v34, %v10143_v17 }
 0x109   : > { %v1461_v23 = vsel %vm575_vm0, %v1243_v51, 0.0  ;;  %v8947_v48 = vpop.eup %8946  ;;  %v1245_v53 = vmul.f32 %v8945_v45, %v10143_v17 }
 0x10a   : > { %v1246_v0 = vmul.f32 %v8947_v48, %v10143_v17  ;;  %v1455_v2 = vsel %vm575_vm0, %v1241_v49, 0.0  ;;  %v8949_v11 = vpop.eup %8948 }
 0x10b   : > { %1447 = vadd.xlane.f32.xlu1 %v1446_v26  ;;  %v780_v26 = vrot.slane %v10304_v35, 5  ;;  %v1467_v18 = vsel %vm575_vm0, %v1245_v53, 0.0 }
 0x10c   : > { %v1470_v51 = vsel %vm575_vm0, %v1246_v0, 0.0 }
 0x10d   : > { %1459 = vadd.xlane.f32.xlu2 %v1458_v37  ;;  %v989_v37 = vadd.f32 %v10330_v19, %v10318_v57  ;;  %v10348_v46 = vperm.slane %v780_v26, 0  ;;  %v724_v26 = vpop.f32.mrf.mxu1 }
 0x10e   : > { %1426 = vadd.xlane.f32.xlu0 %v1425_v41  ;;  %v993_v41 = vadd.f32 %v10333_v33, %v10318_v57 }
 0x10f   : > { %16415 = vst [vmem:[#allocation42_spill] sm:$0xff] %v10348_v46  ;;  %8950 = vtanh.f32 %v989_v37 }
 0x110   : > { %8952 = vtanh.f32 %v993_v41 }
 0x113   : > { %1465 = vadd.xlane.f32.xlu1 %v1464_v59  ;;  %v10351_v59 = vperm.slane %v779_v38, 0  ;;  %v988_v38 = vadd.f32 %v10312_v29, %v724_v26 }
 0x115   : > { %1432 = vadd.xlane.f32.xlu2 %v1431_v1  ;;  %16416 = vst [vmem:[#allocation43_spill] sm:$0xff] %v10351_v59  ;;  %v997_v1 = vadd.f32 %v10348_v46, %v10318_v57  ;;  %v995_v12 = vadd.f32 %v10351_v59, %v10318_v57  ;;  %v8951_v22 = vpop.eup %8950 }
 0x116   : > { %1444 = vadd.xlane.f32.xlu0 %v1443_v13  ;;  %v782_v13 = vrot.slane %v10304_v35, 7  ;;  %v8953_v24 = vpop.eup %8952  ;;  %v1248_v35 = vmul.f32 %v8951_v22, %v10143_v17 }
 0x117   : > { %8954 = vtanh.f32 %v997_v1  ;;  %v1252_v37 = vmul.f32 %v8953_v24, %v10143_v17 }
 0x118   : > { %8956 = vtanh.f32 %v995_v12  ;;  %v10368_v34 = vperm.slane %v782_v13, 0  ;;  %v1476_v45 = vsel %vm575_vm0, %v1248_v35, 0.0  ;;  %v992_v13 = vadd.f32 %v10327_v16, %v724_v26 }
 0x119   : > { %8958 = vtanh.f32 %v999_v44  ;;  %v1488_v49 = vsel %vm575_vm0, %v1252_v37, 0.0  ;;  %v996_v44 = vadd.f32 %v10351_v59, %v724_v26  ;;  %v10391_v35 = vadd.f32 %v10117_v56, %v10169_v47 }
 0x11a   : > { %16418 = vst [vmem:[#allocation45_spill] sm:$0xff] %v10368_v34  ;;  %v1001_v42 = vadd.f32 %v10368_v34, %v10318_v57  ;;  %8960 = vtanh.f32 %v988_v38  ;;  %v994_v57 = vadd.f32 %v10333_v33, %v724_v26  ;;  %v1002_v56 = vadd.f32 %v10368_v34, %v724_v26 }
 0x11b   : > { %1438 = vadd.xlane.f32.xlu1 %v1437_v27  ;;  %v1250_v27 = vmul.f32 %v8949_v11, %v10143_v17  ;;  %v783_v47 = vrot.slane %v10391_v35, 1  ;;  %v757_v59 = vrot.slane %v10120_v58, 3 }
 0x11c   : > { %8962 = vtanh.f32 %v1001_v42 }
 0x11d   : > { %1450 = vadd.xlane.f32.xlu2 %v1449_v39  ;;  %v1482_v39 = vsel %vm575_vm0, %v1250_v27, 0.0  ;;  %v8955_v41 = vpop.eup %8954  ;;  %v10526_v54 = vperm.slane %v757_v59, 0 }
 0x11e   : > { %1462 = vadd.xlane.f32.xlu0 %v1461_v23  ;;  %v990_v23 = vadd.f32 %v10330_v19, %v724_v26  ;;  %v8957_v48 = vpop.eup %8956  ;;  %v1256_v0 = vmul.f32 %v8955_v41, %v10143_v17 }
 0x11f   : > { %v8959_v53 = vpop.eup %8958  ;;  %v1254_v1 = vmul.f32 %v8957_v48, %v10143_v17  ;;  %16441 = vst [vmem:[#allocation68_spill] sm:$0xff] %v10526_v54 }
 0x120   : > { %8964 = vtanh.f32 %v990_v23  ;;  %v1500_v11 = vsel %vm575_vm0, %v1256_v0, 0.0  ;;  %v8961_v12 = vpop.eup %8960  ;;  %v784_v23 = vrot.slane %v10391_v35, 2  ;;  %v10404_v0 = vperm.slane %v10391_v35, 0 }
 0x121   : > { %8966 = vtanh.f32 %v994_v57  ;;  %v1247_v27 = vmul.f32 %v8961_v12, %v10143_v17  ;;  %v10412_v12 = vperm.slane %v783_v47, 0 }
 0x122   : > { %v8963_v22 = vpop.eup %8962  ;;  %8968 = vtanh.f32 %v992_v13  ;;  %16419 = vst [vmem:[#allocation46_spill] sm:$0xff] %v10404_v0  ;;  %v10407_v57 = vperm.slane %v784_v23, 0 }
 0x123   : > { %1456 = vadd.xlane.f32.xlu1 %v1455_v2  ;;  %v1258_v2 = vmul.f32 %v8959_v53, %v10143_v17  ;;  %v1260_v37 = vmul.f32 %v8963_v22, %v10143_v17  ;;  %8970 = vtanh.f32 %v996_v44  ;;  %v1473_v41 = vsel %vm575_vm0, %v1247_v27, 0.0  ;;  %16421 = vst [vmem:[#allocation48_spill] sm:$0xff] %v10412_v12 }
 0x124   : > { %16420 = vst [vmem:[#allocation47_spill] sm:$0xff] %v10407_v57  ;;  %v785_v44 = vrot.slane %v10391_v35, 3  ;;  %v787_v27 = vrot.slane %v10391_v35, 5 }
 0x125   : > { %1468 = vadd.xlane.f32.xlu2 %v1467_v18  ;;  %v1494_v18 = vsel %vm575_vm0, %v1254_v1, 0.0  ;;  %v1512_v48 = vsel %vm575_vm0, %v1260_v37, 0.0 }
 0x126   : > { %1471 = vadd.xlane.f32.xlu0 %v1470_v51  ;;  %v1506_v51 = vsel %vm575_vm0, %v1258_v2, 0.0  ;;  %v8965_v24 = vpop.eup %8964  ;;  %v10432_v47 = vperm.slane %v787_v27, 0 }
 0x127   : > { %v1249_v38 = vmul.f32 %v8965_v24, %v10143_v17  ;;  %v8967_v42 = vpop.eup %8966 }
 0x128   : > { %v1253_v2 = vmul.f32 %v8967_v42, %v10143_v17  ;;  %16424 = vst [vmem:[#allocation51_spill] sm:$0xff] %v10432_v47 }
 0x129   : > { %v1479_v53 = vsel %vm575_vm0, %v1249_v38, 0.0 }
 0x12a   : > { %v1491_v22 = vsel %vm575_vm0, %v1253_v2, 0.0 }
 0x12b   : > { %1483 = vadd.xlane.f32.xlu1 %v1482_v39  ;;  %v1000_v39 = vadd.f32 %v10354_v63, %v724_v26 }
 0x12d   : > { %1477 = vadd.xlane.f32.xlu2 %v1476_v45  ;;  %v998_v45 = vadd.f32 %v10348_v46, %v724_v26  ;;  %8972 = vtanh.f32 %v1000_v39  ;;  %v786_v39 = vrot.slane %v10391_v35, 4 }
 0x12e   : > { %1489 = vadd.xlane.f32.xlu0 %v1488_v49  ;;  %v8969_v49 = vpop.eup %8968 }
 0x12f   : > { %v8971_v1 = vpop.eup %8970  ;;  %8974 = vtanh.f32 %v998_v45  ;;  %v1251_v26 = vmul.f32 %v8969_v49, %v10143_v17  ;;  %v10427_v45 = vperm.slane %v785_v44, 0 }
 0x130   : > { %8976 = vtanh.f32 %v1002_v56  ;;  %v1255_v13 = vmul.f32 %v8971_v1, %v10143_v17  ;;  %v10437_v1 = vperm.slane %v786_v39, 0 }
 0x131   : > { %v1485_v37 = vsel %vm575_vm0, %v1251_v26, 0.0  ;;  %16422 = vst [vmem:[#allocation49_spill] sm:$0xff] %v10427_v45 }
 0x132   : > { %v1497_v42 = vsel %vm575_vm0, %v1255_v13, 0.0  ;;  %16426 = vst [vmem:[#allocation53_spill] sm:$0xff] %v10437_v1 }
 0x133   : > { %1501 = vadd.xlane.f32.xlu1 %v1500_v11  ;;  %v10409_v11 = vpop.f32.mrf.mxu1 }
 0x134   : > { %v1007_v24 = vadd.f32 %v10407_v57, %v10409_v11  ;;  %v1005_v38 = vadd.f32 %v10412_v12, %v10409_v11  ;;  %v1009_v13 = vadd.f32 %v10427_v45, %v10409_v11  ;;  %v1011_v27 = vadd.f32 %v10437_v1, %v10409_v11 }
 0x135   : > { %1495 = vadd.xlane.f32.xlu2 %v1494_v18  ;;  %v1003_v18 = vadd.f32 %v10404_v0, %v10409_v11 }
 0x136   : > { %1507 = vadd.xlane.f32.xlu0 %v1506_v51  ;;  %v8973_v51 = vpop.eup %8972 }
 0x137   : > { %8978 = vtanh.f32 %v1003_v18  ;;  %v1259_v56 = vmul.f32 %v8973_v51, %v10143_v17  ;;  %v788_v18 = vrot.slane %v10391_v35, 6  ;;  %v1013_v51 = vadd.f32 %v10432_v47, %v10409_v11 }
 0x138   : > { %8980 = vtanh.f32 %v1007_v24 }
 0x139   : > { %8982 = vtanh.f32 %v1005_v38  ;;  %v1509_v44 = vsel %vm575_vm0, %v1259_v56, 0.0 }
 0x13a   : > { %8984 = vtanh.f32 %v1009_v13 }
 0x13b   : > { %1474 = vadd.xlane.f32.xlu1 %v1473_v41  ;;  %v8975_v41 = vpop.eup %8974  ;;  %8986 = vtanh.f32 %v1013_v51  ;;  %v729_v9 = vpop.f32.mrf.mxu1 }
 0x13c   : > { %v8977_v23 = vpop.eup %8976  ;;  %8988 = vtanh.f32 %v1011_v27  ;;  %v755_v27 = vrot.slane %v10120_v58, 1 }
 0x13d   : > { %1513 = vadd.xlane.f32.xlu2 %v1512_v48  ;;  %v1261_v26 = vmul.f32 %v8977_v23, %v10143_v17 }
 0x13e   : > { %1480 = vadd.xlane.f32.xlu0 %v1479_v53  ;;  %v1257_v53 = vmul.f32 %v8975_v41, %v10143_v17  ;;  %v10453_v41 = vperm.slane %v788_v18, 0  ;;  %v10485_v4 = vperm.slane %v755_v27, 0 }
 0x13f   : > { %v1515_v39 = vsel %vm575_vm0, %v1261_v26, 0.0 }
 0x140   : > { %v1503_v24 = vsel %vm575_vm0, %v1257_v53, 0.0  ;;  %16428 = vst [vmem:[#allocation55_spill] sm:$0xff] %v10453_v41 }
 0x141   : > { %16433 = vst [vmem:[#allocation60_spill] sm:$0xff] %v10485_v4 }
 0x143   : > { %1492 = vadd.xlane.f32.xlu1 %v1491_v22  ;;  %v8979_v22 = vpop.eup %8978 }
 0x144   : > { %v8981_v38 = vpop.eup %8980  ;;  %v1262_v53 = vmul.f32 %v8979_v22, %v10143_v17 }
 0x145   : > { %1486 = vadd.xlane.f32.xlu2 %v1485_v37  ;;  %v789_v37 = vrot.slane %v10391_v35, 7  ;;  %v8983_v23 = vpop.eup %8982  ;;  %v1266_v35 = vmul.f32 %v8981_v38, %v10143_v17 }
 0x146   : > { %1498 = vadd.xlane.f32.xlu0 %v1497_v42  ;;  %v10429_v48 = vpop.xlane.xlu1 %1375  ;;  %v756_v42 = vrot.slane %v10120_v58, 2  ;;  %v1264_v18 = vmul.f32 %v8983_v23, %v10143_v17  ;;  %v1518_v22 = vsel %vm575_vm0, %v1262_v53, 0.0  ;;  %v8985_v51 = vpop.eup %8984 }
 0x147   : > { %16423 = vst [vmem:[#allocation50_spill] sm:$0xff] %v10429_v48  ;;  %v10464_v26 = vperm.slane %v789_v37, 0  ;;  %v1530_v37 = vsel %vm575_vm0, %v1266_v35, 0.0  ;;  %v8987_v23 = vpop.eup %8986  ;;  %v1268_v8 = vmul.f32 %v8985_v51, %v10143_v17 }
 0x148   : > { %v10434_v49 = vpop.xlane.xlu2 %1387  ;;  %v1524_v20 = vsel %vm575_vm0, %v1264_v18, 0.0  ;;  %v8989_v53 = vpop.eup %8988 }
 0x149   : > { %16425 = vst [vmem:[#allocation52_spill] sm:$0xff] %v10434_v49  ;;  %v10439_v2 = vpop.xlane.xlu0 %1381  ;;  %v1017_v38 = vadd.f32 %v10464_v26, %v10409_v11  ;;  %v1270_v18 = vmul.f32 %v8989_v53, %v10143_v17  ;;  %v1536_v55 = vsel %vm575_vm0, %v1268_v8, 0.0  ;;  %v761_v8 = vrot.slane %v10120_v58, 7 }
 0x14a   : > { %16427 = vst [vmem:[#allocation54_spill] sm:$0xff] %v10439_v2 }
 0x14b   : > { %1510 = vadd.xlane.f32.xlu1 %v1509_v44  ;;  %v10459_v44 = vpop.f32.mrf.mxu0  ;;  %16430 = vst [vmem:[#allocation57_spill] sm:$0xff] %v10464_v26  ;;  %v10523_v36 = vperm.slane %v761_v8, 0 }
 0x14d   : > { %1504 = vadd.xlane.f32.xlu2 %v1503_v24  ;;  %v1015_v24 = vadd.f32 %v10453_v41, %v10409_v11  ;;  %v1272_v11 = vmul.f32 %v8987_v23, %v10143_v17  ;;  %16440 = vst [vmem:[#allocation67_spill] sm:$0xff] %v10523_v36 }
 0x14e   : > { %1516 = vadd.xlane.f32.xlu0 %v1515_v39  ;;  %v10456_v56 = vpop.xlane.xlu1 %1393  ;;  %v10471_v39 = vperm.slane %v756_v42, 0  ;;  %v758_v42 = vrot.slane %v10120_v58, 4 }
 0x14f   : > { %16429 = vst [vmem:[#allocation56_spill] sm:$0xff] %v10456_v56  ;;  %8990 = vtanh.f32 %v1015_v24  ;;  %v941_v24 = vadd.f32 %v10485_v4, %v10459_v44  ;;  %v1548_v23 = vsel %vm575_vm0, %v1272_v11, 0.0 }
 0x150   : > { %v10461_v40 = vpop.xlane.xlu2 %1405  ;;  %16432 = vst [vmem:[#allocation59_spill] sm:$0xff] %v10471_v39  ;;  %v943_v31 = vadd.f32 %v10471_v39, %v10459_v44 }
 0x151   : > { %v10466_v13 = vpop.xlane.xlu0 %1399 }
 0x152   : > { %16431 = vst [vmem:[#allocation58_spill] sm:$0xff] %v10466_v13  ;;  %8992 = vtanh.f32 %v943_v31  ;;  %v10499_v31 = vperm.slane %v10120_v58, 0 }
 0x153   : > { %1519 = vadd.xlane.f32.xlu1 %v1518_v22  ;;  %8994 = vtanh.f32 %v1017_v38  ;;  %v759_v38 = vrot.slane %v10120_v58, 5  ;;  %v10583_v32 = vpop.f32.mrf.mxu0 }
 0x154   : > { %16436 = vst [vmem:[#allocation63_spill] sm:$0xff] %v10499_v31  ;;  %v939_v53 = vadd.f32 %v10499_v31, %v10459_v44  ;;  %8996 = vtanh.f32 %v941_v24 }
 0x155   : > { %1531 = vadd.xlane.f32.xlu2 %v1530_v37  ;;  %v8991_v51 = vpop.eup %8990  ;;  %v10513_v11 = vperm.slane %v759_v38, 0  ;;  %v953_v38 = vadd.f32 %v10523_v36, %v10459_v44 }
 0x156   : > { %1525 = vadd.xlane.f32.xlu0 %v1524_v20  ;;  %v10482_v22 = vpop.xlane.xlu1 %1411  ;;  %v10495_v20 = vperm.slane %v758_v42, 0  ;;  %v1542_v42 = vsel %vm575_vm0, %v1270_v18, 0.0  ;;  %v1274_v34 = vmul.f32 %v8991_v51, %v10143_v17 }
 0x157   : > { %16438 = vst [vmem:[#allocation65_spill] sm:$0xff] %v10513_v11 }
 0x158   : > { %v10487_v35 = vpop.xlane.xlu2 %1378  ;;  %16435 = vst [vmem:[#allocation62_spill] sm:$0xff] %v10495_v20  ;;  %v947_v27 = vadd.f32 %v10495_v20, %v10459_v44  ;;  %v8993_v3 = vpop.eup %8992  ;;  %v1554_v51 = vsel %vm575_vm0, %v1274_v34, 0.0 }
 0x159   : > { %16434 = vst [vmem:[#allocation61_spill] sm:$0xff] %v10487_v35  ;;  %v10490_v37 = vpop.xlane.xlu0 %1417  ;;  %v8995_v62 = vpop.eup %8994 }
 0x15a   : > { %8998 = vtanh.f32 %v947_v27  ;;  %v1276_v24 = vmul.f32 %v8995_v62, %v10143_v17  ;;  %v8997_v27 = vpop.eup %8996 }
 0x15b   : > { %1537 = vadd.xlane.f32.xlu1 %v1536_v55  ;;  %9000 = vtanh.f32 %v939_v53  ;;  %v945_v53 = vadd.f32 %v10526_v54, %v10459_v44  ;;  %v1200_v59 = vmul.f32 %v8997_v27, %v10143_v17 }
 0x15c   : > { %v1560_v30 = vsel %vm575_vm0, %v1276_v24, 0.0 }
 0x15d   : > { %1549 = vadd.xlane.f32.xlu2 %v1548_v23  ;;  %v1202_v23 = vmul.f32 %v8993_v3, %v10143_v17 }
 0x15e   : > { %1543 = vadd.xlane.f32.xlu0 %v1542_v42  ;;  %v10509_v55 = vpop.xlane.xlu1 %1384  ;;  %v949_v42 = vadd.f32 %v10513_v11, %v10459_v44 }
 0x15f   : > { %16437 = vst [vmem:[#allocation64_spill] sm:$0xff] %v10509_v55  ;;  %v1338_v3 = vsel %vm575_vm0, %v1202_v23, 0.0 }
 0x160   : > { %v10515_v19 = vpop.xlane.xlu2 %1396  ;;  %v8999_v62 = vpop.eup %8998  ;;  %9002 = vtanh.f32 %v949_v42  ;;  %v1006_v42 = vadd.f32 %v10412_v12, %v729_v9 }
 0x161   : > { %v10518_v18 = vpop.xlane.xlu0 %1390  ;;  %v9001_v8 = vpop.eup %9000  ;;  %9004 = vtanh.f32 %v953_v38  ;;  %v1206_v23 = vmul.f32 %v8999_v62, %v10143_v17 }
 0x162   : > { %16439 = vst [vmem:[#allocation66_spill] sm:$0xff] %v10518_v18  ;;  %9006 = vtanh.f32 %v945_v53  ;;  %v1198_v24 = vmul.f32 %v9001_v8, %v10143_v17 }
 0x163   : > { %1555 = vadd.xlane.f32.xlu1 %v1554_v51  ;;  %v760_v51 = vrot.slane %v10120_v58, 6  ;;  %v1004_v58 = vadd.f32 %v10404_v0, %v729_v9  ;;  %v1350_v38 = vsel %vm575_vm0, %v1206_v23, 0.0  ;;  %9008 = vtanh.f32 %v1006_v42 }
 0x164   : > { %v1326_v16 = vsel %vm575_vm0, %v1198_v24, 0.0  ;;  %v1012_v24 = vadd.f32 %v10437_v1, %v729_v9 }
 0x165   : > { %1339 = vadd.xlane.f32.xlu2 %v1338_v3  ;;  %v10546_v3 = vperm.slane %v760_v51, 0  ;;  %9010 = vtanh.f32 %v1004_v58  ;;  %v1008_v58 = vadd.f32 %v10407_v57, %v729_v9 }
 0x166   : > { %1561 = vadd.xlane.f32.xlu0 %v1560_v30  ;;  %v10534_v34 = vpop.xlane.xlu1 %1402  ;;  %v1332_v30 = vsel %vm575_vm0, %v1200_v59, 0.0  ;;  %v9003_v27 = vpop.eup %9002 }
 0x167   : > { %16442 = vst [vmem:[#allocation69_spill] sm:$0xff] %v10546_v3  ;;  %v951_v62 = vadd.f32 %v10546_v3, %v10459_v44  ;;  %v9005_v53 = vpop.eup %9004  ;;  %v1208_v59 = vmul.f32 %v9003_v27, %v10143_v17 }
 0x168   : > { %v10538_v46 = vpop.xlane.xlu2 %1414  ;;  %v9007_v8 = vpop.eup %9006 }
 0x169   : > { %v10541_v5 = vpop.xlane.xlu0 %1408  ;;  %9012 = vtanh.f32 %v951_v62  ;;  %v1204_v44 = vmul.f32 %v9007_v8, %v10143_v17  ;;  %v1356_v42 = vsel %vm575_vm0, %v1208_v59, 0.0 }
 0x16a   : > { %9014 = vtanh.f32 %v1012_v24 }
 0x16b   : > { %1333 = vadd.xlane.f32.xlu1 %v1332_v30  ;;  %v1212_v30 = vmul.f32 %v9005_v53, %v10143_v17  ;;  %v1344_v53 = vsel %vm575_vm0, %v1204_v44, 0.0  ;;  %v1018_v44 = vadd.f32 %v10464_v26, %v729_v9 }
 0x16d   : > { %1351 = vadd.xlane.f32.xlu2 %v1350_v38  ;;  %v9009_v38 = vpop.eup %9008  ;;  %v1368_v27 = vsel %vm575_vm0, %v1212_v30, 0.0 }
 0x16e   : > { %1327 = vadd.xlane.f32.xlu0 %v1326_v16  ;;  %v10553_v52 = vpop.xlane.xlu1 %1420  ;;  %v1010_v16 = vadd.f32 %v10427_v45, %v729_v9  ;;  %v9011_v0 = vpop.eup %9010  ;;  %v1265_v1 = vmul.f32 %v9009_v38, %v10143_v17 }
 0x16f   : > { %v9013_v62 = vpop.eup %9012 }
 0x170   : > { %v10556_v51 = vpop.xlane.xlu2 %1423  ;;  %9016 = vtanh.f32 %v1010_v16  ;;  %v1210_v57 = vmul.f32 %v9013_v62, %v10143_v17  ;;  %v1527_v24 = vsel %vm575_vm0, %v1265_v1, 0.0  ;;  %v1014_v16 = vadd.f32 %v10432_v47, %v729_v9  ;;  %v10590_v1 = vld [vmem:[%s15965_s10] ss:$0 sm:$0xff] }
 0x171   : > { %v10559_v23 = vpop.xlane.xlu0 %1435  ;;  %9018 = vtanh.f32 %v1008_v58 }
 0x172   : > { %16443 = vst [vmem:[#allocation70_spill] sm:$0xff] %v10559_v23  ;;  %9020 = vtanh.f32 %v1018_v44 }
 0x173   : > { %1357 = vadd.xlane.f32.xlu1 %v1356_v42  ;;  %v1263_v42 = vmul.f32 %v9011_v0, %v10143_v17  ;;  %v1362_v0 = vsel %vm575_vm0, %v1210_v57, 0.0 }
 0x175   : > { %1369 = vadd.xlane.f32.xlu2 %v1368_v27  ;;  %v9015_v27 = vpop.eup %9014  ;;  %v1521_v38 = vsel %vm575_vm0, %v1263_v42, 0.0 }
 0x176   : > { %1345 = vadd.xlane.f32.xlu0 %v1344_v53  ;;  %v10568_v8 = vpop.xlane.xlu1 %1429  ;;  %v1016_v53 = vadd.f32 %v10453_v41, %v729_v9  ;;  %v9017_v45 = vpop.eup %9016  ;;  %v1271_v62 = vmul.f32 %v10590_v1, %v9015_v27  ;;  %v944_v27 = vadd.f32 %v10471_v39, %v10583_v32 }
 0x177   : > { %16444 = vst [vmem:[#allocation71_spill] sm:$0xff] %v10568_v8  ;;  %v9019_v58 = vpop.eup %9018  ;;  %v1269_v57 = vmul.f32 %v10590_v1, %v9017_v45  ;;  %v940_v45 = vadd.f32 %v10499_v31, %v10583_v32 }
 0x178   : > { %v10571_v59 = vpop.xlane.xlu2 %1441  ;;  %9022 = vtanh.f32 %v1016_v53  ;;  %v1267_v44 = vmul.f32 %v10590_v1, %v9019_v58 }
 0x179   : > { %16445 = vst [vmem:[#allocation72_spill] sm:$0xff] %v10571_v59  ;;  %v10574_v30 = vpop.xlane.xlu0 %1453  ;;  %9024 = vtanh.f32 %v1014_v16  ;;  %v1539_v53 = vsel %vm575_vm0, %v1269_v57, 0.0 }
 0x17a   : > { %16446 = vst [vmem:[#allocation73_spill] sm:$0xff] %v10574_v30  ;;  %v1533_v47 = vsel %vm575_vm0, %v1267_v44, 0.0  ;;  %v946_v44 = vadd.f32 %v10526_v54, %v10583_v32 }
 0x17b   : > { %1528 = vadd.xlane.f32.xlu1 %v1527_v24  ;;  %v942_v24 = vadd.f32 %v10485_v4, %v10583_v32 }
 0x17d   : > { %1522 = vadd.xlane.f32.xlu2 %v1521_v38  ;;  %v1545_v38 = vsel %vm575_vm0, %v1271_v62, 0.0  ;;  %9026 = vtanh.f32 %v942_v24 }
 0x17e   : > { %1363 = vadd.xlane.f32.xlu0 %v1362_v0  ;;  %v10585_v17 = vpop.xlane.xlu1 %1447  ;;  %v9021_v0 = vpop.eup %9020  ;;  %9028 = vtanh.f32 %v944_v27 }
 0x17f   : > { %16447 = vst [vmem:[#allocation74_spill] sm:$0xff] %v10585_v17  ;;  %v9023_v16 = vpop.eup %9022  ;;  %v1277_v62 = vmul.f32 %v10590_v1, %v9021_v0  ;;  %9030 = vtanh.f32 %v940_v45  ;;  %v950_v0 = vadd.f32 %v10513_v11, %v10583_v32 }
 0x180   : > { %v10593_v9 = vpop.xlane.xlu2 %1459  ;;  %v9025_v58 = vpop.eup %9024  ;;  %v1275_v26 = vmul.f32 %v10590_v1, %v9023_v16  ;;  %9032 = vtanh.f32 %v946_v44  ;;  %v952_v44 = vadd.f32 %v10546_v3, %v10583_v32 }
 0x181   : > { %16448 = vst [vmem:[#allocation75_spill] sm:$0xff] %v10593_v9  ;;  %v10596_v42 = vpop.xlane.xlu0 %1426  ;;  %v1273_v12 = vmul.f32 %v10590_v1, %v9025_v58  ;;  %v1563_v24 = vsel %vm575_vm0, %v1277_v62, 0.0  ;;  %9034 = vtanh.f32 %v950_v0 }
 0x182   : > { %16449 = vst [vmem:[#allocation76_spill] sm:$0xff] %v10596_v42  ;;  %v1557_v27 = vsel %vm575_vm0, %v1275_v26, 0.0 }
 0x183   : > { %1546 = vadd.xlane.f32.xlu1 %v1545_v38  ;;  %v1551_v16 = vsel %vm575_vm0, %v1273_v12, 0.0 }
 0x185   : > { %1540 = vadd.xlane.f32.xlu2 %v1539_v53  ;;  %v948_v53 = vadd.f32 %v10495_v20, %v10583_v32 }
 0x186   : > { %1534 = vadd.xlane.f32.xlu0 %v1533_v47  ;;  %v10608_v41 = vpop.xlane.xlu1 %1465  ;;  %v9027_v47 = vpop.eup %9026 }
 0x187   : > { %v9029_v45 = vpop.eup %9028  ;;  %v1201_v62 = vmul.f32 %v10590_v1, %v9027_v47  ;;  %9036 = vtanh.f32 %v948_v53  ;;  %v792_v53 = vrot.slane %v10200_v14, 3 }
 0x188   : > { %v10611_v38 = vpop.xlane.xlu2 %1432  ;;  %v9031_v58 = vpop.eup %9030  ;;  %v1203_v26 = vmul.f32 %v10590_v1, %v9029_v45  ;;  %9038 = vtanh.f32 %v952_v44 }
 0x189   : > { %16450 = vst [vmem:[#allocation77_spill] sm:$0xff] %v10611_v38  ;;  %v10614_v57 = vpop.xlane.xlu0 %1444  ;;  %v1199_v12 = vmul.f32 %v10590_v1, %v9031_v58  ;;  %v1335_v47 = vsel %vm575_vm0, %v1201_v62, 0.0  ;;  %v9033_v0 = vpop.eup %9032  ;;  %v954_v58 = vadd.f32 %v10523_v36, %v10583_v32  ;;  %v10662_v36 = vperm.slane %v791_v21, 0 }
 0x18a   : > { %16451 = vst [vmem:[#allocation78_spill] sm:$0xff] %v10614_v57  ;;  %v1341_v45 = vsel %vm575_vm0, %v1203_v26, 0.0  ;;  %v9035_v33 = vpop.eup %9034  ;;  %v1205_v61 = vmul.f32 %v10590_v1, %v9033_v0  ;;  %v10657_v26 = vperm.slane %v792_v53, 0 }
 0x18b   : > { %1564 = vadd.xlane.f32.xlu1 %v1563_v24  ;;  %v10630_v24 = vperm.slane %v10200_v14, 0  ;;  %v1329_v7 = vsel %vm575_vm0, %v1199_v12, 0.0  ;;  %v1209_v32 = vmul.f32 %v10590_v1, %v9035_v33  ;;  %16460 = vst [vmem:[#allocation87_spill] sm:$0xff] %v10662_v36 }
 0x18c   : > { %16458 = vst [vmem:[#allocation85_spill] sm:$0xff] %v10657_v26 }
 0x18d   : > { %1558 = vadd.xlane.f32.xlu2 %v1557_v27  ;;  %16453 = vst [vmem:[#allocation80_spill] sm:$0xff] %v10630_v24  ;;  %v790_v27 = vrot.slane %v10200_v14, 1  ;;  %v1359_v33 = vsel %vm575_vm0, %v1209_v32, 0.0 }
 0x18e   : > { %1552 = vadd.xlane.f32.xlu0 %v1551_v16  ;;  %v10626_v4 = vpop.xlane.xlu1 %1438  ;;  %v10641_v16 = vpop.f32.mrf.mxu1 }
 0x18f   : > { %16452 = vst [vmem:[#allocation79_spill] sm:$0xff] %v10626_v4  ;;  %v1019_v63 = vadd.f32 %v10630_v24, %v10641_v16  ;;  %v10652_v62 = vperm.slane %v790_v27, 0  ;;  %v793_v27 = vrot.slane %v10200_v14, 4  ;;  %v1025_v53 = vadd.f32 %v10657_v26, %v10641_v16 }
 0x190   : > { %v10632_v50 = vpop.xlane.xlu2 %1450  ;;  %v1023_v21 = vadd.f32 %v10662_v36, %v10641_v16 }
 0x191   : > { %16454 = vst [vmem:[#allocation81_spill] sm:$0xff] %v10632_v50  ;;  %v10635_v20 = vpop.xlane.xlu0 %1462  ;;  %9040 = vtanh.f32 %v1019_v63  ;;  %v1347_v63 = vsel %vm575_vm0, %v1205_v61, 0.0 }
 0x192   : > { %16455 = vst [vmem:[#allocation82_spill] sm:$0xff] %v10635_v20  ;;  %9042 = vtanh.f32 %v954_v58 }
 0x193   : > { %1336 = vadd.xlane.f32.xlu1 %v1335_v47  ;;  %16456 = vst [vmem:[#allocation83_spill] sm:$0xff] %v10652_v62  ;;  %v9037_v47 = vpop.eup %9036 }
 0x194   : > { %v1207_v44 = vmul.f32 %v10590_v1, %v9037_v47  ;;  %v9039_v0 = vpop.eup %9038  ;;  %v10677_v47 = vperm.slane %v793_v27, 0 }
 0x195   : > { %1342 = vadd.xlane.f32.xlu2 %v1341_v45 }
 0x196   : > { %1330 = vadd.xlane.f32.xlu0 %v1329_v7  ;;  %v10654_v29 = vpop.xlane.xlu1 %1456  ;;  %v1021_v7 = vadd.f32 %v10652_v62, %v10641_v16  ;;  %v1353_v58 = vsel %vm575_vm0, %v1207_v44, 0.0  ;;  %16462 = vst [vmem:[#allocation89_spill] sm:$0xff] %v10677_v47  ;;  %v10690_v27 = vpop.f32.mrf.mxu1 }
 0x197   : > { %16457 = vst [vmem:[#allocation84_spill] sm:$0xff] %v10654_v29  ;;  %v9041_v45 = vpop.eup %9040 }
 0x198   : > { %v10659_v60 = vpop.xlane.xlu2 %1468  ;;  %9044 = vtanh.f32 %v1021_v7  ;;  %v9043_v28 = vpop.eup %9042  ;;  %v1278_v32 = vmul.f32 %v10590_v1, %v9041_v45  ;;  %v1027_v7 = vadd.f32 %v10677_v47, %v10641_v16 }
 0x199   : > { %16459 = vst [vmem:[#allocation86_spill] sm:$0xff] %v10659_v60  ;;  %v10664_v12 = vpop.xlane.xlu0 %1471  ;;  %9046 = vtanh.f32 %v1025_v53  ;;  %v1213_v44 = vmul.f32 %v10590_v1, %v9043_v28 }
 0x19a   : > { %16461 = vst [vmem:[#allocation88_spill] sm:$0xff] %v10664_v12  ;;  %9048 = vtanh.f32 %v1023_v21  ;;  %v1566_v53 = vsel %vm575_vm0, %v1278_v32, 0.0  ;;  %v1020_v21 = vadd.f32 %v10630_v24, %v10690_v27 }
 0x19b   : > { %1348 = vadd.xlane.f32.xlu1 %v1347_v63  ;;  %v1211_v63 = vmul.f32 %v10590_v1, %v9039_v0  ;;  %v1022_v0 = vadd.f32 %v10652_v62, %v10690_v27  ;;  %v1371_v28 = vsel %vm575_vm0, %v1213_v44, 0.0  ;;  %9050 = vtanh.f32 %v1027_v7 }
 0x19c   : > { %v1024_v44 = vadd.f32 %v10662_v36, %v10690_v27  ;;  %v794_v7 = vrot.slane %v10200_v14, 5 }
 0x19d   : > { %1360 = vadd.xlane.f32.xlu2 %v1359_v33  ;;  %v1365_v33 = vsel %vm575_vm0, %v1211_v63, 0.0  ;;  %9052 = vtanh.f32 %v1022_v0  ;;  %v795_v0 = vrot.slane %v10200_v14, 6 }
 0x19e   : > { %1354 = vadd.xlane.f32.xlu0 %v1353_v58  ;;  %v10679_v61 = vpop.xlane.xlu1 %1483  ;;  %v9045_v58 = vpop.eup %9044  ;;  %9054 = vtanh.f32 %v1020_v21  ;;  %v10719_v36 = vperm.slane %v794_v7, 0 }
 0x19f   : > { %16463 = vst [vmem:[#allocation90_spill] sm:$0xff] %v10679_v61  ;;  %v9047_v45 = vpop.eup %9046  ;;  %v1280_v63 = vmul.f32 %v10590_v1, %v9045_v58  ;;  %v1028_v58 = vadd.f32 %v10677_v47, %v10690_v27  ;;  %9056 = vtanh.f32 %v1024_v44  ;;  %v10724_v3 = vperm.slane %v795_v0, 0  ;;  %v10744_v31 = vpop.f32.mrf.mxu1 }
 0x1a0   : > { %v10682_v11 = vpop.xlane.xlu2 %1477  ;;  %v9049_v25 = vpop.eup %9048  ;;  %v1284_v62 = vmul.f32 %v10590_v1, %v9047_v45  ;;  %v1026_v45 = vadd.f32 %v10657_v26, %v10690_v27  ;;  %16469 = vst [vmem:[#allocation96_spill] sm:$0xff] %v10719_v36  ;;  %v1030_v44 = vadd.f32 %v10719_v36, %v10690_v27 }
 0x1a1   : > { %16464 = vst [vmem:[#allocation91_spill] sm:$0xff] %v10682_v11  ;;  %v10685_v39 = vpop.xlane.xlu0 %1489  ;;  %v1282_v24 = vmul.f32 %v10590_v1, %v9049_v25  ;;  %9058 = vtanh.f32 %v1028_v58  ;;  %v1031_v58 = vadd.f32 %v10724_v3, %v10641_v16 }
 0x1a2   : > { %16465 = vst [vmem:[#allocation92_spill] sm:$0xff] %v10685_v39  ;;  %v1584_v21 = vsel %vm575_vm0, %v1284_v62, 0.0  ;;  %9060 = vtanh.f32 %v1026_v45 }
 0x1a3   : > { %1366 = vadd.xlane.f32.xlu1 %v1365_v33  ;;  %v1578_v6 = vsel %vm575_vm0, %v1282_v24, 0.0  ;;  %16471 = vst [vmem:[#allocation98_spill] sm:$0xff] %v10724_v3  ;;  %9062 = vtanh.f32 %v1030_v44 }
 0x1a4   : > { %9064 = vtanh.f32 %v1031_v58  ;;  %v797_v58 = vrot.slane %v10228_v43, 1 }
 0x1a5   : > { %1567 = vadd.xlane.f32.xlu2 %v1566_v53  ;;  %v1572_v53 = vsel %vm575_vm0, %v1280_v63, 0.0 }
 0x1a6   : > { %1372 = vadd.xlane.f32.xlu0 %v1371_v28  ;;  %v10699_v10 = vpop.xlane.xlu1 %1501  ;;  %v9051_v28 = vpop.eup %9050 }
 0x1a7   : > { %16466 = vst [vmem:[#allocation93_spill] sm:$0xff] %v10699_v10  ;;  %v9053_v25 = vpop.eup %9052  ;;  %v1286_v47 = vmul.f32 %v10590_v1, %v9051_v28 }
 0x1a8   : > { %v10702_v33 = vpop.xlane.xlu2 %1495  ;;  %v9055_v63 = vpop.eup %9054  ;;  %v1281_v26 = vmul.f32 %v10590_v1, %v9053_v25 }
 0x1a9   : > { %16467 = vst [vmem:[#allocation94_spill] sm:$0xff] %v10702_v33  ;;  %v10705_v32 = vpop.xlane.xlu0 %1507  ;;  %v1279_v24 = vmul.f32 %v10590_v1, %v9055_v63  ;;  %v1590_v7 = vsel %vm575_vm0, %v1286_v47, 0.0  ;;  %v9057_v28 = vpop.eup %9056 }
 0x1aa   : > { %16468 = vst [vmem:[#allocation95_spill] sm:$0xff] %v10705_v32  ;;  %v1575_v0 = vsel %vm575_vm0, %v1281_v26, 0.0  ;;  %v9059_v45 = vpop.eup %9058  ;;  %v10771_v32 = vperm.slane %v797_v58, 0 }
 0x1ab   : > { %1573 = vadd.xlane.f32.xlu1 %v1572_v53  ;;  %v1569_v25 = vsel %vm575_vm0, %v1279_v24, 0.0 }
 0x1ac   : > { %16480 = vst [vmem:[#allocation107_spill] sm:$0xff] %v10771_v32  ;;  %v1037_v58 = vadd.f32 %v10771_v32, %v10744_v31 }
 0x1ad   : > { %1585 = vadd.xlane.f32.xlu2 %v1584_v21  ;;  %v1029_v21 = vadd.f32 %v10719_v36, %v10641_v16  ;;  %v1287_v36 = vmul.f32 %v10590_v1, %v9059_v45 }
 0x1ae   : > { %1579 = vadd.xlane.f32.xlu0 %v1578_v6  ;;  %v10721_v53 = vpop.xlane.xlu1 %1474  ;;  %v796_v6 = vrot.slane %v10200_v14, 7  ;;  %v9061_v14 = vpop.eup %9060 }
 0x1af   : > { %16470 = vst [vmem:[#allocation97_spill] sm:$0xff] %v10721_v53  ;;  %9066 = vtanh.f32 %v1029_v21  ;;  %v1285_v24 = vmul.f32 %v10590_v1, %v9061_v14  ;;  %v1032_v21 = vadd.f32 %v10724_v3, %v10690_v27  ;;  %v798_v3 = vrot.slane %v10228_v43, 2 }
 0x1b0   : > { %v10726_v62 = vpop.xlane.xlu2 %1513  ;;  %v10742_v63 = vperm.slane %v796_v6, 0 }
 0x1b1   : > { %16472 = vst [vmem:[#allocation99_spill] sm:$0xff] %v10726_v62  ;;  %v10729_v54 = vpop.xlane.xlu0 %1480  ;;  %v1587_v14 = vsel %vm575_vm0, %v1285_v24, 0.0 }
 0x1b2   : > { %16473 = vst [vmem:[#allocation100_spill] sm:$0xff] %v10729_v54  ;;  %v1033_v44 = vadd.f32 %v10742_v63, %v10641_v16  ;;  %v10766_v16 = vperm.slane %v10228_v43, 0 }
 0x1b3   : > { %1591 = vadd.xlane.f32.xlu1 %v1590_v7  ;;  %16474 = vst [vmem:[#allocation101_spill] sm:$0xff] %v10742_v63  ;;  %v1283_v7 = vmul.f32 %v10590_v1, %v9057_v28  ;;  %v1034_v28 = vadd.f32 %v10742_v63, %v10690_v27 }
 0x1b4   : > { %9068 = vtanh.f32 %v1033_v44  ;;  %16478 = vst [vmem:[#allocation105_spill] sm:$0xff] %v10766_v16 }
 0x1b5   : > { %1576 = vadd.xlane.f32.xlu2 %v1575_v0  ;;  %v1581_v6 = vsel %vm575_vm0, %v1283_v7, 0.0  ;;  %v9063_v0 = vpop.eup %9062  ;;  %9070 = vtanh.f32 %v1034_v28 }
 0x1b6   : > { %1570 = vadd.xlane.f32.xlu0 %v1569_v25  ;;  %v10746_v47 = vpop.xlane.xlu1 %1492  ;;  %v1593_v25 = vsel %vm575_vm0, %v1287_v36, 0.0  ;;  %v9065_v45 = vpop.eup %9064  ;;  %v1289_v63 = vmul.f32 %v10590_v1, %v9063_v0  ;;  %9072 = vtanh.f32 %v1032_v21  ;;  %v1035_v21 = vadd.f32 %v10766_v16, %v10744_v31 }
 0x1b7   : > { %16475 = vst [vmem:[#allocation102_spill] sm:$0xff] %v10746_v47  ;;  %v9067_v7 = vpop.eup %9066  ;;  %v10773_v36 = vpop.f32.mrf.mxu1  ;;  %v1290_v24 = vmul.f32 %v10590_v1, %v9065_v45 }
 0x1b8   : > { %v10749_v26 = vpop.xlane.xlu2 %1486  ;;  %v1599_v0 = vsel %vm575_vm0, %v1289_v63, 0.0 }
 0x1b9   : > { %16476 = vst [vmem:[#allocation103_spill] sm:$0xff] %v10749_v26  ;;  %v10752_v62 = vpop.xlane.xlu0 %1498 }
 0x1ba   : > { %16477 = vst [vmem:[#allocation104_spill] sm:$0xff] %v10752_v62  ;;  %v9069_v28 = vpop.eup %9068 }
 0x1bb   : > { %1582 = vadd.xlane.f32.xlu1 %v1581_v6  ;;  %v9071_v45 = vpop.eup %9070 }
 0x1bc   : > { %v9073_v33 = vpop.eup %9072 }
 0x1bd   : > { %1594 = vadd.xlane.f32.xlu2 %v1593_v25  ;;  %v1288_v25 = vmul.f32 %v10590_v1, %v9067_v7 }
 0x1be   : > { %1588 = vadd.xlane.f32.xlu0 %v1587_v14  ;;  %v10768_v6 = vpop.xlane.xlu1 %1510  ;;  %v1036_v14 = vadd.f32 %v10766_v16, %v10773_v36 }
 0x1bf   : > { %16479 = vst [vmem:[#allocation106_spill] sm:$0xff] %v10768_v6  ;;  %v1602_v6 = vsel %vm575_vm0, %v1290_v24, 0.0  ;;  %v1596_v7 = vsel %vm575_vm0, %v1288_v25, 0.0  ;;  %v1293_v24 = vmul.f32 %v10590_v1, %v9071_v45  ;;  %v1291_v25 = vmul.f32 %v10590_v1, %v9073_v33 }
 0x1c0   : > { %v10775_v27 = vpop.xlane.xlu2 %1504  ;;  %9074 = vtanh.f32 %v1036_v14  ;;  %v1038_v45 = vadd.f32 %v10771_v32, %v10773_v36 }
 0x1c1   : > { %16481 = vst [vmem:[#allocation108_spill] sm:$0xff] %v10775_v27  ;;  %v10778_v44 = vpop.xlane.xlu0 %1516  ;;  %9076 = vtanh.f32 %v1037_v58  ;;  %v800_v58 = vrot.slane %v10228_v43, 4 }
 0x1c2   : > { %16482 = vst [vmem:[#allocation109_spill] sm:$0xff] %v10778_v44  ;;  %v10791_v44 = vperm.slane %v798_v3, 0  ;;  %9078 = vtanh.f32 %v1035_v21  ;;  %v1611_v21 = vsel %vm575_vm0, %v1293_v24, 0.0 }
 0x1c3   : > { %1600 = vadd.xlane.f32.xlu1 %v1599_v0  ;;  %v1292_v0 = vmul.f32 %v10590_v1, %v9069_v28 }
 0x1c4   : > { %16483 = vst [vmem:[#allocation110_spill] sm:$0xff] %v10791_v44  ;;  %v1039_v3 = vadd.f32 %v10791_v44, %v10744_v31  ;;  %v1040_v28 = vadd.f32 %v10791_v44, %v10773_v36 }
 0x1c5   : > { %1603 = vadd.xlane.f32.xlu2 %v1602_v6  ;;  %v799_v6 = vrot.slane %v10228_v43, 3  ;;  %v1608_v14 = vsel %vm575_vm0, %v1292_v0, 0.0 }
 0x1c6   : > { %1597 = vadd.xlane.f32.xlu0 %v1596_v7  ;;  %v10793_v63 = vpop.xlane.xlu1 %1519  ;;  %v9075_v7 = vpop.eup %9074  ;;  %9080 = vtanh.f32 %v1039_v3 }
 0x1c7   : > { %16484 = vst [vmem:[#allocation111_spill] sm:$0xff] %v10793_v63  ;;  %v9077_v33 = vpop.eup %9076  ;;  %v1295_v44 = vmul.f32 %v10590_v1, %v9075_v7  ;;  %9082 = vtanh.f32 %v1040_v28  ;;  %v10818_v63 = vperm.slane %v800_v58, 0 }
 0x1c8   : > { %v10796_v62 = vpop.xlane.xlu2 %1531  ;;  %v9079_v0 = vpop.eup %9078  ;;  %v1296_v32 = vmul.f32 %v10590_v1, %v9077_v33  ;;  %9084 = vtanh.f32 %v1038_v45 }
 0x1c9   : > { %16485 = vst [vmem:[#allocation112_spill] sm:$0xff] %v10796_v62  ;;  %v10799_v16 = vpop.xlane.xlu0 %1525  ;;  %v10813_v62 = vperm.slane %v799_v6, 0  ;;  %v1617_v6 = vsel %vm575_vm0, %v1295_v44, 0.0  ;;  %v1043_v28 = vadd.f32 %v10818_v63, %v10744_v31 }
 0x1ca   : > { %16486 = vst [vmem:[#allocation113_spill] sm:$0xff] %v10799_v16  ;;  %v1605_v16 = vsel %vm575_vm0, %v1291_v25, 0.0  ;;  %v1294_v25 = vmul.f32 %v10590_v1, %v9079_v0  ;;  %v1620_v58 = vsel %vm575_vm0, %v1296_v32, 0.0 }
 0x1cb   : > { %1609 = vadd.xlane.f32.xlu1 %v1608_v14  ;;  %16487 = vst [vmem:[#allocation114_spill] sm:$0xff] %v10813_v62  ;;  %v1042_v3 = vadd.f32 %v10813_v62, %v10773_v36 }
 0x1cc   : > { %16489 = vst [vmem:[#allocation116_spill] sm:$0xff] %v10818_v63  ;;  %v9081_v7 = vpop.eup %9080  ;;  %v1614_v33 = vsel %vm575_vm0, %v1294_v25, 0.0 }
 0x1cd   : > { %1612 = vadd.xlane.f32.xlu2 %v1611_v21  ;;  %v1041_v21 = vadd.f32 %v10813_v62, %v10744_v31  ;;  %v9083_v45 = vpop.eup %9082  ;;  %9086 = vtanh.f32 %v1042_v3 }
 0x1ce   : > { %1606 = vadd.xlane.f32.xlu0 %v1605_v16  ;;  %v10815_v14 = vpop.xlane.xlu1 %1537  ;;  %v801_v16 = vrot.slane %v10228_v43, 5  ;;  %9088 = vtanh.f32 %v1043_v28  ;;  %v1299_v32 = vmul.f32 %v10590_v1, %v9083_v45  ;;  %v803_v28 = vrot.slane %v10228_v43, 7 }
 0x1cf   : > { %16488 = vst [vmem:[#allocation115_spill] sm:$0xff] %v10815_v14  ;;  %9090 = vtanh.f32 %v1041_v21  ;;  %v1044_v45 = vadd.f32 %v10818_v63, %v10773_v36  ;;  %v10860_v14 = vpop.f32.mrf.mxu1 }
 0x1d0   : > { %v10820_v24 = vpop.xlane.xlu2 %1549  ;;  %v10836_v0 = vperm.slane %v801_v16, 0  ;;  %v802_v16 = vrot.slane %v10228_v43, 6  ;;  %v1629_v21 = vsel %vm575_vm0, %v1299_v32, 0.0  ;;  %v10865_v32 = vperm.slane %v803_v28, 0 }
 0x1d1   : > { %16490 = vst [vmem:[#allocation117_spill] sm:$0xff] %v10820_v24  ;;  %v10823_v10 = vpop.xlane.xlu0 %1543 }
 0x1d2   : > { %16491 = vst [vmem:[#allocation118_spill] sm:$0xff] %v10823_v10  ;;  %v9085_v10 = vpop.eup %9084  ;;  %v1045_v3 = vadd.f32 %v10836_v0, %v10744_v31 }
 0x1d3   : > { %1618 = vadd.xlane.f32.xlu1 %v1617_v6  ;;  %16492 = vst [vmem:[#allocation119_spill] sm:$0xff] %v10836_v0  ;;  %v1298_v6 = vmul.f32 %v10590_v1, %v9081_v7  ;;  %v1297_v25 = vmul.f32 %v10590_v1, %v9085_v10  ;;  %v1046_v7 = vadd.f32 %v10836_v0, %v10773_v36 }
 0x1d4   : > { %9092 = vtanh.f32 %v1045_v3  ;;  %16498 = vst [vmem:[#allocation125_spill] sm:$0xff] %v10865_v32 }
 0x1d5   : > { %1621 = vadd.xlane.f32.xlu2 %v1620_v58  ;;  %v1626_v58 = vsel %vm575_vm0, %v1298_v6, 0.0  ;;  %9094 = vtanh.f32 %v1046_v7 }
 0x1d6   : > { %1615 = vadd.xlane.f32.xlu0 %v1614_v33  ;;  %v10838_v44 = vpop.xlane.xlu1 %1555  ;;  %v9087_v33 = vpop.eup %9086  ;;  %9096 = vtanh.f32 %v1044_v45 }
 0x1d7   : > { %16493 = vst [vmem:[#allocation120_spill] sm:$0xff] %v10838_v44  ;;  %v9089_v10 = vpop.eup %9088  ;;  %v10858_v44 = vperm.slane %v802_v16, 0  ;;  %v1301_v43 = vmul.f32 %v10590_v1, %v9087_v33  ;;  %v1049_v33 = vadd.f32 %v10865_v32, %v10744_v31 }
 0x1d8   : > { %v10841_v24 = vpop.xlane.xlu2 %1339  ;;  %v9091_v6 = vpop.eup %9090  ;;  %v1302_v63 = vmul.f32 %v10590_v1, %v9089_v10 }
 0x1d9   : > { %16494 = vst [vmem:[#allocation121_spill] sm:$0xff] %v10841_v24  ;;  %v10844_v62 = vpop.xlane.xlu0 %1561  ;;  %v1300_v3 = vmul.f32 %v10590_v1, %v9091_v6  ;;  %v1048_v16 = vadd.f32 %v10858_v44, %v10773_v36  ;;  %v1047_v28 = vadd.f32 %v10858_v44, %v10744_v31  ;;  %v10883_v6 = vperm.slane %v10256_v15, 0  ;;  %v10888_v24 = vpop.f32.mrf.mxu1 }
 0x1da   : > { %16495 = vst [vmem:[#allocation122_spill] sm:$0xff] %v10844_v62  ;;  %v1623_v62 = vsel %vm575_vm0, %v1297_v25, 0.0  ;;  %v1638_v7 = vsel %vm575_vm0, %v1302_v63, 0.0 }
 0x1db   : > { %1627 = vadd.xlane.f32.xlu1 %v1626_v58  ;;  %16496 = vst [vmem:[#allocation123_spill] sm:$0xff] %v10858_v44  ;;  %v1632_v10 = vsel %vm575_vm0, %v1300_v3, 0.0  ;;  %9098 = vtanh.f32 %v1048_v16 }
 0x1dc   : > { %16501 = vst [vmem:[#allocation128_spill] sm:$0xff] %v10883_v6  ;;  %9100 = vtanh.f32 %v1049_v33 }
 0x1dd   : > { %1630 = vadd.xlane.f32.xlu2 %v1629_v21  ;;  %v9093_v21 = vpop.eup %9092  ;;  %9102 = vtanh.f32 %v1047_v28 }
 0x1de   : > { %1624 = vadd.xlane.f32.xlu0 %v1623_v62  ;;  %v10862_v58 = vpop.xlane.xlu1 %1333  ;;  %v1635_v62 = vsel %vm575_vm0, %v1301_v43, 0.0  ;;  %v9095_v45 = vpop.eup %9094 }
 0x1df   : > { %16497 = vst [vmem:[#allocation124_spill] sm:$0xff] %v10862_v58  ;;  %v1305_v31 = vmul.f32 %v10590_v1, %v9095_v45  ;;  %v805_v45 = vrot.slane %v10256_v15, 2  ;;  %v16506_v58 = vlaneseq }
 0x1e0   : > { %v10867_v0 = vpop.xlane.xlu2 %1351 }
 0x1e1   : > { %16499 = vst [vmem:[#allocation126_spill] sm:$0xff] %v10867_v0  ;;  %v10870_v25 = vpop.xlane.xlu0 %1327  ;;  %v9097_v0 = vpop.eup %9096  ;;  %v1647_v28 = vsel %vm575_vm0, %v1305_v31, 0.0  ;;  %v10915_v31 = vperm.slane %v805_v45, 0 }
 0x1e2   : > { %16500 = vst [vmem:[#allocation127_spill] sm:$0xff] %v10870_v25  ;;  %v1303_v16 = vmul.f32 %v10590_v1, %v9097_v0  ;;  %v9099_v33 = vpop.eup %9098  ;;  %v1050_v0 = vadd.f32 %v10865_v32, %v10773_v36  ;;  %v806_v36 = vrot.slane %v10256_v15, 3 }
 0x1e3   : > { %1636 = vadd.xlane.f32.xlu1 %v1635_v62  ;;  %v1304_v62 = vmul.f32 %v10590_v1, %v9093_v21  ;;  %v1307_v25 = vmul.f32 %v10590_v1, %v9099_v33  ;;  %16509 = vst [vmem:[#allocation135_spill] sm:$0xff] %v10915_v31 }
 0x1e5   : > { %1639 = vadd.xlane.f32.xlu2 %v1638_v7  ;;  %v1051_v7 = vadd.f32 %v10883_v6, %v10860_v14  ;;  %v1644_v21 = vsel %vm575_vm0, %v1304_v62, 0.0 }
 0x1e6   : > { %1633 = vadd.xlane.f32.xlu0 %v1632_v10  ;;  %v10885_v43 = vpop.xlane.xlu1 %1357  ;;  %v804_v10 = vrot.slane %v10256_v15, 1 }
 0x1e7   : > { %16502 = vst [vmem:[#allocation129_spill] sm:$0xff] %v10885_v43  ;;  %v9101_v43 = vpop.eup %9100  ;;  %9104 = vtanh.f32 %v1051_v7 }
 0x1e8   : > { %v10890_v63 = vpop.xlane.xlu2 %1369  ;;  %v10907_v44 = vperm.slane %v804_v10, 0  ;;  %v9103_v62 = vpop.eup %9102 }
 0x1e9   : > { %16503 = vst [vmem:[#allocation130_spill] sm:$0xff] %v10890_v63  ;;  %v10893_v3 = vpop.xlane.xlu0 %1345  ;;  %v1052_v63 = vadd.f32 %v10883_v6, %v10888_v24 }
 0x1ea   : > { %16504 = vst [vmem:[#allocation131_spill] sm:$0xff] %v10893_v3  ;;  %v1641_v3 = vsel %vm575_vm0, %v1303_v16, 0.0  ;;  %v1308_v16 = vmul.f32 %v10590_v1, %v9101_v43  ;;  %v1054_v33 = vadd.f32 %v10907_v44, %v10888_v24  ;;  %v1653_v43 = vsel %vm575_vm0, %v1307_v25, 0.0 }
 0x1eb   : > { %1645 = vadd.xlane.f32.xlu1 %v1644_v21  ;;  %16505 = vst [vmem:[#allocation132_spill] sm:$0xff] %v10907_v44  ;;  %v10910_v21 = vand.u32 127, %v16506_v58  ;;  %9106 = vtanh.f32 %v1052_v63  ;;  %v807_v63 = vrot.slane %v10256_v15, 4  ;;  %v10937_v58 = vperm.slane %v806_v36, 0 }
 0x1ec   : > { %9108 = vtanh.f32 %v1050_v0  ;;  %v1656_v25 = vsel %vm575_vm0, %v1308_v16, 0.0 }
 0x1ed   : > { %1648 = vadd.xlane.f32.xlu2 %v1647_v28  ;;  %16507 = vst [vmem:[#allocation133_spill] sm:$0xff] %v10910_v21  ;;  %v10922_v7 = vadd.s32 4294967288, %v10910_v21  ;;  %v1866_v45 = vperm.slane %v10429_v48, %v10910_v21  ;;  %v9105_v28 = vpop.eup %9104  ;;  %v1872_v0 = vperm.slane %v10434_v49, %v10910_v21  ;;  %9110 = vtanh.f32 %v1054_v33 }
 0x1ee   : > { %1642 = vadd.xlane.f32.xlu0 %v1641_v3  ;;  %v10912_v6 = vpop.xlane.xlu1 %1528  ;;  %v1306_v3 = vmul.f32 %v10590_v1, %v9103_v62  ;;  %v1055_v62 = vadd.f32 %v10915_v31, %v10860_v14  ;;  %16513 = vst [vmem:[#allocation139_spill] sm:$0xff] %v10937_v58  ;;  %v10950_v60 = vperm.slane %v807_v63, 0  ;;  %v1057_v33 = vadd.f32 %v10937_v58, %v10860_v14 }
 0x1ef   : > { %16508 = vst [vmem:[#allocation134_spill] sm:$0xff] %v10912_v6  ;;  %v1869_v6 = vperm.slane %v10439_v2, %v10910_v21  ;;  %v1870_v48 = vperm.slane %v10509_v55, %v10922_v7  ;;  %v1056_v55 = vadd.f32 %v10915_v31, %v10888_v24  ;;  %v1058_v2 = vadd.f32 %v10937_v58, %v10888_v24 }
 0x1f0   : > { %v10918_v32 = vpop.xlane.xlu2 %1522  ;;  %16511 = vst [vmem:[#allocation137_spill] sm:$0xff] %v10922_v7  ;;  %v1650_v36 = vsel %vm575_vm0, %v1306_v3, 0.0  ;;  %v1867_v3 = vperm.slane %v10487_v35, %v10922_v7  ;;  %9112 = vtanh.f32 %v1055_v62  ;;  %v1873_v31 = vperm.slane %v10518_v18, %v10922_v7 }
 0x1f1   : > { %16510 = vst [vmem:[#allocation136_spill] sm:$0xff] %v10918_v32  ;;  %v10924_v10 = vpop.xlane.xlu0 %1363  ;;  %v1053_v32 = vadd.f32 %v10907_v44, %v10860_v14  ;;  %v9107_v49 = vpop.eup %9106  ;;  %v1310_v44 = vmul.f32 %v10590_v1, %v9105_v28  ;;  %v1878_v18 = vperm.slane %v10466_v13, %v10910_v21 }
 0x1f2   : > { %16512 = vst [vmem:[#allocation138_spill] sm:$0xff] %v10924_v10  ;;  %v808_v10 = vrot.slane %v10256_v15, 5  ;;  %v9109_v27 = vpop.eup %9108  ;;  %v1311_v28 = vmul.f32 %v10590_v1, %v9107_v49  ;;  %v1059_v49 = vadd.f32 %v10950_v60, %v10860_v14 }
 0x1f3   : > { %1654 = vadd.xlane.f32.xlu1 %v1653_v43  ;;  %v1875_v43 = vperm.slane %v10456_v56, %v10910_v21  ;;  %16514 = vst [vmem:[#allocation140_spill] sm:$0xff] %v10950_v60  ;;  %v809_v56 = vrot.slane %v10256_v15, 6  ;;  %9114 = vtanh.f32 %v1053_v32  ;;  %v1309_v62 = vmul.f32 %v10590_v1, %v9109_v27  ;;  %v9111_v58 = vpop.eup %9110 }
 0x1f4   : > { %v10964_v63 = vperm.slane %v808_v10, 0  ;;  %v1060_v10 = vadd.f32 %v10950_v60, %v10888_v24  ;;  %9116 = vtanh.f32 %v1056_v55  ;;  %v1876_v55 = vperm.slane %v10515_v19, %v10922_v7 }
 0x1f5   : > { %1657 = vadd.xlane.f32.xlu2 %v1656_v25  ;;  %v1871_v25 = vsel %vm1843_vm2, %v1870_v48, %v1869_v6  ;;  %v810_v48 = vrot.slane %v10256_v15, 7  ;;  %v1662_v6 = vsel %vm575_vm0, %v1310_v44, 0.0  ;;  %v10983_v32 = vperm.slane %v809_v56, 0 }
 0x1f6   : > { %1651 = vadd.xlane.f32.xlu0 %v1650_v36  ;;  %v10954_v16 = vpop.xlane.xlu1 %1546  ;;  %16516 = vst [vmem:[#allocation142_spill] sm:$0xff] %v10964_v63  ;;  %9118 = vtanh.f32 %v1057_v33  ;;  %v1061_v27 = vadd.f32 %v10964_v63, %v10860_v14  ;;  %v1665_v44 = vsel %vm575_vm0, %v1311_v28, 0.0  ;;  %v9113_v56 = vpop.eup %9112  ;;  %v1879_v60 = vperm.slane %v10534_v34, %v10922_v7 }
 0x1f7   : > { %16515 = vst [vmem:[#allocation141_spill] sm:$0xff] %v10954_v16  ;;  %v1868_v16 = vsel %vm1843_vm2, %v1867_v3, %v1866_v45  ;;  %9120 = vtanh.f32 %v1058_v2  ;;  %v1659_v13 = vsel %vm575_vm0, %v1309_v62, 0.0  ;;  %v10997_v45 = vperm.slane %v810_v48, 0 }
 0x1f8   : > { %v10967_v36 = vpop.xlane.xlu2 %1540  ;;  %16518 = vst [vmem:[#allocation144_spill] sm:$0xff] %v10983_v32  ;;  %v2048_v15 = vsel %vm2034_vm3, %v1871_v25, %v1868_v16  ;;  %9122 = vtanh.f32 %v1060_v10  ;;  %v1874_v33 = vsel %vm1843_vm2, %v1873_v31, %v1872_v0  ;;  %v1313_v25 = vmul.f32 %v10590_v1, %v9111_v58 }
 0x1f9   : > { %v10974_v35 = vpop.xlane.xlu0 %1534  ;;  %16519 = vst [vmem:[#allocation145_spill] sm:$0xff] %v10997_v45  ;;  %v9115_v3 = vpop.eup %9114  ;;  %9124 = vtanh.f32 %v1059_v49  ;;  %v1063_v2 = vadd.f32 %v10983_v32, %v10860_v14  ;;  %v1882_v62 = vperm.slane %v10541_v5, %v10922_v7  ;;  %v1062_v10 = vadd.f32 %v10964_v63, %v10888_v24 }
 0x1fa   : > { %16517 = vst [vmem:[#allocation143_spill] sm:$0xff] %v10974_v35  ;;  %9126 = vtanh.f32 %v1061_v27  ;;  %v9117_v31 = vpop.eup %9116  ;;  %v11014_v58 = vsel %vm1843_vm2, %v1876_v55, %v1875_v43  ;;  %v1314_v48 = vmul.f32 %v10590_v1, %v9113_v56  ;;  %v11022_v27 = vsel %vm2036_vm4, %v1874_v33, %v2048_v15 }
 0x1fb   : > { %1663 = vadd.xlane.f32.xlu1 %v1662_v6  ;;  %v1064_v6 = vadd.f32 %v10983_v32, %v10888_v24  ;;  %v1066_v43 = vadd.f32 %v10997_v45, %v10888_v24  ;;  %v1671_v63 = vsel %vm575_vm0, %v1313_v25, 0.0  ;;  %9128 = vtanh.f32 %v1063_v2 }
 0x1fc   : > { %v9119_v49 = vpop.eup %9118  ;;  %v1065_v15 = vadd.f32 %v10997_v45, %v10860_v14  ;;  %9130 = vtanh.f32 %v1062_v10  ;;  %v1890_v25 = vperm.slane %v10556_v51, %v10910_v21  ;;  %v1894_v14 = vperm.slane %v10611_v38, %v10922_v7 }
 0x1fd   : > { %1666 = vadd.xlane.f32.xlu2 %v1665_v44  ;;  %v11025_v44 = vsel %vm1843_vm2, %v1879_v60, %v1878_v18  ;;  %v9121_v55 = vpop.eup %9120  ;;  %v16520_v60 = vperm.slane %v10461_v40, %v10910_v21  ;;  %v1674_v2 = vsel %vm575_vm0, %v1314_v48, 0.0  ;;  %9132 = vtanh.f32 %v1064_v6 }
 0x1fe   : > { %1660 = vadd.xlane.f32.xlu0 %v1659_v13  ;;  %v11000_v16 = vpop.xlane.xlu1 %1564  ;;  %v1312_v13 = vmul.f32 %v10590_v1, %v9115_v3  ;;  %v9123_v33 = vpop.eup %9122  ;;  %9134 = vtanh.f32 %v1066_v43  ;;  %v1893_v10 = vperm.slane %v10568_v8, %v10910_v21  ;;  %v1316_v48 = vmul.f32 %v10590_v1, %v9119_v49 }
 0x1ff   : > { %v11041_v18 = vsel %vm1843_vm2, %v1882_v62, %v16520_v60  ;;  %v9125_v3 = vpop.eup %9124  ;;  %v1896_v62 = vperm.slane %v10559_v23, %v10910_v21  ;;  %v1891_v60 = vperm.slane %v10596_v42, %v10922_v7  ;;  %v1315_v6 = vmul.f32 %v10590_v1, %v9117_v31 }
 0x200   : > { %v11016_v0 = vpop.xlane.xlu2 %1558  ;;  %v9127_v56 = vpop.eup %9126  ;;  %9136 = vtanh.f32 %v1065_v15  ;;  %v1899_v32 = vperm.slane %v10571_v59, %v10910_v21  ;;  %v1900_v45 = vperm.slane %v10614_v57, %v10922_v7  ;;  %v1319_v43 = vmul.f32 %v10590_v1, %v9123_v33 }
 0x201   : > { %v11027_v28 = vpop.xlane.xlu0 %1552  ;;  %v1895_v23 = vsel %vm1843_vm2, %v1894_v14, %v1893_v10  ;;  %v1318_v31 = vmul.f32 %v10590_v1, %v9125_v3  ;;  %v1320_v15 = vmul.f32 %v10590_v1, %v9127_v56  ;;  %v1902_v57 = vperm.slane %v10585_v17, %v10910_v21 }
 0x202   : > { %v1892_v33 = vsel %vm1843_vm2, %v1891_v60, %v1890_v25  ;;  %v1897_v3 = vperm.slane %v10626_v4, %v10922_v7  ;;  %v1680_v56 = vsel %vm575_vm0, %v1316_v48, 0.0  ;;  %v1677_v10 = vsel %vm575_vm0, %v1315_v6, 0.0 }
 0x203   : > { %1672 = vadd.xlane.f32.xlu1 %v1671_v63  ;;  %v1668_v63 = vsel %vm575_vm0, %v1312_v13, 0.0  ;;  %v1317_v13 = vmul.f32 %v10590_v1, %v9121_v55  ;;  %v2055_v38 = vsel %vm2034_vm3, %v1895_v23, %v1892_v33  ;;  %v1901_v55 = vsel %vm1843_vm2, %v1900_v45, %v1899_v32 }
 0x204   : > { %v1689_v60 = vsel %vm575_vm0, %v1319_v43, 0.0  ;;  %v1918_v42 = vperm.slane %v10729_v54, %v10922_v7  ;;  %v1686_v4 = vsel %vm575_vm0, %v1318_v31, 0.0  ;;  %v1692_v48 = vsel %vm575_vm0, %v1320_v15, 0.0 }
 0x205   : > { %1675 = vadd.xlane.f32.xlu2 %v1674_v2  ;;  %v9129_v2 = vpop.eup %9128  ;;  %v1683_v25 = vsel %vm575_vm0, %v1317_v13, 0.0  ;;  %v1921_v23 = vperm.slane %v10749_v26, %v10922_v7  ;;  %v16521_v45 = vperm.slane %v10482_v22, %v10910_v21  ;;  %v16522_v13 = vperm.slane %v10538_v46, %v10922_v7 }
 0x206   : > { %1669 = vadd.xlane.f32.xlu0 %v1668_v63  ;;  %v11057_v24 = vpop.xlane.xlu1 %1336  ;;  %v9131_v59 = vpop.eup %9130  ;;  %v1322_v6 = vmul.f32 %v10590_v1, %v9129_v2  ;;  %v2050_v31 = vsel %vm2038_vm5, %v11014_v58, %v11022_v27  ;;  %v1898_v2 = vsel %vm1843_vm2, %v1897_v3, %v1896_v62  ;;  %v1917_v15 = vperm.slane %v10682_v11, %v10910_v21  ;;  %v16532_v11 = vld [vmem:[#allocation124_spill] sm:$0xff] }
 0x207   : > { %v9133_v14 = vpop.eup %9132  ;;  %v1321_v32 = vmul.f32 %v10590_v1, %v9131_v59  ;;  %v11106_v43 = vsel %vm1843_vm2, %v16522_v13, %v16521_v45  ;;  %v1915_v59 = vperm.slane %v10721_v53, %v10922_v7  ;;  %v1920_v45 = vperm.slane %v10679_v61, %v10910_v21 }
 0x208   : > { %v11070_v49 = vpop.xlane.xlu2 %1342  ;;  %v9135_v17 = vpop.eup %9134  ;;  %v1914_v62 = vperm.slane %v10664_v12, %v10910_v21  ;;  %v1919_v3 = vsel %vm1843_vm2, %v1918_v42, %v1917_v15  ;;  %v1698_v13 = vsel %vm575_vm0, %v1322_v6, 0.0  ;;  %v2056_v26 = vsel %vm2036_vm4, %v1898_v2, %v2055_v38 }
 0x209   : > { %v11081_v8 = vpop.xlane.xlu0 %1330  ;;  %v9137_v63 = vpop.eup %9136  ;;  %v1325_v58 = vmul.f32 %v10590_v1, %v9135_v17  ;;  %v1906_v17 = vperm.slane %v10654_v29, %v10922_v7  ;;  %v11142_v61 = vsel %vm575_vm0, %v1321_v32, 0.0  ;;  %v1909_v42 = vperm.slane %v10635_v20, %v10922_v7  ;;  %v16536_v29 = vld [vmem:[#allocation131_spill] sm:$0xff]  ;;  %v16538_v20 = vld [vmem:[#allocation109_spill] sm:$0xff] }
 0x20a   : > { %v1324_v27 = vmul.f32 %v10590_v1, %v9137_v63  ;;  %v1916_v6 = vsel %vm1843_vm2, %v1915_v59, %v1914_v62  ;;  %v1923_v15 = vperm.slane %v10685_v39, %v10910_v21  ;;  %v16526_v62 = vld [vmem:[#allocation93_spill] sm:$0xff]  ;;  %v1846_v53 = vperm.slane %v11057_v24, %v10922_v7 }
 0x20b   : > { %1681 = vadd.xlane.f32.xlu1 %v1680_v56  ;;  %v1323_v56 = vmul.f32 %v10590_v1, %v9133_v14  ;;  %v11133_v14 = vsel %vm2040_vm6, %v11025_v44, %v2050_v31  ;;  %v1922_v1 = vsel %vm1843_vm2, %v1921_v23, %v1920_v45  ;;  %v1924_v44 = vperm.slane %v10746_v47, %v10922_v7  ;;  %v16523_v45 = vld [vmem:[#allocation108_spill] sm:$0xff] }
 0x20c   : > { %v2062_v23 = vsel %vm2034_vm3, %v1919_v3, %v1916_v6  ;;  %v11153_v2 = vsel %vm575_vm0, %v1325_v58, 0.0  ;;  %v11156_v32 = vsel %vm575_vm0, %v1324_v27, 0.0  ;;  %v16525_v58 = vld [vmem:[#allocation86_spill] sm:$0xff]  ;;  %v1929_v3 = vperm.slane %v16526_v62, %v10910_v21  ;;  %v16527_v6 = vld [vmem:[#allocation104_spill] sm:$0xff] }
 0x20d   : > { %1684 = vadd.xlane.f32.xlu2 %v1683_v25  ;;  %v1903_v25 = vperm.slane %v10632_v50, %v10922_v7  ;;  %v1701_v38 = vsel %vm575_vm0, %v1323_v56, 0.0  ;;  %v2063_v59 = vsel %vm2036_vm4, %v1922_v1, %v2062_v23  ;;  %v1930_v56 = vperm.slane %v16523_v45, %v10922_v7  ;;  %v16528_v45 = vld [vmem:[#allocation127_spill] sm:$0xff]  ;;  %v16530_v27 = vld [vmem:[#allocation94_spill] sm:$0xff] }
 0x20e   : > { %1678 = vadd.xlane.f32.xlu0 %v1677_v10  ;;  %v11116_v33 = vpop.xlane.xlu1 %1348  ;;  %v1927_v1 = vperm.slane %v16527_v6, %v10922_v7  ;;  %v1925_v23 = vsel %vm1843_vm2, %v1924_v44, %v1923_v15  ;;  %v1840_v47 = vperm.slane %v16528_v45, %v10910_v21  ;;  %v1926_v62 = vperm.slane %v16530_v27, %v10910_v21 }
 0x20f   : > { %v1904_v31 = vsel %vm1843_vm2, %v1903_v25, %v1902_v57  ;;  %v1842_v57 = vperm.slane %v11081_v8, %v10922_v7  ;;  %v2064_v6 = vsel %vm2038_vm5, %v1925_v23, %v2063_v59  ;;  %v16531_v44 = vperm.slane %v10593_v9, %v10910_v21  ;;  %v16533_v23 = vld [vmem:[#allocation106_spill] sm:$0xff] }
 0x210   : > { %v11128_v10 = vpop.xlane.xlu2 %1360  ;;  %v1845_v39 = vperm.slane %v16532_v11, %v10910_v21  ;;  %v1928_v59 = vsel %vm1843_vm2, %v1927_v1, %v1926_v62  ;;  %v1933_v54 = vperm.slane %v16533_v23, %v10922_v7  ;;  %v1851_v9 = vperm.slane %v16536_v29, %v10910_v21 }
 0x211   : > { %v11139_v63 = vpop.xlane.xlu0 %1354  ;;  %v11192_v15 = vsel %vm1843_vm2, %v1909_v42, %v16531_v44  ;;  %v16534_v42 = vld [vmem:[#allocation121_spill] sm:$0xff]  ;;  %v2065_v62 = vsel %vm2040_vm6, %v1928_v59, %v2064_v6 }
 0x212   : > { %v1848_v44 = vperm.slane %v16534_v42, %v10910_v21  ;;  %v1847_v12 = vsel %vm1843_vm2, %v1846_v53, %v1845_v39  ;;  %v1855_v50 = vperm.slane %v11139_v63, %v10922_v7 }
 0x213   : > { %1690 = vadd.xlane.f32.xlu1 %v1689_v60  ;;  %v16524_v60 = vperm.slane %v10574_v30, %v10910_v21  ;;  %v1936_v30 = vperm.slane %v16538_v20, %v10922_v7 }
 0x215   : > { %v1907_v25 = vsel %vm1843_vm2, %v1906_v17, %v16524_v60  ;;  %1693 = vadd.xlane.f32.xlu2 %v1692_v48  ;;  %v2057_v60 = vsel %vm2038_vm5, %v1901_v55, %v2056_v26  ;;  %v1849_v48 = vperm.slane %v11070_v49, %v10922_v7  ;;  %v1844_v26 = vsel %vm1843_vm2, %v1842_v57, %v1840_v47  ;;  %v16535_v47 = vld [vmem:[#allocation95_spill] sm:$0xff] }
 0x216   : > { %1687 = vadd.xlane.f32.xlu0 %v1686_v4  ;;  %v11180_v17 = vpop.xlane.xlu1 %1366  ;;  %v1931_v4 = vsel %vm1843_vm2, %v1930_v56, %v1929_v3  ;;  %v1852_v55 = vperm.slane %v11116_v33, %v10922_v7  ;;  %v2058_v3 = vsel %vm2040_vm6, %v1904_v31, %v2057_v60  ;;  %v1932_v57 = vperm.slane %v16535_v47, %v10910_v21  ;;  %v16537_v60 = vld [vmem:[#allocation99_spill] sm:$0xff] }
 0x217   : > { %16529 = vst [vmem:[#allocation86_spill] sm:$0xff] %v11180_v17  ;;  %v2035_v1 = vsel %vm2034_vm3, %v1847_v12, %v1844_v26  ;;  %v1850_v23 = vsel %vm1843_vm2, %v1849_v48, %v1848_v44  ;;  %v2066_v31 = vsel %vm2042_vm7, %v1931_v4, %v2065_v62  ;;  %v1935_v47 = vperm.slane %v16537_v60, %v10910_v21  ;;  %v16539_v12 = vld [vmem:[#allocation111_spill] sm:$0xff]  ;;  %v16540_v48 = vld [vmem:[#allocation126_spill] sm:$0xff] }
 0x218   : > { %v11200_v27 = vpop.xlane.xlu2 %1567  ;;  %v1853_v39 = vsel %vm1843_vm2, %v1852_v55, %v1851_v9  ;;  %v2059_v53 = vsel %vm2042_vm7, %v1907_v25, %v2058_v3  ;;  %v1938_v6 = vperm.slane %v16539_v12, %v10910_v21  ;;  %v1854_v26 = vperm.slane %v16540_v48, %v10910_v21  ;;  %v16543_v3 = vld [vmem:[#allocation134_spill] sm:$0xff] }
 0x219   : > { %v11207_v56 = vpop.xlane.xlu0 %1372  ;;  %v1934_v59 = vsel %vm1843_vm2, %v1933_v54, %v1932_v57  ;;  %v1945_v44 = vperm.slane %v10974_v35, %v10922_v7  ;;  %v2037_v62 = vsel %vm2036_vm4, %v1850_v23, %v2035_v1  ;;  %v1858_v9 = vperm.slane %v11128_v10, %v10922_v7  ;;  %v16544_v23 = vld [vmem:[#allocation112_spill] sm:$0xff]  ;;  %v16546_v35 = vld [vmem:[#allocation129_spill] sm:$0xff] }
 0x21a   : > { %v2067_v55 = vsel %vm2044_vm8, %v1934_v59, %v2066_v31  ;;  %v1942_v12 = vperm.slane %v16543_v3, %v10922_v7  ;;  %v1856_v54 = vsel %vm1843_vm2, %v1855_v50, %v1854_v26  ;;  %v1861_v57 = vperm.slane %v11180_v17, %v10922_v7 }
 0x21b   : > { %1699 = vadd.xlane.f32.xlu1 %v1698_v13  ;;  %v16541_v13 = vld [vmem:[#allocation136_spill] sm:$0xff]  ;;  %v1944_v1 = vperm.slane %v16544_v23, %v10910_v21  ;;  %v1857_v60 = vperm.slane %v16546_v35, %v10910_v21  ;;  %v1937_v59 = vsel %vm1843_vm2, %v1936_v30, %v1935_v47  ;;  %v1948_v26 = vperm.slane %v10967_v36, %v10922_v7  ;;  %v16549_v47 = vld [vmem:[#allocation115_spill] sm:$0xff] }
 0x21c   : > { %v1939_v4 = vperm.slane %v16541_v13, %v10922_v7  ;;  %v16545_v13 = vld [vmem:[#allocation113_spill] sm:$0xff]  ;;  %v2068_v23 = vsel %vm2046_vm9, %v1937_v59, %v2067_v55  ;;  %v1864_v17 = vperm.slane %v11207_v56, %v10922_v7  ;;  %v1947_v35 = vperm.slane %v16549_v47, %v10910_v21  ;;  %v16552_v55 = vld [vmem:[#allocation130_spill] sm:$0xff] }
 0x21d   : > { %1702 = vadd.xlane.f32.xlu2 %v1701_v38  ;;  %v2039_v38 = vsel %vm2038_vm5, %v1853_v39, %v2037_v62  ;;  %v16548_v39 = vld [vmem:[#allocation138_spill] sm:$0xff]  ;;  %v1859_v20 = vsel %vm1843_vm2, %v1858_v9, %v1857_v60  ;;  %v1954_v59 = vperm.slane %v11027_v28, %v10922_v7 }
 0x21e   : > { %1696 = vadd.xlane.f32.xlu0 %v11142_v61  ;;  %v11240_v25 = vpop.xlane.xlu1 %1573  ;;  %v1941_v61 = vperm.slane %v16545_v13, %v10910_v21  ;;  %v1860_v62 = vperm.slane %v16548_v39, %v10910_v21  ;;  %v1940_v50 = vsel %vm1843_vm2, %v1939_v4, %v1938_v6  ;;  %v1946_v13 = vsel %vm1843_vm2, %v1945_v44, %v1944_v1 }
 0x21f   : > { %16542 = vst [vmem:[#allocation127_spill] sm:$0xff] %v11240_v25  ;;  %v2041_v30 = vsel %vm2040_vm6, %v1856_v54, %v2039_v38  ;;  %v16550_v4 = vperm.slane %v10608_v41, %v10910_v21  ;;  %v16551_v44 = vperm.slane %v16525_v58, %v10922_v7  ;;  %v1863_v38 = vperm.slane %v16552_v55, %v10910_v21 }
 0x220   : > { %v11255_v31 = vpop.xlane.xlu2 %1585  ;;  %v1943_v6 = vsel %vm1843_vm2, %v1942_v12, %v1941_v61  ;;  %v1862_v9 = vsel %vm1843_vm2, %v1861_v57, %v1860_v62  ;;  %v2115_v1 = vsel %vm2105_vm10, %v2068_v23, -inf  ;;  %v1949_v61 = vsel %vm1843_vm2, %v1948_v26, %v1947_v35  ;;  %v16553_v62 = vld [vmem:[#allocation141_spill] sm:$0xff] }
 0x221   : > { %16547 = vst [vmem:[#allocation124_spill] sm:$0xff] %v11255_v31  ;;  %v11263_v3 = vpop.xlane.xlu0 %1579  ;;  %v1913_v60 = vsel %vm1843_vm2, %v16551_v44, %v16550_v4  ;;  %v2069_v54 = vsel %vm2034_vm3, %v1943_v6, %v1940_v50  ;;  %v2043_v57 = vsel %vm2042_vm7, %v1859_v20, %v2041_v30  ;;  %v1951_v4 = vperm.slane %v16553_v62, %v10922_v7  ;;  %v16558_v6 = vld [vmem:[#allocation118_spill] sm:$0xff] }
 0x222   : > { %v2070_v12 = vsel %vm2036_vm4, %v1946_v13, %v2069_v54  ;;  %v2045_v35 = vsel %vm2044_vm8, %v1862_v9, %v2043_v57  ;;  %v16555_v13 = vld [vmem:[#allocation117_spill] sm:$0xff]  ;;  %v16556_v26 = vperm.slane %v10490_v37, %v10910_v21 }
 0x223   : > { %1708 = vadd.xlane.f32.xlu1 %v11153_v2  ;;  %v2060_v2 = vsel %vm2044_vm8, %v11192_v15, %v2059_v53  ;;  %v2052_v15 = vsel %vm2042_vm7, %v11041_v18, %v11133_v14  ;;  %v1865_v53 = vsel %vm1843_vm2, %v1864_v17, %v1863_v38  ;;  %v1953_v23 = vperm.slane %v16555_v13, %v10910_v21 }
 0x224   : > { %v2061_v20 = vsel %vm2046_vm9, %v1913_v60, %v2060_v2  ;;  %v1950_v18 = vperm.slane %v16558_v6, %v10910_v21  ;;  %v2071_v14 = vsel %vm2038_vm5, %v1949_v61, %v2070_v12  ;;  %v1957_v17 = vperm.slane %v11016_v0, %v10922_v7 }
 0x225   : > { %2116 = vmax.xlane.f32.xlu2 %v2115_v1  ;;  %v1955_v60 = vsel %vm1843_vm2, %v1954_v59, %v1953_v23  ;;  %v2053_v38 = vsel %vm2044_vm8, %v11106_v43, %v2052_v15  ;;  %v2047_v54 = vsel %vm2046_vm9, %v1865_v53, %v2045_v35  ;;  %v16559_v1 = vld [vmem:[#allocation120_spill] sm:$0xff]  ;;  %v2112_v12 = vsel %vm2105_vm10, %v2061_v20, -inf  ;;  %v16561_v35 = vld [vmem:[#allocation122_spill] sm:$0xff] }
 0x226   : > { %1705 = vadd.xlane.f32.xlu0 %v11156_v32  ;;  %v11297_v50 = vpop.xlane.xlu1 %1591  ;;  %v16557_v32 = vperm.slane %v10553_v52, %v10922_v7  ;;  %v1956_v2 = vperm.slane %v16559_v1, %v10910_v21  ;;  %v1952_v57 = vsel %vm1843_vm2, %v1951_v4, %v1950_v18  ;;  %v2106_v59 = vsel %vm2105_vm10, %v2047_v54, -inf }
 0x227   : > { %16554 = vst [vmem:[#allocation121_spill] sm:$0xff] %v11297_v50  ;;  %v1960_v15 = vperm.slane %v11000_v16, %v10922_v7  ;;  %v1959_v20 = vperm.slane %v16561_v35, %v10910_v21 }
 0x228   : > { %v1889_v30 = vsel %vm1843_vm2, %v16557_v32, %v16556_v26  ;;  %v11319_v44 = vpop.xlane.xlu2 %1576  ;;  %v2072_v26 = vsel %vm2040_vm6, %v1952_v57, %v2071_v14  ;;  %v1958_v23 = vsel %vm1843_vm2, %v1957_v17, %v1956_v2 }
 0x229   : > { %v11322_v9 = vpop.xlane.xlu0 %1570  ;;  %v2054_v61 = vsel %vm2046_vm9, %v1889_v30, %v2053_v38  ;;  %v2073_v43 = vsel %vm2042_vm7, %v1955_v60, %v2072_v26  ;;  %v1961_v14 = vsel %vm1843_vm2, %v1960_v15, %v1959_v20  ;;  %v1966_v38 = vperm.slane %v11319_v44, %v10922_v7 }
 0x22a   : > { %v2109_v53 = vsel %vm2105_vm10, %v2054_v61, -inf  ;;  %v2074_v32 = vsel %vm2044_vm8, %v1958_v23, %v2073_v43  ;;  %v1963_v60 = vperm.slane %v11322_v9, %v10922_v7  ;;  %v1965_v61 = vperm.slane %v11240_v25, %v10910_v21 }
 0x22b   : > { %2113 = vmax.xlane.f32.xlu1 %v2112_v12  ;;  %v2075_v17 = vsel %vm2046_vm9, %v1961_v14, %v2074_v32  ;;  %v1962_v12 = vperm.slane %v11200_v27, %v10910_v21  ;;  %v1968_v26 = vperm.slane %v11263_v3, %v10910_v21  ;;  %v1971_v32 = vperm.slane %v11255_v31, %v10910_v21 }
 0x22c   : > { %v2118_v54 = vsel %vm2105_vm10, %v2075_v17, -inf  ;;  %v1967_v43 = vsel %vm1843_vm2, %v1966_v38, %v1965_v61 }
 0x22d   : > { %2107 = vmax.xlane.f32.xlu2 %v2106_v59  ;;  %v1964_v23 = vsel %vm1843_vm2, %v1963_v60, %v1962_v12  ;;  %v1974_v12 = vperm.slane %v11297_v50, %v10910_v21 }
 0x22e   : > { %2110 = vmax.xlane.f32.xlu0 %v2109_v53  ;;  %v11339_v4 = vpop.xlane.xlu1 %1582  ;;  %v2076_v14 = vsel %vm2034_vm3, %v1967_v43, %v1964_v23 }
 0x22f   : > { %16560 = vst [vmem:[#allocation131_spill] sm:$0xff] %v11339_v4  ;;  %v1969_v2 = vperm.slane %v11339_v4, %v10922_v7 }
 0x230   : > { %v11344_v30 = vpop.xlane.xlu2 %1594 }
 0x231   : > { %16562 = vst [vmem:[#allocation126_spill] sm:$0xff] %v11344_v30  ;;  %v11346_v18 = vpop.xlane.xlu0 %1588  ;;  %v1970_v20 = vsel %vm1843_vm2, %v1969_v2, %v1968_v26  ;;  %v1975_v17 = vperm.slane %v11344_v30, %v10922_v7 }
 0x232   : > { %v1972_v15 = vperm.slane %v11346_v18, %v10922_v7 }
 0x233   : > { %v1976_v23 = vsel %vm1843_vm2, %v1975_v17, %v1974_v12 }
 0x234   : > { %v1973_v60 = vsel %vm1843_vm2, %v1972_v15, %v1971_v32 }
 0x236   : > { %2119 = vmax.xlane.f32.xlu0 %v2118_v54  ;;  %v11357_v57 = vpop.xlane.xlu1 %1600  ;;  %v2077_v54 = vsel %vm2036_vm4, %v1970_v20, %v2076_v14 }
 0x237   : > { %16563 = vst [vmem:[#allocation138_spill] sm:$0xff] %v11357_v57  ;;  %v1978_v2 = vperm.slane %v11357_v57, %v10922_v7  ;;  %v2078_v26 = vsel %vm2038_vm5, %v1973_v60, %v2077_v54 }
 0x238   : > { %v11365_v59 = vpop.xlane.xlu2 %1603  ;;  %v2079_v60 = vsel %vm2040_vm6, %v1976_v23, %v2078_v26 }
 0x239   : > { %16564 = vst [vmem:[#allocation115_spill] sm:$0xff] %v11365_v59  ;;  %v11371_v53 = vpop.xlane.xlu0 %1597  ;;  %v1980_v50 = vperm.slane %v11365_v59, %v10910_v21 }
 0x23a   : > { %16565 = vst [vmem:[#allocation130_spill] sm:$0xff] %v11371_v53  ;;  %v1977_v38 = vperm.slane %v11371_v53, %v10910_v21 }
 0x23c   : > { %v1979_v20 = vsel %vm1843_vm2, %v1978_v2, %v1977_v38 }
 0x23d   : > { %v2080_v12 = vsel %vm2042_vm7, %v1979_v20, %v2079_v60 }
 0x23e   : > { %v11385_v61 = vpop.xlane.xlu1 %1609 }
 0x23f   : > { %16566 = vst [vmem:[#allocation141_spill] sm:$0xff] %v11385_v61  ;;  %v1983_v15 = vperm.slane %v11385_v61, %v10910_v21 }
 0x240   : > { %v11391_v43 = vpop.xlane.xlu2 %1612 }
 0x241   : > { %16567 = vst [vmem:[#allocation117_spill] sm:$0xff] %v11391_v43  ;;  %v11396_v32 = vpop.xlane.xlu0 %1606  ;;  %v1984_v14 = vperm.slane %v11391_v43, %v10922_v7 }
 0x242   : > { %16568 = vst [vmem:[#allocation118_spill] sm:$0xff] %v11396_v32  ;;  %v1981_v54 = vperm.slane %v11396_v32, %v10922_v7 }
 0x243   : > { %v1985_v17 = vsel %vm1843_vm2, %v1984_v14, %v1983_v15 }
 0x244   : > { %v1982_v38 = vsel %vm1843_vm2, %v1981_v54, %v1980_v50 }
 0x245   : > { %v2081_v2 = vsel %vm2044_vm8, %v1982_v38, %v2080_v12 }
 0x246   : > { %v11409_v61 = vpop.xlane.xlu1 %1618  ;;  %v2082_v43 = vsel %vm2046_vm9, %v1985_v17, %v2081_v2 }
 0x247   : > { %16569 = vst [vmem:[#allocation120_spill] sm:$0xff] %v11409_v61  ;;  %v2121_v57 = vsel %vm2105_vm10, %v2082_v43, -inf  ;;  %v1987_v32 = vperm.slane %v11409_v61, %v10922_v7 }
 0x248   : > { %2122 = vmax.xlane.f32.xlu1 %v2121_v57  ;;  %v11413_v59 = vpop.xlane.xlu2 %1621 }
 0x249   : > { %16570 = vst [vmem:[#allocation122_spill] sm:$0xff] %v11413_v59  ;;  %v11415_v30 = vpop.xlane.xlu0 %1615  ;;  %v1989_v38 = vperm.slane %v11413_v59, %v10910_v21 }
 0x24a   : > { %16571 = vst [vmem:[#allocation146_spill] sm:$0xff] %v11415_v30  ;;  %v1986_v60 = vperm.slane %v11415_v30, %v10910_v21 }
 0x24e   : > { %v11417_v15 = vpop.xlane.xlu1 %1627 }
 0x24f   : > { %16572 = vst [vmem:[#allocation147_spill] sm:$0xff] %v11417_v15  ;;  %v1992_v30 = vperm.slane %v11417_v15, %v10910_v21 }
 0x250   : > { %v11419_v26 = vpop.xlane.xlu2 %1630 }
 0x251   : > { %16573 = vst [vmem:[#allocation148_spill] sm:$0xff] %v11419_v26  ;;  %v11421_v50 = vpop.xlane.xlu0 %1624  ;;  %v1993_v2 = vperm.slane %v11419_v26, %v10922_v7  ;;  %v1988_v26 = vsel %vm1843_vm2, %v1987_v32, %v1986_v60 }
 0x252   : > { %16574 = vst [vmem:[#allocation149_spill] sm:$0xff] %v11421_v50  ;;  %v1990_v17 = vperm.slane %v11421_v50, %v10922_v7 }
 0x254   : > { %v1991_v4 = vsel %vm1843_vm2, %v1990_v17, %v1989_v38  ;;  %v1994_v38 = vsel %vm1843_vm2, %v1993_v2, %v1992_v30 }
 0x255   : > { %v2083_v17 = vsel %vm2034_vm3, %v1991_v4, %v1988_v26 }
 0x256   : > { %v11423_v23 = vpop.xlane.xlu1 %1636  ;;  %v2084_v60 = vsel %vm2036_vm4, %v1994_v38, %v2083_v17 }
 0x257   : > { %16575 = vst [vmem:[#allocation150_spill] sm:$0xff] %v11423_v23  ;;  %v1996_v61 = vperm.slane %v11423_v23, %v10922_v7 }
 0x258   : > { %v11425_v20 = vpop.xlane.xlu2 %1639 }
 0x259   : > { %16576 = vst [vmem:[#allocation151_spill] sm:$0xff] %v11425_v20  ;;  %v11427_v14 = vpop.xlane.xlu0 %1633 }
 0x25a   : > { %16577 = vst [vmem:[#allocation152_spill] sm:$0xff] %v11427_v14  ;;  %v1995_v31 = vperm.slane %v11427_v14, %v10910_v21  ;;  %v1998_v14 = vperm.slane %v11425_v20, %v10910_v21 }
 0x25c   : > { %v1997_v25 = vsel %vm1843_vm2, %v1996_v61, %v1995_v31 }
 0x25d   : > { %v2085_v30 = vsel %vm2038_vm5, %v1997_v25, %v2084_v60 }
 0x25e   : > { %v11429_v54 = vpop.xlane.xlu1 %1645 }
 0x25f   : > { %16578 = vst [vmem:[#allocation153_spill] sm:$0xff] %v11429_v54  ;;  %v2001_v4 = vperm.slane %v11429_v54, %v10910_v21 }
 0x260   : > { %v11431_v43 = vpop.xlane.xlu2 %1648 }
 0x261   : > { %16579 = vst [vmem:[#allocation154_spill] sm:$0xff] %v11431_v43  ;;  %v11433_v57 = vpop.xlane.xlu0 %1642  ;;  %v2002_v15 = vperm.slane %v11431_v43, %v10922_v7 }
 0x262   : > { %16580 = vst [vmem:[#allocation155_spill] sm:$0xff] %v11433_v57  ;;  %v1999_v59 = vperm.slane %v11433_v57, %v10922_v7 }
 0x263   : > { %v2003_v61 = vsel %vm1843_vm2, %v2002_v15, %v2001_v4 }
 0x264   : > { %v2000_v57 = vsel %vm1843_vm2, %v1999_v59, %v1998_v14 }
 0x265   : > { %v2086_v59 = vsel %vm2040_vm6, %v2000_v57, %v2085_v30 }
 0x266   : > { %v11441_v12 = vpop.xlane.xlu1 %1654  ;;  %v2087_v25 = vsel %vm2042_vm7, %v2003_v61, %v2086_v59 }
 0x267   : > { %16581 = vst [vmem:[#allocation156_spill] sm:$0xff] %v11441_v12  ;;  %v2005_v31 = vperm.slane %v11441_v12, %v10922_v7 }
 0x268   : > { %v11450_v50 = vpop.xlane.xlu2 %1657 }
 0x269   : > { %16582 = vst [vmem:[#allocation157_spill] sm:$0xff] %v11450_v50  ;;  %v11456_v53 = vpop.xlane.xlu0 %1651  ;;  %v2007_v38 = vperm.slane %v11450_v50, %v10910_v21 }
 0x26a   : > { %16583 = vst [vmem:[#allocation158_spill] sm:$0xff] %v11456_v53  ;;  %v2004_v32 = vperm.slane %v11456_v53, %v10910_v21 }
 0x26c   : > { %v2006_v17 = vsel %vm1843_vm2, %v2005_v31, %v2004_v32 }
 0x26d   : > { %v2088_v15 = vsel %vm2044_vm8, %v2006_v17, %v2087_v25 }
 0x26e   : > { %v11474_v26 = vpop.xlane.xlu1 %1663 }
 0x270   : > { %v11480_v2 = vpop.xlane.xlu2 %1666 }
 0x271   : > { %16584 = vst [vmem:[#allocation159_spill] sm:$0xff] %v11480_v2  ;;  %v11483_v14 = vpop.xlane.xlu0 %1660 }
 0x272   : > { %16585 = vst [vmem:[#allocation160_spill] sm:$0xff] %v11483_v14  ;;  %v2008_v54 = vperm.slane %v11483_v14, %v10922_v7  ;;  %v2010_v14 = vperm.slane %v11474_v26, %v10910_v21 }
 0x274   : > { %v2009_v60 = vsel %vm1843_vm2, %v2008_v54, %v2007_v38 }
 0x275   : > { %v2089_v4 = vsel %vm2046_vm9, %v2009_v60, %v2088_v15 }
 0x276   : > { %v2124_v57 = vsel %vm2105_vm10, %v2089_v4, -inf  ;;  %v11495_v30 = vpop.xlane.xlu1 %1672  ;;  %v2011_v4 = vperm.slane %v11480_v2, %v10922_v7 }
 0x277   : > { %16586 = vst [vmem:[#allocation161_spill] sm:$0xff] %v11495_v30  ;;  %2125 = vmax.xlane.f32.xlu2 %v2124_v57  ;;  %v2014_v57 = vperm.slane %v11495_v30, %v10922_v7 }
 0x278   : > { %v11497_v32 = vpop.xlane.xlu2 %1675  ;;  %v2012_v2 = vsel %vm1843_vm2, %v2011_v4, %v2010_v14 }
 0x279   : > { %16587 = vst [vmem:[#allocation162_spill] sm:$0xff] %v11497_v32  ;;  %v11499_v31 = vpop.xlane.xlu0 %1669  ;;  %v2016_v43 = vperm.slane %v11497_v32, %v10910_v21 }
 0x27a   : > { %16588 = vst [vmem:[#allocation163_spill] sm:$0xff] %v11499_v31  ;;  %v2013_v38 = vperm.slane %v11499_v31, %v10910_v21 }
 0x27c   : > { %v2015_v31 = vsel %vm1843_vm2, %v2014_v57, %v2013_v38 }
 0x27d   : > { %v2090_v38 = vsel %vm2034_vm3, %v2015_v31, %v2012_v2 }
 0x27e   : > { %v11501_v12 = vpop.xlane.xlu1 %1681 }
 0x27f   : > { %16589 = vst [vmem:[#allocation164_spill] sm:$0xff] %v11501_v12  ;;  %v2019_v30 = vperm.slane %v11501_v12, %v10910_v21 }
 0x280   : > { %v11505_v61 = vpop.xlane.xlu2 %1684 }
 0x281   : > { %v11503_v50 = vpop.xlane.xlu0 %1678  ;;  %16591 = vst [vmem:[#allocation166_spill] sm:$0xff] %v11505_v61 }
 0x282   : > { %16590 = vst [vmem:[#allocation165_spill] sm:$0xff] %v11503_v50  ;;  %v2017_v25 = vperm.slane %v11503_v50, %v10922_v7  ;;  %v2020_v50 = vperm.slane %v11505_v61, %v10922_v7 }
 0x284   : > { %v2018_v23 = vsel %vm1843_vm2, %v2017_v25, %v2016_v43  ;;  %v2021_v25 = vsel %vm1843_vm2, %v2020_v50, %v2019_v30 }
 0x285   : > { %v2091_v43 = vsel %vm2036_vm4, %v2018_v23, %v2090_v38 }
 0x286   : > { %v11507_v54 = vpop.xlane.xlu1 %1690  ;;  %v2092_v2 = vsel %vm2038_vm5, %v2021_v25, %v2091_v43 }
 0x287   : > { %16592 = vst [vmem:[#allocation167_spill] sm:$0xff] %v11507_v54  ;;  %v2023_v57 = vperm.slane %v11507_v54, %v10922_v7 }
 0x288   : > { %v11511_v17 = vpop.xlane.xlu2 %1693 }
 0x289   : > { %v11509_v59 = vpop.xlane.xlu0 %1687  ;;  %v2025_v14 = vperm.slane %v11511_v17, %v10910_v21 }
 0x28a   : > { %v2022_v20 = vperm.slane %v11509_v59, %v10910_v21 }
 0x28c   : > { %v2024_v4 = vsel %vm1843_vm2, %v2023_v57, %v2022_v20 }
 0x28d   : > { %v2093_v30 = vsel %vm2040_vm6, %v2024_v4, %v2092_v2  ;;  %v16156_v2 = vmov 0  }
 0x28e   : > { %v11517_v60 = vpop.xlane.xlu1 %1699  ;;  %8870 = vset.pattern.permute.xlu1 %v16156_v2  ;;  %8869 = vset.pattern.permute.xlu2 %v16156_v2 }
 0x28f   : > { %16593 = vst [vmem:[#allocation168_spill] sm:$0xff] %v11517_v60  ;;  %v2028_v31 = vperm.slane %v11517_v60, %v10910_v21  ;;  %8871 = vset.pattern.permute.xlu0 %v16156_v2 }
 0x290   : > { %v11540_v53 = vpop.xlane.xlu2 %1702 }
 0x291   : > { %v11519_v15 = vpop.xlane.xlu0 %1696  ;;  %16595 = vst [vmem:[#allocation170_spill] sm:$0xff] %v11540_v53  ;;  %v2029_v12 = vperm.slane %v11540_v53, %v10922_v7  ;;  %v16602_v53 = vld [vmem:[#allocation66_spill] sm:$0xff] }
 0x292   : > { %16594 = vst [vmem:[#allocation169_spill] sm:$0xff] %v11519_v15  ;;  %v2026_v32 = vperm.slane %v11519_v15, %v10922_v7 }
 0x293   : > { %v2030_v20 = vsel %vm1843_vm2, %v2029_v12, %v2028_v31 }
 0x294   : > { %v2027_v15 = vsel %vm1843_vm2, %v2026_v32, %v2025_v14 }
 0x295   : > { %v2094_v38 = vsel %vm2042_vm7, %v2027_v15, %v2093_v30  ;;  %v16597_v15 = vld [vmem:[#allocation61_spill] sm:$0xff] }
 0x296   : > { %v11558_v23 = vpop.xlane.xlu1 %1708  ;;  %v2095_v43 = vsel %vm2044_vm8, %v2030_v20, %v2094_v38  ;;  %v16599_v20 = vld [vmem:[#allocation54_spill] sm:$0xff] }
 0x297   : > { %16596 = vst [vmem:[#allocation171_spill] sm:$0xff] %v11558_v23  ;;  %v2032_v57 = vperm.slane %v11558_v23, %v10922_v7 }
 0x299   : > { %v11552_v61 = vpop.xlane.xlu0 %1705 }
 0x29a   : > { %v2031_v50 = vperm.slane %v11552_v61, %v10910_v21  ;;  %v16601_v21 = vld [vmem:[#allocation64_spill] sm:$0xff] }
 0x29c   : > { %v2033_v32 = vsel %vm1843_vm2, %v2032_v57, %v2031_v50  ;;  %v16598_v50 = vld [vmem:[#allocation50_spill] sm:$0xff] }
 0x29d   : > { %v2096_v25 = vsel %vm2046_vm9, %v2033_v32, %v2095_v43 }
 0x29e   : > { %v2127_v14 = vsel %vm2105_vm10, %v2096_v25, -inf }
 0x29f   : > { %2128 = vmax.xlane.f32.xlu0 %v2127_v14  ;;  %v16600_v14 = vld [vmem:[#allocation52_spill] sm:$0xff] }
 0x2a1   : > { %v11571_v60 = vpop.xlane.xlu0 %2110 }
 0x2a2   : > { %v2146_v4 = vperm.slane %v11571_v60, 0  ;;  %v2147_v12 = vperm.slane %v11571_v60, 1  ;;  %v2148_v57 = vperm.slane %v11571_v60, 2 }
 0x2a4   : > { %v2283_v31 = vsub.f32 %v16597_v15, %v2146_v4  ;;  %v2282_v30 = vsub.f32 %v16598_v50, %v2146_v4  ;;  %v2284_v38 = vsub.f32 %v16599_v20, %v2147_v12  ;;  %v2286_v7 = vsub.f32 %v16600_v14, %v2148_v57 }
 0x2a5   : > { %v2285_v23 = vsub.f32 %v16601_v21, %v2147_v12  ;;  %v2287_v15 = vsub.f32 %v16602_v53, %v2148_v57  ;;  %v2149_v21 = vperm.slane %v11571_v60, 3  ;;  %v2151_v57 = vperm.slane %v11571_v60, 5 }
 0x2a6   : > { %v2428_v32 = vmul.f32 1.442695, %v2283_v31  ;;  %v2426_v43 = vmul.f32 1.442695, %v2282_v30  ;;  %v2430_v25 = vmul.f32 1.442695, %v2284_v38 }
 0x2a7   : > { %v2434_v54 = vmul.f32 1.442695, %v2286_v7  ;;  %v2432_v4 = vmul.f32 1.442695, %v2285_v23  ;;  %v2436_v2 = vmul.f32 1.442695, %v2287_v15  ;;  %v2289_v53 = vsub.f32 %v10515_v19, %v2149_v21 }
 0x2a8   : > { %9138 = vpow2.f32 %v2428_v32  ;;  %v2150_v7 = vperm.slane %v11571_v60, 4  ;;  %v16606_v23 = vld [vmem:[#allocation56_spill] sm:$0xff]  ;;  %v16607_v30 = vld [vmem:[#allocation58_spill] sm:$0xff]  ;;  %v2292_v19 = vsub.f32 %v10461_v40, %v2151_v57 }
 0x2a9   : > { %9140 = vpow2.f32 %v2426_v43  ;;  %v2288_v12 = vsub.f32 %v16606_v23, %v2149_v21  ;;  %v2152_v21 = vperm.slane %v11571_v60, 6 }
 0x2aa   : > { %9142 = vpow2.f32 %v2430_v25  ;;  %v2290_v38 = vsub.f32 %v16607_v30, %v2150_v7  ;;  %v2291_v15 = vsub.f32 %v10534_v34, %v2150_v7  ;;  %v2153_v30 = vperm.slane %v11571_v60, 7 }
 0x2ab   : > { %9144 = vpow2.f32 %v2434_v54  ;;  %v2440_v54 = vmul.f32 1.442695, %v2289_v53  ;;  %v2446_v53 = vmul.f32 1.442695, %v2292_v19  ;;  %v2295_v34 = vsub.f32 %v10538_v46, %v2152_v21 }
 0x2ac   : > { %9146 = vpow2.f32 %v2432_v4  ;;  %v2442_v25 = vmul.f32 1.442695, %v2290_v38  ;;  %v2293_v4 = vsub.f32 %v10541_v5, %v2151_v57  ;;  %v2444_v23 = vmul.f32 1.442695, %v2291_v15  ;;  %v11623_v5 = vpop.xlane.xlu1 %2113 }
 0x2ad   : > { %9148 = vpow2.f32 %v2436_v2  ;;  %v2438_v2 = vmul.f32 1.442695, %v2288_v12  ;;  %v2294_v7 = vsub.f32 %v10482_v22, %v2152_v21  ;;  %v2296_v60 = vsub.f32 %v10490_v37, %v2153_v30  ;;  %v11638_v37 = vpop.xlane.xlu2 %2116  ;;  %v16617_v21 = vld [vmem:[#allocation76_spill] sm:$0xff] }
 0x2ae   : > { %v11585_v50 = vpop.eup %9138  ;;  %9150 = vpow2.f32 %v2440_v54  ;;  %v2448_v38 = vmul.f32 1.442695, %v2293_v4  ;;  %v2154_v57 = vperm.slane %v11623_v5, 0  ;;  %v2452_v54 = vmul.f32 1.442695, %v2295_v34 }
 0x2af   : > { %16603 = vst [vmem:[#allocation61_spill] sm:$0xff] %v11585_v50  ;;  %v11587_v20 = vpop.eup %9140  ;;  %2830 = vperm.xlu1 %8870, %v11585_v50   ;;  %9152 = vpow2.f32 %v2438_v2  ;;  %v2450_v2 = vmul.f32 1.442695, %v2294_v7  ;;  %v2454_v46 = vmul.f32 1.442695, %v2296_v60  ;;  %v2297_v4 = vsub.f32 %v10553_v52, %v2153_v30  ;;  %v16621_v30 = vld [vmem:[#allocation77_spill] sm:$0xff] }
 0x2b0   : > { %16604 = vst [vmem:[#allocation50_spill] sm:$0xff] %v11587_v20  ;;  %v11590_v31 = vpop.eup %9142  ;;  %2827 = vperm.xlu2 %8869, %v11587_v20   ;;  %9154 = vpow2.f32 %v2442_v25  ;;  %v2298_v22 = vsub.f32 %v10556_v51, %v2154_v57  ;;  %v2156_v51 = vperm.slane %v11623_v5, 2 }
 0x2b1   : > { %16605 = vst [vmem:[#allocation54_spill] sm:$0xff] %v11590_v31  ;;  %v11600_v32 = vpop.eup %9144  ;;  %9156 = vpow2.f32 %v2446_v53  ;;  %v2299_v53 = vsub.f32 %v16617_v21, %v2154_v57  ;;  %v2456_v34 = vmul.f32 1.442695, %v2297_v4  ;;  %v16622_v57 = vld [vmem:[#allocation71_spill] sm:$0xff] }
 0x2b2   : > { %16608 = vst [vmem:[#allocation52_spill] sm:$0xff] %v11600_v32  ;;  %v11602_v43 = vpop.eup %9146  ;;  %9158 = vpow2.f32 %v2444_v23  ;;  %v2155_v23 = vperm.slane %v11623_v5, 1 }
 0x2b3   : > { %2833 = vperm.xlu0 %8871, %v11590_v31   ;;  %16609 = vst [vmem:[#allocation64_spill] sm:$0xff] %v11602_v43  ;;  %v11605_v14 = vpop.eup %9148  ;;  %9160 = vpow2.f32 %v2448_v38  ;;  %v2458_v38 = vmul.f32 1.442695, %v2298_v22  ;;  %v2460_v60 = vmul.f32 1.442695, %v2299_v53  ;;  %v16623_v22 = vld [vmem:[#allocation70_spill] sm:$0xff] }
 0x2b4   : > { %16610 = vst [vmem:[#allocation66_spill] sm:$0xff] %v11605_v14  ;;  %v11613_v12 = vpop.eup %9150  ;;  %9162 = vpow2.f32 %v2452_v54  ;;  %v2302_v4 = vsub.f32 %v16623_v22, %v2156_v51  ;;  %v16166_v53 = vperm.slane %v11623_v5, 3 }
 0x2b5   : > { %16611 = vst [vmem:[#allocation56_spill] sm:$0xff] %v11613_v12  ;;  %9164 = vpow2.f32 %v2450_v2  ;;  %v2301_v2 = vsub.f32 %v16621_v30, %v2155_v23  ;;  %v11657_v21 = vpop.xlane.xlu2 %2107 }
 0x2b6   : > { %9166 = vpow2.f32 %v2454_v46  ;;  %v2300_v46 = vsub.f32 %v16622_v57, %v2155_v23  ;;  %v2466_v30 = vmul.f32 1.442695, %v2302_v4  ;;  %v2138_v4 = vperm.slane %v11657_v21, 0 }
 0x2b7   : > { %2839 = vperm.xlu1 %8870, %v11600_v32   ;;  %9168 = vpow2.f32 %v2458_v38  ;;  %v2142_v20 = vperm.slane %v11657_v21, 4 }
 0x2b8   : > { %2836 = vperm.xlu2 %8869, %v11602_v43   ;;  %v11616_v43 = vpop.eup %9152  ;;  %9170 = vpow2.f32 %v2456_v34  ;;  %v16627_v34 = vld [vmem:[#allocation72_spill] sm:$0xff] }
 0x2b9   : > { %16612 = vst [vmem:[#allocation58_spill] sm:$0xff] %v11616_v43  ;;  %v11619_v40 = vpop.eup %9154  ;;  %9172 = vpow2.f32 %v2460_v60  ;;  %v2304_v60 = vsub.f32 %v16627_v34, %v16166_v53 }
 0x2ba   : > { %16613 = vst [vmem:[#allocation172_spill] sm:$0xff] %v11619_v40  ;;  %v11629_v25 = vpop.eup %9156 }
 0x2bb   : > { %2842 = vperm.xlu0 %8871, %v11605_v14   ;;  %16614 = vst [vmem:[#allocation173_spill] sm:$0xff] %v11629_v25  ;;  %v11631_v19 = vpop.eup %9158  ;;  %v2470_v22 = vmul.f32 1.442695, %v2304_v60  ;;  %v11795_v14 = vpop.xlane.xlu1 %2122 }
 0x2bc   : > { %16615 = vst [vmem:[#allocation174_spill] sm:$0xff] %v11631_v19  ;;  %v11634_v15 = vpop.eup %9160 }
 0x2bd   : > { %16616 = vst [vmem:[#allocation175_spill] sm:$0xff] %v11634_v15  ;;  %v11644_v7 = vpop.eup %9162 }
 0x2be   : > { %16618 = vst [vmem:[#allocation76_spill] sm:$0xff] %v11644_v7  ;;  %v11647_v54 = vpop.eup %9164 }
 0x2bf   : > { %2848 = vperm.xlu1 %8870, %v11613_v12   ;;  %16619 = vst [vmem:[#allocation176_spill] sm:$0xff] %v11647_v54  ;;  %v11650_v52 = vpop.eup %9166 }
 0x2c0   : > { %2845 = vperm.xlu2 %8869, %v11616_v43   ;;  %16620 = vst [vmem:[#allocation177_spill] sm:$0xff] %v11650_v52  ;;  %v2462_v43 = vmul.f32 1.442695, %v2300_v46 }
 0x2c3   : > { %2851 = vperm.xlu0 %8871, %v11619_v40  }
 0x2c7   : > { %2857 = vperm.xlu1 %8870, %v11629_v25   ;;  %v2161_v25 = vperm.slane %v11623_v5, 7 }
 0x2c8   : > { %2854 = vperm.xlu2 %8869, %v11631_v19   ;;  %v2464_v19 = vmul.f32 1.442695, %v2301_v2  ;;  %v16628_v2 = vld [vmem:[#allocation79_spill] sm:$0xff] }
 0x2c9   : > { %v2303_v57 = vsub.f32 %v16628_v2, %v2156_v51  ;;  %v2275_v51 = vsub.f32 %v11139_v63, %v2142_v20 }
 0x2ca   : > { %9174 = vpow2.f32 %v2464_v19 }
 0x2cb   : > { %2860 = vperm.xlu0 %8871, %v11634_v15   ;;  %v11660_v15 = vpop.eup %9168  ;;  %9176 = vpow2.f32 %v2462_v43  ;;  %v2266_v43 = vsub.f32 %v16528_v45, %v2138_v4  ;;  %v2412_v45 = vmul.f32 1.442695, %v2275_v51 }
 0x2cc   : > { %16624 = vst [vmem:[#allocation77_spill] sm:$0xff] %v11660_v15  ;;  %v11663_v38 = vpop.eup %9170  ;;  %9178 = vpow2.f32 %v2466_v30  ;;  %v2140_v30 = vperm.slane %v11657_v21, 2 }
 0x2cd   : > { %16625 = vst [vmem:[#allocation71_spill] sm:$0xff] %v11663_v38  ;;  %v11666_v23 = vpop.eup %9172  ;;  %9180 = vpow2.f32 %v2470_v22  ;;  %v2394_v60 = vmul.f32 1.442695, %v2266_v43 }
 0x2ce   : > { %16626 = vst [vmem:[#allocation70_spill] sm:$0xff] %v11666_v23 }
 0x2cf   : > { %2866 = vperm.xlu1 %8870, %v11644_v7  }
 0x2d0   : > { %2863 = vperm.xlu2 %8869, %v11647_v54   ;;  %v2139_v54 = vperm.slane %v11657_v21, 1 }
 0x2d2   : > { %v2268_v46 = vsub.f32 %v16532_v11, %v2139_v54  ;;  %v2267_v11 = vsub.f32 %v11081_v8, %v2138_v4  ;;  %v2269_v63 = vsub.f32 %v11057_v24, %v2139_v54  ;;  %v2141_v4 = vperm.slane %v11657_v21, 3 }
 0x2d3   : > { %2869 = vperm.xlu0 %8871, %v11650_v52   ;;  %v2468_v52 = vmul.f32 1.442695, %v2303_v57 }
 0x2d4   : > { %v2398_v34 = vmul.f32 1.442695, %v2268_v46  ;;  %v2396_v2 = vmul.f32 1.442695, %v2267_v11  ;;  %v16168_v46 = vperm.slane %v11657_v21, 6  ;;  %v2272_v54 = vsub.f32 %v16536_v29, %v2141_v4 }
 0x2d5   : > { %9182 = vpow2.f32 %v2468_v52  ;;  %v2270_v52 = vsub.f32 %v16534_v42, %v2140_v30  ;;  %v2400_v43 = vmul.f32 1.442695, %v2269_v63  ;;  %v2145_v42 = vperm.slane %v11657_v21, 7 }
 0x2d6   : > { %9184 = vpow2.f32 %v2398_v34  ;;  %v2278_v22 = vsub.f32 %v16548_v39, %v16168_v46  ;;  %v2271_v39 = vsub.f32 %v11070_v49, %v2140_v30  ;;  %v2273_v49 = vsub.f32 %v11116_v33, %v2141_v4  ;;  %v16642_v30 = vld [vmem:[#allocation78_spill] sm:$0xff] }
 0x2d7   : > { %2875 = vperm.xlu1 %8870, %v11660_v15   ;;  %v11676_v15 = vpop.eup %9174  ;;  %9186 = vpow2.f32 %v2394_v60  ;;  %v2402_v34 = vmul.f32 1.442695, %v2270_v52 }
 0x2d8   : > { %2872 = vperm.xlu2 %8869, %v11663_v38   ;;  %16629 = vst [vmem:[#allocation72_spill] sm:$0xff] %v11676_v15  ;;  %v11679_v53 = vpop.eup %9176  ;;  %9188 = vpow2.f32 %v2396_v2  ;;  %v2418_v51 = vmul.f32 1.442695, %v2278_v22  ;;  %v2281_v2 = vsub.f32 %v11207_v56, %v2145_v42  ;;  %v2404_v52 = vmul.f32 1.442695, %v2271_v39 }
 0x2d9   : > { %16630 = vst [vmem:[#allocation79_spill] sm:$0xff] %v11679_v53  ;;  %v11682_v19 = vpop.eup %9178  ;;  %9190 = vpow2.f32 %v2412_v45  ;;  %v2406_v45 = vmul.f32 1.442695, %v2272_v54  ;;  %v16641_v56 = vperm.slane %v11623_v5, 3  ;;  %v2408_v39 = vmul.f32 1.442695, %v2273_v49 }
 0x2da   : > { %16631 = vst [vmem:[#allocation178_spill] sm:$0xff] %v11682_v19  ;;  %v11690_v57 = vpop.eup %9180  ;;  %9192 = vpow2.f32 %v2402_v34  ;;  %v2424_v22 = vmul.f32 1.442695, %v2281_v2  ;;  %v2274_v34 = vsub.f32 %v16540_v48, %v2142_v20  ;;  %v2159_v48 = vperm.slane %v11623_v5, 5  ;;  %v16647_v49 = vld [vmem:[#allocation73_spill] sm:$0xff] }
 0x2db   : > { %2878 = vperm.xlu0 %8871, %v11666_v23   ;;  %16632 = vst [vmem:[#allocation179_spill] sm:$0xff] %v11690_v57  ;;  %v11693_v38 = vpop.eup %9182  ;;  %9194 = vpow2.f32 %v2400_v43  ;;  %v2305_v43 = vsub.f32 %v16642_v30, %v16641_v56 }
 0x2dc   : > { %16633 = vst [vmem:[#allocation180_spill] sm:$0xff] %v11693_v38  ;;  %v11696_v8 = vpop.eup %9184  ;;  %9196 = vpow2.f32 %v2418_v51  ;;  %v2143_v51 = vperm.slane %v11657_v21, 5  ;;  %v2410_v54 = vmul.f32 1.442695, %v2274_v34  ;;  %v2308_v56 = vsub.f32 %v16647_v49, %v2159_v48 }
 0x2dd   : > { %16634 = vst [vmem:[#allocation181_spill] sm:$0xff] %v11696_v8  ;;  %v11706_v11 = vpop.eup %9186  ;;  %9198 = vpow2.f32 %v2406_v45  ;;  %v2472_v20 = vmul.f32 1.442695, %v2305_v43 }
 0x2de   : > { %16635 = vst [vmem:[#allocation182_spill] sm:$0xff] %v11706_v11  ;;  %v11709_v60 = vpop.eup %9188  ;;  %9200 = vpow2.f32 %v2404_v52  ;;  %v2277_v4 = vsub.f32 %v11128_v10, %v2143_v51  ;;  %v16646_v52 = vld [vmem:[#allocation129_spill] sm:$0xff]  ;;  %v2478_v10 = vmul.f32 1.442695, %v2308_v56  ;;  %v2158_v56 = vperm.slane %v11623_v5, 4 }
 0x2df   : > { %2884 = vperm.xlu1 %8870, %v11676_v15   ;;  %16636 = vst [vmem:[#allocation183_spill] sm:$0xff] %v11709_v60  ;;  %v11712_v24 = vpop.eup %9190  ;;  %9202 = vpow2.f32 %v2424_v22  ;;  %v2276_v22 = vsub.f32 %v16646_v52, %v2143_v51 }
 0x2e0   : > { %2881 = vperm.xlu2 %8869, %v11679_v53   ;;  %16637 = vst [vmem:[#allocation184_spill] sm:$0xff] %v11712_v24  ;;  %v11719_v63 = vpop.eup %9192  ;;  %9204 = vpow2.f32 %v2410_v54  ;;  %v2416_v30 = vmul.f32 1.442695, %v2277_v4  ;;  %v2160_v53 = vperm.slane %v11623_v5, 6  ;;  %v2280_v54 = vsub.f32 %v16552_v55, %v2145_v42 }
 0x2e1   : > { %16638 = vst [vmem:[#allocation185_spill] sm:$0xff] %v11719_v63  ;;  %v11721_v46 = vpop.eup %9194  ;;  %9206 = vpow2.f32 %v2408_v39  ;;  %v2414_v43 = vmul.f32 1.442695, %v2276_v22  ;;  %v16651_v39 = vperm.slane %v11657_v21, 6  ;;  %v16653_v22 = vld [vmem:[#allocation82_spill] sm:$0xff]  ;;  %v16180_v42 = vperm.slane %v11638_v37, 0 }
 0x2e2   : > { %16639 = vst [vmem:[#allocation186_spill] sm:$0xff] %v11721_v46  ;;  %v11724_v29 = vpop.eup %9196  ;;  %9208 = vpow2.f32 %v2472_v20  ;;  %v16652_v20 = vld [vmem:[#allocation86_spill] sm:$0xff]  ;;  %v2311_v49 = vsub.f32 %v16653_v22, %v2160_v53  ;;  %v2422_v23 = vmul.f32 1.442695, %v2280_v54  ;;  %v2312_v5 = vsub.f32 %v10608_v41, %v2161_v25 }
 0x2e3   : > { %2887 = vperm.xlu0 %8871, %v11682_v19   ;;  %16640 = vst [vmem:[#allocation187_spill] sm:$0xff] %v11724_v29  ;;  %v11734_v2 = vpop.eup %9198  ;;  %9210 = vpow2.f32 %v2416_v30  ;;  %v2279_v4 = vsub.f32 %v16652_v20, %v16651_v39  ;;  %v16657_v20 = vld [vmem:[#allocation81_spill] sm:$0xff] }
 0x2e4   : > { %16643 = vst [vmem:[#allocation78_spill] sm:$0xff] %v11734_v2  ;;  %v11737_v45 = vpop.eup %9200  ;;  %9212 = vpow2.f32 %v2414_v43  ;;  %v2484_v30 = vmul.f32 1.442695, %v2311_v49  ;;  %v2307_v43 = vsub.f32 %v16657_v20, %v2158_v56 }
 0x2e5   : > { %16644 = vst [vmem:[#allocation188_spill] sm:$0xff] %v11737_v45  ;;  %v11740_v33 = vpop.eup %9202  ;;  %9214 = vpow2.f32 %v2478_v10  ;;  %v16658_v10 = vld [vmem:[#allocation74_spill] sm:$0xff] }
 0x2e6   : > { %16645 = vst [vmem:[#allocation189_spill] sm:$0xff] %v11740_v33  ;;  %9216 = vpow2.f32 %v2422_v23  ;;  %v2306_v22 = vsub.f32 %v16658_v10, %v2158_v56  ;;  %v2476_v15 = vmul.f32 1.442695, %v2307_v43  ;;  %v2163_v23 = vperm.slane %v11638_v37, 1 }
 0x2e7   : > { %2893 = vperm.xlu1 %8870, %v11690_v57   ;;  %v2420_v57 = vmul.f32 1.442695, %v2279_v4  ;;  %v16659_v4 = vld [vmem:[#allocation88_spill] sm:$0xff] }
 0x2e8   : > { %2890 = vperm.xlu2 %8869, %v11693_v38   ;;  %v11749_v38 = vpop.eup %9204  ;;  %v2314_v49 = vsub.f32 %v16659_v4, %v16180_v42  ;;  %v2474_v40 = vmul.f32 1.442695, %v2306_v22  ;;  %v16665_v22 = vld [vmem:[#allocation100_spill] sm:$0xff] }
 0x2e9   : > { %16648 = vst [vmem:[#allocation129_spill] sm:$0xff] %v11749_v38  ;;  %v11752_v19 = vpop.eup %9206  ;;  %9218 = vpow2.f32 %v2420_v57  ;;  %v16663_v57 = vld [vmem:[#allocation75_spill] sm:$0xff]  ;;  %v2317_v4 = vsub.f32 %v16665_v22, %v2163_v23 }
 0x2ea   : > { %v11745_v34 = vpop.xlane.xlu2 %2125  ;;  %16649 = vst [vmem:[#allocation73_spill] sm:$0xff] %v11752_v19  ;;  %v11755_v51 = vpop.eup %9208  ;;  %9220 = vpow2.f32 %v2484_v30  ;;  %v2490_v7 = vmul.f32 1.442695, %v2314_v49  ;;  %v16664_v30 = vld [vmem:[#allocation84_spill] sm:$0xff] }
 0x2eb   : > { %2785 = vperm.xlu0 %8871, %v11696_v8   ;;  %16650 = vst [vmem:[#allocation190_spill] sm:$0xff] %v11755_v51  ;;  %v11767_v55 = vpop.eup %9210  ;;  %9222 = vpow2.f32 %v2476_v15  ;;  %v2309_v43 = vsub.f32 %v16664_v30, %v2159_v48  ;;  %v16187_v15 = vperm.slane %v11638_v37, 3  ;;  %v2313_v30 = vsub.f32 %v16525_v58, %v2161_v25 }
 0x2ec   : > { %16654 = vst [vmem:[#allocation86_spill] sm:$0xff] %v11767_v55  ;;  %v11770_v21 = vpop.eup %9212  ;;  %9224 = vpow2.f32 %v2474_v40 }
 0x2ed   : > { %16655 = vst [vmem:[#allocation82_spill] sm:$0xff] %v11770_v21  ;;  %v11773_v39 = vpop.eup %9214  ;;  %9226 = vpow2.f32 %v2490_v7  ;;  %v2488_v58 = vmul.f32 1.442695, %v2313_v30  ;;  %v16675_v30 = vld [vmem:[#allocation97_spill] sm:$0xff] }
 0x2ee   : > { %16656 = vst [vmem:[#allocation191_spill] sm:$0xff] %v11773_v39  ;;  %v11786_v20 = vpop.eup %9216 }
 0x2ef   : > { %2779 = vperm.xlu1 %8870, %v11706_v11   ;;  %16660 = vst [vmem:[#allocation81_spill] sm:$0xff] %v11786_v20  ;;  %v11789_v56 = vpop.eup %9218 }
 0x2f0   : > { %2782 = vperm.xlu2 %8869, %v11709_v60   ;;  %16661 = vst [vmem:[#allocation74_spill] sm:$0xff] %v11789_v56  ;;  %v11792_v10 = vpop.eup %9220 }
 0x2f1   : > { %16662 = vst [vmem:[#allocation88_spill] sm:$0xff] %v11792_v10 }
 0x2f3   : > { %2806 = vperm.xlu0 %8871, %v11712_v24  }
 0x2f7   : > { %2791 = vperm.xlu1 %8870, %v11719_v63  }
 0x2f8   : > { %2788 = vperm.xlu2 %8869, %v11721_v46  }
 0x2fb   : > { %2815 = vperm.xlu0 %8871, %v11724_v29  }
 0x2ff   : > { %2797 = vperm.xlu1 %8870, %v11734_v2  }
 0x300   : > { %2794 = vperm.xlu2 %8869, %v11737_v45  }
 0x303   : > { %2824 = vperm.xlu0 %8871, %v11740_v33  }
 0x307   : > { %2803 = vperm.xlu1 %8870, %v11749_v38  }
 0x308   : > { %2800 = vperm.xlu2 %8869, %v11752_v19  }
 0x30a   : > { %v11762_v52 = vpop.permute.xlu2 %2827 }
 0x30b   : > { %2896 = vperm.xlu0 %8871, %v11755_v51   ;;  %v11784_v51 = vpop.xlane.xlu0 %2119 }
 0x30f   : > { %2812 = vperm.xlu1 %8870, %v11767_v55  }
 0x310   : > { %2809 = vperm.xlu2 %8869, %v11770_v21   ;;  %v11806_v21 = vpop.eup %9222 }
 0x311   : > { %16666 = vst [vmem:[#allocation75_spill] sm:$0xff] %v11806_v21  ;;  %v11809_v48 = vpop.eup %9224 }
 0x312   : > { %v11778_v54 = vpop.permute.xlu2 %2836  ;;  %16667 = vst [vmem:[#allocation84_spill] sm:$0xff] %v11809_v48  ;;  %v11812_v40 = vpop.eup %9226 }
 0x313   : > { %2905 = vperm.xlu0 %8871, %v11773_v39   ;;  %v2310_v39 = vsub.f32 %v16663_v57, %v2160_v53  ;;  %v11801_v49 = vpop.xlane.xlu0 %2128  ;;  %v2480_v57 = vmul.f32 1.442695, %v2309_v43  ;;  %16668 = vst [vmem:[#allocation100_spill] sm:$0xff] %v11812_v40 }
 0x315   : > { %v2482_v53 = vmul.f32 1.442695, %v2310_v39  ;;  %v16669_v39 = vld [vmem:[#allocation92_spill] sm:$0xff] }
 0x316   : > { %v2320_v43 = vsub.f32 %v16669_v39, %v16187_v15 }
 0x317   : > { %2821 = vperm.xlu1 %8870, %v11786_v20   ;;  %9228 = vpow2.f32 %v2482_v53  ;;  %v2166_v53 = vperm.slane %v11638_v37, 4 }
 0x318   : > { %2818 = vperm.xlu2 %8869, %v11789_v56   ;;  %v2496_v56 = vmul.f32 1.442695, %v2317_v4  ;;  %9230 = vpow2.f32 %v2480_v57  ;;  %v16673_v57 = vld [vmem:[#allocation91_spill] sm:$0xff] }
 0x319   : > { %v2316_v39 = vsub.f32 %v16673_v57, %v2163_v23  ;;  %v2164_v23 = vperm.slane %v11638_v37, 2 }
 0x31a   : > { %v11803_v42 = vpop.permute.xlu2 %2845  ;;  %9232 = vpow2.f32 %v2496_v56  ;;  %v16674_v56 = vperm.slane %v11638_v37, 0 }
 0x31b   : > { %2914 = vperm.xlu0 %8871, %v11792_v10   ;;  %v2486_v10 = vmul.f32 1.442695, %v2312_v5  ;;  %9234 = vpow2.f32 %v2488_v58  ;;  %v2494_v57 = vmul.f32 1.442695, %v2316_v39  ;;  %v16200_v58 = vperm.slane %v11638_v37, 6 }
 0x31c   : > { %v2315_v5 = vsub.f32 %v16675_v30, %v16674_v56  ;;  %v16680_v30 = vld [vmem:[#allocation103_spill] sm:$0xff] }
 0x31d   : > { %9236 = vpow2.f32 %v2486_v10 }
 0x31f   : > { %2902 = vperm.xlu1 %8870, %v11806_v21   ;;  %v2502_v21 = vmul.f32 1.442695, %v2320_v43  ;;  %v16676_v43 = vld [vmem:[#allocation104_spill] sm:$0xff] }
 0x320   : > { %2899 = vperm.xlu2 %8869, %v11809_v48   ;;  %v11827_v48 = vpop.eup %9228 }
 0x321   : > { %v11816_v7 = vpop.permute.xlu1 %2830  ;;  %16670 = vst [vmem:[#allocation92_spill] sm:$0xff] %v11827_v48  ;;  %v11830_v41 = vpop.eup %9230  ;;  %9238 = vpow2.f32 %v2502_v21  ;;  %v16681_v21 = vld [vmem:[#allocation90_spill] sm:$0xff] }
 0x322   : > { %v11823_v22 = vpop.permute.xlu2 %2854  ;;  %16671 = vst [vmem:[#allocation192_spill] sm:$0xff] %v11830_v41  ;;  %v11833_v25 = vpop.eup %9232  ;;  %9240 = vpow2.f32 %v2494_v57 }
 0x323   : > { %2923 = vperm.xlu0 %8871, %v11812_v40   ;;  %16672 = vst [vmem:[#allocation193_spill] sm:$0xff] %v11833_v25  ;;  %v2323_v40 = vsub.f32 %v16676_v43, %v2166_v53  ;;  %v11849_v12 = vpop.eup %9234  ;;  %v2319_v43 = vsub.f32 %v16680_v30, %v2164_v23 }
 0x324   : > { %16677 = vst [vmem:[#allocation91_spill] sm:$0xff] %v11849_v12  ;;  %v11852_v56 = vpop.eup %9236 }
 0x325   : > { %v11825_v4 = vpop.permute.xlu0 %2833  ;;  %v2508_v19 = vmul.f32 1.442695, %v2323_v40  ;;  %16678 = vst [vmem:[#allocation97_spill] sm:$0xff] %v11852_v56  ;;  %v16682_v40 = vld [vmem:[#allocation95_spill] sm:$0xff]  ;;  %v2500_v30 = vmul.f32 1.442695, %v2319_v43 }
 0x326   : > { %v16688_v43 = vld [vmem:[#allocation102_spill] sm:$0xff] }
 0x327   : > { %2911 = vperm.xlu1 %8870, %v11827_v48   ;;  %v11855_v10 = vpop.eup %9238 }
 0x328   : > { %2908 = vperm.xlu2 %8869, %v11830_v41   ;;  %v2492_v41 = vmul.f32 1.442695, %v2315_v5  ;;  %16679 = vst [vmem:[#allocation104_spill] sm:$0xff] %v11855_v10  ;;  %v2326_v5 = vsub.f32 %v16682_v40, %v16200_v58 }
 0x329   : > { %v11837_v15 = vpop.permute.xlu1 %2839 }
 0x32a   : > { %v11844_v31 = vpop.permute.xlu2 %2863  ;;  %9242 = vpow2.f32 %v2492_v41  ;;  %v2514_v57 = vmul.f32 1.442695, %v2326_v5  ;;  %v16689_v5 = vld [vmem:[#allocation109_spill] sm:$0xff] }
 0x32b   : > { %2932 = vperm.xlu0 %8871, %v11833_v25   ;;  %v2318_v25 = vsub.f32 %v16681_v21, %v2164_v23  ;;  %9244 = vpow2.f32 %v2508_v19  ;;  %v2169_v23 = vperm.slane %v11638_v37, 7  ;;  %v16687_v19 = vperm.slane %v11638_v37, 3 }
 0x32c   : > { %9246 = vpow2.f32 %v2500_v30 }
 0x32d   : > { %v11846_v48 = vpop.permute.xlu0 %2842  ;;  %v2498_v32 = vmul.f32 1.442695, %v2318_v25  ;;  %v2321_v25 = vsub.f32 %v16688_v43, %v16687_v19  ;;  %v2329_v63 = vsub.f32 %v16689_v5, %v2169_v23  ;;  %v16213_v19 = vperm.slane %v11784_v51, 1  ;;  %v16693_v5 = vld [vmem:[#allocation108_spill] sm:$0xff] }
 0x32f   : > { %2920 = vperm.xlu1 %8870, %v11849_v12   ;;  %9248 = vpow2.f32 %v2498_v32  ;;  %v2504_v30 = vmul.f32 1.442695, %v2321_v25  ;;  %v2520_v50 = vmul.f32 1.442695, %v2329_v63  ;;  %v16695_v63 = vld [vmem:[#allocation113_spill] sm:$0xff] }
 0x330   : > { %2917 = vperm.xlu2 %8869, %v11852_v56   ;;  %v11870_v56 = vpop.eup %9240  ;;  %9250 = vpow2.f32 %v2514_v57  ;;  %v16694_v57 = vld [vmem:[#allocation93_spill] sm:$0xff]  ;;  %v2332_v25 = vsub.f32 %v16695_v63, %v16213_v19 }
 0x331   : > { %v11860_v39 = vpop.permute.xlu1 %2848  ;;  %16683 = vst [vmem:[#allocation103_spill] sm:$0xff] %v11870_v56  ;;  %v11873_v21 = vpop.eup %9242 }
 0x332   : > { %v11866_v33 = vpop.permute.xlu2 %2872  ;;  %16684 = vst [vmem:[#allocation90_spill] sm:$0xff] %v11873_v21  ;;  %v11876_v41 = vpop.eup %9244 }
 0x333   : > { %2941 = vperm.xlu0 %8871, %v11855_v10   ;;  %16685 = vst [vmem:[#allocation95_spill] sm:$0xff] %v11876_v41  ;;  %v16686_v10 = vld [vmem:[#allocation94_spill] sm:$0xff] }
 0x334   : > { %v2322_v40 = vsub.f32 %v16686_v10, %v2166_v53  ;;  %v2167_v53 = vperm.slane %v11638_v37, 5 }
 0x335   : > { %v11868_v12 = vpop.permute.xlu0 %2851 }
 0x336   : > { %v2506_v10 = vmul.f32 1.442695, %v2322_v40  ;;  %v2324_v60 = vsub.f32 %v16694_v57, %v2167_v53 }
 0x337   : > { %2929 = vperm.xlu1 %8870, %v11870_v56  }
 0x338   : > { %2926 = vperm.xlu2 %8869, %v11873_v21   ;;  %v11892_v21 = vpop.eup %9246  ;;  %9252 = vpow2.f32 %v2506_v10  ;;  %v2510_v20 = vmul.f32 1.442695, %v2324_v60  ;;  %v2526_v10 = vmul.f32 1.442695, %v2332_v25  ;;  %v16702_v25 = vld [vmem:[#allocation143_spill] sm:$0xff] }
 0x339   : > { %v11883_v58 = vpop.permute.xlu1 %2857  ;;  %16690 = vst [vmem:[#allocation94_spill] sm:$0xff] %v11892_v21  ;;  %v11895_v43 = vpop.eup %9248  ;;  %9254 = vpow2.f32 %v2504_v30 }
 0x33a   : > { %v11887_v29 = vpop.permute.xlu2 %2881  ;;  %16691 = vst [vmem:[#allocation102_spill] sm:$0xff] %v11895_v43  ;;  %v11898_v32 = vpop.eup %9250  ;;  %9256 = vpow2.f32 %v2520_v50  ;;  %v16700_v50 = vperm.slane %v11638_v37, 6  ;;  %v16224_v37 = vperm.slane %v11784_v51, 4 }
 0x33b   : > { %2950 = vperm.xlu0 %8871, %v11876_v41   ;;  %16692 = vst [vmem:[#allocation109_spill] sm:$0xff] %v11898_v32  ;;  %v2325_v41 = vsub.f32 %v16693_v5, %v2167_v53  ;;  %v2172_v53 = vperm.slane %v11784_v51, 2 }
 0x33d   : > { %v11889_v56 = vpop.permute.xlu0 %2860  ;;  %v2512_v5 = vmul.f32 1.442695, %v2325_v41  ;;  %v16701_v41 = vld [vmem:[#allocation106_spill] sm:$0xff]  ;;  %v2335_v2 = vsub.f32 %v16702_v25, %v2172_v53  ;;  %v16706_v25 = vld [vmem:[#allocation136_spill] sm:$0xff] }
 0x33e   : > { %v2327_v60 = vsub.f32 %v16701_v41, %v16700_v50 }
 0x33f   : > { %2938 = vperm.xlu1 %8870, %v11892_v21   ;;  %9258 = vpow2.f32 %v2512_v5  ;;  %v2532_v50 = vmul.f32 1.442695, %v2335_v2  ;;  %v2338_v2 = vsub.f32 %v16558_v6, %v16224_v37 }
 0x340   : > { %2935 = vperm.xlu2 %8869, %v11895_v43   ;;  %v11913_v43 = vpop.eup %9252  ;;  %9260 = vpow2.f32 %v2510_v20  ;;  %v2516_v5 = vmul.f32 1.442695, %v2327_v60 }
 0x341   : > { %v11903_v40 = vpop.permute.xlu1 %2866  ;;  %16696 = vst [vmem:[#allocation108_spill] sm:$0xff] %v11913_v43  ;;  %v11916_v57 = vpop.eup %9254  ;;  %9262 = vpow2.f32 %v2526_v10  ;;  %v16707_v10 = vld [vmem:[#allocation111_spill] sm:$0xff] }
 0x342   : > { %v11909_v24 = vpop.permute.xlu2 %2890  ;;  %16697 = vst [vmem:[#allocation93_spill] sm:$0xff] %v11916_v57  ;;  %v11919_v30 = vpop.eup %9256 }
 0x343   : > { %2959 = vperm.xlu0 %8871, %v11898_v32   ;;  %16698 = vst [vmem:[#allocation113_spill] sm:$0xff] %v11919_v30  ;;  %v16699_v32 = vld [vmem:[#allocation99_spill] sm:$0xff] }
 0x344   : > { %v2328_v63 = vsub.f32 %v16699_v32, %v2169_v23  ;;  %v2170_v32 = vperm.slane %v11784_v51, 0 }
 0x345   : > { %v11911_v21 = vpop.permute.xlu0 %2869 }
 0x346   : > { %v2518_v23 = vmul.f32 1.442695, %v2328_v63  ;;  %v2330_v63 = vsub.f32 %v16707_v10, %v2170_v32 }
 0x347   : > { %2947 = vperm.xlu1 %8870, %v11913_v43  }
 0x348   : > { %2944 = vperm.xlu2 %8869, %v11916_v57   ;;  %v11935_v57 = vpop.eup %9258  ;;  %9264 = vpow2.f32 %v2518_v23  ;;  %v2522_v38 = vmul.f32 1.442695, %v2330_v63  ;;  %v2175_v23 = vperm.slane %v11784_v51, 5 }
 0x349   : > { %v11926_v19 = vpop.permute.xlu1 %2875  ;;  %16703 = vst [vmem:[#allocation99_spill] sm:$0xff] %v11935_v57  ;;  %v11938_v41 = vpop.eup %9260  ;;  %9266 = vpow2.f32 %v2516_v5 }
 0x34a   : > { %v11930_v55 = vpop.permute.xlu2 %2782  ;;  %16704 = vst [vmem:[#allocation106_spill] sm:$0xff] %v11938_v41  ;;  %v11941_v20 = vpop.eup %9262  ;;  %9268 = vpow2.f32 %v2532_v50  ;;  %v16712_v50 = vperm.slane %v11784_v51, 1 }
 0x34b   : > { %2968 = vperm.xlu0 %8871, %v11919_v30   ;;  %16705 = vst [vmem:[#allocation143_spill] sm:$0xff] %v11941_v20  ;;  %v2331_v30 = vsub.f32 %v16706_v25, %v2170_v32  ;;  %v2538_v32 = vmul.f32 1.442695, %v2338_v2  ;;  %v2341_v2 = vsub.f32 %v11027_v28, %v2175_v23 }
 0x34d   : > { %v11932_v43 = vpop.permute.xlu0 %2878  ;;  %v2524_v25 = vmul.f32 1.442695, %v2331_v30  ;;  %v16713_v30 = vld [vmem:[#allocation134_spill] sm:$0xff] }
 0x34e   : > { %v2333_v63 = vsub.f32 %v16713_v30, %v16712_v50  ;;  %v16232_v50 = vperm.slane %v11784_v51, 7  ;;  %v2544_v30 = vmul.f32 1.442695, %v2341_v2 }
 0x34f   : > { %2956 = vperm.xlu1 %8870, %v11935_v57   ;;  %9270 = vpow2.f32 %v2524_v25 }
 0x350   : > { %2953 = vperm.xlu2 %8869, %v11938_v41   ;;  %v11956_v41 = vpop.eup %9264  ;;  %9272 = vpow2.f32 %v2522_v38  ;;  %v2528_v25 = vmul.f32 1.442695, %v2333_v63  ;;  %v2344_v63 = vsub.f32 %v16561_v35, %v16232_v50  ;;  %v2340_v35 = vsub.f32 %v16555_v13, %v2175_v23 }
 0x351   : > { %v11946_v8 = vpop.permute.xlu1 %2884  ;;  %16708 = vst [vmem:[#allocation136_spill] sm:$0xff] %v11956_v41  ;;  %v11959_v10 = vpop.eup %9266  ;;  %9274 = vpow2.f32 %v2538_v32  ;;  %v2176_v13 = vperm.slane %v11784_v51, 6 }
 0x352   : > { %v11952_v60 = vpop.permute.xlu2 %2788  ;;  %16709 = vst [vmem:[#allocation111_spill] sm:$0xff] %v11959_v10  ;;  %v11962_v5 = vpop.eup %9268  ;;  %v2542_v23 = vmul.f32 1.442695, %v2340_v35 }
 0x353   : > { %2977 = vperm.xlu0 %8871, %v11941_v20   ;;  %16710 = vst [vmem:[#allocation194_spill] sm:$0xff] %v11962_v5  ;;  %v16711_v20 = vld [vmem:[#allocation112_spill] sm:$0xff] }
 0x354   : > { %v2334_v6 = vsub.f32 %v16711_v20, %v2172_v53  ;;  %v2173_v53 = vperm.slane %v11784_v51, 3 }
 0x355   : > { %v11954_v57 = vpop.permute.xlu0 %2887 }
 0x356   : > { %v2530_v20 = vmul.f32 1.442695, %v2334_v6  ;;  %v2337_v28 = vsub.f32 %v10967_v36, %v2173_v53  ;;  %v2336_v32 = vsub.f32 %v16549_v47, %v2173_v53  ;;  %v2178_v47 = vperm.slane %v11795_v14, 0 }
 0x357   : > { %2965 = vperm.xlu1 %8870, %v11956_v41  }
 0x358   : > { %2962 = vperm.xlu2 %8869, %v11959_v10   ;;  %v11978_v10 = vpop.eup %9270  ;;  %9276 = vpow2.f32 %v2530_v20  ;;  %v2536_v36 = vmul.f32 1.442695, %v2337_v28  ;;  %v2550_v20 = vmul.f32 1.442695, %v2344_v63  ;;  %v2347_v63 = vsub.f32 %v11322_v9, %v2178_v47 }
 0x359   : > { %v11969_v37 = vpop.permute.xlu1 %2893  ;;  %16714 = vst [vmem:[#allocation112_spill] sm:$0xff] %v11978_v10  ;;  %v11981_v46 = vpop.eup %9272  ;;  %9278 = vpow2.f32 %v2528_v25  ;;  %v2343_v9 = vsub.f32 %v11016_v0, %v2176_v13 }
 0x35a   : > { %v11973_v45 = vpop.permute.xlu2 %2794  ;;  %16715 = vst [vmem:[#allocation134_spill] sm:$0xff] %v11981_v46  ;;  %v11984_v38 = vpop.eup %9274  ;;  %9280 = vpow2.f32 %v2544_v30  ;;  %v16720_v30 = vperm.slane %v11784_v51, 4 }
 0x35b   : > { %2986 = vperm.xlu0 %8871, %v11962_v5   ;;  %16716 = vst [vmem:[#allocation195_spill] sm:$0xff] %v11984_v38  ;;  %9282 = vpow2.f32 %v2536_v36  ;;  %v2548_v0 = vmul.f32 1.442695, %v2343_v9 }
 0x35c   : > { %v2339_v28 = vsub.f32 %v16553_v62, %v16720_v30  ;;  %v16239_v62 = vperm.slane %v11795_v14, 2  ;;  %v2556_v30 = vmul.f32 1.442695, %v2347_v63 }
 0x35d   : > { %v11975_v41 = vpop.permute.xlu0 %2785 }
 0x35e   : > { %v2540_v36 = vmul.f32 1.442695, %v2339_v28  ;;  %v2350_v28 = vsub.f32 %v11263_v3, %v16239_v62  ;;  %v2346_v3 = vsub.f32 %v11200_v27, %v2178_v47  ;;  %v2179_v27 = vperm.slane %v11795_v14, 1 }
 0x35f   : > { %2974 = vperm.xlu1 %8870, %v11978_v10   ;;  %v2534_v10 = vmul.f32 1.442695, %v2336_v32 }
 0x360   : > { %2971 = vperm.xlu2 %8869, %v11981_v46   ;;  %v11999_v46 = vpop.eup %9276  ;;  %v2554_v47 = vmul.f32 1.442695, %v2346_v3 }
 0x361   : > { %v11989_v6 = vpop.permute.xlu1 %2779  ;;  %16717 = vst [vmem:[#allocation196_spill] sm:$0xff] %v11999_v46  ;;  %v12002_v53 = vpop.eup %9278  ;;  %9284 = vpow2.f32 %v2534_v10 }
 0x362   : > { %v11995_v2 = vpop.permute.xlu2 %2800  ;;  %16718 = vst [vmem:[#allocation197_spill] sm:$0xff] %v12002_v53  ;;  %v12005_v25 = vpop.eup %9280  ;;  %9286 = vpow2.f32 %v2550_v20  ;;  %v2342_v20 = vsub.f32 %v16559_v1, %v2176_v13  ;;  %v2181_v1 = vperm.slane %v11795_v14, 3  ;;  %v2562_v13 = vmul.f32 1.442695, %v2350_v28 }
 0x363   : > { %2995 = vperm.xlu0 %8871, %v11984_v38   ;;  %16719 = vst [vmem:[#allocation198_spill] sm:$0xff] %v12005_v25  ;;  %9288 = vpow2.f32 %v2542_v23 }
 0x364   : > { %9290 = vpow2.f32 %v2540_v36  ;;  %v2353_v28 = vsub.f32 %v11346_v18, %v2181_v1  ;;  %v2349_v18 = vsub.f32 %v11319_v44, %v2179_v27 }
 0x365   : > { %v11997_v5 = vpop.permute.xlu0 %2806  ;;  %9292 = vpow2.f32 %v2556_v30  ;;  %v16728_v30 = vperm.slane %v11784_v51, 7 }
 0x366   : > { %9294 = vpow2.f32 %v2548_v0  ;;  %v2568_v51 = vmul.f32 1.442695, %v2353_v28  ;;  %v2560_v44 = vmul.f32 1.442695, %v2349_v18  ;;  %v16741_v18 = vld [vmem:[#allocation131_spill] sm:$0xff] }
 0x367   : > { %2983 = vperm.xlu1 %8870, %v11999_v46   ;;  %v2345_v9 = vsub.f32 %v11000_v16, %v16728_v30  ;;  %v16248_v16 = vperm.slane %v11795_v14, 5 }
 0x368   : > { %2980 = vperm.xlu2 %8869, %v12002_v53   ;;  %v12021_v53 = vpop.eup %9282 }
 0x369   : > { %v12012_v32 = vpop.permute.xlu1 %2791  ;;  %16721 = vst [vmem:[#allocation199_spill] sm:$0xff] %v12021_v53  ;;  %v12024_v46 = vpop.eup %9284  ;;  %v2552_v0 = vmul.f32 1.442695, %v2345_v9  ;;  %v16734_v9 = vld [vmem:[#allocation130_spill] sm:$0xff] }
 0x36a   : > { %v12016_v50 = vpop.permute.xlu2 %2809  ;;  %16722 = vst [vmem:[#allocation200_spill] sm:$0xff] %v12024_v46  ;;  %v12027_v10 = vpop.eup %9286  ;;  %v2356_v28 = vsub.f32 %v16734_v9, %v16248_v16 }
 0x36b   : > { %3004 = vperm.xlu0 %8871, %v12005_v25   ;;  %16723 = vst [vmem:[#allocation201_spill] sm:$0xff] %v12027_v10 }
 0x36d   : > { %v12018_v38 = vpop.permute.xlu0 %2815 }
 0x36f   : > { %2992 = vperm.xlu1 %8870, %v12021_v53   ;;  %v2546_v53 = vmul.f32 1.442695, %v2342_v20 }
 0x370   : > { %2989 = vperm.xlu2 %8869, %v12024_v46   ;;  %v12042_v46 = vpop.eup %9288 }
 0x371   : > { %v12032_v35 = vpop.permute.xlu1 %2797  ;;  %16725 = vst [vmem:[#allocation203_spill] sm:$0xff] %v12042_v46  ;;  %v12045_v23 = vpop.eup %9290  ;;  %9296 = vpow2.f32 %v2546_v53 }
 0x372   : > { %v12038_v63 = vpop.permute.xlu2 %2818  ;;  %16726 = vst [vmem:[#allocation204_spill] sm:$0xff] %v12045_v23  ;;  %v12048_v36 = vpop.eup %9292  ;;  %9298 = vpow2.f32 %v2562_v13  ;;  %v16733_v13 = vld [vmem:[#allocation127_spill] sm:$0xff] }
 0x373   : > { %3013 = vperm.xlu0 %8871, %v12027_v10   ;;  %16727 = vst [vmem:[#allocation205_spill] sm:$0xff] %v12048_v36  ;;  %9300 = vpow2.f32 %v2554_v47  ;;  %v2574_v47 = vmul.f32 1.442695, %v2356_v28  ;;  %v16743_v28 = vld [vmem:[#allocation118_spill] sm:$0xff] }
 0x374   : > { %9302 = vpow2.f32 %v2552_v0 }
 0x375   : > { %v12040_v25 = vpop.permute.xlu0 %2824  ;;  %9304 = vpow2.f32 %v2568_v51  ;;  %v16740_v51 = vperm.slane %v11795_v14, 2 }
 0x376   : > { %16724 = vst [vmem:[#allocation202_spill] sm:$0xff] %v12040_v25  ;;  %9306 = vpow2.f32 %v2560_v44 }
 0x377   : > { %3001 = vperm.xlu1 %8870, %v12042_v46  }
 0x378   : > { %2998 = vperm.xlu2 %8869, %v12045_v23   ;;  %v12064_v23 = vpop.eup %9294 }
 0x379   : > { %v12055_v20 = vpop.permute.xlu1 %2803  ;;  %16730 = vst [vmem:[#allocation207_spill] sm:$0xff] %v12064_v23  ;;  %v12067_v30 = vpop.eup %9296 }
 0x37a   : > { %v12059_v62 = vpop.permute.xlu2 %2899  ;;  %16731 = vst [vmem:[#allocation208_spill] sm:$0xff] %v12067_v30  ;;  %v12070_v53 = vpop.eup %9298 }
 0x37b   : > { %3022 = vperm.xlu0 %8871, %v12048_v36   ;;  %16729 = vst [vmem:[#allocation206_spill] sm:$0xff] %v12059_v62  ;;  %v2348_v36 = vsub.f32 %v16733_v13, %v2179_v27  ;;  %v2184_v27 = vperm.slane %v11795_v14, 6 }
 0x37c   : > { %16732 = vst [vmem:[#allocation209_spill] sm:$0xff] %v12070_v53 }
 0x37d   : > { %v12061_v10 = vpop.permute.xlu0 %2896  ;;  %v2558_v11 = vmul.f32 1.442695, %v2348_v36  ;;  %v2351_v36 = vsub.f32 %v16741_v18, %v16740_v51  ;;  %v16257_v51 = vperm.slane %v11745_v34, 0 }
 0x37f   : > { %3010 = vperm.xlu1 %8870, %v12064_v23   ;;  %9308 = vpow2.f32 %v2558_v11  ;;  %v2564_v44 = vmul.f32 1.442695, %v2351_v36 }
 0x380   : > { %3007 = vperm.xlu2 %8869, %v12067_v30   ;;  %v12085_v30 = vpop.eup %9300  ;;  %9310 = vpow2.f32 %v2574_v47  ;;  %v16750_v47 = vld [vmem:[#allocation121_spill] sm:$0xff] }
 0x381   : > { %v12075_v3 = vpop.permute.xlu1 %2812  ;;  %16736 = vst [vmem:[#allocation130_spill] sm:$0xff] %v12085_v30  ;;  %v12088_v13 = vpop.eup %9302 }
 0x382   : > { %v12081_v46 = vpop.permute.xlu2 %2908  ;;  %16737 = vst [vmem:[#allocation210_spill] sm:$0xff] %v12088_v13  ;;  %v12091_v0 = vpop.eup %9304 }
 0x383   : > { %3031 = vperm.xlu0 %8871, %v12070_v53   ;;  %16735 = vst [vmem:[#allocation127_spill] sm:$0xff] %v12081_v46  ;;  %v16739_v53 = vld [vmem:[#allocation124_spill] sm:$0xff]  ;;  %v2359_v46 = vsub.f32 %v16743_v28, %v2184_v27  ;;  %v16749_v28 = vld [vmem:[#allocation126_spill] sm:$0xff] }
 0x384   : > { %16738 = vst [vmem:[#allocation211_spill] sm:$0xff] %v12091_v0  ;;  %v2352_v9 = vsub.f32 %v16739_v53, %v2181_v1  ;;  %v2182_v1 = vperm.slane %v11795_v14, 4 }
 0x385   : > { %v12083_v23 = vpop.permute.xlu0 %2905  ;;  %v2580_v25 = vmul.f32 1.442695, %v2359_v46  ;;  %v16751_v46 = vld [vmem:[#allocation146_spill] sm:$0xff] }
 0x386   : > { %v2566_v53 = vmul.f32 1.442695, %v2352_v9  ;;  %v2362_v36 = vsub.f32 %v16751_v46, %v16257_v51 }
 0x387   : > { %3019 = vperm.xlu1 %8870, %v12085_v30  }
 0x388   : > { %3016 = vperm.xlu2 %8869, %v12088_v13   ;;  %v12107_v13 = vpop.eup %9306  ;;  %9312 = vpow2.f32 %v2566_v53  ;;  %v2586_v53 = vmul.f32 1.442695, %v2362_v36  ;;  %v16761_v36 = vld [vmem:[#allocation149_spill] sm:$0xff] }
 0x389   : > { %v12098_v16 = vpop.permute.xlu1 %2821  ;;  %16746 = vst [vmem:[#allocation212_spill] sm:$0xff] %v12107_v13  ;;  %v12110_v18 = vpop.eup %9308  ;;  %9314 = vpow2.f32 %v2564_v44 }
 0x38a   : > { %16742 = vst [vmem:[#allocation124_spill] sm:$0xff] %v12098_v16  ;;  %v12102_v62 = vpop.permute.xlu2 %2917  ;;  %v12113_v11 = vpop.eup %9310  ;;  %9316 = vpow2.f32 %v2580_v25  ;;  %v16758_v25 = vperm.slane %v11795_v14, 5 }
 0x38b   : > { %3040 = vperm.xlu0 %8871, %v12091_v0   ;;  %16744 = vst [vmem:[#allocation131_spill] sm:$0xff] %v12102_v62  ;;  %v2355_v0 = vsub.f32 %v16749_v28, %v2182_v1 }
 0x38c   : > { %16747 = vst [vmem:[#allocation213_spill] sm:$0xff] %v12110_v18 }
 0x38d   : > { %v12104_v30 = vpop.permute.xlu0 %2914  ;;  %16748 = vst [vmem:[#allocation214_spill] sm:$0xff] %v12113_v11  ;;  %v2572_v28 = vmul.f32 1.442695, %v2355_v0  ;;  %v16759_v0 = vld [vmem:[#allocation138_spill] sm:$0xff] }
 0x38e   : > { %16745 = vst [vmem:[#allocation118_spill] sm:$0xff] %v12104_v30  ;;  %v2354_v30 = vsub.f32 %v16750_v47, %v2182_v1  ;;  %v2187_v1 = vperm.slane %v11745_v34, 1 }
 0x38f   : > { %3028 = vperm.xlu1 %8870, %v12107_v13   ;;  %9318 = vpow2.f32 %v2572_v28 }
 0x390   : > { %3025 = vperm.xlu2 %8869, %v12110_v18   ;;  %v2570_v16 = vmul.f32 1.442695, %v2354_v30  ;;  %v12128_v18 = vpop.eup %9312  ;;  %v2357_v30 = vsub.f32 %v16759_v0, %v16758_v25  ;;  %v16264_v25 = vperm.slane %v11745_v34, 3 }
 0x391   : > { %v12118_v9 = vpop.permute.xlu1 %2902  ;;  %16754 = vst [vmem:[#allocation146_spill] sm:$0xff] %v12128_v18  ;;  %v12131_v47 = vpop.eup %9314 }
 0x392   : > { %v12124_v62 = vpop.permute.xlu2 %2926  ;;  %16755 = vst [vmem:[#allocation215_spill] sm:$0xff] %v12131_v47  ;;  %v12134_v44 = vpop.eup %9316  ;;  %9320 = vpow2.f32 %v2570_v16  ;;  %v2576_v28 = vmul.f32 1.442695, %v2357_v30 }
 0x393   : > { %3049 = vperm.xlu0 %8871, %v12113_v11   ;;  %16752 = vst [vmem:[#allocation126_spill] sm:$0xff] %v12124_v62  ;;  %v16757_v11 = vld [vmem:[#allocation115_spill] sm:$0xff]  ;;  %v2365_v62 = vsub.f32 %v16761_v36, %v2187_v1  ;;  %9322 = vpow2.f32 %v2586_v53  ;;  %v16767_v36 = vld [vmem:[#allocation117_spill] sm:$0xff] }
 0x394   : > { %16756 = vst [vmem:[#allocation216_spill] sm:$0xff] %v12134_v44  ;;  %v2358_v46 = vsub.f32 %v16757_v11, %v2184_v27  ;;  %v2185_v27 = vperm.slane %v11795_v14, 7  ;;  %v16768_v53 = vld [vmem:[#allocation141_spill] sm:$0xff] }
 0x395   : > { %v12126_v13 = vpop.permute.xlu0 %2923  ;;  %v2592_v0 = vmul.f32 1.442695, %v2365_v62  ;;  %v16770_v62 = vld [vmem:[#allocation152_spill] sm:$0xff] }
 0x396   : > { %16753 = vst [vmem:[#allocation121_spill] sm:$0xff] %v12126_v13  ;;  %v2578_v11 = vmul.f32 1.442695, %v2358_v46  ;;  %v2360_v14 = vsub.f32 %v16768_v53, %v2185_v27  ;;  %v2368_v30 = vsub.f32 %v16770_v62, %v16264_v25 }
 0x397   : > { %3037 = vperm.xlu1 %8870, %v12128_v18  }
 0x398   : > { %3034 = vperm.xlu2 %8869, %v12131_v47   ;;  %v12150_v47 = vpop.eup %9318  ;;  %9324 = vpow2.f32 %v2578_v11  ;;  %v2598_v11 = vmul.f32 1.442695, %v2368_v30  ;;  %v16780_v30 = vld [vmem:[#allocation155_spill] sm:$0xff] }
 0x399   : > { %v12141_v51 = vpop.permute.xlu1 %2911  ;;  %16764 = vst [vmem:[#allocation217_spill] sm:$0xff] %v12150_v47  ;;  %9326 = vpow2.f32 %v2576_v28 }
 0x39a   : > { %16760 = vst [vmem:[#allocation115_spill] sm:$0xff] %v12141_v51  ;;  %v12145_v13 = vpop.permute.xlu2 %2935  ;;  %v12153_v51 = vpop.eup %9320  ;;  %9328 = vpow2.f32 %v2592_v0  ;;  %v16777_v0 = vperm.slane %v11745_v34, 0 }
 0x39b   : > { %3058 = vperm.xlu0 %8871, %v12134_v44   ;;  %16762 = vst [vmem:[#allocation138_spill] sm:$0xff] %v12145_v13  ;;  %v12156_v16 = vpop.eup %9322  ;;  %v2361_v44 = vsub.f32 %v16767_v36, %v2185_v27  ;;  %v2582_v13 = vmul.f32 1.442695, %v2360_v14  ;;  %v2190_v27 = vperm.slane %v11745_v34, 4 }
 0x39c   : > { %16765 = vst [vmem:[#allocation218_spill] sm:$0xff] %v12153_v51 }
 0x39d   : > { %v12147_v18 = vpop.permute.xlu0 %2932  ;;  %16766 = vst [vmem:[#allocation219_spill] sm:$0xff] %v12156_v16  ;;  %v2584_v36 = vmul.f32 1.442695, %v2361_v44  ;;  %v16778_v44 = vld [vmem:[#allocation120_spill] sm:$0xff] }
 0x39e   : > { %16763 = vst [vmem:[#allocation149_spill] sm:$0xff] %v12147_v18  ;;  %v2363_v14 = vsub.f32 %v16778_v44, %v16777_v0  ;;  %v16272_v0 = vperm.slane %v11745_v34, 6 }
 0x39f   : > { %3046 = vperm.xlu1 %8870, %v12150_v47   ;;  %9330 = vpow2.f32 %v2584_v36 }
 0x3a0   : > { %3043 = vperm.xlu2 %8869, %v12153_v51   ;;  %v12171_v51 = vpop.eup %9324  ;;  %9332 = vpow2.f32 %v2582_v13  ;;  %v2588_v36 = vmul.f32 1.442695, %v2363_v14 }
 0x3a1   : > { %v12161_v46 = vpop.permute.xlu1 %2920  ;;  %16773 = vst [vmem:[#allocation220_spill] sm:$0xff] %v12171_v51  ;;  %v12174_v53 = vpop.eup %9326  ;;  %9334 = vpow2.f32 %v2598_v11  ;;  %v16787_v11 = vld [vmem:[#allocation147_spill] sm:$0xff] }
 0x3a2   : > { %16769 = vst [vmem:[#allocation117_spill] sm:$0xff] %v12161_v46  ;;  %v12167_v18 = vpop.permute.xlu2 %2944  ;;  %v12177_v28 = vpop.eup %9328  ;;  %v2371_v46 = vsub.f32 %v16780_v30, %v2190_v27  ;;  %v16786_v30 = vld [vmem:[#allocation148_spill] sm:$0xff] }
 0x3a3   : > { %3067 = vperm.xlu0 %8871, %v12156_v16   ;;  %16771 = vst [vmem:[#allocation141_spill] sm:$0xff] %v12167_v18  ;;  %v16776_v16 = vld [vmem:[#allocation122_spill] sm:$0xff] }
 0x3a4   : > { %16774 = vst [vmem:[#allocation221_spill] sm:$0xff] %v12174_v53  ;;  %v2364_v62 = vsub.f32 %v16776_v16, %v2187_v1  ;;  %v2188_v1 = vperm.slane %v11745_v34, 2  ;;  %v2604_v44 = vmul.f32 1.442695, %v2371_v46  ;;  %v16789_v46 = vld [vmem:[#allocation158_spill] sm:$0xff] }
 0x3a5   : > { %v12169_v47 = vpop.permute.xlu0 %2941  ;;  %16775 = vst [vmem:[#allocation222_spill] sm:$0xff] %v12177_v28  ;;  %v2374_v14 = vsub.f32 %v16789_v46, %v16272_v0 }
 0x3a6   : > { %16772 = vst [vmem:[#allocation152_spill] sm:$0xff] %v12169_v47  ;;  %v2590_v16 = vmul.f32 1.442695, %v2364_v62 }
 0x3a7   : > { %3055 = vperm.xlu1 %8870, %v12171_v51  }
 0x3a8   : > { %3052 = vperm.xlu2 %8869, %v12174_v53   ;;  %v12193_v53 = vpop.eup %9330  ;;  %9336 = vpow2.f32 %v2590_v16  ;;  %v2610_v16 = vmul.f32 1.442695, %v2374_v14  ;;  %v16799_v14 = vld [vmem:[#allocation160_spill] sm:$0xff] }
 0x3a9   : > { %v12184_v25 = vpop.permute.xlu1 %2929  ;;  %16783 = vst [vmem:[#allocation223_spill] sm:$0xff] %v12193_v53  ;;  %9338 = vpow2.f32 %v2588_v36 }
 0x3aa   : > { %16779 = vst [vmem:[#allocation122_spill] sm:$0xff] %v12184_v25  ;;  %v12188_v18 = vpop.permute.xlu2 %2953  ;;  %v12196_v25 = vpop.eup %9332  ;;  %9340 = vpow2.f32 %v2604_v44  ;;  %v16796_v44 = vperm.slane %v11745_v34, 3 }
 0x3ab   : > { %3076 = vperm.xlu0 %8871, %v12177_v28   ;;  %16781 = vst [vmem:[#allocation120_spill] sm:$0xff] %v12188_v18  ;;  %v12199_v13 = vpop.eup %9334  ;;  %v2367_v28 = vsub.f32 %v16786_v30, %v2188_v1 }
 0x3ac   : > { %16784 = vst [vmem:[#allocation224_spill] sm:$0xff] %v12196_v25 }
 0x3ad   : > { %v12190_v51 = vpop.permute.xlu0 %2950  ;;  %16785 = vst [vmem:[#allocation225_spill] sm:$0xff] %v12199_v13  ;;  %v2596_v30 = vmul.f32 1.442695, %v2367_v28  ;;  %v16797_v28 = vld [vmem:[#allocation150_spill] sm:$0xff] }
 0x3ae   : > { %16782 = vst [vmem:[#allocation155_spill] sm:$0xff] %v12190_v51  ;;  %v2366_v51 = vsub.f32 %v16787_v11, %v2188_v1  ;;  %v2193_v1 = vperm.slane %v11745_v34, 7 }
 0x3af   : > { %3064 = vperm.xlu1 %8870, %v12193_v53   ;;  %9342 = vpow2.f32 %v2596_v30 }
 0x3b0   : > { %3061 = vperm.xlu2 %8869, %v12196_v25   ;;  %v2594_v47 = vmul.f32 1.442695, %v2366_v51  ;;  %v12214_v25 = vpop.eup %9336  ;;  %v2369_v51 = vsub.f32 %v16797_v28, %v16796_v44  ;;  %v16279_v44 = vperm.slane %v11801_v49, 1 }
 0x3b1   : > { %v12204_v62 = vpop.permute.xlu1 %2938  ;;  %16792 = vst [vmem:[#allocation226_spill] sm:$0xff] %v12214_v25  ;;  %v12217_v11 = vpop.eup %9338 }
 0x3b2   : > { %16788 = vst [vmem:[#allocation148_spill] sm:$0xff] %v12204_v62  ;;  %v12210_v18 = vpop.permute.xlu2 %2962  ;;  %v12220_v36 = vpop.eup %9340  ;;  %9344 = vpow2.f32 %v2594_v47  ;;  %v2600_v30 = vmul.f32 1.442695, %v2369_v51 }
 0x3b3   : > { %3085 = vperm.xlu0 %8871, %v12199_v13   ;;  %16790 = vst [vmem:[#allocation147_spill] sm:$0xff] %v12210_v18  ;;  %v16795_v13 = vld [vmem:[#allocation151_spill] sm:$0xff]  ;;  %v2377_v18 = vsub.f32 %v16799_v14, %v2193_v1  ;;  %9346 = vpow2.f32 %v2610_v16  ;;  %v16805_v14 = vld [vmem:[#allocation154_spill] sm:$0xff]  ;;  %v16806_v16 = vld [vmem:[#allocation153_spill] sm:$0xff] }
 0x3b4   : > { %16793 = vst [vmem:[#allocation227_spill] sm:$0xff] %v12217_v11  ;;  %v2370_v46 = vsub.f32 %v16795_v13, %v2190_v27  ;;  %v2191_v27 = vperm.slane %v11745_v34, 5 }
 0x3b5   : > { %v12212_v53 = vpop.permute.xlu0 %2959  ;;  %16794 = vst [vmem:[#allocation228_spill] sm:$0xff] %v12220_v36  ;;  %v2616_v62 = vmul.f32 1.442695, %v2377_v18  ;;  %v16807_v18 = vld [vmem:[#allocation163_spill] sm:$0xff] }
 0x3b6   : > { %16791 = vst [vmem:[#allocation158_spill] sm:$0xff] %v12212_v53  ;;  %v2602_v13 = vmul.f32 1.442695, %v2370_v46  ;;  %v2380_v51 = vsub.f32 %v16807_v18, %v16279_v44 }
 0x3b7   : > { %3073 = vperm.xlu1 %8870, %v12214_v25  }
 0x3b8   : > { %3070 = vperm.xlu2 %8869, %v12217_v11   ;;  %v12236_v11 = vpop.eup %9342  ;;  %9348 = vpow2.f32 %v2602_v13  ;;  %v2622_v13 = vmul.f32 1.442695, %v2380_v51  ;;  %v16817_v51 = vld [vmem:[#allocation165_spill] sm:$0xff] }
 0x3b9   : > { %v12227_v0 = vpop.permute.xlu1 %2947  ;;  %16802 = vst [vmem:[#allocation229_spill] sm:$0xff] %v12236_v11  ;;  %v12239_v28 = vpop.eup %9344  ;;  %9350 = vpow2.f32 %v2600_v30 }
 0x3ba   : > { %16798 = vst [vmem:[#allocation151_spill] sm:$0xff] %v12227_v0  ;;  %v12231_v53 = vpop.permute.xlu2 %2971  ;;  %v12242_v47 = vpop.eup %9346  ;;  %9352 = vpow2.f32 %v2616_v62  ;;  %v16814_v62 = vperm.slane %v11745_v34, 6  ;;  %v16286_v34 = vperm.slane %v11801_v49, 4 }
 0x3bb   : > { %3094 = vperm.xlu0 %8871, %v12220_v36   ;;  %16800 = vst [vmem:[#allocation150_spill] sm:$0xff] %v12231_v53  ;;  %v2373_v36 = vsub.f32 %v16805_v14, %v2191_v27 }
 0x3bc   : > { %16803 = vst [vmem:[#allocation230_spill] sm:$0xff] %v12239_v28 }
 0x3bd   : > { %v12233_v25 = vpop.permute.xlu0 %2968  ;;  %16804 = vst [vmem:[#allocation231_spill] sm:$0xff] %v12242_v47  ;;  %v2608_v14 = vmul.f32 1.442695, %v2373_v36  ;;  %v16815_v36 = vld [vmem:[#allocation156_spill] sm:$0xff] }
 0x3be   : > { %16801 = vst [vmem:[#allocation160_spill] sm:$0xff] %v12233_v25  ;;  %v2372_v25 = vsub.f32 %v16806_v16, %v2191_v27  ;;  %v2196_v27 = vperm.slane %v11801_v49, 2 }
 0x3bf   : > { %3082 = vperm.xlu1 %8870, %v12236_v11   ;;  %9354 = vpow2.f32 %v2608_v14 }
 0x3c0   : > { %3079 = vperm.xlu2 %8869, %v12239_v28   ;;  %v2606_v0 = vmul.f32 1.442695, %v2372_v25  ;;  %v12257_v28 = vpop.eup %9348  ;;  %v2375_v25 = vsub.f32 %v16815_v36, %v16814_v62 }
 0x3c1   : > { %v12247_v46 = vpop.permute.xlu1 %2956  ;;  %16810 = vst [vmem:[#allocation163_spill] sm:$0xff] %v12257_v28  ;;  %v12260_v16 = vpop.eup %9350 }
 0x3c2   : > { %v12253_v53 = vpop.permute.xlu2 %2980  ;;  %16811 = vst [vmem:[#allocation232_spill] sm:$0xff] %v12260_v16  ;;  %v12263_v30 = vpop.eup %9352  ;;  %9356 = vpow2.f32 %v2606_v0  ;;  %v2612_v14 = vmul.f32 1.442695, %v2375_v25 }
 0x3c3   : > { %3103 = vperm.xlu0 %8871, %v12242_v47   ;;  %16808 = vst [vmem:[#allocation154_spill] sm:$0xff] %v12253_v53  ;;  %v16813_v47 = vld [vmem:[#allocation157_spill] sm:$0xff]  ;;  %v2383_v53 = vsub.f32 %v16817_v51, %v2196_v27  ;;  %9358 = vpow2.f32 %v2622_v13  ;;  %v16823_v51 = vld [vmem:[#allocation159_spill] sm:$0xff] }
 0x3c4   : > { %16812 = vst [vmem:[#allocation233_spill] sm:$0xff] %v12263_v30  ;;  %v2376_v18 = vsub.f32 %v16813_v47, %v2193_v1  ;;  %v2194_v47 = vperm.slane %v11801_v49, 0 }
 0x3c5   : > { %v12255_v11 = vpop.permute.xlu0 %2977  ;;  %v2628_v62 = vmul.f32 1.442695, %v2383_v53  ;;  %v2386_v53 = vsub.f32 %v11509_v59, %v16286_v34 }
 0x3c6   : > { %16809 = vst [vmem:[#allocation153_spill] sm:$0xff] %v12255_v11  ;;  %v2614_v1 = vmul.f32 1.442695, %v2376_v18  ;;  %v2378_v13 = vsub.f32 %v11474_v26, %v2194_v47  ;;  %v2199_v26 = vperm.slane %v11801_v49, 5 }
 0x3c7   : > { %3091 = vperm.xlu1 %8870, %v12257_v28  }
 0x3c8   : > { %3088 = vperm.xlu2 %8869, %v12260_v16   ;;  %v12279_v16 = vpop.eup %9354  ;;  %9360 = vpow2.f32 %v2614_v1  ;;  %v2634_v1 = vmul.f32 1.442695, %v2386_v53  ;;  %v16833_v53 = vld [vmem:[#allocation169_spill] sm:$0xff] }
 0x3c9   : > { %v12270_v44 = vpop.permute.xlu1 %2965  ;;  %16820 = vst [vmem:[#allocation234_spill] sm:$0xff] %v12279_v16  ;;  %v12282_v36 = vpop.eup %9356  ;;  %9362 = vpow2.f32 %v2612_v14 }
 0x3ca   : > { %16816 = vst [vmem:[#allocation157_spill] sm:$0xff] %v12270_v44  ;;  %v12274_v11 = vpop.permute.xlu2 %2989  ;;  %v12285_v0 = vpop.eup %9358  ;;  %9364 = vpow2.f32 %v2628_v62  ;;  %v16830_v62 = vperm.slane %v11801_v49, 1 }
 0x3cb   : > { %3112 = vperm.xlu0 %8871, %v12263_v30   ;;  %16818 = vst [vmem:[#allocation156_spill] sm:$0xff] %v12274_v11  ;;  %v2379_v30 = vsub.f32 %v16823_v51, %v2194_v47  ;;  %v2618_v11 = vmul.f32 1.442695, %v2378_v13 }
 0x3cc   : > { %16821 = vst [vmem:[#allocation235_spill] sm:$0xff] %v12282_v36 }
 0x3cd   : > { %v12276_v28 = vpop.permute.xlu0 %2986  ;;  %16822 = vst [vmem:[#allocation236_spill] sm:$0xff] %v12285_v0  ;;  %v2620_v51 = vmul.f32 1.442695, %v2379_v30  ;;  %v16831_v30 = vld [vmem:[#allocation161_spill] sm:$0xff] }
 0x3ce   : > { %16819 = vst [vmem:[#allocation165_spill] sm:$0xff] %v12276_v28  ;;  %v2381_v13 = vsub.f32 %v16831_v30, %v16830_v62  ;;  %v2201_v62 = vperm.slane %v11801_v49, 7 }
 0x3cf   : > { %3100 = vperm.xlu1 %8870, %v12279_v16   ;;  %9366 = vpow2.f32 %v2620_v51 }
 0x3d0   : > { %3097 = vperm.xlu2 %8869, %v12282_v36   ;;  %v12300_v36 = vpop.eup %9360  ;;  %9368 = vpow2.f32 %v2618_v11  ;;  %v2624_v51 = vmul.f32 1.442695, %v2381_v13 }
 0x3d1   : > { %v12290_v18 = vpop.permute.xlu1 %2974  ;;  %16826 = vst [vmem:[#allocation238_spill] sm:$0xff] %v12300_v36  ;;  %v12303_v47 = vpop.eup %9362  ;;  %9370 = vpow2.f32 %v2634_v1  ;;  %v16840_v1 = vld [vmem:[#allocation164_spill] sm:$0xff] }
 0x3d2   : > { %v12296_v25 = vpop.permute.xlu2 %2998  ;;  %16827 = vst [vmem:[#allocation239_spill] sm:$0xff] %v12303_v47  ;;  %v12306_v14 = vpop.eup %9364 }
 0x3d3   : > { %3121 = vperm.xlu0 %8871, %v12285_v0   ;;  %16824 = vst [vmem:[#allocation159_spill] sm:$0xff] %v12296_v25  ;;  %v16829_v0 = vld [vmem:[#allocation162_spill] sm:$0xff]  ;;  %v2389_v25 = vsub.f32 %v16833_v53, %v2199_v26 }
 0x3d4   : > { %16828 = vst [vmem:[#allocation240_spill] sm:$0xff] %v12306_v14  ;;  %v2382_v59 = vsub.f32 %v16829_v0, %v2196_v27  ;;  %v2197_v27 = vperm.slane %v11801_v49, 3  ;;  %v16839_v53 = vld [vmem:[#allocation166_spill] sm:$0xff] }
 0x3d5   : > { %v12298_v16 = vpop.permute.xlu0 %2995  ;;  %v2640_v30 = vmul.f32 1.442695, %v2389_v25  ;;  %v2392_v25 = vsub.f32 %v11552_v61, %v2201_v62  ;;  %v16847_v61 = vperm.slane %v11801_v49, 4 }
 0x3d6   : > { %16825 = vst [vmem:[#allocation237_spill] sm:$0xff] %v12298_v16  ;;  %v2626_v0 = vmul.f32 1.442695, %v2382_v59 }
 0x3d7   : > { %3109 = vperm.xlu1 %8870, %v12300_v36  }
 0x3d8   : > { %3106 = vperm.xlu2 %8869, %v12303_v47   ;;  %v12322_v47 = vpop.eup %9366  ;;  %9372 = vpow2.f32 %v2626_v0 }
 0x3d9   : > { %v12313_v34 = vpop.permute.xlu1 %2983  ;;  %16836 = vst [vmem:[#allocation241_spill] sm:$0xff] %v12322_v47  ;;  %v12325_v28 = vpop.eup %9368  ;;  %9374 = vpow2.f32 %v2624_v51  ;;  %v2388_v51 = vsub.f32 %v11511_v17, %v2199_v26 }
 0x3da   : > { %16832 = vst [vmem:[#allocation162_spill] sm:$0xff] %v12313_v34  ;;  %v12317_v16 = vpop.permute.xlu2 %3007  ;;  %v12328_v11 = vpop.eup %9370  ;;  %9376 = vpow2.f32 %v2640_v30  ;;  %v16848_v30 = vld [vmem:[#allocation167_spill] sm:$0xff] }
 0x3db   : > { %3130 = vperm.xlu0 %8871, %v12306_v14   ;;  %16834 = vst [vmem:[#allocation161_spill] sm:$0xff] %v12317_v16  ;;  %v2385_v14 = vsub.f32 %v16839_v53, %v2197_v27  ;;  %v2384_v16 = vsub.f32 %v16840_v1, %v2197_v27  ;;  %v2387_v1 = vsub.f32 %v16848_v30, %v16847_v61  ;;  %v2638_v17 = vmul.f32 1.442695, %v2388_v51  ;;  %v16853_v30 = vld [vmem:[#allocation170_spill] sm:$0xff]  ;;  %v12376_v51 = vpop.f32.mrf.mxu3 }
 0x3dc   : > { %16837 = vst [vmem:[#allocation242_spill] sm:$0xff] %v12325_v28 }
 0x3dd   : > { %v12319_v36 = vpop.permute.xlu0 %3004  ;;  %16838 = vst [vmem:[#allocation243_spill] sm:$0xff] %v12328_v11  ;;  %v2630_v44 = vmul.f32 1.442695, %v2384_v16  ;;  %v2636_v26 = vmul.f32 1.442695, %v2387_v1 }
 0x3de   : > { %16835 = vst [vmem:[#allocation169_spill] sm:$0xff] %v12319_v36  ;;  %v2632_v36 = vmul.f32 1.442695, %v2385_v14  ;;  %v12341_v53 = vpop.eup %9372 }
 0x3df   : > { %3118 = vperm.xlu1 %8870, %v12322_v47   ;;  %16844 = vst [vmem:[#allocation245_spill] sm:$0xff] %v12341_v53  ;;  %v12343_v0 = vpop.eup %9374 }
 0x3e0   : > { %3115 = vperm.xlu2 %8869, %v12325_v28   ;;  %v2646_v28 = vmul.f32 1.442695, %v2392_v25  ;;  %16845 = vst [vmem:[#allocation246_spill] sm:$0xff] %v12343_v0  ;;  %v12346_v27 = vpop.eup %9376  ;;  %9378 = vpow2.f32 %v2632_v36 }
 0x3e1   : > { %v12333_v59 = vpop.permute.xlu1 %2992  ;;  %16846 = vst [vmem:[#allocation247_spill] sm:$0xff] %v12346_v27  ;;  %9380 = vpow2.f32 %v2630_v44  ;;  %v16854_v44 = vld [vmem:[#allocation168_spill] sm:$0xff] }
 0x3e2   : > { %16841 = vst [vmem:[#allocation166_spill] sm:$0xff] %v12333_v59  ;;  %v12337_v13 = vpop.permute.xlu2 %3016  ;;  %9382 = vpow2.f32 %v2646_v28  ;;  %v16865_v59 = vld [vmem:[#allocation69_spill] sm:$0xff] }
 0x3e3   : > { %3139 = vperm.xlu0 %8871, %v12328_v11   ;;  %16842 = vst [vmem:[#allocation164_spill] sm:$0xff] %v12337_v13  ;;  %v2200_v11 = vperm.slane %v11801_v49, 6  ;;  %9384 = vpow2.f32 %v2638_v17 }
 0x3e4   : > { %9386 = vpow2.f32 %v2636_v26 }
 0x3e5   : > { %v12339_v47 = vpop.permute.xlu0 %3013  ;;  %v2390_v28 = vsub.f32 %v16854_v44, %v2200_v11 }
 0x3e6   : > { %16843 = vst [vmem:[#allocation244_spill] sm:$0xff] %v12339_v47 }
 0x3e7   : > { %3127 = vperm.xlu1 %8870, %v12341_v53   ;;  %v2642_v13 = vmul.f32 1.442695, %v2390_v28 }
 0x3e8   : > { %3124 = vperm.xlu2 %8869, %v12343_v0   ;;  %v12361_v0 = vpop.eup %9378 }
 0x3e9   : > { %v12353_v14 = vpop.permute.xlu1 %3001  ;;  %16850 = vst [vmem:[#allocation248_spill] sm:$0xff] %v12361_v0  ;;  %v12363_v36 = vpop.eup %9380 }
 0x3ea   : > { %16849 = vst [vmem:[#allocation167_spill] sm:$0xff] %v12353_v14  ;;  %v12356_v16 = vpop.permute.xlu2 %3025  ;;  %v12366_v61 = vpop.eup %9382 }
 0x3eb   : > { %3148 = vperm.xlu0 %8871, %v12346_v27   ;;  %16851 = vst [vmem:[#allocation249_spill] sm:$0xff] %v12363_v36  ;;  %v2391_v27 = vsub.f32 %v16853_v30, %v2200_v11  ;;  %v12380_v47 = vpop.eup %9384  ;;  %v16857_v30 = vld [vmem:[#allocation63_spill] sm:$0xff] }
 0x3ec   : > { %16852 = vst [vmem:[#allocation250_spill] sm:$0xff] %v12366_v61  ;;  %v5190_v17 = vadd.f32 %v12376_v51, %v16857_v30  ;;  %v16859_v11 = vld [vmem:[#allocation171_spill] sm:$0xff]  ;;  %v16861_v30 = vld [vmem:[#allocation133_spill] sm:$0xff] }
 0x3ed   : > { %v12358_v25 = vpop.permute.xlu0 %3022  ;;  %16856 = vst [vmem:[#allocation168_spill] sm:$0xff] %v12380_v47  ;;  %v2393_v26 = vsub.f32 %v16859_v11, %v2201_v62  ;;  %v3189_v14 = vperm.slane %v11825_v4, %v16861_v30  ;;  %v16864_v62 = vld [vmem:[#allocation137_spill] sm:$0xff]  ;;  %v3192_v4 = vperm.slane %v11837_v15, %v16861_v30 }
 0x3ee   : > { %v3193_v11 = vperm.slane %v11846_v48, %v16864_v62  ;;  %v12417_v48 = vadd.f32 %v12376_v51, %v16865_v59  ;;  %v3214_v59 = vperm.slane %v11946_v8, %v16864_v62  ;;  %v3216_v8 = vperm.slane %v11954_v57, %v16861_v30 }
 0x3ef   : > { %3136 = vperm.xlu1 %8870, %v12361_v0   ;;  %v2644_v0 = vmul.f32 1.442695, %v2391_v27  ;;  %v2648_v28 = vmul.f32 1.442695, %v2393_v26  ;;  %v3187_v26 = vperm.slane %v11816_v7, %v16864_v62  ;;  %v3196_v7 = vperm.slane %v11860_v39, %v16864_v62 }
 0x3f0   : > { %3133 = vperm.xlu2 %8869, %v12363_v36   ;;  %v12384_v36 = vpop.eup %9386  ;;  %v3194_v15 = vsel %vm1843_vm2, %v3193_v11, %v3192_v4  ;;  %v3211_v4 = vperm.slane %v11932_v43, %v16864_v62  ;;  %v3217_v57 = vperm.slane %v11909_v24, %v16864_v62  ;;  %v3210_v43 = vperm.slane %v11926_v19, %v16861_v30 }
 0x3f1   : > { %v12371_v53 = vpop.permute.xlu1 %3010  ;;  %16858 = vst [vmem:[#allocation63_spill] sm:$0xff] %v12384_v36  ;;  %9388 = vpow2.f32 %v2644_v0  ;;  %v3201_v24 = vperm.slane %v11883_v58, %v16861_v30  ;;  %v3207_v19 = vperm.slane %v11911_v21, %v16861_v30 }
 0x3f2   : > { %16855 = vst [vmem:[#allocation170_spill] sm:$0xff] %v12371_v53  ;;  %v12374_v49 = vpop.permute.xlu2 %3034  ;;  %9390 = vpow2.f32 %v2642_v13 }
 0x3f3   : > { %3157 = vperm.xlu0 %8871, %v12366_v61   ;;  %9392 = vtanh.f32 %v5190_v17  ;;  %v3190_v17 = vperm.slane %v11778_v54, %v16864_v62 }
 0x3f4   : > { %9394 = vpow2.f32 %v2648_v28  ;;  %v3198_v28 = vperm.slane %v11868_v12, %v16861_v30 }
 0x3f5   : > { %v12378_v1 = vpop.permute.xlu0 %3031  ;;  %v3191_v54 = vsel %vm1843_vm2, %v3190_v17, %v3189_v14  ;;  %v3195_v14 = vperm.slane %v11803_v42, %v16861_v30  ;;  %v3204_v17 = vperm.slane %v11844_v31, %v16861_v30 }
 0x3f7   : > { %3145 = vperm.xlu1 %8870, %v12380_v47   ;;  %v12395_v53 = vpop.eup %9388  ;;  %v16862_v47 = vld [vmem:[#allocation68_spill] sm:$0xff] }
 0x3f8   : > { %3142 = vperm.xlu2 %8869, %v12384_v36   ;;  %16860 = vst [vmem:[#allocation171_spill] sm:$0xff] %v12395_v53  ;;  %v5193_v36 = vadd.f32 %v12376_v51, %v16862_v47  ;;  %v12401_v0 = vpop.eup %9390 }
 0x3f9   : > { %v12389_v44 = vpop.permute.xlu1 %3019  ;;  %16863 = vst [vmem:[#allocation68_spill] sm:$0xff] %v12401_v0  ;;  %v9393_v13 = vpop.eup %9392 }
 0x3fa   : > { %v12391_v61 = vpop.permute.xlu2 %3043  ;;  %9396 = vtanh.f32 %v5193_v36  ;;  %v3199_v36 = vperm.slane %v11823_v22, %v16864_v62  ;;  %v3197_v22 = vsel %vm1843_vm2, %v3196_v7, %v3195_v14  ;;  %v3218_v7 = vsel %vm1843_vm2, %v3217_v57, %v3216_v8 }
 0x3fb   : > { %9398 = vtanh.f32 %v12417_v48 }
 0x3fc   : > { %v3200_v31 = vsel %vm1843_vm2, %v3199_v36, %v3198_v28  ;;  %v3162_v28 = vperm.slane %v11989_v6, %v16861_v30  ;;  %v3163_v6 = vperm.slane %v11930_v55, %v16864_v62  ;;  %v3219_v55 = vperm.slane %v11969_v37, %v16861_v30 }
 0x3fd   : > { %v12393_v27 = vpop.permute.xlu0 %3040  ;;  %v3175_v37 = vperm.slane %v11997_v5, %v16864_v62  ;;  %v3223_v5 = vperm.slane %v12118_v9, %v16864_v62  ;;  %v16866_v9 = vld [vmem:[#allocation202_spill] sm:$0xff] }
 0x3ff   : > { %3154 = vperm.xlu1 %8870, %v12395_v53   ;;  %v3186_v53 = vperm.slane %v11762_v52, %v16861_v30  ;;  %v12436_v52 = vld [vmem:[%s15965_s10] ss:$0 sm:$0xff] }
 0x400   : > { %3151 = vperm.xlu2 %8869, %v12401_v0   ;;  %v12439_v39 = vmul.f32 %v12436_v52, %v9393_v13  ;;  %v3213_v13 = vperm.slane %v11887_v29, %v16861_v30  ;;  %v3205_v29 = vperm.slane %v11903_v40, %v16864_v62 }
 0x401   : > { %v12413_v47 = vpop.permute.xlu1 %3028  ;;  %v3188_v12 = vsel %vm1843_vm2, %v3187_v26, %v3186_v53  ;;  %v3202_v53 = vperm.slane %v11889_v56, %v16864_v62  ;;  %v12461_v26 = vpop.eup %9394  ;;  %v3208_v56 = vperm.slane %v11866_v33, %v16864_v62  ;;  %v3165_v33 = vperm.slane %v11975_v41, %v16861_v30 }
 0x402   : > { %v12424_v34 = vpop.permute.xlu2 %3052  ;;  %v3361_v11 = vsel %vm2034_vm3, %v3191_v54, %v3188_v12  ;;  %v3215_v54 = vsel %vm1843_vm2, %v3214_v59, %v3213_v13  ;;  %v3212_v59 = vsel %vm1843_vm2, %v3211_v4, %v3210_v43  ;;  %v3206_v21 = vsel %vm1843_vm2, %v3205_v29, %v3204_v17 }
 0x403   : > { %v3362_v42 = vsel %vm2036_vm4, %v3194_v15, %v3361_v11  ;;  %v12469_v15 = vpop.eup %9396  ;;  %v3203_v36 = vsel %vm1843_vm2, %v3202_v53, %v3201_v24  ;;  %v3368_v12 = vsel %vm2034_vm3, %v3215_v54, %v3212_v59  ;;  %v3166_v11 = vperm.slane %v11952_v60, %v16864_v62  ;;  %v16867_v59 = vld [vmem:[#allocation206_spill] sm:$0xff] }
 0x404   : > { %v3363_v40 = vsel %vm2038_vm5, %v3197_v22, %v3362_v42  ;;  %v3369_v41 = vsel %vm2036_vm4, %v3218_v7, %v3368_v12  ;;  %v3168_v13 = vperm.slane %v12012_v32, %v16861_v30  ;;  %v3169_v42 = vperm.slane %v11973_v45, %v16864_v62 }
 0x405   : > { %v12431_v0 = vpop.permute.xlu0 %3049  ;;  %v3364_v58 = vsel %vm2040_vm6, %v3200_v31, %v3363_v40  ;;  %v3164_v22 = vsel %vm1843_vm2, %v3163_v6, %v3162_v28  ;;  %v3171_v17 = vperm.slane %v12032_v35, %v16861_v30  ;;  %v3167_v60 = vsel %vm1843_vm2, %v3166_v11, %v3165_v33 }
 0x406   : > { %v3174_v53 = vperm.slane %v12055_v20, %v16861_v30  ;;  %v3220_v32 = vperm.slane %v12061_v10, %v16864_v62  ;;  %v3209_v57 = vsel %vm1843_vm2, %v3208_v56, %v3207_v19  ;;  %v3172_v45 = vperm.slane %v11995_v2, %v16864_v62 }
 0x407   : > { %v3181_v31 = vperm.slane %v12038_v63, %v16864_v62  ;;  %v3365_v35 = vsel %vm2042_vm7, %v3203_v36, %v3364_v58  ;;  %v3354_v29 = vsel %vm2034_vm3, %v3167_v60, %v3164_v22  ;;  %v3177_v20 = vperm.slane %v12016_v50, %v16861_v30 }
 0x408   : > { %3160 = vperm.xlu2 %8869, %v12461_v26   ;;  %v3170_v10 = vsel %vm1843_vm2, %v3169_v42, %v3168_v13  ;;  %v3366_v43 = vsel %vm2044_vm8, %v3206_v21, %v3365_v35  ;;  %v3180_v2 = vperm.slane %v12018_v38, %v16861_v30  ;;  %v3173_v54 = vsel %vm1843_vm2, %v3172_v45, %v3171_v17 }
 0x409   : > { %v12485_v14 = vpop.permute.xlu1 %3037  ;;  %v3367_v63 = vsel %vm2046_vm9, %v3209_v57, %v3366_v43  ;;  %v3176_v56 = vsel %vm1843_vm2, %v3175_v37, %v3174_v53  ;;  %v3221_v24 = vsel %vm1843_vm2, %v3220_v32, %v3219_v55  ;;  %v3178_v50 = vperm.slane %v12075_v3, %v16864_v62  ;;  %v16868_v3 = vld [vmem:[#allocation127_spill] sm:$0xff]  ;;  %v16870_v53 = vld [vmem:[#allocation124_spill] sm:$0xff]  ;;  %v16871_v57 = vld [vmem:[#allocation126_spill] sm:$0xff] }
 0x40a   : > { %v12492_v8 = vpop.permute.xlu2 %3061  ;;  %v3225_v7 = vperm.slane %v12083_v23, %v16861_v30  ;;  %v3355_v38 = vsel %vm2036_vm4, %v3170_v10, %v3354_v29  ;;  %v12541_v40 = vsel %vm1843_vm2, %v3181_v31, %v3180_v2  ;;  %v3184_v19 = vperm.slane %v16866_v9, %v16864_v62  ;;  %v16869_v23 = vld [vmem:[#allocation121_spill] sm:$0xff]  ;;  %v16872_v37 = vld [vmem:[#allocation131_spill] sm:$0xff] }
 0x40b   : > { %v3222_v33 = vperm.slane %v16867_v59, %v16861_v30  ;;  %v3356_v36 = vsel %vm2038_vm5, %v3173_v54, %v3355_v38  ;;  %v3226_v6 = vperm.slane %v16868_v3, %v16864_v62  ;;  %v3234_v12 = vperm.slane %v16869_v23, %v16861_v30  ;;  %v16874_v43 = vld [vmem:[#allocation115_spill] sm:$0xff]  ;;  %v16875_v54 = vld [vmem:[#allocation152_spill] sm:$0xff]  ;;  %v16878_v38 = vld [vmem:[#allocation149_spill] sm:$0xff] }
 0x40c   : > { %v3421_v11 = vsel %vm2105_vm10, %v3367_v63, 0.0  ;;  %v3357_v13 = vsel %vm2040_vm6, %v3176_v56, %v3356_v36  ;;  %v3370_v42 = vsel %vm2038_vm5, %v3221_v24, %v3369_v41  ;;  %v3286_v22 = vperm.slane %v12413_v47, %v16864_v62  ;;  %v16873_v41 = vld [vmem:[#allocation118_spill] sm:$0xff]  ;;  %v16880_v23 = vld [vmem:[#allocation148_spill] sm:$0xff] }
 0x40d   : > { %v12500_v4 = vpop.permute.xlu0 %3058  ;;  %v3224_v55 = vsel %vm1843_vm2, %v3223_v5, %v3222_v33  ;;  %v3179_v17 = vsel %vm1843_vm2, %v3178_v50, %v3177_v20  ;;  %v12564_v60 = vsel %vm1843_vm2, %v3226_v6, %v3225_v7  ;;  %v3183_v32 = vperm.slane %v16870_v53, %v16861_v30  ;;  %v16876_v63 = vld [vmem:[#allocation122_spill] sm:$0xff]  ;;  %v16879_v6 = vld [vmem:[#allocation141_spill] sm:$0xff] }
 0x40e   : > { %v3235_v45 = vperm.slane %v16871_v57, %v16864_v62  ;;  %v3231_v31 = vperm.slane %v16872_v37, %v16861_v30  ;;  %v3229_v35 = vperm.slane %v16873_v41, %v16864_v62  ;;  %v3285_v47 = vperm.slane %v12356_v16, %v16861_v30  ;;  %v16877_v50 = vld [vmem:[#allocation138_spill] sm:$0xff] }
 0x40f   : > { %v3282_v29 = vperm.slane %v12389_v44, %v16861_v30  ;;  %v12579_v20 = vsel %vm2040_vm6, %v3224_v55, %v3370_v42  ;;  %v3228_v2 = vperm.slane %v16874_v43, %v16861_v30  ;;  %v3243_v5 = vperm.slane %v16875_v54, %v16861_v30 }
 0x410   : > { %v3236_v10 = vsel %vm1843_vm2, %v3235_v45, %v3234_v12  ;;  %v3237_v56 = vperm.slane %v16876_v63, %v16861_v30  ;;  %v3283_v16 = vperm.slane %v12358_v25, %v16864_v62  ;;  %v3287_v24 = vsel %vm1843_vm2, %v3286_v22, %v3285_v47  ;;  %v16881_v45 = vld [vmem:[#allocation117_spill] sm:$0xff] }
 0x411   : > { %v3047_v28 = vpop.permute.xlu1 %3046  ;;  %v3291_v44 = vperm.slane %v12485_v14, %v16861_v30  ;;  %v3240_v7 = vperm.slane %v16877_v50, %v16861_v30  ;;  %v3238_v59 = vperm.slane %v16878_v38, %v16864_v62  ;;  %v3288_v33 = vperm.slane %v12378_v1, %v16861_v30 }
 0x412   : > { %v12547_v58 = vpop.permute.xlu2 %3070  ;;  %v3295_v36 = vperm.slane %v3047_v28, %v16864_v62  ;;  %v3244_v25 = vperm.slane %v16879_v6, %v16864_v62  ;;  %v3241_v12 = vperm.slane %v16880_v23, %v16864_v62  ;;  %v3284_v14 = vsel %vm1843_vm2, %v3283_v16, %v3282_v29  ;;  %v16882_v29 = vld [vmem:[#allocation120_spill] sm:$0xff] }
 0x413   : > { %v3292_v42 = vperm.slane %v12393_v27, %v16864_v62  ;;  %v12610_v22 = vsel %vm1843_vm2, %v3229_v35, %v3228_v2  ;;  %v3289_v1 = vperm.slane %v12374_v49, %v16864_v62  ;;  %v3294_v28 = vperm.slane %v12391_v61, %v16861_v30 }
 0x414   : > { %v3389_v53 = vsel %vm2034_vm3, %v3287_v24, %v3284_v14  ;;  %v3232_v41 = vperm.slane %v16881_v45, %v16864_v62  ;;  %v3245_v27 = vsel %vm1843_vm2, %v3244_v25, %v3243_v5  ;;  %v3239_v47 = vsel %vm1843_vm2, %v3238_v59, %v3237_v56  ;;  %v16884_v24 = vld [vmem:[#allocation158_spill] sm:$0xff]  ;;  %v16885_v59 = vld [vmem:[#allocation151_spill] sm:$0xff] }
 0x415   : > { %v12554_v21 = vpop.permute.xlu0 %3067  ;;  %v3293_v35 = vsel %vm1843_vm2, %v3292_v42, %v3291_v44  ;;  %v3249_v49 = vperm.slane %v16882_v29, %v16861_v30  ;;  %v3290_v43 = vsel %vm1843_vm2, %v3289_v1, %v3288_v33  ;;  %v3296_v61 = vsel %vm1843_vm2, %v3295_v36, %v3294_v28  ;;  %v16887_v1 = vld [vmem:[#allocation150_spill] sm:$0xff] }
 0x416   : > { %v3242_v63 = vsel %vm1843_vm2, %v3241_v12, %v3240_v7  ;;  %v3297_v5 = vperm.slane %v12431_v0, %v16861_v30  ;;  %v3390_v56 = vsel %vm2036_vm4, %v3290_v43, %v3389_v53  ;;  %v3375_v16 = vsel %vm2034_vm3, %v3239_v47, %v3236_v10  ;;  %v16886_v10 = vld [vmem:[#allocation147_spill] sm:$0xff]  ;;  %v16889_v43 = vld [vmem:[#allocation162_spill] sm:$0xff] }
 0x417   : > { %v3252_v44 = vperm.slane %v16884_v24, %v16861_v30  ;;  %v3391_v50 = vsel %vm2038_vm5, %v3293_v35, %v3390_v56  ;;  %v3301_v38 = vperm.slane %v12500_v4, %v16864_v62  ;;  %v3246_v33 = vperm.slane %v16885_v59, %v16861_v30  ;;  %v16888_v35 = vld [vmem:[#allocation153_spill] sm:$0xff]  ;;  %v16892_v24 = vld [vmem:[#allocation160_spill] sm:$0xff] }
 0x418   : > { %v3298_v7 = vperm.slane %v12424_v34, %v16864_v62  ;;  %v3392_v0 = vsel %vm2040_vm6, %v3296_v61, %v3391_v50  ;;  %v3358_v36 = vsel %vm2042_vm7, %v3179_v17, %v3357_v13  ;;  %v3376_v6 = vsel %vm2036_vm4, %v3242_v63, %v3375_v16  ;;  %v16893_v50 = vld [vmem:[#allocation154_spill] sm:$0xff]  ;;  %v16894_v59 = vld [vmem:[#allocation165_spill] sm:$0xff] }
 0x419   : > { %v3056_v3 = vpop.permute.xlu1 %3055  ;;  %v3185_v4 = vsel %vm1843_vm2, %v3184_v19, %v3183_v32  ;;  %v3250_v34 = vperm.slane %v12247_v46, %v16864_v62  ;;  %v3303_v13 = vperm.slane %v12492_v8, %v16861_v30  ;;  %v3258_v28 = vperm.slane %v16887_v1, %v16861_v30 }
 0x41a   : > { %v12607_v55 = vpop.permute.xlu2 %3079  ;;  %v3300_v2 = vperm.slane %v3056_v3, %v16861_v30  ;;  %v3253_v3 = vperm.slane %v16886_v10, %v16864_v62  ;;  %v3299_v12 = vsel %vm1843_vm2, %v3298_v7, %v3297_v5  ;;  %v3359_v46 = vsel %vm2044_vm8, %v12541_v40, %v3358_v36  ;;  %v16895_v7 = vld [vmem:[#allocation156_spill] sm:$0xff] }
 0x41b   : > { %v3393_v19 = vsel %vm2042_vm7, %v3299_v12, %v3392_v0  ;;  %v3259_v8 = vperm.slane %v12290_v18, %v16864_v62  ;;  %v3261_v29 = vperm.slane %v16888_v35, %v16861_v30  ;;  %v3264_v61 = vperm.slane %v16889_v43, %v16861_v30  ;;  %v16891_v18 = vld [vmem:[#allocation166_spill] sm:$0xff]  ;;  %v16901_v35 = vld [vmem:[#allocation161_spill] sm:$0xff] }
 0x41c   : > { %v3302_v25 = vsel %vm1843_vm2, %v3301_v38, %v3300_v2  ;;  %v3254_v42 = vsel %vm1843_vm2, %v3253_v3, %v3252_v44  ;;  %v3360_v40 = vsel %vm2046_vm9, %v3185_v4, %v3359_v46  ;;  %v3268_v5 = vperm.slane %v16891_v18, %v16864_v62 }
 0x41d   : > { %v12617_v57 = vpop.permute.xlu0 %3076  ;;  %3422 = vadd.xlane.f32.xlu0 %v3421_v11  ;;  %v16883_v11 = vld [vmem:[#allocation155_spill] sm:$0xff]  ;;  %v3394_v47 = vsel %vm2044_vm8, %v3302_v25, %v3393_v19  ;;  %v3377_v16 = vsel %vm2038_vm5, %v3245_v27, %v3376_v6  ;;  %v3256_v44 = vperm.slane %v16892_v24, %v16864_v62  ;;  %v3262_v38 = vperm.slane %v16893_v50, %v16864_v62  ;;  %v16898_v19 = vld [vmem:[#allocation170_spill] sm:$0xff] }
 0x41e   : > { %v3247_v54 = vperm.slane %v16883_v11, %v16864_v62  ;;  %v3251_v11 = vsel %vm1843_vm2, %v3250_v34, %v3249_v49  ;;  %v3267_v0 = vperm.slane %v16895_v7, %v16861_v30  ;;  %v3260_v36 = vsel %vm1843_vm2, %v3259_v8, %v3258_v28  ;;  %v16896_v34 = vld [vmem:[#allocation167_spill] sm:$0xff] }
 0x41f   : > { %v3418_v10 = vsel %vm2105_vm10, %v3360_v40, 0.0  ;;  %v3263_v27 = vsel %vm1843_vm2, %v3262_v38, %v3261_v29  ;;  %v3372_v25 = vsel %vm2042_vm7, %v12564_v60, %v12579_v20  ;;  %v3273_v12 = vperm.slane %v16896_v34, %v16861_v30  ;;  %v16897_v20 = vld [vmem:[#allocation237_spill] sm:$0xff]  ;;  %v16899_v8 = vld [vmem:[#allocation159_spill] sm:$0xff] }
 0x420   : > { %v3248_v32 = vsel %vm1843_vm2, %v3247_v54, %v3246_v33  ;;  %v16890_v54 = vld [vmem:[#allocation157_spill] sm:$0xff]  ;;  %v3265_v33 = vperm.slane %v16894_v59, %v16864_v62  ;;  %v3269_v4 = vsel %vm1843_vm2, %v3268_v5, %v3267_v0  ;;  %v3382_v60 = vsel %vm2034_vm3, %v3263_v27, %v3260_v36  ;;  %v16904_v36 = vld [vmem:[#allocation20_spill] sm:$0xff]  ;;  %v9399_v27 = vpop.eup %9398 }
 0x421   : > { %v3065_v23 = vpop.permute.xlu1 %3064  ;;  %v3255_v63 = vperm.slane %v16890_v54, %v16861_v30  ;;  %v3378_v49 = vsel %vm2040_vm6, %v3248_v32, %v3377_v16  ;;  %v3270_v28 = vperm.slane %v16897_v20, %v16861_v30  ;;  %v3277_v46 = vperm.slane %v16898_v19, %v16864_v62 }
 0x422   : > { %v12660_v17 = vpop.permute.xlu2 %3088  ;;  %v3304_v14 = vperm.slane %v3065_v23, %v16864_v62  ;;  %v3266_v3 = vsel %vm1843_vm2, %v3265_v33, %v3264_v61  ;;  %v3379_v23 = vsel %vm2042_vm7, %v3251_v11, %v3378_v49  ;;  %v3373_v37 = vsel %vm2044_vm8, %v12610_v22, %v3372_v25 }
 0x423   : > { %v3257_v1 = vsel %vm1843_vm2, %v3256_v44, %v3255_v63  ;;  %v3271_v45 = vperm.slane %v16899_v8, %v16864_v62  ;;  %v3276_v29 = vperm.slane %v16901_v35, %v16861_v30  ;;  %v5383_v40 = vsel %vm5382_vm11, %v12439_v39, 0.0  ;;  %v16903_v44 = vld [vmem:[#allocation164_spill] sm:$0xff] }
 0x424   : > { %v3305_v53 = vsel %vm1843_vm2, %v3304_v14, %v3303_v13  ;;  %v3233_v14 = vsel %vm1843_vm2, %v3232_v41, %v3231_v31  ;;  %v3383_v31 = vsel %vm2036_vm4, %v3266_v3, %v3382_v60  ;;  %v16900_v41 = vld [vmem:[#allocation169_spill] sm:$0xff]  ;;  %v12752_v16 = vrot.slane %v12376_v51, 4 }
 0x425   : > { %v12666_v9 = vpop.permute.xlu0 %3085  ;;  %v3395_v2 = vsel %vm2046_vm9, %v3305_v53, %v3394_v47  ;;  %v3274_v53 = vperm.slane %v16900_v41, %v16864_v62  ;;  %v3380_v47 = vsel %vm2044_vm8, %v3254_v42, %v3379_v23  ;;  %v3384_v43 = vsel %vm2038_vm5, %v3269_v4, %v3383_v31  ;;  %v16902_v42 = vld [vmem:[#allocation244_spill] sm:$0xff] }
 0x426   : > { %v3433_v56 = vsel %vm2105_vm10, %v3395_v2, 0.0  ;;  %v3374_v61 = vsel %vm2046_vm9, %v3233_v14, %v3373_v37  ;;  %v3381_v2 = vsel %vm2046_vm9, %v3257_v1, %v3380_v47  ;;  %v3272_v11 = vsel %vm1843_vm2, %v3271_v45, %v3270_v28 }
 0x427   : > { %3434 = vadd.xlane.f32.xlu0 %v3433_v56  ;;  %v3275_v22 = vsel %vm1843_vm2, %v3274_v53, %v3273_v12  ;;  %v3278_v54 = vsel %vm1843_vm2, %v3277_v46, %v3276_v29  ;;  %v3279_v63 = vperm.slane %v16902_v42, %v16861_v30  ;;  %v3424_v18 = vsel %vm2105_vm10, %v3374_v61, 0.0  ;;  %v16905_v12 = vld [vmem:[#allocation23_spill] sm:$0xff] }
 0x428   : > { %v3427_v5 = vsel %vm2105_vm10, %v3381_v2, 0.0  ;;  %v3385_v56 = vsel %vm2040_vm6, %v3272_v11, %v3384_v43  ;;  %v3280_v50 = vperm.slane %v16903_v44, %v16864_v62  ;;  %v5321_v38 = vmul.f32 %v12436_v52, %v12469_v15  ;;  %v16906_v43 = vld [vmem:[#allocation25_spill] sm:$0xff]  ;;  %v16907_v2 = vld [vmem:[#allocation59_spill] sm:$0xff] }
 0x429   : > { %3419 = vadd.xlane.f32.xlu1 %v3418_v10  ;;  %v12702_v6 = vpop.permute.xlu1 %3073  ;;  %v3386_v24 = vsel %vm2042_vm7, %v3275_v22, %v3385_v56  ;;  %v5199_v10 = vadd.f32 %v12752_v16, %v16904_v36  ;;  %v5324_v25 = vmul.f32 %v12436_v52, %v9399_v27  ;;  %v5202_v14 = vadd.f32 %v12752_v16, %v16905_v12 }
 0x42a   : > { %v12711_v13 = vpop.permute.xlu2 %3097  ;;  %v3387_v59 = vsel %vm2044_vm8, %v3278_v54, %v3386_v24  ;;  %v3281_v7 = vsel %vm1843_vm2, %v3280_v50, %v3279_v63  ;;  %v5392_v48 = vsel %vm5382_vm11, %v5321_v38, 0.0  ;;  %v3309_v23 = vperm.slane %v12702_v6, %v16861_v30  ;;  %v12820_v24 = vpop.f32.mrf.mxu3 }
 0x42b   : > { %v3388_v0 = vsel %vm2046_vm9, %v3281_v7, %v3387_v59  ;;  %9400 = vtanh.f32 %v5199_v10  ;;  %v3306_v1 = vperm.slane %v12554_v21, %v16861_v30  ;;  %v3310_v60 = vperm.slane %v12617_v57, %v16864_v62  ;;  %v16909_v10 = vld [vmem:[#allocation28_spill] sm:$0xff] }
 0x42c   : > { %v3430_v3 = vsel %vm2105_vm10, %v3388_v0, 0.0  ;;  %v5401_v28 = vsel %vm5382_vm11, %v5324_v25, 0.0  ;;  %v3312_v6 = vperm.slane %v12607_v55, %v16861_v30  ;;  %v3307_v46 = vperm.slane %v12547_v58, %v16864_v62  ;;  %v16908_v0 = vld [vmem:[#allocation65_spill] sm:$0xff] }
 0x42d   : > { %v12726_v32 = vpop.permute.xlu0 %3094  ;;  %v3311_v37 = vsel %vm1843_vm2, %v3310_v60, %v3309_v23  ;;  %9402 = vtanh.f32 %v5202_v14  ;;  %v3315_v31 = vperm.slane %v12666_v9, %v16861_v30  ;;  %v3316_v47 = vperm.slane %v12660_v17, %v16864_v62 }
 0x42e   : > { %v3308_v57 = vsel %vm1843_vm2, %v3307_v46, %v3306_v1  ;;  %v3319_v58 = vperm.slane %v12726_v32, %v16864_v62  ;;  %v3321_v35 = vperm.slane %v12711_v13, %v16861_v30  ;;  %v5205_v9 = vadd.f32 %v12752_v16, %v16906_v43  ;;  %v16910_v1 = vld [vmem:[#allocation33_spill] sm:$0xff] }
 0x42f   : > { %5384 = vadd.xlane.f32.xlu0 %v5383_v40  ;;  %v3396_v53 = vsel %vm2034_vm3, %v3311_v37, %v3308_v57  ;;  %v5192_v22 = vadd.f32 %v12376_v51, %v16907_v2  ;;  %v3317_v40 = vsel %vm1843_vm2, %v3316_v47, %v3315_v31  ;;  %v5211_v60 = vadd.f32 %v12820_v24, %v16910_v1  ;;  %v16913_v47 = vld [vmem:[#allocation21_spill] sm:$0xff]  ;;  %v16918_v1 = vld [vmem:[#allocation60_spill] sm:$0xff] }
 0x430   : > { %9404 = vtanh.f32 %v5205_v9 }
 0x431   : > { %3425 = vadd.xlane.f32.xlu2 %v3424_v18  ;;  %3428 = vadd.xlane.f32.xlu1 %v3427_v5  ;;  %v3083_v39 = vpop.permute.xlu1 %3082  ;;  %v9401_v19 = vpop.eup %9400  ;;  %9406 = vtanh.f32 %v5192_v22 }
 0x432   : > { %v3107_v49 = vpop.permute.xlu2 %3106  ;;  %v3313_v34 = vperm.slane %v3083_v39, %v16864_v62  ;;  %v5327_v55 = vmul.f32 %v12436_v52, %v9401_v19 }
 0x433   : > { %v9403_v54 = vpop.eup %9402  ;;  %v3325_v5 = vperm.slane %v3107_v49, %v16864_v62  ;;  %v5195_v49 = vadd.f32 %v12376_v51, %v16908_v0 }
 0x434   : > { %v3314_v8 = vsel %vm1843_vm2, %v3313_v34, %v3312_v6  ;;  %v5410_v17 = vsel %vm5382_vm11, %v5327_v55, 0.0  ;;  %v5330_v38 = vmul.f32 %v12436_v52, %v9403_v54 }
 0x435   : > { %v12761_v33 = vpop.permute.xlu0 %3103  ;;  %v3397_v29 = vsel %vm2036_vm4, %v3314_v8, %v3396_v53  ;;  %9408 = vtanh.f32 %v5195_v49  ;;  %v16912_v53 = vld [vmem:[#allocation38_spill] sm:$0xff] }
 0x436   : > { %v3324_v13 = vperm.slane %v12761_v33, %v16861_v30  ;;  %v3398_v42 = vsel %vm2038_vm5, %v3317_v40, %v3397_v29  ;;  %v9405_v27 = vpop.eup %9404 }
 0x437   : > { %5393 = vadd.xlane.f32.xlu0 %v5392_v48  ;;  %v5208_v48 = vadd.f32 %v12820_v24, %v16909_v10  ;;  %v9407_v25 = vpop.eup %9406  ;;  %v5333_v12 = vmul.f32 %v12436_v52, %v9405_v27 }
 0x438   : > { %v3326_v59 = vsel %vm1843_vm2, %v3325_v5, %v3324_v13  ;;  %v5320_v14 = vmul.f32 %v12436_v52, %v9407_v25  ;;  %v16915_v13 = vld [vmem:[#allocation24_spill] sm:$0xff]  ;;  %v16917_v25 = vld [vmem:[#allocation30_spill] sm:$0xff] }
 0x439   : > { %3431 = vadd.xlane.f32.xlu2 %v3430_v3  ;;  %v3092_v15 = vpop.permute.xlu1 %3091  ;;  %v5419_v3 = vsel %vm5382_vm11, %v5330_v38, 0.0  ;;  %9410 = vtanh.f32 %v5208_v48  ;;  %v5428_v46 = vsel %vm5382_vm11, %v5333_v12, 0.0 }
 0x43a   : > { %v12779_v20 = vpop.permute.xlu2 %3115  ;;  %v3318_v21 = vperm.slane %v3092_v15, %v16861_v30  ;;  %v5389_v37 = vsel %vm5382_vm11, %v5320_v14, 0.0  ;;  %9412 = vtanh.f32 %v5211_v60 }
 0x43b   : > { %v9409_v6 = vpop.eup %9408 }
 0x43c   : > { %v3320_v61 = vsel %vm1843_vm2, %v3319_v58, %v3318_v21  ;;  %v12846_v21 = vrot.slane %v12820_v24, 4 }
 0x43d   : > { %v3113_v4 = vpop.permute.xlu0 %3112  ;;  %v3399_v63 = vsel %vm2040_vm6, %v3320_v61, %v3398_v42  ;;  %v5204_v42 = vadd.f32 %v12752_v16, %v16915_v13 }
 0x43e   : > { %v3328_v44 = vperm.slane %v3113_v4, %v16864_v62  ;;  %v5214_v58 = vadd.f32 %v12846_v21, %v16912_v53 }
 0x43f   : > { %5402 = vadd.xlane.f32.xlu0 %v5401_v28  ;;  %v16911_v28 = vld [vmem:[#allocation18_spill] sm:$0xff]  ;;  %v9411_v8 = vpop.eup %9410 }
 0x440   : > { %v5198_v19 = vadd.f32 %v12752_v16, %v16911_v28  ;;  %v5336_v31 = vmul.f32 %v12436_v52, %v9411_v8  ;;  %v9413_v29 = vpop.eup %9412 }
 0x441   : > { %v3101_v45 = vpop.permute.xlu1 %3100  ;;  %v5339_v22 = vmul.f32 %v12436_v52, %v9413_v29 }
 0x442   : > { %v3322_v41 = vperm.slane %v3101_v45, %v16864_v62  ;;  %v12816_v18 = vpop.permute.xlu2 %3124  ;;  %9414 = vtanh.f32 %v5198_v19  ;;  %v5437_v43 = vsel %vm5382_vm11, %v5336_v31, 0.0 }
 0x443   : > { %9416 = vtanh.f32 %v5214_v58  ;;  %v3334_v48 = vperm.slane %v12816_v18, %v16864_v62  ;;  %v5191_v18 = vadd.f32 %v12376_v51, %v16918_v1 }
 0x444   : > { %v3323_v32 = vsel %vm1843_vm2, %v3322_v41, %v3321_v35  ;;  %v5323_v41 = vmul.f32 %v12436_v52, %v9409_v6  ;;  %v5201_v35 = vadd.f32 %v12752_v16, %v16913_v47 }
 0x445   : > { %v12809_v11 = vpop.permute.xlu0 %3121  ;;  %v3400_v39 = vsel %vm2042_vm7, %v3323_v32, %v3399_v63 }
 0x446   : > { %v3401_v7 = vsel %vm2044_vm8, %v3326_v59, %v3400_v39  ;;  %v5398_v9 = vsel %vm5382_vm11, %v5323_v41, 0.0  ;;  %9418 = vtanh.f32 %v5201_v35  ;;  %v3330_v59 = vperm.slane %v12779_v20, %v16861_v30 }
 0x447   : > { %5411 = vadd.xlane.f32.xlu0 %v5410_v17  ;;  %v16914_v17 = vld [vmem:[#allocation41_spill] sm:$0xff] }
 0x448   : > { %v9415_v61 = vpop.eup %9414  ;;  %v5217_v54 = vadd.f32 %v12846_v21, %v16914_v17  ;;  %v16919_v17 = vld [vmem:[#allocation48_spill] sm:$0xff] }
 0x449   : > { %v3110_v56 = vpop.permute.xlu1 %3109  ;;  %v5326_v40 = vmul.f32 %v12436_v52, %v9415_v61  ;;  %v9417_v63 = vpop.eup %9416 }
 0x44a   : > { %v3327_v50 = vperm.slane %v3110_v56, %v16861_v30  ;;  %v3134_v34 = vpop.permute.xlu2 %3133  ;;  %v5446_v56 = vsel %vm5382_vm11, %v5339_v22, 0.0  ;;  %9420 = vtanh.f32 %v5217_v54 }
 0x44b   : > { %v5407_v39 = vsel %vm5382_vm11, %v5326_v40, 0.0  ;;  %9422 = vtanh.f32 %v5204_v42  ;;  %v3339_v27 = vperm.slane %v3134_v34, %v16861_v30 }
 0x44c   : > { %v3329_v33 = vsel %vm1843_vm2, %v3328_v44, %v3327_v50  ;;  %v9419_v44 = vpop.eup %9418 }
 0x44d   : > { %v3402_v36 = vsel %vm2046_vm9, %v3329_v33, %v3401_v7  ;;  %v12835_v23 = vpop.permute.xlu0 %3130  ;;  %v3333_v33 = vperm.slane %v12809_v11, %v16861_v30  ;;  %v5329_v10 = vmul.f32 %v12436_v52, %v9419_v44 }
 0x44e   : > { %v3436_v15 = vsel %vm2105_vm10, %v3402_v36, 0.0  ;;  %v3337_v49 = vperm.slane %v12835_v23, %v16864_v62  ;;  %v5342_v36 = vmul.f32 %v12436_v52, %v9417_v63 }
 0x44f   : > { %5420 = vadd.xlane.f32.xlu0 %v5419_v3  ;;  %3437 = vadd.xlane.f32.xlu1 %v3436_v15  ;;  %v16916_v3 = vld [vmem:[#allocation44_spill] sm:$0xff]  ;;  %v3335_v23 = vsel %vm1843_vm2, %v3334_v48, %v3333_v33 }
 0x450   : > { %v5220_v11 = vadd.f32 %v12846_v21, %v16916_v3  ;;  %v9421_v34 = vpop.eup %9420  ;;  %v5455_v6 = vsel %vm5382_vm11, %v5342_v36, 0.0 }
 0x451   : > { %v3119_v4 = vpop.permute.xlu1 %3118  ;;  %v5345_v29 = vmul.f32 %v12436_v52, %v9421_v34 }
 0x452   : > { %v12852_v55 = vpop.permute.xlu2 %3142  ;;  %v3331_v50 = vperm.slane %v3119_v4, %v16864_v62  ;;  %v5207_v4 = vadd.f32 %v12820_v24, %v16917_v25  ;;  %9424 = vtanh.f32 %v5220_v11  ;;  %v16924_v25 = vld [vmem:[#allocation67_spill] sm:$0xff] }
 0x453   : > { %v3343_v31 = vperm.slane %v12852_v55, %v16864_v62 }
 0x454   : > { %v3332_v20 = vsel %vm1843_vm2, %v3331_v50, %v3330_v59  ;;  %9426 = vtanh.f32 %v5207_v4  ;;  %v5197_v4 = vadd.f32 %v12376_v51, %v16924_v25 }
 0x455   : > { %v12848_v57 = vpop.permute.xlu0 %3139  ;;  %v3403_v60 = vsel %vm2034_vm3, %v3335_v23, %v3332_v20  ;;  %9428 = vtanh.f32 %v5191_v18 }
 0x456   : > { %v3342_v28 = vperm.slane %v12848_v57, %v16861_v30  ;;  %v12903_v57 = vpop.f32.mrf.mxu3 }
 0x457   : > { %5429 = vadd.xlane.f32.xlu0 %v5428_v46  ;;  %5390 = vadd.xlane.f32.xlu1 %v5389_v37  ;;  %v5416_v46 = vsel %vm5382_vm11, %v5329_v10, 0.0  ;;  %v9423_v37 = vpop.eup %9422  ;;  %v5223_v54 = vadd.f32 %v12903_v57, %v16919_v17  ;;  %v16922_v10 = vld [vmem:[#allocation53_spill] sm:$0xff] }
 0x458   : > { %v5332_v61 = vmul.f32 %v12436_v52, %v9423_v37  ;;  %v9425_v13 = vpop.eup %9424  ;;  %v5226_v48 = vadd.f32 %v12903_v57, %v16922_v10 }
 0x459   : > { %v3128_v45 = vpop.permute.xlu1 %3127  ;;  %9430 = vtanh.f32 %v5223_v54 }
 0x45a   : > { %v3152_v5 = vpop.permute.xlu2 %3151  ;;  %v3336_v38 = vperm.slane %v3128_v45, %v16861_v30  ;;  %v5425_v44 = vsel %vm5382_vm11, %v5332_v61, 0.0 }
 0x45c   : > { %v3338_v15 = vsel %vm1843_vm2, %v3337_v49, %v3336_v38  ;;  %v16921_v38 = vld [vmem:[#allocation62_spill] sm:$0xff] }
 0x45d   : > { %v3149_v32 = vpop.permute.xlu0 %3148  ;;  %v3404_v8 = vsel %vm2036_vm4, %v3338_v15, %v3403_v60  ;;  %v5194_v59 = vadd.f32 %v12376_v51, %v16921_v38  ;;  %v16925_v60 = vld [vmem:[#allocation57_spill] sm:$0xff]  ;;  %v16926_v51 = vld [vmem:[#allocation39_spill] sm:$0xff] }
 0x45e   : > { %v3346_v45 = vperm.slane %v3149_v32, %v16864_v62  ;;  %v12979_v10 = vpop.f32.mrf.mxu3 }
 0x45f   : > { %5438 = vadd.xlane.f32.xlu0 %v5437_v43  ;;  %5399 = vadd.xlane.f32.xlu1 %v5398_v9  ;;  %v3344_v43 = vsel %vm1843_vm2, %v3343_v31, %v3342_v28  ;;  %v3348_v9 = vperm.slane %v3152_v5, %v16861_v30  ;;  %v16920_v5 = vld [vmem:[#allocation35_spill] sm:$0xff]  ;;  %v5229_v28 = vadd.f32 %v12903_v57, %v16925_v60 }
 0x461   : > { %v3137_v2 = vpop.permute.xlu1 %3136 }
 0x462   : > { %v3340_v7 = vperm.slane %v3137_v2, %v16864_v62  ;;  %v3161_v41 = vpop.permute.xlu2 %3160 }
 0x463   : > { %v3352_v2 = vperm.slane %v3161_v41, %v16864_v62 }
 0x464   : > { %v3341_v12 = vsel %vm1843_vm2, %v3340_v7, %v3339_v27  ;;  %v16923_v27 = vld [vmem:[#allocation37_spill] sm:$0xff] }
 0x465   : > { %v3158_v19 = vpop.permute.xlu0 %3157  ;;  %v3405_v53 = vsel %vm2038_vm5, %v3341_v12, %v3404_v8  ;;  %v5213_v20 = vadd.f32 %v12820_v24, %v16923_v27  ;;  %v16927_v8 = vld [vmem:[#allocation19_spill] sm:$0xff] }
 0x466   : > { %v3351_v58 = vperm.slane %v3158_v19, %v16861_v30  ;;  %v3406_v22 = vsel %vm2040_vm6, %v3344_v43, %v3405_v53  ;;  %v5216_v19 = vadd.f32 %v12846_v21, %v16926_v51  ;;  %v16928_v43 = vld [vmem:[#allocation87_spill] sm:$0xff] }
 0x467   : > { %5447 = vadd.xlane.f32.xlu0 %v5446_v56  ;;  %5408 = vadd.xlane.f32.xlu1 %v5407_v39  ;;  %v5210_v56 = vadd.f32 %v12820_v24, %v16920_v5  ;;  %v9427_v39 = vpop.eup %9426 }
 0x468   : > { %v3353_v42 = vsel %vm1843_vm2, %v3352_v2, %v3351_v58  ;;  %v9429_v33 = vpop.eup %9428  ;;  %v5335_v49 = vmul.f32 %v12436_v52, %v9427_v39  ;;  %v12953_v58 = vrot.slane %v12903_v57, 4  ;;  %v16931_v39 = vld [vmem:[#allocation96_spill] sm:$0xff] }
 0x469   : > { %v3146_v0 = vpop.permute.xlu1 %3145  ;;  %9432 = vtanh.f32 %v5210_v56  ;;  %v5319_v36 = vmul.f32 %v12436_v52, %v9429_v33  ;;  %v9431_v3 = vpop.eup %9430  ;;  %v16933_v33 = vld [vmem:[#allocation29_spill] sm:$0xff] }
 0x46a   : > { %v3345_v14 = vperm.slane %v3146_v0, %v16861_v30  ;;  %v5348_v0 = vmul.f32 %v12436_v52, %v9425_v13  ;;  %9434 = vtanh.f32 %v5194_v59  ;;  %v5434_v15 = vsel %vm5382_vm11, %v5335_v49, 0.0 }
 0x46b   : > { %v5386_v12 = vsel %vm5382_vm11, %v5319_v36, 0.0  ;;  %9436 = vtanh.f32 %v5226_v48  ;;  %v5351_v1 = vmul.f32 %v12436_v52, %v9431_v3  ;;  %v16934_v3 = vld [vmem:[#allocation105_spill] sm:$0xff] }
 0x46c   : > { %v3347_v47 = vsel %vm1843_vm2, %v3346_v45, %v3345_v14  ;;  %v5473_v11 = vsel %vm5382_vm11, %v5348_v0, 0.0  ;;  %9438 = vtanh.f32 %v5213_v20  ;;  %v5200_v45 = vadd.f32 %v12752_v16, %v16927_v8 }
 0x46d   : > { %v3407_v32 = vsel %vm2042_vm7, %v3347_v47, %v3406_v22  ;;  %9440 = vtanh.f32 %v5197_v4 }
 0x46e   : > { %9442 = vtanh.f32 %v5229_v28 }
 0x46f   : > { %5456 = vadd.xlane.f32.xlu0 %v5455_v6  ;;  %5417 = vadd.xlane.f32.xlu1 %v5416_v46  ;;  %v9433_v23 = vpop.eup %9432  ;;  %v5482_v46 = vsel %vm5382_vm11, %v5351_v1, 0.0  ;;  %9444 = vtanh.f32 %v5216_v19 }
 0x470   : > { %v9435_v14 = vpop.eup %9434  ;;  %v5338_v18 = vmul.f32 %v12436_v52, %v9433_v23  ;;  %9446 = vtanh.f32 %v5200_v45 }
 0x471   : > { %v3155_v35 = vpop.permute.xlu1 %3154  ;;  %v5322_v34 = vmul.f32 %v12436_v52, %v9435_v14  ;;  %v9437_v6 = vpop.eup %9436  ;;  %v16936_v14 = vld [vmem:[#allocation31_spill] sm:$0xff] }
 0x472   : > { %v3349_v55 = vperm.slane %v3155_v35, %v16864_v62  ;;  %v5464_v62 = vsel %vm5382_vm11, %v5345_v29, 0.0  ;;  %v5443_v37 = vsel %vm5382_vm11, %v5338_v18, 0.0  ;;  %v9439_v31 = vpop.eup %9438  ;;  %v5354_v47 = vmul.f32 %v12436_v52, %v9437_v6  ;;  %v16937_v6 = vld [vmem:[#allocation114_spill] sm:$0xff] }
 0x473   : > { %v5395_v41 = vsel %vm5382_vm11, %v5322_v34, 0.0  ;;  %v9441_v53 = vpop.eup %9440  ;;  %v5341_v35 = vmul.f32 %v12436_v52, %v9439_v31  ;;  %v5209_v1 = vadd.f32 %v12820_v24, %v16936_v14 }
 0x474   : > { %v3350_v40 = vsel %vm1843_vm2, %v3349_v55, %v3348_v9  ;;  %v5325_v29 = vmul.f32 %v12436_v52, %v9441_v53  ;;  %v5232_v9 = vadd.f32 %v12953_v58, %v16928_v43  ;;  %v16929_v55 = vld [vmem:[#allocation42_spill] sm:$0xff]  ;;  %v9443_v2 = vpop.eup %9442  ;;  %v5491_v22 = vsel %vm5382_vm11, %v5354_v47, 0.0  ;;  %v16939_v53 = vld [vmem:[#allocation36_spill] sm:$0xff] }
 0x475   : > { %v3408_v63 = vsel %vm2044_vm8, %v3350_v40, %v3407_v32  ;;  %v5219_v61 = vadd.f32 %v12846_v21, %v16929_v55  ;;  %v5452_v40 = vsel %vm5382_vm11, %v5341_v35, 0.0  ;;  %v16930_v32 = vld [vmem:[#allocation22_spill] sm:$0xff]  ;;  %v9445_v54 = vpop.eup %9444  ;;  %v5212_v47 = vadd.f32 %v12820_v24, %v16939_v53 }
 0x476   : > { %v3409_v50 = vsel %vm2046_vm9, %v3353_v42, %v3408_v63  ;;  %v5203_v17 = vadd.f32 %v12752_v16, %v16930_v32  ;;  %v5404_v13 = vsel %vm5382_vm11, %v5325_v29, 0.0  ;;  %v9447_v42 = vpop.eup %9446  ;;  %9448 = vtanh.f32 %v5232_v9  ;;  %v16932_v16 = vld [vmem:[#allocation46_spill] sm:$0xff] }
 0x477   : > { %5465 = vadd.xlane.f32.xlu0 %v5464_v62  ;;  %5426 = vadd.xlane.f32.xlu1 %v5425_v44  ;;  %v3439_v7 = vsel %vm2105_vm10, %v3409_v50, 0.0  ;;  %9450 = vtanh.f32 %v5219_v61  ;;  %v5357_v63 = vmul.f32 %v12436_v52, %v9443_v2  ;;  %v5344_v5 = vmul.f32 %v12436_v52, %v9445_v54  ;;  %v16940_v2 = vld [vmem:[#allocation123_spill] sm:$0xff] }
 0x478   : > { %3440 = vadd.xlane.f32.xlu2 %v3439_v7  ;;  %9452 = vtanh.f32 %v5203_v17  ;;  %v5328_v56 = vmul.f32 %v12436_v52, %v9447_v42  ;;  %v5235_v62 = vadd.f32 %v12953_v58, %v16931_v39  ;;  %v5222_v44 = vadd.f32 %v12903_v57, %v16932_v16  ;;  %v13027_v16 = vld [vmem:[%s15965_s10] ss:$0 sm:$0xff] }
 0x479   : > { %v5500_v38 = vsel %vm5382_vm11, %v5357_v63, 0.0  ;;  %v5461_v59 = vsel %vm5382_vm11, %v5344_v5, 0.0  ;;  %v5206_v7 = vadd.f32 %v12820_v24, %v16933_v33  ;;  %v16941_v24 = vld [vmem:[#allocation83_spill] sm:$0xff]  ;;  %v13020_v39 = vrot.slane %v12979_v10, 4 }
 0x47a   : > { %v5413_v49 = vsel %vm5382_vm11, %v5328_v56, 0.0  ;;  %9454 = vtanh.f32 %v5235_v62 }
 0x47b   : > { %9456 = vtanh.f32 %v5222_v44 }
 0x47c   : > { %v9449_v50 = vpop.eup %9448  ;;  %9458 = vtanh.f32 %v5206_v7  ;;  %v16944_v7 = vld [vmem:[#allocation89_spill] sm:$0xff] }
 0x47d   : > { %v9451_v0 = vpop.eup %9450  ;;  %v5360_v48 = vmul.f32 %v12436_v52, %v9449_v50 }
 0x47e   : > { %v9453_v36 = vpop.eup %9452  ;;  %v5347_v27 = vmul.f32 %v12436_v52, %v9451_v0  ;;  %v5234_v0 = vadd.f32 %v12953_v58, %v16944_v7 }
 0x47f   : > { %5474 = vadd.xlane.f32.xlu0 %v5473_v11  ;;  %5435 = vadd.xlane.f32.xlu1 %v5434_v15  ;;  %v5331_v20 = vmul.f32 %v12436_v52, %v9453_v36  ;;  %v5238_v11 = vadd.f32 %v12979_v10, %v16934_v3  ;;  %v16935_v15 = vld [vmem:[#allocation49_spill] sm:$0xff]  ;;  %v5509_v23 = vsel %vm5382_vm11, %v5360_v48, 0.0 }
 0x480   : > { %5387 = vadd.xlane.f32.xlu2 %v5386_v12  ;;  %v5225_v25 = vadd.f32 %v12903_v57, %v16935_v15  ;;  %v9455_v4 = vpop.eup %9454  ;;  %v5470_v12 = vsel %vm5382_vm11, %v5347_v27, 0.0  ;;  %v16945_v27 = vld [vmem:[#allocation43_spill] sm:$0xff] }
 0x481   : > { %v9457_v18 = vpop.eup %9456  ;;  %v5422_v34 = vsel %vm5382_vm11, %v5331_v20, 0.0  ;;  %9460 = vtanh.f32 %v5238_v11  ;;  %v5363_v28 = vmul.f32 %v12436_v52, %v9455_v4  ;;  %v5218_v20 = vadd.f32 %v12846_v21, %v16945_v27 }
 0x482   : > { %v9459_v60 = vpop.eup %9458  ;;  %9462 = vtanh.f32 %v5225_v25  ;;  %v5350_v51 = vmul.f32 %v12436_v52, %v9457_v18 }
 0x483   : > { %9464 = vtanh.f32 %v5209_v1  ;;  %v5334_v19 = vmul.f32 %v12436_v52, %v9459_v60  ;;  %v5518_v31 = vsel %vm5382_vm11, %v5363_v28, 0.0  ;;  %v16946_v1 = vld [vmem:[#allocation140_spill] sm:$0xff] }
 0x484   : > { %v5250_v18 = vadd.f32 %v13020_v39, %v16946_v1 }
 0x485   : > { %v5431_v29 = vsel %vm5382_vm11, %v5334_v19, 0.0 }
 0x487   : > { %5483 = vadd.xlane.f32.xlu0 %v5482_v46  ;;  %5444 = vadd.xlane.f32.xlu1 %v5443_v37  ;;  %v5241_v46 = vadd.f32 %v12979_v10, %v16937_v6  ;;  %v16938_v37 = vld [vmem:[#allocation55_spill] sm:$0xff]  ;;  %v9461_v45 = vpop.eup %9460  ;;  %v16948_v6 = vld [vmem:[#allocation45_spill] sm:$0xff] }
 0x488   : > { %5396 = vadd.xlane.f32.xlu2 %v5395_v41  ;;  %v5228_v8 = vadd.f32 %v12903_v57, %v16938_v37  ;;  %v5479_v41 = vsel %vm5382_vm11, %v5350_v51, 0.0  ;;  %v9463_v35 = vpop.eup %9462  ;;  %v5366_v9 = vmul.f32 %v12436_v52, %v9461_v45 }
 0x489   : > { %v9465_v43 = vpop.eup %9464  ;;  %9466 = vtanh.f32 %v5241_v46  ;;  %v5353_v55 = vmul.f32 %v12436_v52, %v9463_v35  ;;  %v5221_v46 = vadd.f32 %v12846_v21, %v16948_v6  ;;  %v16949_v35 = vld [vmem:[#allocation145_spill] sm:$0xff]  ;;  %v16956_v6 = vld [vmem:[#allocation139_spill] sm:$0xff] }
 0x48a   : > { %9468 = vtanh.f32 %v5228_v8  ;;  %v5337_v61 = vmul.f32 %v12436_v52, %v9465_v43  ;;  %v5527_v17 = vsel %vm5382_vm11, %v5366_v9, 0.0  ;;  %v16950_v43 = vld [vmem:[#allocation110_spill] sm:$0xff] }
 0x48b   : > { %9470 = vtanh.f32 %v5212_v47  ;;  %v5488_v54 = vsel %vm5382_vm11, %v5353_v55, 0.0  ;;  %v5240_v9 = vadd.f32 %v12979_v10, %v16950_v43 }
 0x48c   : > { %v5440_v52 = vsel %vm5382_vm11, %v5337_v61, 0.0 }
 0x48f   : > { %5492 = vadd.xlane.f32.xlu0 %v5491_v22  ;;  %5453 = vadd.xlane.f32.xlu1 %v5452_v40  ;;  %v5244_v22 = vadd.f32 %v12979_v10, %v16940_v2  ;;  %v5231_v40 = vadd.f32 %v12953_v58, %v16941_v24  ;;  %v9467_v32 = vpop.eup %9466 }
 0x490   : > { %5405 = vadd.xlane.f32.xlu2 %v5404_v13  ;;  %v16942_v13 = vld [vmem:[#allocation40_spill] sm:$0xff]  ;;  %v9469_v63 = vpop.eup %9468  ;;  %v13016_v5 = vpop.xlane.xlu0 %3422  ;;  %v5369_v44 = vmul.f32 %v13027_v16, %v9467_v32 }
 0x491   : > { %v5215_v42 = vadd.f32 %v12846_v21, %v16942_v13  ;;  %v9471_v56 = vpop.eup %9470  ;;  %9472 = vtanh.f32 %v5244_v22  ;;  %v5356_v50 = vmul.f32 %v13027_v16, %v9469_v63  ;;  %v16951_v22 = vld [vmem:[#allocation47_spill] sm:$0xff] }
 0x492   : > { %9474 = vtanh.f32 %v5231_v40  ;;  %v5536_v36 = vsel %vm5382_vm11, %v5369_v44, 0.0  ;;  %v5224_v24 = vadd.f32 %v12903_v57, %v16951_v22 }
 0x493   : > { %9476 = vtanh.f32 %v5215_v42  ;;  %v5497_v48 = vsel %vm5382_vm11, %v5356_v50, 0.0 }
 0x497   : > { %5501 = vadd.xlane.f32.xlu0 %v5500_v38  ;;  %5462 = vadd.xlane.f32.xlu1 %v5461_v59  ;;  %v5340_v38 = vmul.f32 %v13027_v16, %v9471_v56  ;;  %v16943_v59 = vld [vmem:[#allocation132_spill] sm:$0xff]  ;;  %v16952_v56 = vld [vmem:[#allocation119_spill] sm:$0xff] }
 0x498   : > { %5414 = vadd.xlane.f32.xlu2 %v5413_v49  ;;  %v5247_v33 = vadd.f32 %v13020_v39, %v16943_v59  ;;  %v9473_v49 = vpop.eup %9472  ;;  %v5243_v44 = vadd.f32 %v12979_v10, %v16952_v56 }
 0x499   : > { %v9475_v3 = vpop.eup %9474  ;;  %v5449_v15 = vsel %vm5382_vm11, %v5340_v38, 0.0 }
 0x49a   : > { %v13040_v11 = vpop.xlane.xlu0 %3434  ;;  %v9477_v25 = vpop.eup %9476  ;;  %9478 = vtanh.f32 %v5247_v33  ;;  %v16953_v33 = vld [vmem:[#allocation51_spill] sm:$0xff] }
 0x49b   : > { %9480 = vtanh.f32 %v5234_v0  ;;  %v5343_v14 = vmul.f32 %v13027_v16, %v9477_v25  ;;  %v5227_v7 = vadd.f32 %v12903_v57, %v16953_v33  ;;  %v16954_v57 = vld [vmem:[#allocation128_spill] sm:$0xff] }
 0x49c   : > { %v13022_v62 = vpop.xlane.xlu1 %3419  ;;  %9482 = vtanh.f32 %v5218_v20  ;;  %v5246_v25 = vadd.f32 %v13020_v39, %v16954_v57 }
 0x49d   : > { %v5458_v8 = vsel %vm5382_vm11, %v5343_v14, 0.0  ;;  %9484 = vtanh.f32 %v5250_v18  ;;  %v16955_v14 = vld [vmem:[#allocation80_spill] sm:$0xff] }
 0x49e   : > { %v5230_v1 = vadd.f32 %v12953_v58, %v16955_v14 }
 0x49f   : > { %5510 = vadd.xlane.f32.xlu0 %v5509_v23  ;;  %5471 = vadd.xlane.f32.xlu1 %v5470_v12  ;;  %v5372_v23 = vmul.f32 %v13027_v16, %v9473_v49  ;;  %v5359_v12 = vmul.f32 %v13027_v16, %v9475_v3 }
 0x4a0   : > { %5423 = vadd.xlane.f32.xlu2 %v5422_v34  ;;  %v16947_v34 = vld [vmem:[#allocation101_spill] sm:$0xff]  ;;  %v9479_v28 = vpop.eup %9478 }
 0x4a1   : > { %v5237_v60 = vadd.f32 %v12953_v58, %v16947_v34  ;;  %v5545_v51 = vsel %vm5382_vm11, %v5372_v23, 0.0  ;;  %v5506_v19 = vsel %vm5382_vm11, %v5359_v12, 0.0  ;;  %v9481_v37 = vpop.eup %9480  ;;  %v5375_v53 = vmul.f32 %v13027_v16, %v9479_v28 }
 0x4a2   : > { %v9483_v45 = vpop.eup %9482  ;;  %v5362_v47 = vmul.f32 %v13027_v16, %v9481_v37 }
 0x4a3   : > { %9486 = vtanh.f32 %v5237_v60  ;;  %v5346_v21 = vmul.f32 %v13027_v16, %v9483_v45  ;;  %v9485_v55 = vpop.eup %9484  ;;  %v5554_v61 = vsel %vm5382_vm11, %v5375_v53, 0.0  ;;  %v16957_v45 = vld [vmem:[#allocation85_spill] sm:$0xff] }
 0x4a4   : > { %v13043_v4 = vpop.xlane.xlu1 %3428  ;;  %9488 = vtanh.f32 %v5221_v46  ;;  %v5515_v2 = vsel %vm5382_vm11, %v5362_v47, 0.0  ;;  %v5378_v13 = vmul.f32 %v13027_v16, %v9485_v55  ;;  %v13101_v28 = vpop.xlane.xlu2 %3425  ;;  %v5249_v46 = vadd.f32 %v13020_v39, %v16956_v6 }
 0x4a5   : > { %v5467_v32 = vsel %vm5382_vm11, %v5346_v21, 0.0  ;;  %v5233_v53 = vadd.f32 %v12953_v58, %v16957_v45 }
 0x4a6   : > { %v5563_v38 = vsel %vm5382_vm11, %v5378_v13, 0.0 }
 0x4a7   : > { %5519 = vadd.xlane.f32.xlu0 %v5518_v31  ;;  %5480 = vadd.xlane.f32.xlu1 %v5479_v41  ;;  %v13057_v31 = vpop.xlane.xlu0 %5384 }
 0x4a8   : > { %5432 = vadd.xlane.f32.xlu2 %v5431_v29  ;;  %v5253_v29 = vadd.f32 %v13020_v39, %v16949_v35 }
 0x4a9   : > { %v9487_v40 = vpop.eup %9486 }
 0x4aa   : > { %9490 = vtanh.f32 %v5253_v29  ;;  %v5365_v42 = vmul.f32 %v13027_v16, %v9487_v40 }
 0x4ab   : > { %9492 = vtanh.f32 %v5240_v9 }
 0x4ac   : > { %9494 = vtanh.f32 %v5224_v24  ;;  %v5524_v59 = vsel %vm5382_vm11, %v5365_v42, 0.0  ;;  %v13116_v9 = vpop.xlane.xlu2 %3431  ;;  %v16959_v24 = vld [vmem:[#allocation98_spill] sm:$0xff] }
 0x4ad   : > { %9496 = vtanh.f32 %v5243_v44  ;;  %v5236_v40 = vadd.f32 %v12953_v58, %v16959_v24 }
 0x4ae   : > { %9498 = vtanh.f32 %v5227_v7 }
 0x4af   : > { %5528 = vadd.xlane.f32.xlu0 %v5527_v17  ;;  %5489 = vadd.xlane.f32.xlu1 %v5488_v54  ;;  %v9489_v17 = vpop.eup %9488  ;;  %v13077_v63 = vpop.xlane.xlu0 %5393  ;;  %9500 = vtanh.f32 %v5246_v25  ;;  %v16961_v25 = vld [vmem:[#allocation116_spill] sm:$0xff] }
 0x4b0   : > { %5441 = vadd.xlane.f32.xlu2 %v5440_v52  ;;  %v5349_v52 = vmul.f32 %v13027_v16, %v9489_v17  ;;  %v9491_v50 = vpop.eup %9490  ;;  %9502 = vtanh.f32 %v5230_v1 }
 0x4b1   : > { %v9493_v0 = vpop.eup %9492  ;;  %9504 = vtanh.f32 %v5249_v46 }
 0x4b2   : > { %v5476_v49 = vsel %vm5382_vm11, %v5349_v52, 0.0  ;;  %v5368_v27 = vmul.f32 %v13027_v16, %v9493_v0  ;;  %9506 = vtanh.f32 %v5233_v53 }
 0x4b4   : > { %v5533_v12 = vsel %vm5382_vm11, %v5368_v27, 0.0 }
 0x4b7   : > { %5537 = vadd.xlane.f32.xlu0 %v5536_v36  ;;  %5498 = vadd.xlane.f32.xlu1 %v5497_v48  ;;  %v9495_v36 = vpop.eup %9494  ;;  %v5381_v48 = vmul.f32 %v13027_v16, %v9491_v50 }
 0x4b8   : > { %5450 = vadd.xlane.f32.xlu2 %v5449_v15  ;;  %v5352_v20 = vmul.f32 %v13027_v16, %v9495_v36  ;;  %v13092_v15 = vpop.xlane.xlu0 %5402  ;;  %v9497_v18 = vpop.eup %9496 }
 0x4b9   : > { %v5572_v23 = vsel %vm5382_vm11, %v5381_v48, 0.0  ;;  %v9499_v60 = vpop.eup %9498 }
 0x4ba   : > { %v5485_v34 = vsel %vm5382_vm11, %v5352_v20, 0.0  ;;  %v9501_v47 = vpop.eup %9500 }
 0x4bb   : > { %v9503_v29 = vpop.eup %9502  ;;  %v5374_v43 = vmul.f32 %v13027_v16, %v9501_v47  ;;  %v16963_v47 = vld [vmem:[#allocation135_spill] sm:$0xff] }
 0x4bc   : > { %v5358_v55 = vmul.f32 %v13027_v16, %v9503_v29 }
 0x4bd   : > { %v5551_v22 = vsel %vm5382_vm11, %v5374_v43, 0.0 }
 0x4be   : > { %v5503_v17 = vsel %vm5382_vm11, %v5358_v55, 0.0 }
 0x4bf   : > { %5546 = vadd.xlane.f32.xlu0 %v5545_v51  ;;  %5507 = vadd.xlane.f32.xlu1 %v5506_v19  ;;  %v5371_v51 = vmul.f32 %v13027_v16, %v9497_v18  ;;  %v5355_v19 = vmul.f32 %v13027_v16, %v9499_v60 }
 0x4c0   : > { %5459 = vadd.xlane.f32.xlu2 %v5458_v8  ;;  %v13112_v21 = vpop.xlane.xlu0 %5411 }
 0x4c1   : > { %v5542_v8 = vsel %vm5382_vm11, %v5371_v51, 0.0  ;;  %v5494_v35 = vsel %vm5382_vm11, %v5355_v19, 0.0  ;;  %v16962_v51 = vld [vmem:[#allocation125_spill] sm:$0xff] }
 0x4c2   : > { %v13059_v41 = vpop.xlane.xlu1 %3437  ;;  %v5245_v19 = vadd.f32 %v12979_v10, %v16962_v51 }
 0x4c7   : > { %5555 = vadd.xlane.f32.xlu0 %v5554_v61  ;;  %5516 = vadd.xlane.f32.xlu1 %v5515_v2  ;;  %v16958_v61 = vld [vmem:[#allocation144_spill] sm:$0xff] }
 0x4c8   : > { %5468 = vadd.xlane.f32.xlu2 %v5467_v32  ;;  %v5252_v2 = vadd.f32 %v13020_v39, %v16958_v61  ;;  %v9505_v32 = vpop.eup %9504  ;;  %v13127_v52 = vpop.xlane.xlu0 %5420 }
 0x4c9   : > { %v9507_v13 = vpop.eup %9506  ;;  %v5377_v56 = vmul.f32 %v13027_v16, %v9505_v32  ;;  %v16964_v32 = vld [vmem:[#allocation142_spill] sm:$0xff] }
 0x4ca   : > { %v13073_v54 = vpop.xlane.xlu1 %5390  ;;  %9508 = vtanh.f32 %v5252_v2  ;;  %v5361_v50 = vmul.f32 %v13027_v16, %v9507_v13 }
 0x4cb   : > { %9510 = vtanh.f32 %v5236_v40  ;;  %v5560_v58 = vsel %vm5382_vm11, %v5377_v56, 0.0  ;;  %v5641_v51 = vperm.slane %v13073_v54, %v16861_v30 }
 0x4cc   : > { %v5512_v7 = vsel %vm5382_vm11, %v5361_v50, 0.0 }
 0x4cf   : > { %5564 = vadd.xlane.f32.xlu0 %v5563_v38  ;;  %5525 = vadd.xlane.f32.xlu1 %v5524_v59  ;;  %v16960_v38 = vld [vmem:[#allocation107_spill] sm:$0xff] }
 0x4d0   : > { %5477 = vadd.xlane.f32.xlu2 %v5476_v49  ;;  %v5239_v59 = vadd.f32 %v12979_v10, %v16960_v38  ;;  %v9509_v33 = vpop.eup %9508  ;;  %v13140_v48 = vpop.xlane.xlu0 %5429 }
 0x4d1   : > { %v9511_v0 = vpop.eup %9510  ;;  %v5380_v36 = vmul.f32 %v13027_v16, %v9509_v33 }
 0x4d2   : > { %v13090_v3 = vpop.xlane.xlu1 %5399  ;;  %9512 = vtanh.f32 %v5239_v59  ;;  %v5364_v20 = vmul.f32 %v13027_v16, %v9511_v0 }
 0x4d3   : > { %v5569_v57 = vsel %vm5382_vm11, %v5380_v36, 0.0 }
 0x4d7   : > { %5573 = vadd.xlane.f32.xlu0 %v5572_v23  ;;  %5534 = vadd.xlane.f32.xlu1 %v5533_v12  ;;  %v5242_v23 = vadd.f32 %v12979_v10, %v16961_v25  ;;  %v5521_v12 = vsel %vm5382_vm11, %v5364_v20, 0.0  ;;  %v5639_v20 = vperm.slane %v13057_v31, %v16861_v30 }
 0x4d8   : > { %5486 = vadd.xlane.f32.xlu2 %v5485_v34  ;;  %v9513_v14 = vpop.eup %9512  ;;  %v13154_v60 = vpop.xlane.xlu0 %5438 }
 0x4d9   : > { %9514 = vtanh.f32 %v5242_v23  ;;  %v5367_v18 = vmul.f32 %v13027_v16, %v9513_v14 }
 0x4da   : > { %v13107_v37 = vpop.xlane.xlu1 %5408  ;;  %9516 = vtanh.f32 %v5245_v19 }
 0x4db   : > { %v5530_v6 = vsel %vm5382_vm11, %v5367_v18, 0.0  ;;  %v5647_v10 = vperm.slane %v13107_v37, %v16861_v30 }
 0x4df   : > { %5543 = vadd.xlane.f32.xlu1 %v5542_v8  ;;  %v9515_v46 = vpop.eup %9514 }
 0x4e0   : > { %5495 = vadd.xlane.f32.xlu2 %v5494_v35  ;;  %v5370_v45 = vmul.f32 %v13027_v16, %v9515_v46  ;;  %v5248_v35 = vadd.f32 %v13020_v39, %v16963_v47  ;;  %v13166_v29 = vpop.xlane.xlu0 %5447  ;;  %v9517_v55 = vpop.eup %9516 }
 0x4e1   : > { %v5373_v2 = vmul.f32 %v13027_v16, %v9517_v55  ;;  %v5642_v55 = vperm.slane %v13077_v63, %v16861_v30 }
 0x4e2   : > { %v13125_v42 = vpop.xlane.xlu1 %5417  ;;  %v5539_v43 = vsel %vm5382_vm11, %v5370_v45, 0.0  ;;  %9518 = vtanh.f32 %v5248_v35 }
 0x4e3   : > { %v5548_v56 = vsel %vm5382_vm11, %v5373_v2, 0.0 }
 0x4e7   : > { %5552 = vadd.xlane.f32.xlu1 %v5551_v22  ;;  %v5648_v22 = vperm.slane %v13112_v21, %v16861_v30 }
 0x4e8   : > { %5504 = vadd.xlane.f32.xlu2 %v5503_v17  ;;  %v5251_v17 = vadd.f32 %v13020_v39, %v16964_v32  ;;  %v9519_v50 = vpop.eup %9518  ;;  %v13187_v59 = vpop.xlane.xlu0 %5456  ;;  %v5651_v39 = vperm.slane %v13127_v52, %v16861_v30 }
 0x4e9   : > { %v5710_v40 = vsel %vm2034_vm3, %v5648_v22, %v5647_v10  ;;  %v5376_v36 = vmul.f32 %v13027_v16, %v9519_v50 }
 0x4ea   : > { %v13137_v49 = vpop.xlane.xlu1 %5426  ;;  %9520 = vtanh.f32 %v5251_v17  ;;  %v5644_v17 = vperm.slane %v13090_v3, %v16861_v30 }
 0x4eb   : > { %v13130_v44 = vpop.xlane.xlu2 %3440  ;;  %v5653_v25 = vperm.slane %v13137_v49, %v16861_v30  ;;  %v5557_v19 = vsel %vm5382_vm11, %v5376_v36, 0.0  ;;  %9522 = vrcp.f32 %v13022_v62 }
 0x4ec   : > { %9524 = vrcp.f32 %v13016_v5  ;;  %v17006_v5 = vld [vmem:[#allocation61_spill] sm:$0xff] }
 0x4ed   : > { %9526 = vrcp.f32 %v13101_v28  ;;  %v17020_v28 = vld [vmem:[#allocation50_spill] sm:$0xff] }
 0x4ee   : > { %9528 = vrcp.f32 %v13043_v4  ;;  %v17042_v4 = vld [vmem:[#allocation191_spill] sm:$0xff] }
 0x4ef   : > { %5561 = vadd.xlane.f32.xlu1 %v5560_v58  ;;  %v5650_v58 = vperm.slane %v13125_v42, %v16861_v30  ;;  %9530 = vrcp.f32 %v13116_v9  ;;  %v17069_v9 = vld [vmem:[#allocation95_spill] sm:$0xff] }
 0x4f0   : > { %5513 = vadd.xlane.f32.xlu2 %v5512_v7  ;;  %v9521_v46 = vpop.eup %9520  ;;  %v13221_v2 = vpop.xlane.xlu0 %5465  ;;  %9532 = vrcp.f32 %v13040_v11 }
 0x4f1   : > { %16965 = vst [vmem:[#allocation137_spill] sm:$0xff] %v13221_v2  ;;  %9534 = vrcp.f32 %v13059_v41 }
 0x4f2   : > { %v13152_v34 = vpop.xlane.xlu1 %5435  ;;  %9536 = vrcp.f32 %v13130_v44  ;;  %v17165_v44 = vld [vmem:[#allocation228_spill] sm:$0xff] }
 0x4f3   : > { %v13142_v27 = vpop.xlane.xlu2 %5387 }
 0x4f4   : > { %v5640_v33 = vperm.slane %v13142_v27, %v16861_v30 }
 0x4f6   : > { %v5703_v14 = vsel %vm2034_vm3, %v5640_v33, %v5639_v20  ;;  %v5656_v33 = vperm.slane %v13152_v34, %v16861_v30  ;;  %v5657_v20 = vperm.slane %v13154_v60, %v16861_v30 }
 0x4f7   : > { %5570 = vadd.xlane.f32.xlu1 %v5569_v57  ;;  %v5704_v47 = vsel %vm2036_vm4, %v5641_v51, %v5703_v14 }
 0x4f8   : > { %5522 = vadd.xlane.f32.xlu2 %v5521_v12  ;;  %v5654_v12 = vperm.slane %v13140_v48, %v16861_v30 }
 0x4fa   : > { %v13162_v53 = vpop.xlane.xlu1 %5444 }
 0x4fb   : > { %v13149_v1 = vpop.xlane.xlu2 %5396 }
 0x4fc   : > { %v5643_v35 = vperm.slane %v13149_v1, %v16861_v30 }
 0x500   : > { %5531 = vadd.xlane.f32.xlu2 %v5530_v6 }
 0x502   : > { %v13185_v38 = vpop.xlane.xlu1 %5453 }
 0x503   : > { %v13159_v8 = vpop.xlane.xlu2 %5405 }
 0x504   : > { %v5646_v50 = vperm.slane %v13159_v8, %v16861_v30 }
 0x508   : > { %5540 = vadd.xlane.f32.xlu2 %v5539_v43 }
 0x50a   : > { %v13219_v10 = vpop.xlane.xlu1 %5462 }
 0x50b   : > { %v13171_v61 = vpop.xlane.xlu2 %5414 }
 0x50c   : > { %v5649_v24 = vperm.slane %v13171_v61, %v16861_v30 }
 0x50e   : > { %v5711_v13 = vsel %vm2036_vm4, %v5649_v24, %v5710_v40  ;;  %v5379_v24 = vmul.f32 %v13027_v16, %v9521_v46  ;;  %v5705_v40 = vsel %vm2038_vm5, %v5642_v55, %v5704_v47  ;;  %v5645_v16 = vperm.slane %v13092_v15, %v16861_v30 }
 0x50f   : > { %v5712_v7 = vsel %vm2038_vm5, %v5650_v58, %v5711_v13  ;;  %v5706_v32 = vsel %vm2040_vm6, %v5643_v35, %v5705_v40  ;;  %v5660_v46 = vperm.slane %v13166_v29, %v16861_v30  ;;  %v5662_v35 = vperm.slane %v13185_v38, %v16861_v30 }
 0x510   : > { %5549 = vadd.xlane.f32.xlu2 %v5548_v56  ;;  %v5713_v23 = vsel %vm2040_vm6, %v5651_v39, %v5712_v7  ;;  %v5566_v56 = vsel %vm5382_vm11, %v5379_v24, 0.0  ;;  %v5707_v58 = vsel %vm2042_vm7, %v5644_v17, %v5706_v32 }
 0x511   : > { %v5708_v36 = vsel %vm2044_vm8, %v5645_v16, %v5707_v58 }
 0x513   : > { %v13194_v0 = vpop.xlane.xlu2 %5423 }
 0x514   : > { %v5652_v57 = vperm.slane %v13194_v0, %v16861_v30 }
 0x516   : > { %v5714_v18 = vsel %vm2042_vm7, %v5652_v57, %v5713_v23  ;;  %v13246_v57 = vpop.xlane.xlu1 %5471  ;;  %v5709_v23 = vsel %vm2046_vm9, %v5646_v50, %v5708_v36  ;;  %v5663_v50 = vperm.slane %v13187_v59, %v16861_v30 }
 0x517   : > { %v5715_v6 = vsel %vm2044_vm8, %v5653_v25, %v5714_v18  ;;  %v5768_v51 = vsel %vm5767_vm12, %v5709_v23, -inf }
 0x518   : > { %5558 = vadd.xlane.f32.xlu2 %v5557_v19  ;;  %v5716_v45 = vsel %vm2046_vm9, %v5654_v12, %v5715_v6  ;;  %v13251_v12 = vpop.xlane.xlu0 %5474  ;;  %v5659_v19 = vperm.slane %v13162_v53, %v16861_v30 }
 0x519   : > { %v5771_v43 = vsel %vm5767_vm12, %v5716_v45, -inf  ;;  %16966 = vst [vmem:[#allocation69_spill] sm:$0xff] %v13251_v12 }
 0x51a   : > { %5772 = vmax.xlane.f32.xlu1 %v5771_v43 }
 0x51b   : > { %v13223_v22 = vpop.xlane.xlu2 %5432 }
 0x51c   : > { %v5655_v13 = vperm.slane %v13223_v22, %v16861_v30 }
 0x51e   : > { %v5717_v7 = vsel %vm2034_vm3, %v5656_v33, %v5655_v13  ;;  %v13268_v55 = vpop.xlane.xlu1 %5480 }
 0x51f   : > { %v5718_v14 = vsel %vm2036_vm4, %v5657_v20, %v5717_v7  ;;  %v5665_v7 = vperm.slane %v13219_v10, %v16861_v30 }
 0x520   : > { %5567 = vadd.xlane.f32.xlu2 %v5566_v56  ;;  %v13271_v40 = vpop.xlane.xlu0 %5483 }
 0x521   : > { %16967 = vst [vmem:[#allocation202_spill] sm:$0xff] %v13271_v40 }
 0x523   : > { %v13241_v39 = vpop.xlane.xlu2 %5441 }
 0x524   : > { %v5658_v25 = vperm.slane %v13241_v39, %v16861_v30 }
 0x526   : > { %v5719_v18 = vsel %vm2038_vm5, %v5658_v25, %v5718_v14  ;;  %v13281_v58 = vpop.xlane.xlu1 %5489  ;;  %v5666_v25 = vperm.slane %v13221_v2, %v16861_v30 }
 0x527   : > { %v5720_v6 = vsel %vm2040_vm6, %v5659_v19, %v5719_v18 }
 0x528   : > { %5769 = vmax.xlane.f32.xlu2 %v5768_v51  ;;  %v5721_v43 = vsel %vm2042_vm7, %v5660_v46, %v5720_v6  ;;  %v13284_v33 = vpop.xlane.xlu0 %5492  ;;  %v5668_v51 = vperm.slane %v13246_v57, %v16861_v30  ;;  %v5669_v46 = vperm.slane %v13251_v12, %v16861_v30 }
 0x529   : > { %16968 = vst [vmem:[#allocation206_spill] sm:$0xff] %v13284_v33 }
 0x52b   : > { %v13261_v45 = vpop.xlane.xlu2 %5450 }
 0x52c   : > { %v5661_v47 = vperm.slane %v13261_v45, %v16861_v30 }
 0x52e   : > { %v5722_v24 = vsel %vm2044_vm8, %v5661_v47, %v5721_v43  ;;  %v13299_v19 = vpop.xlane.xlu1 %5498 }
 0x52f   : > { %v5723_v32 = vsel %vm2046_vm9, %v5662_v35, %v5722_v24 }
 0x530   : > { %v5774_v17 = vsel %vm5767_vm12, %v5723_v32, -inf  ;;  %v13304_v47 = vpop.xlane.xlu0 %5501 }
 0x531   : > { %5775 = vmax.xlane.f32.xlu0 %v5774_v17  ;;  %16969 = vst [vmem:[#allocation127_spill] sm:$0xff] %v13304_v47 }
 0x533   : > { %v13275_v13 = vpop.xlane.xlu2 %5459 }
 0x534   : > { %v5664_v56 = vperm.slane %v13275_v13, %v16861_v30 }
 0x536   : > { %v5724_v16 = vsel %vm2034_vm3, %v5664_v56, %v5663_v50  ;;  %v5671_v56 = vperm.slane %v13268_v55, %v16861_v30 }
 0x537   : > { %v5725_v36 = vsel %vm2036_vm4, %v5665_v7, %v5724_v16  ;;  %v5672_v16 = vperm.slane %v13271_v40, %v16861_v30  ;;  %v13319_v7 = vpop.xlane.xlu1 %5507 }
 0x538   : > { %v5726_v14 = vsel %vm2038_vm5, %v5666_v25, %v5725_v36  ;;  %16971 = vst [vmem:[#allocation124_spill] sm:$0xff] %v13319_v7  ;;  %v13323_v25 = vpop.xlane.xlu0 %5510 }
 0x539   : > { %16972 = vst [vmem:[#allocation126_spill] sm:$0xff] %v13323_v25 }
 0x53b   : > { %v13289_v20 = vpop.xlane.xlu2 %5468 }
 0x53c   : > { %v5667_v23 = vperm.slane %v13289_v20, %v16861_v30 }
 0x53e   : > { %v5727_v18 = vsel %vm2040_vm6, %v5667_v23, %v5726_v14  ;;  %v5731_v23 = vsel %vm2034_vm3, %v5672_v16, %v5671_v56 }
 0x53f   : > { %v5728_v6 = vsel %vm2042_vm7, %v5668_v51, %v5727_v18  ;;  %v5674_v18 = vperm.slane %v13281_v58, %v16861_v30  ;;  %v13341_v56 = vpop.xlane.xlu1 %5516 }
 0x540   : > { %v5729_v24 = vsel %vm2044_vm8, %v5669_v46, %v5728_v6  ;;  %v5675_v6 = vperm.slane %v13284_v33, %v16861_v30  ;;  %16974 = vst [vmem:[#allocation118_spill] sm:$0xff] %v13341_v56 }
 0x543   : > { %v13306_v35 = vpop.xlane.xlu2 %5477 }
 0x544   : > { %v5670_v43 = vperm.slane %v13306_v35, %v16861_v30 }
 0x546   : > { %v5730_v32 = vsel %vm2046_vm9, %v5670_v43, %v5729_v24  ;;  %v5677_v24 = vperm.slane %v13299_v19, %v16861_v30 }
 0x547   : > { %v5777_v17 = vsel %vm5767_vm12, %v5730_v32, -inf }
 0x548   : > { %5778 = vmax.xlane.f32.xlu2 %v5777_v17  ;;  %v5678_v17 = vperm.slane %v13304_v47, %v16861_v30 }
 0x54b   : > { %v13315_v50 = vpop.xlane.xlu2 %5486 }
 0x54c   : > { %16970 = vst [vmem:[#allocation121_spill] sm:$0xff] %v13315_v50  ;;  %v5673_v36 = vperm.slane %v13315_v50, %v16861_v30 }
 0x54e   : > { %v5732_v14 = vsel %vm2036_vm4, %v5673_v36, %v5731_v23  ;;  %v13344_v36 = vpop.xlane.xlu0 %5519 }
 0x54f   : > { %v5733_v51 = vsel %vm2038_vm5, %v5674_v18, %v5732_v14  ;;  %16975 = vst [vmem:[#allocation115_spill] sm:$0xff] %v13344_v36 }
 0x550   : > { %v5734_v32 = vsel %vm2040_vm6, %v5675_v6, %v5733_v51  ;;  %v13353_v6 = vpop.xlane.xlu1 %5525 }
 0x551   : > { %16977 = vst [vmem:[#allocation122_spill] sm:$0xff] %v13353_v6 }
 0x553   : > { %v13332_v46 = vpop.xlane.xlu2 %5495 }
 0x554   : > { %16973 = vst [vmem:[#allocation131_spill] sm:$0xff] %v13332_v46  ;;  %v5676_v43 = vperm.slane %v13332_v46, %v16861_v30 }
 0x556   : > { %v5735_v16 = vsel %vm2042_vm7, %v5676_v43, %v5734_v32  ;;  %v13355_v47 = vpop.xlane.xlu0 %5528  ;;  %v5680_v43 = vperm.slane %v13319_v7, %v16861_v30 }
 0x557   : > { %v5736_v23 = vsel %vm2044_vm8, %v5677_v24, %v5735_v16  ;;  %16978 = vst [vmem:[#allocation138_spill] sm:$0xff] %v13355_v47 }
 0x558   : > { %v5737_v14 = vsel %vm2046_vm9, %v5678_v17, %v5736_v23  ;;  %v5681_v17 = vperm.slane %v13323_v25, %v16861_v30  ;;  %v13370_v40 = vpop.xlane.xlu1 %5534 }
 0x559   : > { %v5780_v18 = vsel %vm5767_vm12, %v5737_v14, -inf  ;;  %16980 = vst [vmem:[#allocation141_spill] sm:$0xff] %v13370_v40 }
 0x55a   : > { %5781 = vmax.xlane.f32.xlu1 %v5780_v18  ;;  %v5683_v18 = vperm.slane %v13341_v56, %v16861_v30 }
 0x55b   : > { %v13349_v33 = vpop.xlane.xlu2 %5504 }
 0x55c   : > { %16976 = vst [vmem:[#allocation152_spill] sm:$0xff] %v13349_v33  ;;  %v5679_v51 = vperm.slane %v13349_v33, %v16861_v30 }
 0x55e   : > { %v5738_v32 = vsel %vm2034_vm3, %v5680_v43, %v5679_v51  ;;  %v5684_v51 = vperm.slane %v13344_v36, %v16861_v30  ;;  %v13375_v43 = vpop.xlane.xlu0 %5537 }
 0x55f   : > { %v5739_v23 = vsel %vm2036_vm4, %v5681_v17, %v5738_v32  ;;  %16981 = vst [vmem:[#allocation148_spill] sm:$0xff] %v13375_v43  ;;  %v5686_v32 = vperm.slane %v13353_v6, %v16861_v30 }
 0x560   : > { %v13389_v36 = vpop.xlane.xlu1 %5543 }
 0x561   : > { %16984 = vst [vmem:[#allocation155_spill] sm:$0xff] %v13389_v36 }
 0x563   : > { %v13360_v24 = vpop.xlane.xlu2 %5513 }
 0x564   : > { %16979 = vst [vmem:[#allocation149_spill] sm:$0xff] %v13360_v24  ;;  %v5682_v16 = vperm.slane %v13360_v24, %v16861_v30 }
 0x566   : > { %v5740_v14 = vsel %vm2038_vm5, %v5682_v16, %v5739_v23 }
 0x567   : > { %v5741_v33 = vsel %vm2040_vm6, %v5683_v18, %v5740_v14 }
 0x568   : > { %v5742_v17 = vsel %vm2042_vm7, %v5684_v51, %v5741_v33  ;;  %v5687_v33 = vperm.slane %v13355_v47, %v16861_v30  ;;  %v5689_v51 = vperm.slane %v13370_v40, %v16861_v30 }
 0x56b   : > { %v13377_v25 = vpop.xlane.xlu2 %5522 }
 0x56c   : > { %16982 = vst [vmem:[#allocation117_spill] sm:$0xff] %v13377_v25  ;;  %v5685_v24 = vperm.slane %v13377_v25, %v16861_v30  ;;  %v13393_v25 = vpop.xlane.xlu0 %5546 }
 0x56d   : > { %16985 = vst [vmem:[#allocation158_spill] sm:$0xff] %v13393_v25 }
 0x56e   : > { %v5743_v16 = vsel %vm2044_vm8, %v5685_v24, %v5742_v17 }
 0x56f   : > { %v5744_v23 = vsel %vm2046_vm9, %v5686_v32, %v5743_v16  ;;  %v13404_v16 = vpop.eup %9522 }
 0x570   : > { %v5783_v14 = vsel %vm5767_vm12, %v5744_v23, -inf  ;;  %v5690_v23 = vperm.slane %v13375_v43, %v16861_v30  ;;  %v5693_v43 = vperm.slane %v13393_v25, %v16861_v30 }
 0x571   : > { %5784 = vmax.xlane.f32.xlu0 %v5783_v14  ;;  %v13410_v14 = vpop.xlane.xlu1 %5552 }
 0x572   : > { %16987 = vst [vmem:[#allocation147_spill] sm:$0xff] %v13410_v14 }
 0x573   : > { %v13387_v18 = vpop.xlane.xlu2 %5531 }
 0x574   : > { %16983 = vst [vmem:[#allocation120_spill] sm:$0xff] %v13387_v18  ;;  %v5688_v56 = vperm.slane %v13387_v18, %v16861_v30 }
 0x576   : > { %v5745_v24 = vsel %vm2034_vm3, %v5688_v56, %v5687_v33  ;;  %v13413_v56 = vpop.xlane.xlu0 %5555 }
 0x577   : > { %v5746_v32 = vsel %vm2036_vm4, %v5689_v51, %v5745_v24  ;;  %16988 = vst [vmem:[#allocation150_spill] sm:$0xff] %v13413_v56  ;;  %v3458_v24 = vperm.slane %v13404_v16, 0  ;;  %v5692_v51 = vperm.slane %v13389_v36, %v16861_v30  ;;  %v3459_v36 = vperm.slane %v13404_v16, 1 }
 0x578   : > { %v5747_v47 = vsel %vm2038_vm5, %v5690_v23, %v5746_v32 }
 0x57b   : > { %v13402_v17 = vpop.xlane.xlu2 %5540 }
 0x57c   : > { %16986 = vst [vmem:[#allocation151_spill] sm:$0xff] %v13402_v17  ;;  %v5691_v62 = vperm.slane %v13402_v17, %v16861_v30  ;;  %v16990_v17 = vld [vmem:[#allocation182_spill] sm:$0xff] }
 0x57d   : > { %v3586_v6 = vmul.f32 %v16990_v17, %v3458_v24  ;;  %v5695_v17 = vperm.slane %v13410_v14, %v16861_v30 }
 0x57e   : > { %v5748_v33 = vsel %vm2040_vm6, %v5691_v62, %v5747_v47 }
 0x57f   : > { %v5749_v18 = vsel %vm2042_vm7, %v5692_v51, %v5748_v33  ;;  %v13431_v33 = vpop.xlane.xlu1 %5561  ;;  %v13433_v51 = vpop.xlane.xlu0 %5564 }
 0x580   : > { %v5750_v47 = vsel %vm2044_vm8, %v5693_v43, %v5749_v18  ;;  %16991 = vst [vmem:[#allocation162_spill] sm:$0xff] %v13431_v33  ;;  %v5696_v43 = vperm.slane %v13413_v56, %v16861_v30  ;;  %v5699_v56 = vperm.slane %v13433_v51, %v16861_v30 }
 0x581   : > { %16992 = vst [vmem:[#allocation157_spill] sm:$0xff] %v13433_v51 }
 0x583   : > { %v13422_v40 = vpop.xlane.xlu2 %5549 }
 0x584   : > { %16989 = vst [vmem:[#allocation153_spill] sm:$0xff] %v13422_v40  ;;  %v5694_v32 = vperm.slane %v13422_v40, %v16861_v30  ;;  %v16994_v40 = vld [vmem:[#allocation186_spill] sm:$0xff] }
 0x585   : > { %3716 = vperm.xlu0 %8871, %v3586_v6   ;;  %v3589_v6 = vmul.f32 %v16994_v40, %v3459_v36 }
 0x586   : > { %v5751_v23 = vsel %vm2046_vm9, %v5694_v32, %v5750_v47  ;;  %v5752_v32 = vsel %vm2034_vm3, %v5696_v43, %v5695_v17 }
 0x587   : > { %v5786_v62 = vsel %vm5767_vm12, %v5751_v23, -inf  ;;  %v3460_v23 = vperm.slane %v13404_v16, 2  ;;  %v13449_v14 = vpop.xlane.xlu1 %5570  ;;  %v13454_v12 = vpop.xlane.xlu0 %5573 }
 0x588   : > { %5787 = vmax.xlane.f32.xlu2 %v5786_v62  ;;  %v5698_v62 = vperm.slane %v13431_v33, %v16861_v30  ;;  %16995 = vst [vmem:[#allocation160_spill] sm:$0xff] %v13449_v14  ;;  %v3462_v33 = vperm.slane %v13404_v16, 4 }
 0x589   : > { %16996 = vst [vmem:[#allocation154_spill] sm:$0xff] %v13454_v12 }
 0x58b   : > { %v13437_v25 = vpop.xlane.xlu2 %5558 }
 0x58c   : > { %16993 = vst [vmem:[#allocation166_spill] sm:$0xff] %v13437_v25  ;;  %v5697_v18 = vperm.slane %v13437_v25, %v16861_v30 }
 0x58d   : > { %3731 = vperm.xlu0 %8871, %v3589_v6   ;;  %v16998_v6 = vld [vmem:[#allocation188_spill] sm:$0xff] }
 0x58e   : > { %v5753_v47 = vsel %vm2036_vm4, %v5697_v18, %v5752_v32  ;;  %v3591_v17 = vmul.f32 %v16998_v6, %v3460_v23  ;;  %v5701_v18 = vperm.slane %v13449_v14, %v16861_v30 }
 0x58f   : > { %v5754_v40 = vsel %vm2038_vm5, %v5698_v62, %v5753_v47  ;;  %v5702_v47 = vperm.slane %v13454_v12, %v16861_v30  ;;  %v17008_v12 = vld [vmem:[#allocation185_spill] sm:$0xff] }
 0x590   : > { %v5755_v32 = vsel %vm2040_vm6, %v5699_v56, %v5754_v40  ;;  %v3463_v56 = vperm.slane %v13404_v16, 5  ;;  %v3461_v40 = vperm.slane %v13404_v16, 3 }
 0x593   : > { %v13456_v25 = vpop.xlane.xlu2 %5567 }
 0x594   : > { %16997 = vst [vmem:[#allocation165_spill] sm:$0xff] %v13456_v25  ;;  %v5700_v43 = vperm.slane %v13456_v25, %v16861_v30  ;;  %v16999_v25 = vld [vmem:[#allocation129_spill] sm:$0xff] }
 0x595   : > { %3741 = vperm.xlu0 %8871, %v3591_v17   ;;  %v3594_v7 = vmul.f32 %v16999_v25, %v3462_v33  ;;  %v17000_v17 = vld [vmem:[#allocation181_spill] sm:$0xff] }
 0x596   : > { %v5756_v62 = vsel %vm2042_vm7, %v5700_v43, %v5755_v32  ;;  %v3588_v14 = vmul.f32 %v17000_v17, %v3459_v36  ;;  %v17001_v43 = vld [vmem:[#allocation86_spill] sm:$0xff]  ;;  %v17004_v36 = vld [vmem:[#allocation184_spill] sm:$0xff] }
 0x597   : > { %v5757_v51 = vsel %vm2044_vm8, %v5701_v18, %v5756_v62  ;;  %v3597_v32 = vmul.f32 %v17001_v43, %v3463_v56  ;;  %v17002_v18 = vld [vmem:[#allocation78_spill] sm:$0xff]  ;;  %v3595_v62 = vmul.f32 %v17004_v36, %v3462_v33  ;;  %v3464_v43 = vperm.slane %v13404_v16, 6  ;;  %v17009_v33 = vld [vmem:[#allocation52_spill] sm:$0xff] }
 0x598   : > { %v5758_v6 = vsel %vm2046_vm9, %v5702_v47, %v5757_v51  ;;  %v3592_v51 = vmul.f32 %v17002_v18, %v3461_v40  ;;  %v3465_v47 = vperm.slane %v13404_v16, 7  ;;  %v17007_v18 = vld [vmem:[#allocation187_spill] sm:$0xff]  ;;  %v17011_v16 = vld [vmem:[#allocation73_spill] sm:$0xff] }
 0x599   : > { %v5789_v46 = vsel %vm5767_vm12, %v5758_v6, -inf  ;;  %v17005_v6 = vld [vmem:[#allocation183_spill] sm:$0xff] }
 0x59a   : > { %5790 = vmax.xlane.f32.xlu1 %v5789_v46  ;;  %v17003_v46 = vld [vmem:[#allocation81_spill] sm:$0xff]  ;;  %v3587_v17 = vmul.f32 %v17005_v6, %v3458_v24  ;;  %v3593_v6 = vmul.f32 %v17011_v16, %v3461_v40 }
 0x59b   : > { %v3600_v25 = vmul.f32 %v17003_v46, %v3465_v47 }
 0x59d   : > { %3756 = vperm.xlu0 %8871, %v3594_v7   ;;  %v13480_v7 = vpop.eup %9524 }
 0x59e   : > { %v3468_v46 = vperm.slane %v13480_v7, 2  ;;  %v3469_v24 = vperm.slane %v13480_v7, 3 }
 0x5a0   : > { %3726 = vperm.xlu2 %8869, %v3588_v14   ;;  %v3466_v14 = vperm.slane %v13480_v7, 0  ;;  %v3606_v36 = vmul.f32 %v17009_v33, %v3468_v46 }
 0x5a5   : > { %3771 = vperm.xlu0 %8871, %v3597_v32   ;;  %v3603_v32 = vmul.f32 %v17006_v5, %v3466_v14  ;;  %v17012_v5 = vld [vmem:[#allocation56_spill] sm:$0xff] }
 0x5a8   : > { %3746 = vperm.xlu2 %8869, %v3592_v51   ;;  %v3598_v51 = vmul.f32 %v17007_v18, %v3464_v43  ;;  %v17013_v18 = vld [vmem:[#allocation54_spill] sm:$0xff] }
 0x5ad   : > { %3786 = vperm.xlu0 %8871, %v3600_v25   ;;  %v3590_v25 = vmul.f32 %v17008_v12, %v3460_v23  ;;  %v3471_v12 = vperm.slane %v13480_v7, 5  ;;  %v17014_v23 = vld [vmem:[#allocation82_spill] sm:$0xff] }
 0x5b0   : > { %3761 = vperm.xlu2 %8869, %v3595_v62   ;;  %v17010_v62 = vld [vmem:[#allocation189_spill] sm:$0xff] }
 0x5b1   : > { %v3601_v30 = vmul.f32 %v17010_v62, %v3465_v47  ;;  %v17015_v47 = vld [vmem:[#allocation173_spill] sm:$0xff]  ;;  %v17017_v62 = vld [vmem:[#allocation74_spill] sm:$0xff] }
 0x5b2   : > { %v3612_v33 = vmul.f32 %v17015_v47, %v3471_v12  ;;  %v3599_v16 = vmul.f32 %v17017_v62, %v3464_v43  ;;  %v17022_v43 = vld [vmem:[#allocation175_spill] sm:$0xff] }
 0x5b3   : > { %3721 = vperm.xlu1 %8870, %v3587_v17   ;;  %v3467_v17 = vperm.slane %v13480_v7, 1 }
 0x5b5   : > { %3801 = vperm.xlu0 %8871, %v3603_v32   ;;  %v3609_v32 = vmul.f32 %v17012_v5, %v3469_v24  ;;  %v17018_v5 = vld [vmem:[#allocation76_spill] sm:$0xff] }
 0x5b8   : > { %3776 = vperm.xlu2 %8869, %v3598_v51   ;;  %v3604_v51 = vmul.f32 %v17013_v18, %v3467_v17  ;;  %v13506_v18 = vpop.eup %9526 }
 0x5bb   : > { %3736 = vperm.xlu1 %8870, %v3590_v25   ;;  %v3596_v25 = vmul.f32 %v17014_v23, %v3463_v56  ;;  %v17019_v56 = vld [vmem:[#allocation172_spill] sm:$0xff]  ;;  %v3474_v23 = vperm.slane %v13506_v18, 0 }
 0x5bd   : > { %3816 = vperm.xlu0 %8871, %v3606_v36   ;;  %v3472_v36 = vperm.slane %v13480_v7, 6 }
 0x5c0   : > { %3791 = vperm.xlu2 %8869, %v3601_v30   ;;  %v17016_v30 = vld [vmem:[#allocation66_spill] sm:$0xff] }
 0x5c1   : > { %v3607_v40 = vmul.f32 %v17016_v30, %v3468_v46  ;;  %v3602_v46 = vmul.f32 %v17020_v28, %v3466_v14  ;;  %v3475_v30 = vperm.slane %v13506_v18, 1  ;;  %v13518_v14 = vpop.xlane.xlu0 %5775  ;;  %v3477_v28 = vperm.slane %v13506_v18, 3 }
 0x5c3   : > { %3751 = vperm.xlu1 %8870, %v3593_v6   ;;  %v3470_v6 = vperm.slane %v13480_v7, 4 }
 0x5c5   : > { %3831 = vperm.xlu0 %8871, %v3609_v32   ;;  %v3615_v32 = vmul.f32 %v17018_v5, %v3472_v36  ;;  %v17024_v5 = vld [vmem:[#allocation72_spill] sm:$0xff] }
 0x5c8   : > { %3806 = vperm.xlu2 %8869, %v3604_v51   ;;  %v3610_v51 = vmul.f32 %v17019_v56, %v3470_v6  ;;  %v17025_v56 = vld [vmem:[#allocation177_spill] sm:$0xff] }
 0x5cb   : > { %3766 = vperm.xlu1 %8870, %v3596_v25   ;;  %v17021_v25 = vld [vmem:[#allocation77_spill] sm:$0xff] }
 0x5cc   : > { %v3618_v47 = vmul.f32 %v17021_v25, %v3474_v23  ;;  %v13522_v25 = vpop.xlane.xlu2 %5769 }
 0x5cd   : > { %3846 = vperm.xlu0 %8871, %v3612_v33   ;;  %v3613_v33 = vmul.f32 %v17022_v43, %v3471_v12 }
 0x5d0   : > { %3821 = vperm.xlu2 %8869, %v3607_v40   ;;  %v17023_v40 = vld [vmem:[#allocation64_spill] sm:$0xff] }
 0x5d1   : > { %v3605_v62 = vmul.f32 %v17023_v40, %v3467_v17  ;;  %v3478_v40 = vperm.slane %v13506_v18, 4 }
 0x5d3   : > { %3781 = vperm.xlu1 %8870, %v3599_v16   ;;  %v3473_v16 = vperm.slane %v13480_v7, 7  ;;  %v17028_v7 = vld [vmem:[#allocation70_spill] sm:$0xff] }
 0x5d4   : > { %v3619_v43 = vmul.f32 %v17028_v7, %v3474_v23  ;;  %v3480_v23 = vperm.slane %v13506_v18, 6 }
 0x5d5   : > { %3861 = vperm.xlu0 %8871, %v3615_v32   ;;  %v3621_v32 = vmul.f32 %v17024_v5, %v3475_v30 }
 0x5d8   : > { %3836 = vperm.xlu2 %8869, %v3610_v51   ;;  %v3616_v51 = vmul.f32 %v17025_v56, %v3473_v16  ;;  %v13531_v56 = vpop.xlane.xlu2 %5778 }
 0x5db   : > { %3796 = vperm.xlu1 %8870, %v3602_v46   ;;  %v17026_v46 = vld [vmem:[#allocation58_spill] sm:$0xff] }
 0x5dc   : > { %v3608_v12 = vmul.f32 %v17026_v46, %v3469_v24  ;;  %v17031_v24 = vld [vmem:[#allocation75_spill] sm:$0xff]  ;;  %v17032_v46 = vld [vmem:[#allocation178_spill] sm:$0xff] }
 0x5dd   : > { %3876 = vperm.xlu0 %8871, %v3618_v47   ;;  %v17027_v47 = vld [vmem:[#allocation179_spill] sm:$0xff] }
 0x5de   : > { %v3624_v17 = vmul.f32 %v17027_v47, %v3477_v28 }
 0x5e0   : > { %3851 = vperm.xlu2 %8869, %v3613_v33  }
 0x5e3   : > { %3811 = vperm.xlu1 %8870, %v3605_v62   ;;  %v17030_v62 = vld [vmem:[#allocation174_spill] sm:$0xff] }
 0x5e4   : > { %v13526_v33 = vpop.xlane.xlu0 %5784  ;;  %v3611_v5 = vmul.f32 %v17030_v62, %v3470_v6  ;;  %v17036_v6 = vld [vmem:[#allocation92_spill] sm:$0xff] }
 0x5e5   : > { %3891 = vperm.xlu0 %8871, %v3621_v32   ;;  %17029 = vst [vmem:[#allocation156_spill] sm:$0xff] %v13526_v33  ;;  %v3476_v32 = vperm.slane %v13506_v18, 2  ;;  %v3630_v62 = vmul.f32 %v17036_v6, %v3480_v23  ;;  %v13552_v6 = vpop.eup %9528 }
 0x5e8   : > { %3866 = vperm.xlu2 %8869, %v3616_v51   ;;  %v3627_v51 = vmul.f32 %v17031_v24, %v3478_v40 }
 0x5eb   : > { %3826 = vperm.xlu1 %8870, %v3608_v12   ;;  %v3622_v12 = vmul.f32 %v17032_v46, %v3476_v32  ;;  %v3481_v46 = vperm.slane %v13506_v18, 7 }
 0x5ed   : > { %3906 = vperm.xlu0 %8871, %v3624_v17   ;;  %v17034_v17 = vld [vmem:[#allocation176_spill] sm:$0xff] }
 0x5ee   : > { %v3614_v7 = vmul.f32 %v17034_v17, %v3472_v36  ;;  %v17041_v17 = vld [vmem:[#allocation91_spill] sm:$0xff] }
 0x5f0   : > { %3881 = vperm.xlu2 %8869, %v3619_v43  }
 0x5f3   : > { %3841 = vperm.xlu1 %8870, %v3611_v5   ;;  %v17037_v5 = vld [vmem:[#allocation190_spill] sm:$0xff] }
 0x5f4   : > { %v3625_v24 = vmul.f32 %v17037_v5, %v3477_v28  ;;  %v3483_v5 = vperm.slane %v13552_v6, 1 }
 0x5f5   : > { %3921 = vperm.xlu0 %8871, %v3627_v51  }
 0x5f7   : > { %v13535_v47 = vpop.permute.xlu0 %3716 }
 0x5f8   : > { %17033 = vst [vmem:[#allocation167_spill] sm:$0xff] %v13535_v47  ;;  %3896 = vperm.xlu2 %8869, %v3622_v12   ;;  %v17039_v47 = vld [vmem:[#allocation71_spill] sm:$0xff]  ;;  %v3479_v12 = vperm.slane %v13506_v18, 5 }
 0x5f9   : > { %v3617_v2 = vmul.f32 %v17039_v47, %v3473_v16  ;;  %v17046_v18 = vld [vmem:[#allocation103_spill] sm:$0xff] }
 0x5fa   : > { %v3636_v47 = vmul.f32 %v17046_v18, %v3483_v5 }
 0x5fb   : > { %v13539_v43 = vpop.xlane.xlu2 %5787  ;;  %3856 = vperm.xlu1 %8870, %v3614_v7   ;;  %v3633_v7 = vmul.f32 %v17041_v17, %v3481_v46  ;;  %v17047_v17 = vld [vmem:[#allocation88_spill] sm:$0xff] }
 0x5fc   : > { %17035 = vst [vmem:[#allocation237_spill] sm:$0xff] %v13539_v43 }
 0x5fd   : > { %3936 = vperm.xlu0 %8871, %v3630_v62   ;;  %v3628_v62 = vmul.f32 %v17042_v4, %v3479_v12  ;;  %v3484_v4 = vperm.slane %v13552_v6, 2 }
 0x5ff   : > { %v13544_v51 = vpop.permute.xlu0 %3731 }
 0x600   : > { %17038 = vst [vmem:[#allocation170_spill] sm:$0xff] %v13544_v51  ;;  %3911 = vperm.xlu2 %8869, %v3625_v24   ;;  %v17044_v24 = vld [vmem:[#allocation79_spill] sm:$0xff] }
 0x601   : > { %v3620_v51 = vmul.f32 %v17044_v24, %v3475_v30 }
 0x603   : > { %v13549_v36 = vpop.permute.xlu2 %3726  ;;  %3871 = vperm.xlu1 %8870, %v3617_v2   ;;  %v13562_v2 = vpop.xlane.xlu1 %5772 }
 0x604   : > { %17040 = vst [vmem:[#allocation159_spill] sm:$0xff] %v13549_v36  ;;  %v3631_v36 = vmul.f32 %v17047_v17, %v3480_v23  ;;  %v3486_v17 = vperm.slane %v13552_v6, 4 }
 0x605   : > { %3951 = vperm.xlu0 %8871, %v3633_v7  }
 0x607   : > { %v13555_v28 = vpop.permute.xlu0 %3741 }
 0x608   : > { %17043 = vst [vmem:[#allocation169_spill] sm:$0xff] %v13555_v28  ;;  %3926 = vperm.xlu2 %8869, %v3628_v62   ;;  %v17049_v28 = vld [vmem:[#allocation180_spill] sm:$0xff]  ;;  %v3482_v62 = vperm.slane %v13552_v6, 0 }
 0x609   : > { %v3623_v43 = vmul.f32 %v17049_v28, %v3476_v32  ;;  %v17056_v28 = vld [vmem:[#allocation108_spill] sm:$0xff] }
 0x60b   : > { %v13559_v16 = vpop.permute.xlu2 %3746  ;;  %3886 = vperm.xlu1 %8870, %v3620_v51   ;;  %v17051_v51 = vld [vmem:[#allocation94_spill] sm:$0xff]  ;;  %v13573_v18 = vpop.xlane.xlu1 %5781 }
 0x60c   : > { %17045 = vst [vmem:[#allocation161_spill] sm:$0xff] %v13559_v16  ;;  %v3639_v24 = vmul.f32 %v17051_v51, %v3484_v4  ;;  %v17057_v51 = vld [vmem:[#allocation193_spill] sm:$0xff] }
 0x60d   : > { %3966 = vperm.xlu0 %8871, %v3636_v47   ;;  %v17052_v47 = vld [vmem:[#allocation100_spill] sm:$0xff]  ;;  %v3637_v33 = vmul.f32 %v17057_v51, %v3483_v5 }
 0x60e   : > { %v3634_v16 = vmul.f32 %v17052_v47, %v3482_v62  ;;  %v3487_v47 = vperm.slane %v13552_v6, 5  ;;  %v17063_v5 = vld [vmem:[#allocation104_spill] sm:$0xff] }
 0x60f   : > { %v13565_v7 = vpop.permute.xlu0 %3756 }
 0x610   : > { %17048 = vst [vmem:[#allocation244_spill] sm:$0xff] %v13565_v7  ;;  %3941 = vperm.xlu2 %8869, %v3631_v36   ;;  %v17054_v36 = vld [vmem:[#allocation84_spill] sm:$0xff] }
 0x611   : > { %v3626_v7 = vmul.f32 %v17054_v36, %v3478_v40 }
 0x613   : > { %v13570_v30 = vpop.permute.xlu2 %3761  ;;  %3901 = vperm.xlu1 %8870, %v3623_v43   ;;  %v13583_v43 = vpop.xlane.xlu1 %5790 }
 0x614   : > { %17050 = vst [vmem:[#allocation164_spill] sm:$0xff] %v13570_v30  ;;  %v3642_v30 = vmul.f32 %v17056_v28, %v3486_v17 }
 0x615   : > { %3981 = vperm.xlu0 %8871, %v3639_v24  }
 0x617   : > { %v13576_v23 = vpop.permute.xlu0 %3771 }
 0x618   : > { %17053 = vst [vmem:[#allocation20_spill] sm:$0xff] %v13576_v23  ;;  %3956 = vperm.xlu2 %8869, %v3634_v16   ;;  %v17059_v23 = vld [vmem:[#allocation192_spill] sm:$0xff]  ;;  %v3485_v16 = vperm.slane %v13552_v6, 3 }
 0x619   : > { %v3629_v50 = vmul.f32 %v17059_v23, %v3479_v12  ;;  %v17065_v12 = vld [vmem:[#allocation97_spill] sm:$0xff] }
 0x61a   : > { %v3632_v23 = vmul.f32 %v17065_v12, %v3481_v46  ;;  %v3488_v46 = vperm.slane %v13552_v6, 6 }
 0x61b   : > { %v13580_v32 = vpop.permute.xlu2 %3776  ;;  %3916 = vperm.xlu1 %8870, %v3626_v7   ;;  %v17061_v7 = vld [vmem:[#allocation99_spill] sm:$0xff] }
 0x61c   : > { %17055 = vst [vmem:[#allocation23_spill] sm:$0xff] %v13580_v32  ;;  %v3645_v36 = vmul.f32 %v17061_v7, %v3487_v47  ;;  %v13605_v7 = vpop.eup %9530 }
 0x61d   : > { %3996 = vperm.xlu0 %8871, %v3642_v30   ;;  %v3640_v30 = vmul.f32 %v17063_v5, %v3485_v16 }
 0x61f   : > { %v13586_v24 = vpop.permute.xlu0 %3786 }
 0x620   : > { %17058 = vst [vmem:[#allocation25_spill] sm:$0xff] %v13586_v24  ;;  %3971 = vperm.xlu2 %8869, %v3637_v33   ;;  %v3489_v33 = vperm.slane %v13552_v6, 7  ;;  %v17079_v6 = vld [vmem:[#allocation196_spill] sm:$0xff] }
 0x623   : > { %v13591_v40 = vpop.permute.xlu2 %3791  ;;  %3931 = vperm.xlu1 %8870, %v3629_v50   ;;  %v17067_v50 = vld [vmem:[#allocation136_spill] sm:$0xff] }
 0x624   : > { %17060 = vst [vmem:[#allocation59_spill] sm:$0xff] %v13591_v40  ;;  %v3648_v24 = vmul.f32 %v17067_v50, %v3489_v33  ;;  %v3643_v40 = vmul.f32 %v17069_v9, %v3486_v17  ;;  %v3492_v9 = vperm.slane %v13605_v7, 2 }
 0x625   : > { %4011 = vperm.xlu0 %8871, %v3645_v36   ;;  %v13594_v28 = vpop.permute.xlu1 %3721 }
 0x626   : > { %17062 = vst [vmem:[#allocation65_spill] sm:$0xff] %v13594_v28 }
 0x627   : > { %v13598_v51 = vpop.permute.xlu0 %3801 }
 0x628   : > { %17064 = vst [vmem:[#allocation28_spill] sm:$0xff] %v13598_v51  ;;  %3986 = vperm.xlu2 %8869, %v3640_v30   ;;  %v3490_v51 = vperm.slane %v13605_v7, 0  ;;  %v17071_v30 = vld [vmem:[#allocation90_spill] sm:$0xff] }
 0x629   : > { %v3635_v28 = vmul.f32 %v17071_v30, %v3482_v62  ;;  %v3654_v30 = vmul.f32 %v17079_v6, %v3492_v9 }
 0x62b   : > { %v13602_v32 = vpop.permute.xlu2 %3806  ;;  %3946 = vperm.xlu1 %8870, %v3632_v23   ;;  %v17073_v23 = vld [vmem:[#allocation112_spill] sm:$0xff] }
 0x62c   : > { %17066 = vst [vmem:[#allocation33_spill] sm:$0xff] %v13602_v32  ;;  %v3651_v50 = vmul.f32 %v17073_v23, %v3490_v51  ;;  %v17075_v32 = vld [vmem:[#allocation109_spill] sm:$0xff] }
 0x62d   : > { %4026 = vperm.xlu0 %8871, %v3648_v24   ;;  %v13607_v36 = vpop.permute.xlu1 %3736  ;;  %v17081_v23 = vld [vmem:[#allocation113_spill] sm:$0xff] }
 0x62e   : > { %17068 = vst [vmem:[#allocation18_spill] sm:$0xff] %v13607_v36  ;;  %v3646_v36 = vmul.f32 %v17075_v32, %v3488_v46  ;;  %v3493_v32 = vperm.slane %v13605_v7, 3 }
 0x62f   : > { %v13610_v5 = vpop.permute.xlu0 %3816 }
 0x630   : > { %17070 = vst [vmem:[#allocation38_spill] sm:$0xff] %v13610_v5  ;;  %4001 = vperm.xlu2 %8869, %v3643_v40   ;;  %v17077_v40 = vld [vmem:[#allocation102_spill] sm:$0xff] }
 0x631   : > { %v3638_v5 = vmul.f32 %v17077_v40, %v3484_v4 }
 0x633   : > { %v13615_v12 = vpop.permute.xlu2 %3821  ;;  %3961 = vperm.xlu1 %8870, %v3635_v28  }
 0x634   : > { %17072 = vst [vmem:[#allocation21_spill] sm:$0xff] %v13615_v12 }
 0x635   : > { %4041 = vperm.xlu0 %8871, %v3651_v50   ;;  %v13618_v24 = vpop.permute.xlu1 %3751  ;;  %v3649_v50 = vmul.f32 %v17081_v23, %v3489_v33  ;;  %v3495_v23 = vperm.slane %v13605_v7, 5 }
 0x636   : > { %17074 = vst [vmem:[#allocation41_spill] sm:$0xff] %v13618_v24 }
 0x637   : > { %v13621_v17 = vpop.permute.xlu0 %3831 }
 0x638   : > { %17076 = vst [vmem:[#allocation24_spill] sm:$0xff] %v13621_v17  ;;  %4016 = vperm.xlu2 %8869, %v3646_v36   ;;  %v17083_v17 = vld [vmem:[#allocation93_spill] sm:$0xff]  ;;  %v3491_v36 = vperm.slane %v13605_v7, 1 }
 0x639   : > { %v3641_v12 = vmul.f32 %v17083_v17, %v3485_v16  ;;  %v17091_v17 = vld [vmem:[#allocation203_spill] sm:$0xff] }
 0x63b   : > { %v13625_v62 = vpop.permute.xlu2 %3836  ;;  %3976 = vperm.xlu1 %8870, %v3638_v5   ;;  %v17085_v5 = vld [vmem:[#allocation199_spill] sm:$0xff] }
 0x63c   : > { %17078 = vst [vmem:[#allocation44_spill] sm:$0xff] %v13625_v62  ;;  %v3657_v40 = vmul.f32 %v17085_v5, %v3493_v32  ;;  %v17093_v5 = vld [vmem:[#allocation194_spill] sm:$0xff] }
 0x63d   : > { %4056 = vperm.xlu0 %8871, %v3654_v30   ;;  %v13628_v28 = vpop.permute.xlu1 %3766  ;;  %v17087_v30 = vld [vmem:[#allocation143_spill] sm:$0xff] }
 0x63e   : > { %17080 = vst [vmem:[#allocation30_spill] sm:$0xff] %v13628_v28  ;;  %v3652_v62 = vmul.f32 %v17087_v30, %v3491_v36 }
 0x63f   : > { %v13631_v24 = vpop.permute.xlu0 %3846 }
 0x640   : > { %17082 = vst [vmem:[#allocation60_spill] sm:$0xff] %v13631_v24  ;;  %4031 = vperm.xlu2 %8869, %v3649_v50   ;;  %v17089_v50 = vld [vmem:[#allocation106_spill] sm:$0xff] }
 0x641   : > { %v3644_v24 = vmul.f32 %v17089_v50, %v3487_v47  ;;  %v3494_v47 = vperm.slane %v13605_v7, 4 }
 0x643   : > { %v13636_v4 = vpop.permute.xlu2 %3851  ;;  %3991 = vperm.xlu1 %8870, %v3641_v12  }
 0x644   : > { %17084 = vst [vmem:[#allocation48_spill] sm:$0xff] %v13636_v4  ;;  %v3660_v4 = vmul.f32 %v17091_v17, %v3495_v23  ;;  %v13661_v17 = vpop.eup %9532 }
 0x645   : > { %4071 = vperm.xlu0 %8871, %v3657_v40   ;;  %v13639_v6 = vpop.permute.xlu1 %3781  ;;  %v3655_v40 = vmul.f32 %v17093_v5, %v3492_v9  ;;  %v17099_v9 = vld [vmem:[#allocation195_spill] sm:$0xff] }
 0x646   : > { %17086 = vst [vmem:[#allocation35_spill] sm:$0xff] %v13639_v6  ;;  %v3658_v5 = vmul.f32 %v17099_v9, %v3494_v47  ;;  %v3499_v9 = vperm.slane %v13661_v17, 1 }
 0x647   : > { %v13642_v33 = vpop.permute.xlu0 %3861 }
 0x648   : > { %17088 = vst [vmem:[#allocation62_spill] sm:$0xff] %v13642_v33  ;;  %4046 = vperm.xlu2 %8869, %v3652_v62   ;;  %v3496_v33 = vperm.slane %v13605_v7, 6  ;;  %v17095_v62 = vld [vmem:[#allocation111_spill] sm:$0xff] }
 0x649   : > { %v3647_v6 = vmul.f32 %v17095_v62, %v3488_v46  ;;  %v17101_v46 = vld [vmem:[#allocation134_spill] sm:$0xff] }
 0x64a   : > { %v3650_v62 = vmul.f32 %v17101_v46, %v3490_v51  ;;  %v17109_v46 = vld [vmem:[#allocation212_spill] sm:$0xff] }
 0x64b   : > { %v13646_v16 = vpop.permute.xlu2 %3866  ;;  %4006 = vperm.xlu1 %8870, %v3644_v24   ;;  %v17097_v24 = vld [vmem:[#allocation207_spill] sm:$0xff] }
 0x64c   : > { %17090 = vst [vmem:[#allocation53_spill] sm:$0xff] %v13646_v16 }
 0x64d   : > { %4086 = vperm.xlu0 %8871, %v3660_v4   ;;  %v13649_v12 = vpop.permute.xlu1 %3796  ;;  %v3663_v4 = vmul.f32 %v17097_v24, %v3496_v33 }
 0x64e   : > { %17092 = vst [vmem:[#allocation37_spill] sm:$0xff] %v13649_v12 }
 0x64f   : > { %v13653_v30 = vpop.permute.xlu0 %3876 }
 0x650   : > { %17094 = vst [vmem:[#allocation67_spill] sm:$0xff] %v13653_v30  ;;  %4061 = vperm.xlu2 %8869, %v3655_v40   ;;  %v3498_v40 = vperm.slane %v13661_v17, 0 }
 0x653   : > { %v13658_v50 = vpop.permute.xlu2 %3881  ;;  %4021 = vperm.xlu1 %8870, %v3647_v6   ;;  %v17103_v6 = vld [vmem:[#allocation130_spill] sm:$0xff] }
 0x654   : > { %17096 = vst [vmem:[#allocation57_spill] sm:$0xff] %v13658_v50  ;;  %v3666_v50 = vmul.f32 %v17103_v6, %v3498_v40  ;;  %v17111_v6 = vld [vmem:[#allocation201_spill] sm:$0xff] }
 0x655   : > { %4101 = vperm.xlu0 %8871, %v3663_v4   ;;  %v13663_v11 = vpop.permute.xlu1 %3811  ;;  %v17105_v4 = vld [vmem:[#allocation198_spill] sm:$0xff] }
 0x656   : > { %17098 = vst [vmem:[#allocation39_spill] sm:$0xff] %v13663_v11  ;;  %v3661_v12 = vmul.f32 %v17105_v4, %v3495_v23  ;;  %v3501_v4 = vperm.slane %v13661_v17, 3 }
 0x657   : > { %v13666_v16 = vpop.permute.xlu0 %3891 }
 0x658   : > { %17100 = vst [vmem:[#allocation19_spill] sm:$0xff] %v13666_v16  ;;  %4076 = vperm.xlu2 %8869, %v3658_v5   ;;  %v17107_v16 = vld [vmem:[#allocation197_spill] sm:$0xff]  ;;  %v3497_v5 = vperm.slane %v13605_v7, 7  ;;  %v17115_v7 = vld [vmem:[#allocation146_spill] sm:$0xff] }
 0x659   : > { %v3653_v28 = vmul.f32 %v17107_v16, %v3491_v36  ;;  %v3672_v16 = vmul.f32 %v17115_v7, %v3501_v4 }
 0x65b   : > { %v13670_v30 = vpop.permute.xlu2 %3896  ;;  %4036 = vperm.xlu1 %8870, %v3650_v62   ;;  %v3669_v62 = vmul.f32 %v17109_v46, %v3499_v9  ;;  %v17117_v46 = vld [vmem:[#allocation205_spill] sm:$0xff] }
 0x65c   : > { %17102 = vst [vmem:[#allocation87_spill] sm:$0xff] %v13670_v30  ;;  %v3664_v30 = vmul.f32 %v17111_v6, %v3497_v5  ;;  %v3502_v6 = vperm.slane %v13661_v17, 4 }
 0x65d   : > { %4116 = vperm.xlu0 %8871, %v3666_v50   ;;  %v13673_v24 = vpop.permute.xlu1 %3826 }
 0x65e   : > { %17104 = vst [vmem:[#allocation42_spill] sm:$0xff] %v13673_v24 }
 0x65f   : > { %v13676_v11 = vpop.permute.xlu0 %3906 }
 0x660   : > { %17106 = vst [vmem:[#allocation22_spill] sm:$0xff] %v13676_v11  ;;  %4091 = vperm.xlu2 %8869, %v3661_v12   ;;  %v17113_v12 = vld [vmem:[#allocation200_spill] sm:$0xff] }
 0x661   : > { %v3656_v11 = vmul.f32 %v17113_v12, %v3493_v32 }
 0x663   : > { %v13681_v51 = vpop.permute.xlu2 %3911  ;;  %4051 = vperm.xlu1 %8870, %v3653_v28  }
 0x664   : > { %17108 = vst [vmem:[#allocation96_spill] sm:$0xff] %v13681_v51 }
 0x665   : > { %4131 = vperm.xlu0 %8871, %v3669_v62   ;;  %v13684_v50 = vpop.permute.xlu1 %3841  ;;  %v3667_v62 = vmul.f32 %v17117_v46, %v3498_v40  ;;  %v3504_v46 = vperm.slane %v13661_v17, 6 }
 0x666   : > { %17110 = vst [vmem:[#allocation46_spill] sm:$0xff] %v13684_v50 }
 0x667   : > { %v13687_v23 = vpop.permute.xlu0 %3921 }
 0x668   : > { %17112 = vst [vmem:[#allocation29_spill] sm:$0xff] %v13687_v23  ;;  %4106 = vperm.xlu2 %8869, %v3664_v30   ;;  %v17119_v23 = vld [vmem:[#allocation204_spill] sm:$0xff]  ;;  %v3500_v30 = vperm.slane %v13661_v17, 2 }
 0x669   : > { %v3659_v51 = vmul.f32 %v17119_v23, %v3494_v47  ;;  %v17127_v23 = vld [vmem:[#allocation220_spill] sm:$0xff] }
 0x66b   : > { %v13691_v36 = vpop.permute.xlu2 %3926  ;;  %4066 = vperm.xlu1 %8870, %v3656_v11   ;;  %v17121_v11 = vld [vmem:[#allocation217_spill] sm:$0xff] }
 0x66c   : > { %17114 = vst [vmem:[#allocation105_spill] sm:$0xff] %v13691_v36  ;;  %v3675_v12 = vmul.f32 %v17121_v11, %v3502_v6  ;;  %v17129_v11 = vld [vmem:[#allocation211_spill] sm:$0xff] }
 0x66d   : > { %4146 = vperm.xlu0 %8871, %v3672_v16   ;;  %v13694_v28 = vpop.permute.xlu1 %3856  ;;  %v17123_v16 = vld [vmem:[#allocation209_spill] sm:$0xff] }
 0x66e   : > { %17116 = vst [vmem:[#allocation49_spill] sm:$0xff] %v13694_v28  ;;  %v3670_v36 = vmul.f32 %v17123_v16, %v3500_v30 }
 0x66f   : > { %v13697_v50 = vpop.permute.xlu0 %3936 }
 0x670   : > { %17118 = vst [vmem:[#allocation31_spill] sm:$0xff] %v13697_v50  ;;  %4121 = vperm.xlu2 %8869, %v3667_v62   ;;  %v17125_v62 = vld [vmem:[#allocation208_spill] sm:$0xff] }
 0x671   : > { %v3662_v50 = vmul.f32 %v17125_v62, %v3496_v33  ;;  %v3503_v33 = vperm.slane %v13661_v17, 5 }
 0x673   : > { %v13702_v32 = vpop.permute.xlu2 %3941  ;;  %4081 = vperm.xlu1 %8870, %v3659_v51  }
 0x674   : > { %17120 = vst [vmem:[#allocation114_spill] sm:$0xff] %v13702_v32  ;;  %v3678_v32 = vmul.f32 %v17127_v23, %v3504_v46  ;;  %v13727_v23 = vpop.eup %9534 }
 0x675   : > { %4161 = vperm.xlu0 %8871, %v3675_v12   ;;  %v13705_v7 = vpop.permute.xlu1 %3871  ;;  %v3673_v12 = vmul.f32 %v17129_v11, %v3501_v4  ;;  %v17135_v4 = vld [vmem:[#allocation214_spill] sm:$0xff] }
 0x676   : > { %17122 = vst [vmem:[#allocation55_spill] sm:$0xff] %v13705_v7  ;;  %v3676_v11 = vmul.f32 %v17135_v4, %v3503_v33  ;;  %v3508_v4 = vperm.slane %v13727_v23, 2 }
 0x677   : > { %v13708_v40 = vpop.permute.xlu0 %3951 }
 0x678   : > { %17124 = vst [vmem:[#allocation36_spill] sm:$0xff] %v13708_v40  ;;  %4136 = vperm.xlu2 %8869, %v3670_v36   ;;  %v3505_v40 = vperm.slane %v13661_v17, 7  ;;  %v17131_v36 = vld [vmem:[#allocation210_spill] sm:$0xff] }
 0x679   : > { %v3665_v7 = vmul.f32 %v17131_v36, %v3497_v5  ;;  %v17137_v5 = vld [vmem:[#allocation213_spill] sm:$0xff] }
 0x67a   : > { %v3668_v36 = vmul.f32 %v17137_v5, %v3499_v9  ;;  %v17145_v5 = vld [vmem:[#allocation229_spill] sm:$0xff] }
 0x67b   : > { %v13712_v47 = vpop.permute.xlu2 %3956  ;;  %4096 = vperm.xlu1 %8870, %v3662_v50   ;;  %v17133_v50 = vld [vmem:[#allocation223_spill] sm:$0xff] }
 0x67c   : > { %17126 = vst [vmem:[#allocation123_spill] sm:$0xff] %v13712_v47 }
 0x67d   : > { %4176 = vperm.xlu0 %8871, %v3678_v32   ;;  %v13715_v51 = vpop.permute.xlu1 %3886  ;;  %v3681_v32 = vmul.f32 %v17133_v50, %v3505_v40 }
 0x67e   : > { %17128 = vst [vmem:[#allocation83_spill] sm:$0xff] %v13715_v51 }
 0x67f   : > { %v13719_v16 = vpop.permute.xlu0 %3966 }
 0x680   : > { %17130 = vst [vmem:[#allocation40_spill] sm:$0xff] %v13719_v16  ;;  %4151 = vperm.xlu2 %8869, %v3673_v12   ;;  %v3507_v12 = vperm.slane %v13727_v23, 1 }
 0x683   : > { %v13724_v62 = vpop.permute.xlu2 %3971  ;;  %4111 = vperm.xlu1 %8870, %v3665_v7   ;;  %v17139_v7 = vld [vmem:[#allocation226_spill] sm:$0xff] }
 0x684   : > { %17132 = vst [vmem:[#allocation132_spill] sm:$0xff] %v13724_v62  ;;  %v3684_v62 = vmul.f32 %v17139_v7, %v3507_v12  ;;  %v17147_v7 = vld [vmem:[#allocation219_spill] sm:$0xff] }
 0x685   : > { %4191 = vperm.xlu0 %8871, %v3681_v32   ;;  %v13729_v41 = vpop.permute.xlu1 %3901  ;;  %v17141_v32 = vld [vmem:[#allocation216_spill] sm:$0xff] }
 0x686   : > { %17134 = vst [vmem:[#allocation89_spill] sm:$0xff] %v13729_v41  ;;  %v3679_v47 = vmul.f32 %v17141_v32, %v3504_v46  ;;  %v3510_v32 = vperm.slane %v13727_v23, 4 }
 0x687   : > { %v13732_v16 = vpop.permute.xlu0 %3981 }
 0x688   : > { %17136 = vst [vmem:[#allocation43_spill] sm:$0xff] %v13732_v16  ;;  %4166 = vperm.xlu2 %8869, %v3676_v11   ;;  %v17143_v16 = vld [vmem:[#allocation215_spill] sm:$0xff]  ;;  %v3506_v11 = vperm.slane %v13727_v23, 0 }
 0x689   : > { %v3671_v51 = vmul.f32 %v17143_v16, %v3500_v30  ;;  %v17151_v16 = vld [vmem:[#allocation163_spill] sm:$0xff] }
 0x68b   : > { %v13736_v17 = vpop.permute.xlu2 %3986  ;;  %4126 = vperm.xlu1 %8870, %v3668_v36   ;;  %v3687_v36 = vmul.f32 %v17145_v5, %v3508_v4  ;;  %v17153_v5 = vld [vmem:[#allocation222_spill] sm:$0xff] }
 0x68c   : > { %17138 = vst [vmem:[#allocation140_spill] sm:$0xff] %v13736_v17 }
 0x68d   : > { %4206 = vperm.xlu0 %8871, %v3684_v62   ;;  %v13739_v50 = vpop.permute.xlu1 %3916 }
 0x68e   : > { %17140 = vst [vmem:[#allocation101_spill] sm:$0xff] %v13739_v50  ;;  %v3682_v50 = vmul.f32 %v17147_v7, %v3506_v11  ;;  %v3511_v7 = vperm.slane %v13727_v23, 5 }
 0x68f   : > { %v13742_v41 = vpop.permute.xlu0 %3996 }
 0x690   : > { %17142 = vst [vmem:[#allocation45_spill] sm:$0xff] %v13742_v41  ;;  %4181 = vperm.xlu2 %8869, %v3679_v47   ;;  %v17149_v47 = vld [vmem:[#allocation218_spill] sm:$0xff] }
 0x691   : > { %v3674_v41 = vmul.f32 %v17149_v47, %v3502_v6 }
 0x693   : > { %v13747_v9 = vpop.permute.xlu2 %4001  ;;  %4141 = vperm.xlu1 %8870, %v3671_v51  }
 0x694   : > { %17144 = vst [vmem:[#allocation145_spill] sm:$0xff] %v13747_v9  ;;  %v3690_v9 = vmul.f32 %v17151_v16, %v3510_v32 }
 0x695   : > { %4221 = vperm.xlu0 %8871, %v3687_v36   ;;  %v13750_v62 = vpop.permute.xlu1 %3931  ;;  %v3685_v36 = vmul.f32 %v17153_v5, %v3507_v12  ;;  %v17159_v12 = vld [vmem:[#allocation225_spill] sm:$0xff] }
 0x696   : > { %17146 = vst [vmem:[#allocation110_spill] sm:$0xff] %v13750_v62 }
 0x697   : > { %v13753_v46 = vpop.permute.xlu0 %4011 }
 0x698   : > { %17148 = vst [vmem:[#allocation47_spill] sm:$0xff] %v13753_v46  ;;  %4196 = vperm.xlu2 %8869, %v3682_v50   ;;  %v17155_v46 = vld [vmem:[#allocation221_spill] sm:$0xff]  ;;  %v3509_v50 = vperm.slane %v13727_v23, 3 }
 0x699   : > { %v3677_v17 = vmul.f32 %v17155_v46, %v3503_v33  ;;  %v17161_v33 = vld [vmem:[#allocation224_spill] sm:$0xff] }
 0x69a   : > { %v3688_v16 = vmul.f32 %v17159_v12, %v3509_v50  ;;  %v3680_v46 = vmul.f32 %v17161_v33, %v3505_v40  ;;  %v3512_v40 = vperm.slane %v13727_v23, 6 }
 0x69b   : > { %v13757_v30 = vpop.permute.xlu2 %4016  ;;  %4156 = vperm.xlu1 %8870, %v3674_v41   ;;  %v17157_v41 = vld [vmem:[#allocation234_spill] sm:$0xff] }
 0x69c   : > { %17150 = vst [vmem:[#allocation119_spill] sm:$0xff] %v13757_v30  ;;  %v3693_v47 = vmul.f32 %v17157_v41, %v3511_v7  ;;  %v13782_v41 = vpop.eup %9536 }
 0x69d   : > { %4236 = vperm.xlu0 %8871, %v3690_v9   ;;  %v13760_v51 = vpop.permute.xlu1 %3946 }
 0x69e   : > { %17152 = vst [vmem:[#allocation51_spill] sm:$0xff] %v13760_v51 }
 0x69f   : > { %v13763_v62 = vpop.permute.xlu0 %4026 }
 0x6a0   : > { %17154 = vst [vmem:[#allocation128_spill] sm:$0xff] %v13763_v62  ;;  %4211 = vperm.xlu2 %8869, %v3685_v36   ;;  %v3513_v36 = vperm.slane %v13727_v23, 7  ;;  %v17175_v23 = vld [vmem:[#allocation245_spill] sm:$0xff] }
 0x6a3   : > { %v13768_v6 = vpop.permute.xlu2 %4031  ;;  %4171 = vperm.xlu1 %8870, %v3677_v17   ;;  %v17163_v17 = vld [vmem:[#allocation238_spill] sm:$0xff] }
 0x6a4   : > { %17156 = vst [vmem:[#allocation80_spill] sm:$0xff] %v13768_v6  ;;  %v3696_v6 = vmul.f32 %v17163_v17, %v3513_v36 }
 0x6a5   : > { %4251 = vperm.xlu0 %8871, %v3693_v47   ;;  %v13771_v9 = vpop.permute.xlu1 %3961 }
 0x6a6   : > { %17158 = vst [vmem:[#allocation139_spill] sm:$0xff] %v13771_v9  ;;  %v3691_v9 = vmul.f32 %v17165_v44, %v3510_v32  ;;  %v3516_v44 = vperm.slane %v13782_v41, 2 }
 0x6a7   : > { %v13775_v5 = vpop.permute.xlu0 %4041 }
 0x6a8   : > { %17160 = vst [vmem:[#allocation85_spill] sm:$0xff] %v13775_v5  ;;  %4226 = vperm.xlu2 %8869, %v3688_v16   ;;  %v3514_v5 = vperm.slane %v13782_v41, 0  ;;  %v17167_v16 = vld [vmem:[#allocation227_spill] sm:$0xff] }
 0x6a9   : > { %v3683_v51 = vmul.f32 %v17167_v16, %v3506_v11  ;;  %v3702_v16 = vmul.f32 %v17175_v23, %v3516_v44 }
 0x6ab   : > { %v13779_v62 = vpop.permute.xlu2 %4046  ;;  %4186 = vperm.xlu1 %8870, %v3680_v46   ;;  %v17169_v46 = vld [vmem:[#allocation241_spill] sm:$0xff] }
 0x6ac   : > { %17162 = vst [vmem:[#allocation144_spill] sm:$0xff] %v13779_v62  ;;  %v3699_v17 = vmul.f32 %v17169_v46, %v3514_v5  ;;  %v17171_v62 = vld [vmem:[#allocation231_spill] sm:$0xff]  ;;  %v17177_v46 = vld [vmem:[#allocation233_spill] sm:$0xff] }
 0x6ad   : > { %4266 = vperm.xlu0 %8871, %v3696_v6   ;;  %v13784_v47 = vpop.permute.xlu1 %3976 }
 0x6ae   : > { %17164 = vst [vmem:[#allocation98_spill] sm:$0xff] %v13784_v47  ;;  %v3694_v47 = vmul.f32 %v17171_v62, %v3512_v40  ;;  %v16337_v62 = vperm.slane %v13782_v41, 3 }
 0x6af   : > { %v13787_v12 = vpop.permute.xlu0 %4056 }
 0x6b0   : > { %17166 = vst [vmem:[#allocation107_spill] sm:$0xff] %v13787_v12  ;;  %4241 = vperm.xlu2 %8869, %v3691_v9   ;;  %v17173_v9 = vld [vmem:[#allocation230_spill] sm:$0xff] }
 0x6b1   : > { %v3686_v12 = vmul.f32 %v17173_v9, %v3508_v4 }
 0x6b3   : > { %v13792_v33 = vpop.permute.xlu2 %4061  ;;  %4201 = vperm.xlu1 %8870, %v3683_v51  }
 0x6b4   : > { %17168 = vst [vmem:[#allocation116_spill] sm:$0xff] %v13792_v33 }
 0x6b5   : > { %4281 = vperm.xlu0 %8871, %v3699_v17   ;;  %v13795_v6 = vpop.permute.xlu1 %3991  ;;  %v3697_v17 = vmul.f32 %v17177_v46, %v3513_v36  ;;  %v17183_v36 = vld [vmem:[#allocation236_spill] sm:$0xff] }
 0x6b6   : > { %17170 = vst [vmem:[#allocation125_spill] sm:$0xff] %v13795_v6 }
 0x6b7   : > { %v13798_v32 = vpop.permute.xlu0 %4071 }
 0x6b8   : > { %17172 = vst [vmem:[#allocation135_spill] sm:$0xff] %v13798_v32  ;;  %4256 = vperm.xlu2 %8869, %v3694_v47   ;;  %v17179_v32 = vld [vmem:[#allocation232_spill] sm:$0xff]  ;;  %v3515_v47 = vperm.slane %v13782_v41, 1 }
 0x6b9   : > { %v3689_v33 = vmul.f32 %v17179_v32, %v3509_v50  ;;  %v17185_v50 = vld [vmem:[#allocation235_spill] sm:$0xff] }
 0x6ba   : > { %v3692_v32 = vmul.f32 %v17185_v50, %v3511_v7  ;;  %v17191_v7 = vld [vmem:[#allocation239_spill] sm:$0xff] }
 0x6bb   : > { %v13802_v11 = vpop.permute.xlu2 %4076  ;;  %4216 = vperm.xlu1 %8870, %v3686_v12   ;;  %v17181_v12 = vld [vmem:[#allocation248_spill] sm:$0xff]  ;;  %v3695_v50 = vmul.f32 %v17191_v7, %v3512_v40 }
 0x6bc   : > { %17174 = vst [vmem:[#allocation142_spill] sm:$0xff] %v13802_v11  ;;  %v3705_v9 = vmul.f32 %v17181_v12, %v16337_v62  ;;  %v5800_v11 = vperm.slane %v13522_v25, 0 }
 0x6bd   : > { %4296 = vperm.xlu0 %8871, %v3702_v16   ;;  %v13805_v51 = vpop.permute.xlu1 %4006  ;;  %v3700_v16 = vmul.f32 %v17183_v36, %v3515_v47  ;;  %v17189_v36 = vld [vmem:[#allocation240_spill] sm:$0xff] }
 0x6be   : > { %17176 = vst [vmem:[#allocation182_spill] sm:$0xff] %v13805_v51  ;;  %v3703_v62 = vmul.f32 %v17189_v36, %v3516_v44 }
 0x6bf   : > { %v13808_v6 = vpop.permute.xlu0 %4086 }
 0x6c0   : > { %17178 = vst [vmem:[#allocation186_spill] sm:$0xff] %v13808_v6  ;;  %4271 = vperm.xlu2 %8869, %v3697_v17   ;;  %v3519_v17 = vperm.slane %v13782_v41, 5 }
 0x6c3   : > { %v13813_v4 = vpop.permute.xlu2 %4091  ;;  %4231 = vperm.xlu1 %8870, %v3689_v33   ;;  %v17187_v33 = vld [vmem:[#allocation168_spill] sm:$0xff] }
 0x6c4   : > { %17180 = vst [vmem:[#allocation188_spill] sm:$0xff] %v13813_v4  ;;  %v3708_v4 = vmul.f32 %v17187_v33, %v3519_v17 }
 0x6c5   : > { %4311 = vperm.xlu0 %8871, %v3705_v9   ;;  %v13818_v23 = vpop.permute.xlu1 %4021  ;;  %v5928_v9 = vsub.f32 %v13057_v31, %v5800_v11  ;;  %v17193_v31 = vld [vmem:[#allocation171_spill] sm:$0xff] }
 0x6c6   : > { %17182 = vst [vmem:[#allocation129_spill] sm:$0xff] %v13818_v23  ;;  %v5803_v23 = vperm.slane %v13522_v25, 3 }
 0x6c7   : > { %v13821_v46 = vpop.permute.xlu0 %4101 }
 0x6c8   : > { %17184 = vst [vmem:[#allocation181_spill] sm:$0xff] %v13821_v46  ;;  %4286 = vperm.xlu2 %8869, %v3700_v16   ;;  %v16338_v16 = vperm.slane %v13782_v41, 6 }
 0x6ca   : > { %v3711_v11 = vmul.f32 %v17193_v31, %v16338_v16 }
 0x6cb   : > { %v13826_v6 = vpop.permute.xlu2 %4106  ;;  %4246 = vperm.xlu1 %8870, %v3692_v32   ;;  %v3518_v32 = vperm.slane %v13782_v41, 4 }
 0x6cc   : > { %17186 = vst [vmem:[#allocation86_spill] sm:$0xff] %v13826_v6  ;;  %v5992_v6 = vmul.f32 1.442695, %v5928_v9  ;;  %v17197_v9 = vld [vmem:[#allocation242_spill] sm:$0xff] }
 0x6cd   : > { %4326 = vperm.xlu0 %8871, %v3708_v4   ;;  %v13829_v12 = vpop.permute.xlu1 %4036  ;;  %v5931_v4 = vsub.f32 %v13077_v63, %v5803_v23  ;;  %v3698_v7 = vmul.f32 %v17197_v9, %v3514_v5  ;;  %v17200_v23 = vld [vmem:[#allocation247_spill] sm:$0xff] }
 0x6ce   : > { %17188 = vst [vmem:[#allocation78_spill] sm:$0xff] %v13829_v12  ;;  %9538 = vpow2.f32 %v5992_v6  ;;  %v5839_v12 = vperm.slane %v13573_v18, 7 }
 0x6cf   : > { %v13833_v46 = vpop.permute.xlu0 %4116 }
 0x6d0   : > { %17190 = vst [vmem:[#allocation81_spill] sm:$0xff] %v13833_v46  ;;  %4301 = vperm.xlu2 %8869, %v3703_v62   ;;  %v17195_v62 = vld [vmem:[#allocation243_spill] sm:$0xff]  ;;  %v5805_v46 = vperm.slane %v13522_v25, 5 }
 0x6d1   : > { %v3706_v36 = vmul.f32 %v17195_v62, %v3518_v32  ;;  %v3709_v62 = vmul.f32 %v17200_v23, %v3519_v17  ;;  %v17208_v23 = vperm.slane %v13782_v41, 3 }
 0x6d2   : > { %v5933_v6 = vsub.f32 %v13090_v3, %v5805_v46  ;;  %v5804_v3 = vperm.slane %v13522_v25, 4 }
 0x6d3   : > { %v13839_v33 = vpop.permute.xlu2 %4121  ;;  %4261 = vperm.xlu1 %8870, %v3695_v50   ;;  %v5998_v50 = vmul.f32 1.442695, %v5931_v4 }
 0x6d4   : > { %17192 = vst [vmem:[#allocation184_spill] sm:$0xff] %v13839_v33  ;;  %v13854_v31 = vpop.eup %9538  ;;  %v6002_v16 = vmul.f32 1.442695, %v5933_v6  ;;  %v5932_v6 = vsub.f32 %v13149_v1, %v5804_v3 }
 0x6d5   : > { %4341 = vperm.xlu0 %8871, %v3711_v11   ;;  %v13844_v44 = vpop.permute.xlu1 %4051  ;;  %v5801_v11 = vperm.slane %v13522_v25, 1  ;;  %9540 = vpow2.f32 %v5998_v50 }
 0x6d6   : > { %17194 = vst [vmem:[#allocation183_spill] sm:$0xff] %v13844_v44  ;;  %9542 = vpow2.f32 %v6002_v16  ;;  %v5807_v16 = vperm.slane %v13522_v25, 7 }
 0x6d7   : > { %v13848_v40 = vpop.permute.xlu0 %4131  ;;  %v5929_v4 = vsub.f32 %v13142_v27, %v5801_v11 }
 0x6d8   : > { %17196 = vst [vmem:[#allocation61_spill] sm:$0xff] %v13848_v40  ;;  %4316 = vperm.xlu2 %8869, %v3706_v36   ;;  %v17202_v36 = vld [vmem:[#allocation246_spill] sm:$0xff] }
 0x6d9   : > { %v3701_v9 = vmul.f32 %v17202_v36, %v3515_v47  ;;  %v5994_v46 = vmul.f32 1.442695, %v5929_v4  ;;  %v17206_v47 = vld [vmem:[#allocation250_spill] sm:$0xff]  ;;  %v5811_v36 = vperm.slane %v13562_v2, 3 }
 0x6db   : > { %v13852_v33 = vpop.permute.xlu2 %4136  ;;  %4276 = vperm.xlu1 %8870, %v3698_v7   ;;  %v5808_v7 = vperm.slane %v13562_v2, 0  ;;  %9544 = vpow2.f32 %v5994_v46  ;;  %v5939_v1 = vsub.f32 %v13125_v42, %v5811_v36  ;;  %v5810_v42 = vperm.slane %v13562_v2, 2 }
 0x6dc   : > { %17198 = vst [vmem:[#allocation187_spill] sm:$0xff] %v13852_v33  ;;  %v16339_v33 = vperm.slane %v13782_v41, 7 }
 0x6dd   : > { %6185 = vperm.xlu0 %8871, %v13854_v31   ;;  %v13858_v63 = vpop.permute.xlu1 %4066  ;;  %v5936_v27 = vsub.f32 %v13107_v37, %v5808_v7  ;;  %v6000_v7 = vmul.f32 1.442695, %v5932_v6  ;;  %v5814_v6 = vperm.slane %v13562_v2, 6 }
 0x6de   : > { %17199 = vst [vmem:[#allocation185_spill] sm:$0xff] %v13858_v63  ;;  %v13870_v63 = vpop.eup %9540  ;;  %v3712_v50 = vmul.f32 %v17206_v47, %v16339_v33 }
 0x6df   : > { %v13862_v5 = vpop.permute.xlu0 %4146  ;;  %17204 = vst [vmem:[#allocation73_spill] sm:$0xff] %v13870_v63  ;;  %v13889_v37 = vpop.eup %9542 }
 0x6e0   : > { %17201 = vst [vmem:[#allocation52_spill] sm:$0xff] %v13862_v5  ;;  %4331 = vperm.xlu2 %8869, %v3709_v62   ;;  %v17209_v62 = vld [vmem:[#allocation249_spill] sm:$0xff] }
 0x6e1   : > { %v3704_v4 = vmul.f32 %v17209_v62, %v17208_v23  ;;  %v13896_v3 = vpop.eup %9544  ;;  %v6014_v62 = vmul.f32 1.442695, %v5939_v1  ;;  %v5938_v1 = vsub.f32 %v13171_v61, %v5810_v42 }
 0x6e3   : > { %v13868_v40 = vpop.permute.xlu2 %4151  ;;  %4291 = vperm.xlu1 %8870, %v3701_v9   ;;  %v6008_v9 = vmul.f32 1.442695, %v5936_v27  ;;  %v5935_v27 = vsub.f32 %v13159_v8, %v5807_v16  ;;  %v5942_v8 = vsub.f32 %v13137_v49, %v5814_v6 }
 0x6e4   : > { %17203 = vst [vmem:[#allocation189_spill] sm:$0xff] %v13868_v40 }
 0x6e5   : > { %6194 = vperm.xlu0 %8871, %v13870_v63   ;;  %v13874_v17 = vpop.permute.xlu1 %4081  ;;  %9546 = vpow2.f32 %v6008_v9  ;;  %v6006_v36 = vmul.f32 1.442695, %v5935_v27  ;;  %v17218_v27 = vld [vmem:[#allocation68_spill] sm:$0xff] }
 0x6e6   : > { %17205 = vst [vmem:[#allocation56_spill] sm:$0xff] %v13874_v17  ;;  %9548 = vpow2.f32 %v6000_v7  ;;  %v5802_v7 = vperm.slane %v13522_v25, 2 }
 0x6e7   : > { %v13880_v11 = vpop.permute.xlu0 %4161  ;;  %9550 = vpow2.f32 %v6014_v62 }
 0x6e8   : > { %17207 = vst [vmem:[#allocation54_spill] sm:$0xff] %v13880_v11  ;;  %4346 = vperm.xlu2 %8869, %v3712_v50   ;;  %v17213_v50 = vld [vmem:[#allocation63_spill] sm:$0xff]  ;;  %9552 = vpow2.f32 %v6006_v36  ;;  %v5930_v62 = vsub.f32 %v13073_v54, %v5802_v7  ;;  %v17222_v7 = vperm.slane %v13782_v41, 7  ;;  %v5833_v11 = vperm.slane %v13573_v18, 1 }
 0x6e9   : > { %v3707_v23 = vmul.f32 %v17213_v50, %v3518_v32  ;;  %v17217_v50 = vperm.slane %v13782_v41, 6 }
 0x6eb   : > { %v13887_v17 = vpop.permute.xlu2 %4166  ;;  %4306 = vperm.xlu1 %8870, %v3704_v4   ;;  %v13906_v33 = vpop.eup %9546 }
 0x6ec   : > { %17210 = vst [vmem:[#allocation82_spill] sm:$0xff] %v13887_v17  ;;  %v13913_v32 = vpop.eup %9548  ;;  %v6020_v17 = vmul.f32 1.442695, %v5942_v8 }
 0x6ed   : > { %6200 = vperm.xlu0 %8871, %v13889_v37   ;;  %v13893_v47 = vpop.permute.xlu1 %4096  ;;  %v13926_v6 = vpop.eup %9550 }
 0x6ee   : > { %17211 = vst [vmem:[#allocation173_spill] sm:$0xff] %v13893_v47  ;;  %9554 = vpow2.f32 %v6020_v17  ;;  %v13934_v36 = vpop.eup %9552  ;;  %v5836_v47 = vperm.slane %v13573_v18, 4 }
 0x6ef   : > { %v13898_v46 = vpop.permute.xlu0 %4176 }
 0x6f0   : > { %17212 = vst [vmem:[#allocation66_spill] sm:$0xff] %v13898_v46  ;;  %6188 = vperm.xlu2 %8869, %v13896_v3   ;;  %v6012_v46 = vmul.f32 1.442695, %v5938_v1  ;;  %v3713_v1 = vmul.f32 %v12461_v26, %v17222_v7 }
 0x6f2   : > { %9556 = vpow2.f32 %v6012_v46 }
 0x6f3   : > { %v13904_v4 = vpop.permute.xlu2 %4181  ;;  %4321 = vperm.xlu1 %8870, %v3707_v23   ;;  %v3710_v23 = vmul.f32 %v17218_v27, %v17217_v50  ;;  %v5806_v50 = vperm.slane %v13522_v25, 6  ;;  %v5996_v27 = vmul.f32 1.442695, %v5930_v62 }
 0x6f4   : > { %17214 = vst [vmem:[#allocation74_spill] sm:$0xff] %v13904_v4 }
 0x6f5   : > { %6209 = vperm.xlu0 %8871, %v13906_v33   ;;  %v13910_v9 = vpop.permute.xlu1 %4111  ;;  %v5934_v25 = vsub.f32 %v13092_v15, %v5806_v50  ;;  %9558 = vpow2.f32 %v5996_v27  ;;  %v5823_v27 = vperm.slane %v13518_v14, 7 }
 0x6f6   : > { %17215 = vst [vmem:[#allocation76_spill] sm:$0xff] %v13910_v9  ;;  %v5817_v9 = vperm.slane %v13518_v14, 1 }
 0x6f7   : > { %v13915_v16 = vpop.permute.xlu0 %4191 }
 0x6f8   : > { %17216 = vst [vmem:[#allocation172_spill] sm:$0xff] %v13915_v16  ;;  %6197 = vperm.xlu2 %8869, %v13913_v32   ;;  %v5813_v16 = vperm.slane %v13562_v2, 5  ;;  %v5945_v42 = vsub.f32 %v13152_v34, %v5817_v9  ;;  %v13947_v9 = vpop.eup %9554 }
 0x6f9   : > { %v13955_v41 = vpop.eup %9556 }
 0x6fa   : > { %v5941_v54 = vsub.f32 %v13194_v0, %v5813_v16  ;;  %v6026_v34 = vmul.f32 1.442695, %v5945_v42  ;;  %v5809_v16 = vperm.slane %v13562_v2, 1  ;;  %v6004_v42 = vmul.f32 1.442695, %v5934_v25 }
 0x6fb   : > { %v13924_v49 = vpop.permute.xlu2 %4196  ;;  %4336 = vperm.xlu1 %8870, %v3710_v23   ;;  %v5820_v23 = vperm.slane %v13518_v14, 4  ;;  %v13962_v50 = vpop.eup %9558 }
 0x6fc   : > { %17219 = vst [vmem:[#allocation50_spill] sm:$0xff] %v13924_v49  ;;  %v6018_v62 = vmul.f32 1.442695, %v5941_v54  ;;  %v5816_v49 = vperm.slane %v13518_v14, 0  ;;  %9560 = vpow2.f32 %v6026_v34 }
 0x6fd   : > { %6218 = vperm.xlu0 %8871, %v13926_v6   ;;  %v13931_v61 = vpop.permute.xlu1 %4126  ;;  %v5948_v26 = vsub.f32 %v13162_v53, %v5820_v23  ;;  %17226 = vst [vmem:[#allocation58_spill] sm:$0xff] %v13962_v50  ;;  %v5819_v23 = vperm.slane %v13518_v14, 3 }
 0x6fe   : > { %17220 = vst [vmem:[#allocation77_spill] sm:$0xff] %v13931_v61  ;;  %v5944_v15 = vsub.f32 %v13223_v22, %v5816_v49  ;;  %9562 = vpow2.f32 %v6018_v62  ;;  %v5951_v49 = vsub.f32 %v13185_v38, %v5823_v27  ;;  %v17276_v61 = vld [vmem:[#allocation237_spill] sm:$0xff] }
 0x6ff   : > { %v13936_v8 = vpop.permute.xlu0 %4206  ;;  %v6032_v54 = vmul.f32 1.442695, %v5948_v26  ;;  %9564 = vpow2.f32 %v6004_v42  ;;  %v5812_v26 = vperm.slane %v13562_v2, 4 }
 0x700   : > { %17221 = vst [vmem:[#allocation175_spill] sm:$0xff] %v13936_v8  ;;  %6206 = vperm.xlu2 %8869, %v13934_v36   ;;  %v6024_v34 = vmul.f32 1.442695, %v5944_v15  ;;  %v6038_v42 = vmul.f32 1.442695, %v5951_v49  ;;  %v5826_v15 = vperm.slane %v13531_v56, 2 }
 0x701   : > { %9566 = vpow2.f32 %v6032_v54  ;;  %v5940_v27 = vsub.f32 %v13127_v52, %v5812_v26  ;;  %v5822_v54 = vperm.slane %v13518_v14, 6  ;;  %v5829_v26 = vperm.slane %v13531_v56, 5 }
 0x702   : > { %v13968_v53 = vpop.eup %9560  ;;  %9568 = vpow2.f32 %v6024_v34 }
 0x703   : > { %v13945_v17 = vpop.permute.xlu2 %4211  ;;  %4351 = vperm.xlu1 %8870, %v3713_v1   ;;  %v5937_v1 = vsub.f32 %v13112_v21, %v5809_v16  ;;  %v5947_v21 = vsub.f32 %v13241_v39, %v5819_v23  ;;  %v5954_v23 = vsub.f32 %v13219_v10, %v5826_v15  ;;  %v5950_v52 = vsub.f32 %v13261_v45, %v5822_v54 }
 0x704   : > { %17223 = vst [vmem:[#allocation64_spill] sm:$0xff] %v13945_v17  ;;  %v13976_v25 = vpop.eup %9562  ;;  %v5825_v15 = vperm.slane %v13531_v56, 1 }
 0x705   : > { %6227 = vperm.xlu0 %8871, %v13947_v9   ;;  %v13952_v0 = vpop.permute.xlu1 %4141  ;;  %v13983_v16 = vpop.eup %9564 }
 0x706   : > { %17224 = vst [vmem:[#allocation72_spill] sm:$0xff] %v13952_v0 }
 0x707   : > { %v13957_v46 = vpop.permute.xlu0 %4221  ;;  %17230 = vst [vmem:[#allocation75_spill] sm:$0xff] %v13983_v16  ;;  %v13989_v38 = vpop.eup %9566 }
 0x708   : > { %17225 = vst [vmem:[#allocation177_spill] sm:$0xff] %v13957_v46  ;;  %6215 = vperm.xlu2 %8869, %v13955_v41   ;;  %v13997_v34 = vpop.eup %9568 }
 0x709   : > { %17232 = vst [vmem:[#allocation176_spill] sm:$0xff] %v13989_v38 }
 0x70b   : > { %v13965_v7 = vpop.permute.xlu2 %4226  ;;  %6191 = vperm.xlu1 %8870, %v13962_v50  }
 0x70c   : > { %17227 = vst [vmem:[#allocation179_spill] sm:$0xff] %v13965_v7  ;;  %v6010_v7 = vmul.f32 1.442695, %v5937_v1  ;;  %v6030_v1 = vmul.f32 1.442695, %v5947_v21 }
 0x70d   : > { %6236 = vperm.xlu0 %8871, %v13968_v53   ;;  %v13973_v22 = vpop.permute.xlu1 %4156  ;;  %v6044_v21 = vmul.f32 1.442695, %v5954_v23 }
 0x70e   : > { %17228 = vst [vmem:[#allocation70_spill] sm:$0xff] %v13973_v22  ;;  %9570 = vpow2.f32 %v6010_v7 }
 0x70f   : > { %v13978_v62 = vpop.permute.xlu0 %4236  ;;  %9572 = vpow2.f32 %v6038_v42 }
 0x710   : > { %17229 = vst [vmem:[#allocation174_spill] sm:$0xff] %v13978_v62  ;;  %6224 = vperm.xlu2 %8869, %v13976_v25   ;;  %v5815_v62 = vperm.slane %v13562_v2, 7  ;;  %9574 = vpow2.f32 %v6030_v1  ;;  %v6036_v2 = vmul.f32 1.442695, %v5950_v52  ;;  %v5832_v52 = vperm.slane %v13573_v18, 0 }
 0x712   : > { %v5943_v42 = vsub.f32 %v13140_v48, %v5815_v62  ;;  %v5953_v48 = vsub.f32 %v13275_v13, %v5825_v15 }
 0x713   : > { %v13986_v46 = vpop.permute.xlu2 %4241  ;;  %6203 = vperm.xlu1 %8870, %v13983_v16  }
 0x714   : > { %17231 = vst [vmem:[#allocation178_spill] sm:$0xff] %v13986_v46  ;;  %v6016_v46 = vmul.f32 1.442695, %v5940_v27  ;;  %v14004_v7 = vpop.eup %9570  ;;  %v5957_v27 = vsub.f32 %v13246_v57, %v5829_v26  ;;  %v6022_v23 = vmul.f32 1.442695, %v5943_v42 }
 0x715   : > { %6245 = vperm.xlu0 %8871, %v13989_v38   ;;  %v13994_v39 = vpop.permute.xlu1 %4171  ;;  %17235 = vst [vmem:[#allocation71_spill] sm:$0xff] %v14004_v7  ;;  %v14010_v10 = vpop.eup %9572  ;;  %v6042_v42 = vmul.f32 1.442695, %v5953_v48  ;;  %v17297_v38 = vld [vmem:[#allocation153_spill] sm:$0xff] }
 0x716   : > { %17233 = vst [vmem:[#allocation92_spill] sm:$0xff] %v13994_v39  ;;  %9576 = vpow2.f32 %v6016_v46  ;;  %v14018_v54 = vpop.eup %9574  ;;  %v6050_v62 = vmul.f32 1.442695, %v5957_v27 }
 0x717   : > { %v13999_v49 = vpop.permute.xlu0 %4251  ;;  %17237 = vst [vmem:[#allocation191_spill] sm:$0xff] %v14010_v10  ;;  %9578 = vpow2.f32 %v6044_v21  ;;  %v5828_v21 = vperm.slane %v13531_v56, 4 }
 0x718   : > { %17234 = vst [vmem:[#allocation190_spill] sm:$0xff] %v13999_v49  ;;  %6233 = vperm.xlu2 %8869, %v13997_v34   ;;  %9580 = vpow2.f32 %v6036_v2  ;;  %v5960_v2 = vsub.f32 %v13268_v55, %v5832_v52 }
 0x719   : > { %9582 = vpow2.f32 %v6022_v23  ;;  %v5835_v23 = vperm.slane %v13573_v18, 3 }
 0x71a   : > { %9584 = vpow2.f32 %v6050_v62  ;;  %v6056_v48 = vmul.f32 1.442695, %v5960_v2 }
 0x71b   : > { %v14007_v8 = vpop.permute.xlu2 %4256  ;;  %6212 = vperm.xlu1 %8870, %v14004_v7   ;;  %9586 = vpow2.f32 %v6042_v42 }
 0x71c   : > { %17236 = vst [vmem:[#allocation91_spill] sm:$0xff] %v14007_v8  ;;  %v5818_v8 = vperm.slane %v13518_v14, 2  ;;  %v14025_v46 = vpop.eup %9576 }
 0x71d   : > { %6254 = vperm.xlu0 %8871, %v14010_v10   ;;  %v14015_v45 = vpop.permute.xlu1 %4186  ;;  %17240 = vst [vmem:[#allocation88_spill] sm:$0xff] %v14025_v46  ;;  %v14031_v57 = vpop.eup %9578  ;;  %v17292_v10 = vld [vmem:[#allocation151_spill] sm:$0xff] }
 0x71e   : > { %17238 = vst [vmem:[#allocation79_spill] sm:$0xff] %v14015_v45  ;;  %v5946_v26 = vsub.f32 %v13154_v60, %v5818_v8  ;;  %v14039_v15 = vpop.eup %9580  ;;  %v5956_v60 = vsub.f32 %v13289_v20, %v5828_v21  ;;  %v5830_v45 = vperm.slane %v13531_v56, 6 }
 0x71f   : > { %v14020_v1 = vpop.permute.xlu0 %4266  ;;  %17242 = vst [vmem:[#allocation94_spill] sm:$0xff] %v14031_v57  ;;  %v14046_v8 = vpop.eup %9582 }
 0x720   : > { %17239 = vst [vmem:[#allocation103_spill] sm:$0xff] %v14020_v1  ;;  %6242 = vperm.xlu2 %8869, %v14018_v54   ;;  %v6028_v1 = vmul.f32 1.442695, %v5946_v26  ;;  %v14052_v55 = vpop.eup %9584  ;;  %v6048_v52 = vmul.f32 1.442695, %v5956_v60  ;;  %v5963_v26 = vsub.f32 %v13281_v58, %v5835_v23 }
 0x721   : > { %17245 = vst [vmem:[#allocation108_spill] sm:$0xff] %v14046_v8  ;;  %v14060_v21 = vpop.eup %9586 }
 0x722   : > { %17247 = vst [vmem:[#allocation192_spill] sm:$0xff] %v14052_v55  ;;  %9588 = vpow2.f32 %v6028_v1  ;;  %v5838_v1 = vperm.slane %v13573_v18, 6  ;;  %v6062_v60 = vmul.f32 1.442695, %v5963_v26 }
 0x723   : > { %v14028_v49 = vpop.permute.xlu2 %4271  ;;  %6221 = vperm.xlu1 %8870, %v14025_v46   ;;  %9590 = vpow2.f32 %v6056_v48 }
 0x724   : > { %17241 = vst [vmem:[#allocation180_spill] sm:$0xff] %v14028_v49  ;;  %v5821_v49 = vperm.slane %v13518_v14, 5  ;;  %v5831_v14 = vperm.slane %v13531_v56, 7  ;;  %9592 = vpow2.f32 %v6048_v52 }
 0x725   : > { %6263 = vperm.xlu0 %8871, %v14031_v57   ;;  %v14036_v13 = vpop.permute.xlu1 %4201 }
 0x726   : > { %17243 = vst [vmem:[#allocation100_spill] sm:$0xff] %v14036_v13  ;;  %v5949_v62 = vsub.f32 %v13166_v29, %v5821_v49  ;;  %v5959_v29 = vsub.f32 %v13306_v35, %v5831_v14  ;;  %v5966_v14 = vsub.f32 %v13299_v19, %v5838_v1  ;;  %v17256_v1 = vld [vmem:[#allocation137_spill] sm:$0xff] }
 0x727   : > { %v14041_v27 = vpop.permute.xlu0 %4281 }
 0x728   : > { %17244 = vst [vmem:[#allocation84_spill] sm:$0xff] %v14041_v27  ;;  %6251 = vperm.xlu2 %8869, %v14039_v15   ;;  %v6034_v2 = vmul.f32 1.442695, %v5949_v62  ;;  %v14067_v49 = vpop.eup %9588  ;;  %v6054_v48 = vmul.f32 1.442695, %v5959_v29  ;;  %v5834_v62 = vperm.slane %v13573_v18, 2 }
 0x729   : > { %v14073_v58 = vpop.eup %9590  ;;  %v6068_v29 = vmul.f32 1.442695, %v5966_v14  ;;  %v17254_v27 = vld [vmem:[#allocation156_spill] sm:$0xff] }
 0x72a   : > { %9594 = vpow2.f32 %v6034_v2  ;;  %v14081_v52 = vpop.eup %9592  ;;  %v5846_v40 = vperm.slane %v17254_v27, 6 }
 0x72b   : > { %v14049_v13 = vpop.permute.xlu2 %4286  ;;  %6230 = vperm.xlu1 %8870, %v14046_v8   ;;  %9596 = vpow2.f32 %v6062_v60 }
 0x72c   : > { %17246 = vst [vmem:[#allocation193_spill] sm:$0xff] %v14049_v13  ;;  %v5824_v13 = vperm.slane %v13531_v56, 0  ;;  %9598 = vpow2.f32 %v6054_v48 }
 0x72d   : > { %6272 = vperm.xlu0 %8871, %v14052_v55   ;;  %v14057_v20 = vpop.permute.xlu1 %4216 }
 0x72e   : > { %17248 = vst [vmem:[#allocation99_spill] sm:$0xff] %v14057_v20  ;;  %v5952_v23 = vsub.f32 %v13187_v59, %v5824_v13  ;;  %v17253_v59 = vld [vmem:[#allocation121_spill] sm:$0xff] }
 0x72f   : > { %v14062_v42 = vpop.permute.xlu0 %4296  ;;  %v5962_v13 = vsub.f32 %v17253_v59, %v5834_v62  ;;  %v17258_v62 = vld [vmem:[#allocation124_spill] sm:$0xff] }
 0x730   : > { %17249 = vst [vmem:[#allocation104_spill] sm:$0xff] %v14062_v42  ;;  %6260 = vperm.xlu2 %8869, %v14060_v21   ;;  %v6040_v42 = vmul.f32 1.442695, %v5952_v23  ;;  %v14088_v2 = vpop.eup %9594  ;;  %v5837_v23 = vperm.slane %v13573_v18, 5  ;;  %v5849_v18 = vperm.slane %v17276_v61, 1 }
 0x731   : > { %v14094_v19 = vpop.eup %9596 }
 0x732   : > { %9600 = vpow2.f32 %v6040_v42  ;;  %v14102_v59 = vpop.eup %9598 }
 0x733   : > { %v14070_v20 = vpop.permute.xlu2 %4301  ;;  %6239 = vperm.xlu1 %8870, %v14067_v49   ;;  %9602 = vpow2.f32 %v6068_v29  ;;  %v17264_v29 = vld [vmem:[#allocation69_spill] sm:$0xff] }
 0x734   : > { %17250 = vst [vmem:[#allocation97_spill] sm:$0xff] %v14070_v20  ;;  %v5827_v20 = vperm.slane %v13531_v56, 3 }
 0x735   : > { %6281 = vperm.xlu0 %8871, %v14073_v58   ;;  %v14078_v35 = vpop.permute.xlu1 %4231 }
 0x736   : > { %17251 = vst [vmem:[#allocation136_spill] sm:$0xff] %v14078_v35  ;;  %v5841_v35 = vperm.slane %v17254_v27, 1  ;;  %v5955_v60 = vsub.f32 %v17256_v1, %v5827_v20  ;;  %v17260_v20 = vld [vmem:[#allocation131_spill] sm:$0xff]  ;;  %v5844_v1 = vperm.slane %v17254_v27, 4 }
 0x737   : > { %v14083_v26 = vpop.permute.xlu0 %4311  ;;  %v5965_v42 = vsub.f32 %v17260_v20, %v5837_v23  ;;  %v17266_v23 = vld [vmem:[#allocation118_spill] sm:$0xff] }
 0x738   : > { %17252 = vst [vmem:[#allocation95_spill] sm:$0xff] %v14083_v26  ;;  %6269 = vperm.xlu2 %8869, %v14081_v52   ;;  %v6060_v26 = vmul.f32 1.442695, %v5962_v13  ;;  %v5969_v14 = vsub.f32 %v17258_v62, %v5841_v35  ;;  %v6046_v39 = vmul.f32 1.442695, %v5955_v60  ;;  %v14109_v13 = vpop.eup %9600  ;;  %v5958_v62 = vsub.f32 %v17264_v29, %v5830_v45 }
 0x739   : > { %17261 = vst [vmem:[#allocation102_spill] sm:$0xff] %v14109_v13  ;;  %v14115_v35 = vpop.eup %9602  ;;  %v6066_v56 = vmul.f32 1.442695, %v5965_v42  ;;  %v5840_v60 = vperm.slane %v17254_v27, 0  ;;  %v5972_v20 = vsub.f32 %v17266_v23, %v5844_v1  ;;  %v5847_v29 = vperm.slane %v17254_v27, 7  ;;  %v17270_v1 = vld [vmem:[#allocation202_spill] sm:$0xff] }
 0x73a   : > { %9604 = vpow2.f32 %v6060_v26  ;;  %17263 = vst [vmem:[#allocation113_spill] sm:$0xff] %v14115_v35  ;;  %v5961_v23 = vsub.f32 %v17270_v1, %v5833_v11 }
 0x73b   : > { %v14091_v17 = vpop.permute.xlu2 %4316  ;;  %6248 = vperm.xlu1 %8870, %v14088_v2   ;;  %9606 = vpow2.f32 %v6046_v39  ;;  %v17269_v39 = vld [vmem:[#allocation152_spill] sm:$0xff] }
 0x73c   : > { %17255 = vst [vmem:[#allocation90_spill] sm:$0xff] %v14091_v17  ;;  %v5968_v45 = vsub.f32 %v17269_v39, %v5840_v60  ;;  %v17273_v60 = vld [vmem:[#allocation122_spill] sm:$0xff]  ;;  %v6058_v11 = vmul.f32 1.442695, %v5961_v23 }
 0x73d   : > { %6290 = vperm.xlu0 %8871, %v14094_v19   ;;  %v14099_v48 = vpop.permute.xlu1 %4246  ;;  %v5975_v39 = vsub.f32 %v17273_v60, %v5847_v29  ;;  %v17277_v29 = vld [vmem:[#allocation206_spill] sm:$0xff] }
 0x73e   : > { %17257 = vst [vmem:[#allocation112_spill] sm:$0xff] %v14099_v48  ;;  %v6074_v48 = vmul.f32 1.442695, %v5969_v14  ;;  %v6072_v4 = vmul.f32 1.442695, %v5968_v45  ;;  %v5964_v60 = vsub.f32 %v17277_v29, %v5836_v47 }
 0x73f   : > { %v14104_v17 = vpop.permute.xlu0 %4326 }
 0x740   : > { %17259 = vst [vmem:[#allocation109_spill] sm:$0xff] %v14104_v17  ;;  %6278 = vperm.xlu2 %8869, %v14102_v59   ;;  %9608 = vpow2.f32 %v6074_v48  ;;  %v14123_v14 = vpop.eup %9604  ;;  %v6052_v17 = vmul.f32 1.442695, %v5958_v62  ;;  %v5843_v62 = vperm.slane %v17254_v27, 3  ;;  %v6064_v47 = vmul.f32 1.442695, %v5964_v60 }
 0x741   : > { %17267 = vst [vmem:[#allocation199_spill] sm:$0xff] %v14123_v14  ;;  %9610 = vpow2.f32 %v6066_v56  ;;  %v14130_v42 = vpop.eup %9606 }
 0x742   : > { %9612 = vpow2.f32 %v6052_v17  ;;  %v17275_v17 = vld [vmem:[#allocation149_spill] sm:$0xff] }
 0x743   : > { %v14112_v22 = vpop.permute.xlu2 %4331  ;;  %6257 = vperm.xlu1 %8870, %v14109_v13   ;;  %v5971_v1 = vsub.f32 %v17275_v17, %v5843_v62  ;;  %v17305_v13 = vld [vmem:[#allocation133_spill] sm:$0xff] }
 0x744   : > { %17262 = vst [vmem:[#allocation196_spill] sm:$0xff] %v14112_v22 }
 0x745   : > { %6299 = vperm.xlu0 %8871, %v14115_v35   ;;  %v14120_v26 = vpop.permute.xlu1 %4261  ;;  %v6078_v23 = vmul.f32 1.442695, %v5971_v1 }
 0x746   : > { %17265 = vst [vmem:[#allocation93_spill] sm:$0xff] %v14120_v26  ;;  %v6080_v26 = vmul.f32 1.442695, %v5972_v20  ;;  %v14134_v48 = vpop.eup %9608 }
 0x747   : > { %v14125_v22 = vpop.permute.xlu0 %4341  ;;  %v14144_v20 = vpop.eup %9610 }
 0x748   : > { %17268 = vst [vmem:[#allocation143_spill] sm:$0xff] %v14125_v22  ;;  %6287 = vperm.xlu2 %8869, %v14123_v14   ;;  %9614 = vpow2.f32 %v6080_v26  ;;  %v14151_v45 = vpop.eup %9612  ;;  %v5852_v14 = vperm.slane %v17276_v61, 4 }
 0x749   : > { %17274 = vst [vmem:[#allocation194_spill] sm:$0xff] %v14144_v20  ;;  %9616 = vpow2.f32 %v6072_v4  ;;  %v17279_v4 = vld [vmem:[#allocation141_spill] sm:$0xff] }
 0x74a   : > { %9618 = vpow2.f32 %v6058_v11  ;;  %v17280_v11 = vld [vmem:[#allocation117_spill] sm:$0xff] }
 0x74b   : > { %6266 = vperm.xlu1 %8870, %v14130_v42   ;;  %v14137_v22 = vpop.permute.xlu2 %4346  ;;  %v5974_v1 = vsub.f32 %v17280_v11, %v5846_v40  ;;  %v17285_v40 = vld [vmem:[#allocation155_spill] sm:$0xff] }
 0x74c   : > { %17271 = vst [vmem:[#allocation106_spill] sm:$0xff] %v14137_v22  ;;  %v6086_v22 = vmul.f32 1.442695, %v5975_v39 }
 0x74d   : > { %6308 = vperm.xlu0 %8871, %v14134_v48   ;;  %v14141_v56 = vpop.permute.xlu1 %4276  ;;  %v6084_v30 = vmul.f32 1.442695, %v5974_v1 }
 0x74e   : > { %17272 = vst [vmem:[#allocation203_spill] sm:$0xff] %v14141_v56  ;;  %v5850_v56 = vperm.slane %v17276_v61, 2  ;;  %v14155_v26 = vpop.eup %9614  ;;  %9620 = vpow2.f32 %v6086_v22 }
 0x74f   : > { %v14146_v0 = vpop.permute.xlu0 %6185  ;;  %v14165_v39 = vpop.eup %9616  ;;  %9622 = vpow2.f32 %v6078_v23 }
 0x750   : > { %6296 = vperm.xlu2 %8869, %v14144_v20   ;;  %v5978_v62 = vsub.f32 %v17279_v4, %v5850_v56  ;;  %v14172_v29 = vpop.eup %9618  ;;  %v17283_v4 = vld [vmem:[#allocation127_spill] sm:$0xff]  ;;  %9624 = vpow2.f32 %v6064_v47  ;;  %v5842_v20 = vperm.slane %v17254_v27, 2  ;;  %v6376_v46 = vperm.slane %v14146_v0, %v17305_v13 }
 0x751   : > { %17281 = vst [vmem:[#allocation207_spill] sm:$0xff] %v14172_v29  ;;  %v5967_v51 = vsub.f32 %v17283_v4, %v5839_v12  ;;  %v17287_v12 = vld [vmem:[#allocation120_spill] sm:$0xff] }
 0x752   : > { %v6092_v56 = vmul.f32 1.442695, %v5978_v62  ;;  %v5977_v47 = vsub.f32 %v17287_v12, %v5849_v18 }
 0x753   : > { %6275 = vperm.xlu1 %8870, %v14151_v45   ;;  %v14163_v17 = vpop.permute.xlu2 %6188  ;;  %v6070_v62 = vmul.f32 1.442695, %v5967_v51  ;;  %v17288_v51 = vld [vmem:[#allocation126_spill] sm:$0xff] }
 0x754   : > { %v14176_v22 = vpop.eup %9620  ;;  %9626 = vpow2.f32 %v6092_v56 }
 0x755   : > { %6317 = vperm.xlu0 %8871, %v14155_v26   ;;  %v14160_v5 = vpop.permute.xlu1 %4291  ;;  %17282 = vst [vmem:[#allocation195_spill] sm:$0xff] %v14176_v22  ;;  %v14184_v11 = vpop.eup %9622  ;;  %9628 = vpow2.f32 %v6084_v30  ;;  %v17290_v30 = vld [vmem:[#allocation147_spill] sm:$0xff] }
 0x756   : > { %17278 = vst [vmem:[#allocation111_spill] sm:$0xff] %v14160_v5  ;;  %v5853_v5 = vperm.slane %v17276_v61, 5  ;;  %v14193_v4 = vpop.eup %9624  ;;  %9630 = vpow2.f32 %v6070_v62 }
 0x757   : > { %v14167_v44 = vpop.permute.xlu0 %6194  ;;  %17286 = vst [vmem:[#allocation130_spill] sm:$0xff] %v14184_v11 }
 0x758   : > { %6305 = vperm.xlu2 %8869, %v14165_v39   ;;  %v5981_v23 = vsub.f32 %v17285_v40, %v5853_v5  ;;  %v5856_v5 = vperm.slane %v13583_v43, 0  ;;  %v5970_v40 = vsub.f32 %v17288_v51, %v5842_v20  ;;  %v5980_v20 = vsub.f32 %v17292_v10, %v5852_v14 }
 0x75a   : > { %v14197_v56 = vpop.eup %9626  ;;  %v5984_v12 = vsub.f32 %v17290_v30, %v5856_v5  ;;  %v6076_v24 = vmul.f32 1.442695, %v5970_v40  ;;  %v5855_v40 = vperm.slane %v17276_v61, 7  ;;  %v6096_v10 = vmul.f32 1.442695, %v5980_v20 }
 0x75b   : > { %6284 = vperm.xlu1 %8870, %v14172_v29   ;;  %v14187_v28 = vpop.permute.xlu2 %6197  ;;  %v5845_v29 = vperm.slane %v17254_v27, 5  ;;  %v17294_v27 = vld [vmem:[#allocation115_spill] sm:$0xff] }
 0x75c   : > { %v6104_v51 = vmul.f32 1.442695, %v5984_v12  ;;  %v5983_v57 = vsub.f32 %v17297_v38, %v5855_v40 }
 0x75d   : > { %6326 = vperm.xlu0 %8871, %v14176_v22   ;;  %v14181_v60 = vpop.permute.xlu1 %4306  ;;  %v5973_v5 = vsub.f32 %v17294_v27, %v5845_v29 }
 0x75e   : > { %17284 = vst [vmem:[#allocation134_spill] sm:$0xff] %v14181_v60  ;;  %v6098_v60 = vmul.f32 1.442695, %v5981_v23  ;;  %v14205_v23 = vpop.eup %9628 }
 0x75f   : > { %v14191_v1 = vpop.permute.xlu0 %6200  ;;  %17291 = vst [vmem:[#allocation197_spill] sm:$0xff] %v14205_v23  ;;  %v14210_v62 = vpop.eup %9630 }
 0x760   : > { %6314 = vperm.xlu2 %8869, %v14184_v11   ;;  %v6090_v11 = vmul.f32 1.442695, %v5977_v47  ;;  %9632 = vpow2.f32 %v6098_v60  ;;  %v5859_v47 = vperm.slane %v13583_v43, 3 }
 0x762   : > { %9634 = vpow2.f32 %v6090_v11  ;;  %v17296_v11 = vld [vmem:[#allocation162_spill] sm:$0xff] }
 0x763   : > { %6293 = vperm.xlu1 %8870, %v14193_v4   ;;  %v14213_v55 = vpop.permute.xlu2 %6206  ;;  %9636 = vpow2.f32 %v6076_v24  ;;  %v5987_v30 = vsub.f32 %v17296_v11, %v5859_v47  ;;  %v5862_v24 = vperm.slane %v13583_v43, 6  ;;  %v6102_v47 = vmul.f32 1.442695, %v5983_v57  ;;  %v17300_v11 = vld [vmem:[#allocation160_spill] sm:$0xff] }
 0x764   : > { %9638 = vpow2.f32 %v6104_v51 }
 0x765   : > { %6335 = vperm.xlu0 %8871, %v14197_v56   ;;  %v14202_v18 = vpop.permute.xlu1 %4321  ;;  %9640 = vpow2.f32 %v6096_v10  ;;  %v6110_v20 = vmul.f32 1.442695, %v5987_v30  ;;  %v5990_v38 = vsub.f32 %v17300_v11, %v5862_v24 }
 0x766   : > { %17289 = vst [vmem:[#allocation198_spill] sm:$0xff] %v14202_v18  ;;  %v14218_v60 = vpop.eup %9632 }
 0x767   : > { %v14215_v18 = vpop.permute.xlu0 %6209  ;;  %17293 = vst [vmem:[#allocation212_spill] sm:$0xff] %v14218_v60  ;;  %v6116_v30 = vmul.f32 1.442695, %v5990_v38 }
 0x768   : > { %6323 = vperm.xlu2 %8869, %v14205_v23   ;;  %v14226_v12 = vpop.eup %9634  ;;  %v6082_v23 = vmul.f32 1.442695, %v5973_v5  ;;  %v6384_v22 = vperm.slane %v14215_v18, %v17305_v13 }
 0x769   : > { %v14230_v29 = vpop.eup %9636 }
 0x76a   : > { %v14234_v27 = vpop.eup %9638  ;;  %9642 = vpow2.f32 %v6082_v23 }
 0x76b   : > { %6302 = vperm.xlu1 %8870, %v14210_v62   ;;  %17298 = vst [vmem:[#allocation200_spill] sm:$0xff] %v14234_v27  ;;  %9644 = vpow2.f32 %v6110_v20  ;;  %v14240_v40 = vpop.eup %9640 }
 0x76c   : > { %17301 = vst [vmem:[#allocation205_spill] sm:$0xff] %v14240_v40  ;;  %9646 = vpow2.f32 %v6102_v47 }
 0x76d   : > { %6344 = vperm.xlu0 %8871, %v14218_v60   ;;  %v14223_v14 = vpop.permute.xlu1 %4336  ;;  %9648 = vpow2.f32 %v6116_v30 }
 0x76e   : > { %17295 = vst [vmem:[#allocation201_spill] sm:$0xff] %v14223_v14  ;;  %v6216_v14 = vpop.permute.xlu2 %6215 }
 0x76f   : > { %v6219_v51 = vpop.permute.xlu0 %6218 }
 0x770   : > { %6332 = vperm.xlu2 %8869, %v14226_v12   ;;  %v14243_v10 = vpop.eup %9642 }
 0x771   : > { %v14246_v23 = vpop.eup %9644 }
 0x772   : > { %17302 = vst [vmem:[#allocation204_spill] sm:$0xff] %v14246_v23 }
 0x773   : > { %6311 = vperm.xlu1 %8870, %v14230_v29  }
 0x775   : > { %6353 = vperm.xlu0 %8871, %v14234_v27   ;;  %v14237_v5 = vpop.permute.xlu1 %4351 }
 0x776   : > { %17299 = vst [vmem:[#allocation146_spill] sm:$0xff] %v14237_v5  ;;  %v6225_v60 = vpop.permute.xlu2 %6224  ;;  %v14249_v5 = vpop.eup %9646 }
 0x777   : > { %17303 = vst [vmem:[#allocation217_spill] sm:$0xff] %v14249_v5  ;;  %v6228_v24 = vpop.permute.xlu0 %6227  ;;  %v14252_v20 = vpop.eup %9648 }
 0x778   : > { %6341 = vperm.xlu2 %8869, %v14240_v40   ;;  %17304 = vst [vmem:[#allocation209_spill] sm:$0xff] %v14252_v20 }
 0x77b   : > { %6320 = vperm.xlu1 %8870, %v14243_v10  }
 0x77d   : > { %6362 = vperm.xlu0 %8871, %v14246_v23   ;;  %v6192_v57 = vpop.permute.xlu1 %6191  ;;  %v6377_v23 = vperm.slane %v14163_v17, %v17305_v13 }
 0x77e   : > { %v6234_v11 = vpop.permute.xlu2 %6233  ;;  %v6378_v30 = vperm.slane %v6192_v57, %v17305_v13  ;;  %v6380_v57 = vperm.slane %v14187_v28, %v17305_v13  ;;  %v6387_v28 = vperm.slane %v6219_v51, %v17305_v13 }
 0x77f   : > { %v6237_v38 = vpop.permute.xlu0 %6236  ;;  %v6392_v51 = vperm.slane %v6234_v11, %v17305_v13 }
 0x780   : > { %6350 = vperm.xlu2 %8869, %v14249_v5   ;;  %v6440_v5 = vsel %vm2034_vm3, %v6377_v23, %v6376_v46 }
 0x781   : > { %v6441_v16 = vsel %vm2036_vm4, %v6378_v30, %v6440_v5  ;;  %v6386_v5 = vperm.slane %v6216_v14, %v17305_v13 }
 0x785   : > { %6371 = vperm.xlu0 %8871, %v14252_v20   ;;  %v6204_v47 = vpop.permute.xlu1 %6203  ;;  %v6379_v20 = vperm.slane %v14167_v44, %v17305_v13 }
 0x786   : > { %v6243_v27 = vpop.permute.xlu2 %6242  ;;  %v6382_v23 = vperm.slane %v6204_v47, %v17305_v13  ;;  %v6393_v47 = vperm.slane %v6237_v38, %v17305_v13 }
 0x787   : > { %v6246_v8 = vpop.permute.xlu0 %6245  ;;  %v6442_v17 = vsel %vm2038_vm5, %v6379_v20, %v6441_v16 }
 0x788   : > { %v6443_v44 = vsel %vm2040_vm6, %v6380_v57, %v6442_v17  ;;  %v6454_v38 = vsel %vm2034_vm3, %v6393_v47, %v6392_v51 }
 0x78d   : > { %v6213_v40 = vpop.permute.xlu1 %6212 }
 0x78e   : > { %v6385_v63 = vperm.slane %v6213_v40, %v17305_v13  ;;  %v6252_v50 = vpop.permute.xlu2 %6251  ;;  %v6381_v40 = vperm.slane %v14191_v1, %v17305_v13  ;;  %v6389_v1 = vperm.slane %v6225_v60, %v17305_v13 }
 0x78f   : > { %v6255_v35 = vpop.permute.xlu0 %6254 }
 0x790   : > { %v6447_v0 = vsel %vm2034_vm3, %v6385_v63, %v6384_v22  ;;  %v6444_v20 = vsel %vm2042_vm7, %v6381_v40, %v6443_v44  ;;  %v6383_v22 = vperm.slane %v14213_v55, %v17305_v13  ;;  %v6390_v44 = vperm.slane %v6228_v24, %v17305_v13 }
 0x791   : > { %v6448_v18 = vsel %vm2036_vm4, %v6386_v5, %v6447_v0  ;;  %v6445_v63 = vsel %vm2044_vm8, %v6382_v23, %v6444_v20 }
 0x792   : > { %v6449_v14 = vsel %vm2038_vm5, %v6387_v28, %v6448_v18  ;;  %v6395_v18 = vperm.slane %v6243_v27, %v17305_v13  ;;  %v6399_v27 = vperm.slane %v6255_v35, %v17305_v13 }
 0x795   : > { %v6222_v7 = vpop.permute.xlu1 %6221 }
 0x796   : > { %v6388_v16 = vperm.slane %v6222_v7, %v17305_v13  ;;  %v6446_v7 = vsel %vm2046_vm9, %v6383_v22, %v6445_v63  ;;  %v6261_v57 = vpop.permute.xlu2 %6260  ;;  %v6398_v22 = vperm.slane %v6252_v50, %v17305_v13 }
 0x797   : > { %v6264_v5 = vpop.permute.xlu0 %6263  ;;  %v6504_v40 = vsel %vm5767_vm12, %v6446_v7, 0.0 }
 0x798   : > { %v6450_v30 = vsel %vm2040_vm6, %v6388_v16, %v6449_v14 }
 0x799   : > { %v6451_v55 = vsel %vm2042_vm7, %v6389_v1, %v6450_v30 }
 0x79a   : > { %v6452_v11 = vsel %vm2044_vm8, %v6390_v44, %v6451_v55 }
 0x79d   : > { %v6231_v46 = vpop.permute.xlu1 %6230 }
 0x79e   : > { %v6391_v23 = vperm.slane %v6231_v46, %v17305_v13  ;;  %v6396_v46 = vperm.slane %v6246_v8, %v17305_v13  ;;  %v6270_v47 = vpop.permute.xlu2 %6269 }
 0x79f   : > { %v6273_v1 = vpop.permute.xlu0 %6272 }
 0x7a0   : > { %v6453_v16 = vsel %vm2046_vm9, %v6391_v23, %v6452_v11  ;;  %v6401_v23 = vperm.slane %v6261_v57, %v17305_v13  ;;  %v6404_v11 = vperm.slane %v6270_v47, %v17305_v13 }
 0x7a1   : > { %v6507_v63 = vsel %vm5767_vm12, %v6453_v16, 0.0 }
 0x7a5   : > { %v6240_v17 = vpop.permute.xlu1 %6239 }
 0x7a6   : > { %v6394_v0 = vperm.slane %v6240_v17, %v17305_v13  ;;  %v6279_v50 = vpop.permute.xlu2 %6278 }
 0x7a7   : > { %v6282_v55 = vpop.permute.xlu0 %6281 }
 0x7a8   : > { %v6455_v60 = vsel %vm2036_vm4, %v6394_v0, %v6454_v38  ;;  %v6402_v38 = vperm.slane %v6264_v5, %v17305_v13 }
 0x7a9   : > { %6505 = vadd.xlane.f32.xlu2 %v6504_v40  ;;  %v6456_v28 = vsel %vm2038_vm5, %v6395_v18, %v6455_v60 }
 0x7aa   : > { %v6457_v14 = vsel %vm2040_vm6, %v6396_v46, %v6456_v28  ;;  %v6405_v46 = vperm.slane %v6273_v1, %v17305_v13 }
 0x7ad   : > { %v6249_v20 = vpop.permute.xlu1 %6248 }
 0x7ae   : > { %v6397_v24 = vperm.slane %v6249_v20, %v17305_v13  ;;  %v6288_v16 = vpop.permute.xlu2 %6287 }
 0x7af   : > { %6508 = vadd.xlane.f32.xlu0 %v6507_v63  ;;  %v6291_v57 = vpop.permute.xlu0 %6290  ;;  %v6407_v63 = vperm.slane %v6279_v50, %v17305_v13 }
 0x7b0   : > { %v6458_v30 = vsel %vm2042_vm7, %v6397_v24, %v6457_v14 }
 0x7b1   : > { %v6459_v17 = vsel %vm2044_vm8, %v6398_v22, %v6458_v30 }
 0x7b2   : > { %v6460_v8 = vsel %vm2046_vm9, %v6399_v27, %v6459_v17 }
 0x7b3   : > { %v6510_v7 = vsel %vm5767_vm12, %v6460_v8, 0.0  ;;  %v6408_v8 = vperm.slane %v6282_v55, %v17305_v13 }
 0x7b4   : > { %6511 = vadd.xlane.f32.xlu1 %v6510_v7 }
 0x7b5   : > { %v6258_v51 = vpop.permute.xlu1 %6257 }
 0x7b6   : > { %v6400_v0 = vperm.slane %v6258_v51, %v17305_v13  ;;  %v6297_v30 = vpop.permute.xlu2 %6296  ;;  %v6410_v51 = vperm.slane %v6288_v16, %v17305_v13 }
 0x7b7   : > { %v6300_v1 = vpop.permute.xlu0 %6299 }
 0x7b8   : > { %v6461_v35 = vsel %vm2034_vm3, %v6401_v23, %v6400_v0  ;;  %v6411_v23 = vperm.slane %v6291_v57, %v17305_v13 }
 0x7b9   : > { %v6462_v60 = vsel %vm2036_vm4, %v6402_v38, %v6461_v35 }
 0x7bd   : > { %v6267_v44 = vpop.permute.xlu1 %6266 }
 0x7be   : > { %v6403_v40 = vperm.slane %v6267_v44, %v17305_v13  ;;  %v6306_v44 = vpop.permute.xlu2 %6305 }
 0x7c0   : > { %v6463_v18 = vsel %vm2038_vm5, %v6403_v40, %v6462_v60  ;;  %v6309_v40 = vpop.permute.xlu0 %6308 }
 0x7c1   : > { %v6464_v28 = vsel %vm2040_vm6, %v6404_v11, %v6463_v18  ;;  %v6413_v18 = vperm.slane %v6297_v30, %v17305_v13  ;;  %v6414_v11 = vperm.slane %v6300_v1, %v17305_v13 }
 0x7c2   : > { %v6465_v5 = vsel %vm2042_vm7, %v6405_v46, %v6464_v28 }
 0x7c5   : > { %v6276_v20 = vpop.permute.xlu1 %6275 }
 0x7c6   : > { %v6406_v24 = vperm.slane %v6276_v20, %v17305_v13 }
 0x7c8   : > { %v6466_v22 = vsel %vm2044_vm8, %v6406_v24, %v6465_v5  ;;  %v6315_v24 = vpop.permute.xlu2 %6314  ;;  %v6417_v5 = vperm.slane %v6309_v40, %v17305_v13 }
 0x7c9   : > { %v6467_v14 = vsel %vm2046_vm9, %v6407_v63, %v6466_v22  ;;  %v6318_v63 = vpop.permute.xlu0 %6317 }
 0x7ca   : > { %v6513_v27 = vsel %vm5767_vm12, %v6467_v14, 0.0  ;;  %v6416_v14 = vperm.slane %v6306_v44, %v17305_v13 }
 0x7cb   : > { %6514 = vadd.xlane.f32.xlu2 %v6513_v27 }
 0x7cd   : > { %v6285_v47 = vpop.permute.xlu1 %6284 }
 0x7ce   : > { %v6409_v17 = vperm.slane %v6285_v47, %v17305_v13  ;;  %v6475_v47 = vsel %vm2034_vm3, %v6417_v5, %v6416_v14 }
 0x7d0   : > { %v6468_v7 = vsel %vm2034_vm3, %v6409_v17, %v6408_v8  ;;  %v6419_v17 = vperm.slane %v6315_v24, %v17305_v13  ;;  %v6324_v1 = vpop.permute.xlu2 %6323  ;;  %v5854_v24 = vperm.slane %v17276_v61, 6 }
 0x7d1   : > { %v6469_v0 = vsel %vm2036_vm4, %v6410_v51, %v6468_v7  ;;  %v6420_v7 = vperm.slane %v6318_v63, %v17305_v13  ;;  %v6327_v51 = vpop.permute.xlu0 %6326 }
 0x7d2   : > { %v6470_v38 = vsel %vm2038_vm5, %v6411_v23, %v6469_v0  ;;  %v6422_v23 = vperm.slane %v6324_v1, %v17305_v13  ;;  %v6423_v44 = vperm.slane %v6327_v51, %v17305_v13  ;;  %v5860_v51 = vperm.slane %v13583_v43, 4 }
 0x7d5   : > { %v6294_v50 = vpop.permute.xlu1 %6293 }
 0x7d6   : > { %v6412_v35 = vperm.slane %v6294_v50, %v17305_v13 }
 0x7d8   : > { %v6471_v60 = vsel %vm2040_vm6, %v6412_v35, %v6470_v38 }
 0x7d9   : > { %v6472_v55 = vsel %vm2042_vm7, %v6413_v18, %v6471_v60 }
 0x7da   : > { %v6473_v46 = vsel %vm2044_vm8, %v6414_v11, %v6472_v55  ;;  %v5848_v55 = vperm.slane %v17276_v61, 0  ;;  %v17306_v11 = vld [vmem:[#allocation138_spill] sm:$0xff] }
 0x7dd   : > { %v6303_v16 = vpop.permute.xlu1 %6302 }
 0x7de   : > { %v6415_v28 = vperm.slane %v6303_v16, %v17305_v13  ;;  %v5976_v16 = vsub.f32 %v17306_v11, %v5848_v55  ;;  %v17311_v55 = vld [vmem:[#allocation154_spill] sm:$0xff] }
 0x7e0   : > { %v6474_v57 = vsel %vm2046_vm9, %v6415_v28, %v6473_v46  ;;  %v5851_v28 = vperm.slane %v17276_v61, 3  ;;  %v6088_v46 = vmul.f32 1.442695, %v5976_v16  ;;  %v17309_v61 = vld [vmem:[#allocation150_spill] sm:$0xff] }
 0x7e1   : > { %v6516_v20 = vsel %vm5767_vm12, %v6474_v57, 0.0  ;;  %v17307_v57 = vld [vmem:[#allocation148_spill] sm:$0xff] }
 0x7e2   : > { %6517 = vadd.xlane.f32.xlu0 %v6516_v20  ;;  %v5979_v20 = vsub.f32 %v17307_v57, %v5851_v28  ;;  %9650 = vpow2.f32 %v6088_v46 }
 0x7e4   : > { %v6094_v63 = vmul.f32 1.442695, %v5979_v20 }
 0x7e5   : > { %v6312_v22 = vpop.permute.xlu1 %6311 }
 0x7e6   : > { %v6418_v27 = vperm.slane %v6312_v22, %v17305_v13  ;;  %v17308_v22 = vld [vmem:[#allocation158_spill] sm:$0xff]  ;;  %9652 = vpow2.f32 %v6094_v63 }
 0x7e7   : > { %v5982_v14 = vsub.f32 %v17308_v22, %v5854_v24 }
 0x7e8   : > { %v6476_v30 = vsel %vm2036_vm4, %v6418_v27, %v6475_v47  ;;  %v14363_v5 = vpop.eup %9650  ;;  %v14367_v27 = vpop.permute.xlu2 %6332 }
 0x7e9   : > { %v6477_v8 = vsel %vm2038_vm5, %v6419_v17, %v6476_v30  ;;  %v6100_v47 = vmul.f32 1.442695, %v5982_v14  ;;  %v5857_v30 = vperm.slane %v13583_v43, 1  ;;  %v14370_v17 = vpop.permute.xlu0 %6335 }
 0x7ea   : > { %v6478_v35 = vsel %vm2040_vm6, %v6420_v7, %v6477_v8 }
 0x7eb   : > { %v5985_v8 = vsub.f32 %v17309_v61, %v5857_v30  ;;  %9654 = vpow2.f32 %v6100_v47 }
 0x7ec   : > { %v14372_v1 = vpop.eup %9652 }
 0x7ed   : > { %v6321_v0 = vpop.permute.xlu1 %6320 }
 0x7ee   : > { %v6421_v50 = vperm.slane %v6321_v0, %v17305_v13  ;;  %v6106_v0 = vmul.f32 1.442695, %v5985_v8 }
 0x7f0   : > { %v6479_v38 = vsel %vm2042_vm7, %v6421_v50, %v6478_v35  ;;  %v14376_v7 = vpop.permute.xlu2 %6341  ;;  %v17310_v35 = vld [vmem:[#allocation157_spill] sm:$0xff]  ;;  %9656 = vpow2.f32 %v6106_v0 }
 0x7f1   : > { %v6480_v40 = vsel %vm2044_vm8, %v6422_v23, %v6479_v38  ;;  %v14379_v50 = vpop.eup %9654  ;;  %v14381_v23 = vpop.permute.xlu0 %6344  ;;  %v5863_v38 = vperm.slane %v13583_v43, 7 }
 0x7f2   : > { %v6481_v60 = vsel %vm2046_vm9, %v6423_v44, %v6480_v40  ;;  %v5988_v44 = vsub.f32 %v17310_v35, %v5860_v51 }
 0x7f3   : > { %v6519_v18 = vsel %vm5767_vm12, %v6481_v60, 0.0  ;;  %v5991_v11 = vsub.f32 %v17311_v55, %v5863_v38 }
 0x7f4   : > { %6520 = vadd.xlane.f32.xlu1 %v6519_v18  ;;  %v6112_v40 = vmul.f32 1.442695, %v5988_v44 }
 0x7f5   : > { %v6118_v28 = vmul.f32 1.442695, %v5991_v11 }
 0x7f6   : > { %v14388_v18 = vpop.eup %9656  ;;  %9658 = vpow2.f32 %v6112_v40 }
 0x7f7   : > { %9660 = vpow2.f32 %v6118_v28 }
 0x7f8   : > { %v14386_v60 = vpop.permute.xlu2 %6350 }
 0x7f9   : > { %v14392_v16 = vpop.permute.xlu0 %6353 }
 0x7fc   : > { %v14394_v57 = vpop.eup %9658 }
 0x7fd   : > { %v14399_v24 = vpop.eup %9660 }
 0x7fe   : > { %17312 = vst [vmem:[#allocation208_spill] sm:$0xff] %v14399_v24 }
 0x801   : > { %v14397_v20 = vpop.permute.xlu0 %6362 }
 0x809   : > { %v14405_v14 = vpop.permute.xlu0 %6371 }
 0x80d   : > { %6329 = vperm.xlu1 %8870, %v14363_v5  }
 0x815   : > { %6338 = vperm.xlu1 %8870, %v14372_v1  }
 0x81c   : > { %v6506_v46 = vpop.xlane.xlu2 %6505 }
 0x81d   : > { %6347 = vperm.xlu1 %8870, %v14379_v50   ;;  %9662 = vrcp.f32 %v6506_v46 }
 0x822   : > { %v6509_v61 = vpop.xlane.xlu0 %6508 }
 0x823   : > { %v14401_v63 = vpop.eup %9662  ;;  %9664 = vrcp.f32 %v6509_v61 }
 0x824   : > { %v6544_v22 = vperm.slane %v14401_v63, 0  ;;  %v6548_v30 = vperm.slane %v14401_v63, 4  ;;  %v6551_v51 = vperm.slane %v14401_v63, 7 }
 0x825   : > { %6356 = vperm.xlu1 %8870, %v14388_v18  }
 0x826   : > { %v6672_v47 = vmul.f32 %v13854_v31, %v6544_v22  ;;  %v6676_v8 = vmul.f32 %v13913_v32, %v6548_v30  ;;  %v6679_v0 = vmul.f32 %v13934_v36, %v6551_v51 }
 0x827   : > { %v6512_v38 = vpop.xlane.xlu1 %6511 }
 0x828   : > { %9666 = vrcp.f32 %v6512_v38 }
 0x829   : > { %v14412_v35 = vpop.eup %9664 }
 0x82a   : > { %v6554_v44 = vperm.slane %v14412_v35, 2  ;;  %v6557_v40 = vperm.slane %v14412_v35, 5 }
 0x82c   : > { %v6682_v31 = vmul.f32 %v13955_v41, %v6554_v44  ;;  %v6685_v32 = vmul.f32 %v13976_v25, %v6557_v40  ;;  %v6426_v44 = vperm.slane %v14370_v17, %v17305_v13 }
 0x82d   : > { %6365 = vperm.xlu1 %8870, %v14394_v57  }
 0x82e   : > { %v14418_v11 = vpop.eup %9666 }
 0x82f   : > { %v6560_v36 = vperm.slane %v14418_v11, 0  ;;  %v6566_v51 = vperm.slane %v14418_v11, 6 }
 0x831   : > { %v6688_v28 = vmul.f32 %v13997_v34, %v6560_v36  ;;  %v6694_v38 = vmul.f32 %v14039_v15, %v6566_v51  ;;  %v5858_v51 = vperm.slane %v13583_v43, 2 }
 0x835   : > { %6374 = vperm.xlu1 %8870, %v14399_v24  }
 0x83d   : > { %6750 = vperm.xlu1 %8870, %v6672_v47   ;;  %v6563_v47 = vperm.slane %v14418_v11, 3 }
 0x83e   : > { %v6515_v55 = vpop.xlane.xlu2 %6514 }
 0x83f   : > { %9668 = vrcp.f32 %v6515_v55  ;;  %v6691_v25 = vmul.f32 %v14018_v54, %v6563_v47 }
 0x845   : > { %6770 = vperm.xlu1 %8870, %v6676_v8   ;;  %v14422_v46 = vpop.eup %9668 }
 0x846   : > { %v6569_v41 = vperm.slane %v14422_v46, 1  ;;  %v6572_v61 = vperm.slane %v14422_v46, 4  ;;  %v6575_v40 = vperm.slane %v14422_v46, 7 }
 0x848   : > { %v6697_v22 = vmul.f32 %v14060_v21, %v6569_v41  ;;  %v6700_v8 = vmul.f32 %v14081_v52, %v6572_v61  ;;  %v6703_v15 = vmul.f32 %v14102_v59, %v6575_v40 }
 0x84d   : > { %6785 = vperm.xlu1 %8870, %v6679_v0   ;;  %v6425_v0 = vperm.slane %v14367_v27, %v17305_v13  ;;  %v6428_v27 = vperm.slane %v14376_v7, %v17305_v13  ;;  %v6431_v7 = vperm.slane %v14386_v60, %v17305_v13  ;;  %v17313_v60 = vld [vmem:[#allocation166_spill] sm:$0xff] }
 0x855   : > { %6800 = vperm.xlu1 %8870, %v6682_v31  }
 0x85d   : > { %6815 = vperm.xlu1 %8870, %v6685_v32   ;;  %v6429_v32 = vperm.slane %v14381_v23, %v17305_v13 }
 0x865   : > { %6830 = vperm.xlu1 %8870, %v6688_v28  }
 0x867   : > { %v6521_v30 = vpop.xlane.xlu1 %6520 }
 0x868   : > { %9670 = vrcp.f32 %v6521_v30  ;;  %v6518_v30 = vpop.xlane.xlu0 %6517 }
 0x869   : > { %9672 = vrcp.f32 %v6518_v30  ;;  %v6562_v30 = vperm.slane %v14418_v11, 2 }
 0x86d   : > { %6875 = vperm.xlu1 %8870, %v6697_v22  }
 0x86e   : > { %v14448_v28 = vpop.eup %9670 }
 0x86f   : > { %v6584_v47 = vperm.slane %v14448_v28, 0 }
 0x871   : > { %v6712_v61 = vmul.f32 %v14165_v39, %v6584_v47 }
 0x875   : > { %6845 = vperm.xlu1 %8870, %v6691_v25  }
 0x87d   : > { %6890 = vperm.xlu1 %8870, %v6700_v8  }
 0x87f   : > { %v6330_v34 = vpop.permute.xlu1 %6329 }
 0x880   : > { %v6424_v21 = vperm.slane %v6330_v34, %v17305_v13  ;;  %v6586_v34 = vperm.slane %v14448_v28, 2 }
 0x882   : > { %v6482_v54 = vsel %vm2034_vm3, %v6425_v0, %v6424_v21  ;;  %v6714_v0 = vmul.f32 %v14230_v29, %v6586_v34  ;;  %v14462_v21 = vpop.eup %9672 }
 0x883   : > { %v6483_v31 = vsel %vm2036_vm4, %v6426_v44, %v6482_v54  ;;  %v5986_v44 = vsub.f32 %v17313_v60, %v5858_v51  ;;  %v6580_v39 = vperm.slane %v14462_v21, 4  ;;  %v5861_v54 = vperm.slane %v13583_v43, 5 }
 0x884   : > { %v6583_v43 = vperm.slane %v14462_v21, 7  ;;  %v6576_v51 = vperm.slane %v14462_v21, 0 }
 0x885   : > { %6860 = vperm.xlu1 %8870, %v6694_v38   ;;  %v6108_v38 = vmul.f32 1.442695, %v5986_v44 }
 0x887   : > { %v6339_v52 = vpop.permute.xlu1 %6338  ;;  %9674 = vpow2.f32 %v6108_v38 }
 0x888   : > { %v6427_v55 = vperm.slane %v6339_v52, %v17305_v13  ;;  %v17314_v52 = vld [vmem:[#allocation165_spill] sm:$0xff] }
 0x889   : > { %v5989_v40 = vsub.f32 %v17314_v52, %v5861_v54 }
 0x88a   : > { %v6484_v17 = vsel %vm2038_vm5, %v6427_v55, %v6483_v31  ;;  %v6708_v31 = vmul.f32 %v14193_v4, %v6580_v39  ;;  %v6589_v55 = vperm.slane %v14448_v28, 5  ;;  %v6432_v39 = vperm.slane %v14392_v16, %v17305_v13 }
 0x88b   : > { %v6485_v36 = vsel %vm2040_vm6, %v6428_v27, %v6484_v17  ;;  %v6114_v27 = vmul.f32 1.442695, %v5989_v40  ;;  %v6711_v17 = vmul.f32 %v14210_v62, %v6583_v43  ;;  %v6555_v62 = vperm.slane %v14412_v35, 3 }
 0x88c   : > { %v6486_v41 = vsel %vm2042_vm7, %v6429_v32, %v6485_v36  ;;  %v6717_v29 = vmul.f32 %v14243_v10, %v6589_v55  ;;  %v6545_v36 = vperm.slane %v14401_v63, 1  ;;  %v6549_v10 = vperm.slane %v14401_v63, 5 }
 0x88d   : > { %6905 = vperm.xlu1 %8870, %v6703_v15   ;;  %v14471_v32 = vpop.eup %9674  ;;  %9676 = vpow2.f32 %v6114_v27 }
 0x88e   : > { %v6673_v15 = vmul.f32 %v13896_v3, %v6545_v36 }
 0x88f   : > { %v6348_v22 = vpop.permute.xlu1 %6347 }
 0x890   : > { %v6430_v25 = vperm.slane %v6348_v22, %v17305_v13  ;;  %v6552_v22 = vperm.slane %v14412_v35, 0 }
 0x892   : > { %v6487_v23 = vsel %vm2044_vm8, %v6430_v25, %v6486_v41  ;;  %v6677_v41 = vmul.f32 %v13889_v37, %v6549_v10  ;;  %v6680_v47 = vmul.f32 %v13906_v33, %v6552_v22  ;;  %v6683_v25 = vmul.f32 %v13926_v6, %v6555_v62 }
 0x893   : > { %v6488_v59 = vsel %vm2046_vm9, %v6431_v7, %v6487_v23  ;;  %v14476_v4 = vpop.eup %9676  ;;  %v6558_v7 = vperm.slane %v14412_v35, 6  ;;  %v6561_v23 = vperm.slane %v14418_v11, 1  ;;  %v6690_v33 = vmul.f32 %v14067_v49, %v6562_v30  ;;  %v17316_v30 = vld [vmem:[#allocation58_spill] sm:$0xff] }
 0x894   : > { %v6522_v8 = vsel %vm5767_vm12, %v6488_v59, 0.0  ;;  %v6565_v59 = vperm.slane %v14418_v11, 5 }
 0x895   : > { %6950 = vperm.xlu1 %8870, %v6712_v61   ;;  %6523 = vadd.xlane.f32.xlu2 %v6522_v8  ;;  %v6686_v3 = vmul.f32 %v13947_v9, %v6558_v7  ;;  %v6689_v37 = vmul.f32 %v13968_v53, %v6561_v23  ;;  %v6571_v61 = vperm.slane %v14422_v46, 3  ;;  %v6574_v8 = vperm.slane %v14422_v46, 6 }
 0x896   : > { %v6693_v9 = vmul.f32 %v14088_v2, %v6565_v59  ;;  %v6585_v2 = vperm.slane %v14448_v28, 1  ;;  %v6547_v59 = vperm.slane %v14401_v63, 3 }
 0x897   : > { %v6699_v6 = vmul.f32 %v14130_v42, %v6571_v61  ;;  %v6702_v53 = vmul.f32 %v14151_v45, %v6574_v8  ;;  %v6357_v34 = vpop.permute.xlu1 %6356  ;;  %v17317_v61 = vld [vmem:[#allocation195_spill] sm:$0xff]  ;;  %v6550_v8 = vperm.slane %v14401_v63, 6 }
 0x898   : > { %v6433_v42 = vperm.slane %v6357_v34, %v17305_v13  ;;  %v6713_v55 = vmul.f32 %v14134_v48, %v6585_v2 }
 0x89d   : > { %6960 = vperm.xlu1 %8870, %v6714_v0   ;;  %v6704_v0 = vmul.f32 %v14073_v58, %v6576_v51  ;;  %v6489_v58 = vsel %vm2034_vm3, %v6433_v42, %v6432_v39  ;;  %v6553_v51 = vperm.slane %v14412_v35, 1  ;;  %v6556_v42 = vperm.slane %v14412_v35, 4 }
 0x89e   : > { %v6559_v39 = vperm.slane %v14412_v35, 7  ;;  %v17325_v35 = vld [vmem:[#allocation164_spill] sm:$0xff] }
 0x89f   : > { %v6366_v60 = vpop.permute.xlu1 %6365 }
 0x8a0   : > { %v6436_v43 = vperm.slane %v6366_v60, %v17305_v13  ;;  %v17321_v60 = vld [vmem:[#allocation88_spill] sm:$0xff] }
 0x8a1   : > { %v6684_v2 = vmul.f32 %v17321_v60, %v6556_v42 }
 0x8a5   : > { %6930 = vperm.xlu1 %8870, %v6708_v31   ;;  %v6435_v31 = vperm.slane %v14397_v20, %v17305_v13 }
 0x8ad   : > { %6975 = vperm.xlu1 %8870, %v6717_v29   ;;  %6359 = vperm.xlu2 %8869, %v14471_v32   ;;  %v6579_v29 = vperm.slane %v14462_v21, 3 }
 0x8af   : > { %v6707_v22 = vmul.f32 %v14094_v19, %v6579_v29  ;;  %v6546_v19 = vperm.slane %v14401_v63, 2 }
 0x8b5   : > { %6945 = vperm.xlu1 %8870, %v6711_v17   ;;  %6368 = vperm.xlu2 %8869, %v14476_v4   ;;  %v6375_v17 = vpop.permute.xlu1 %6374 }
 0x8b6   : > { %v6439_v10 = vperm.slane %v6375_v17, %v17305_v13  ;;  %v17326_v17 = vld [vmem:[#allocation244_spill] sm:$0xff] }
 0x8bd   : > { %6755 = vperm.xlu2 %8869, %v6673_v15  }
 0x8c5   : > { %6775 = vperm.xlu2 %8869, %v6677_v41  }
 0x8cd   : > { %6790 = vperm.xlu2 %8869, %v6680_v47  }
 0x8d5   : > { %6805 = vperm.xlu2 %8869, %v6683_v25  }
 0x8dd   : > { %6820 = vperm.xlu2 %8869, %v6686_v3   ;;  %v17315_v3 = vld [vmem:[#allocation113_spill] sm:$0xff] }
 0x8e5   : > { %6835 = vperm.xlu2 %8869, %v6689_v37   ;;  %v6591_v37 = vperm.slane %v14448_v28, 7 }
 0x8ed   : > { %6840 = vperm.xlu2 %8869, %v6690_v33   ;;  %v6674_v33 = vmul.f32 %v17316_v30, %v6546_v19 }
 0x8f5   : > { %6885 = vperm.xlu2 %8869, %v6699_v6   ;;  %v6719_v6 = vmul.f32 %v17317_v61, %v6591_v37  ;;  %v17331_v61 = vld [vmem:[#allocation59_spill] sm:$0xff] }
 0x8fd   : > { %6855 = vperm.xlu2 %8869, %v6693_v9  }
 0x905   : > { %6900 = vperm.xlu2 %8869, %v6702_v53   ;;  %v17319_v53 = vld [vmem:[#allocation75_spill] sm:$0xff] }
 0x906   : > { %v6678_v34 = vmul.f32 %v17319_v53, %v6550_v8  ;;  %v17332_v53 = vld [vmem:[#allocation25_spill] sm:$0xff] }
 0x908   : > { %v6524_v49 = vpop.xlane.xlu2 %6523 }
 0x909   : > { %9678 = vrcp.f32 %v6524_v49  ;;  %v17320_v49 = vld [vmem:[#allocation71_spill] sm:$0xff] }
 0x90d   : > { %6910 = vperm.xlu2 %8869, %v6704_v0   ;;  %v6681_v0 = vmul.f32 %v17320_v49, %v6553_v51  ;;  %v17333_v51 = vld [vmem:[#allocation18_spill] sm:$0xff] }
 0x90f   : > { %v14502_v44 = vpop.eup %9678 }
 0x910   : > { %v6360_v45 = vpop.permute.xlu2 %6359  ;;  %v6593_v54 = vperm.slane %v14502_v44, 1  ;;  %v6594_v16 = vperm.slane %v14502_v44, 2 }
 0x911   : > { %v6434_v38 = vperm.slane %v6360_v45, %v17305_v13  ;;  %v14548_v45 = vld [vmem:[%s10008_s25] sm:$0xff] }
 0x912   : > { %v6721_v52 = vmul.f32 %v14226_v12, %v6593_v54  ;;  %v6438_v12 = vperm.slane %v14405_v14, %v17305_v13  ;;  %v6722_v48 = vmul.f32 %v14197_v56, %v6594_v16  ;;  %v6588_v14 = vperm.slane %v14448_v28, 4  ;;  %v17322_v54 = vld [vmem:[#allocation159_spill] sm:$0xff] }
 0x913   : > { %v6490_v40 = vsel %vm2036_vm4, %v6434_v38, %v6489_v58  ;;  %v6582_v56 = vperm.slane %v14462_v21, 6  ;;  %v4356_v63 = vmul.f32 %v14548_v45, %v17322_v54  ;;  %v17323_v38 = vld [vmem:[#allocation108_spill] sm:$0xff]  ;;  %v14554_v58 = vld [vmem:[%s10008_s25 + $0x8] sm:$0xff]  ;;  %v4358_v49 = vmul.f32 %v14548_v45, %v17333_v51  ;;  %v14591_v54 = vld [vmem:[%s10008_s25 + $0x18] sm:$0xff] }
 0x914   : > { %v6491_v27 = vsel %vm2038_vm5, %v6435_v31, %v6490_v40  ;;  %6995 = vperm.xlu1 %8870, %v6721_v52   ;;  %v6716_v7 = vmul.f32 %v14155_v26, %v6588_v14  ;;  %v17318_v26 = vld [vmem:[#allocation73_spill] sm:$0xff]  ;;  %v6687_v31 = vmul.f32 %v17323_v38, %v6559_v39  ;;  %v17324_v52 = vld [vmem:[#allocation170_spill] sm:$0xff]  ;;  %v4363_v29 = vmul.f32 %v14554_v58, %v17325_v35  ;;  %v14599_v35 = vld [vmem:[%s10008_s25 + $0x10] sm:$0xff] }
 0x915   : > { %6955 = vperm.xlu2 %8869, %v6713_v55   ;;  %v6492_v15 = vsel %vm2040_vm6, %v6436_v43, %v6491_v27  ;;  %v6710_v23 = vmul.f32 %v17315_v3, %v6582_v56  ;;  %v6675_v9 = vmul.f32 %v17318_v26, %v6547_v59  ;;  %v4357_v40 = vmul.f32 %v14554_v58, %v17324_v52  ;;  %v17330_v3 = vld [vmem:[#allocation94_spill] sm:$0xff]  ;;  %v14580_v26 = vpop.permute.xlu1 %6750 }
 0x916   : > { %v4491_v55 = vsel %vm673_vm1, %v4356_v63, 0.0  ;;  %v6568_v27 = vperm.slane %v14422_v46, 0  ;;  %v17335_v63 = vld [vmem:[#allocation21_spill] sm:$0xff] }
 0x917   : > { %v4492_v16 = vsel %vm673_vm1, %v4357_v40, 0.0  ;;  %v4375_v38 = vmul.f32 %v14591_v54, %v17335_v63  ;;  %v17350_v63 = vld [vmem:[#allocation48_spill] sm:$0xff] }
 0x918   : > { %v6369_v20 = vpop.permute.xlu2 %6368  ;;  %v4493_v43 = vadd.f32 %v4492_v16, %v4491_v55  ;;  %v4500_v16 = vsel %vm673_vm1, %v4358_v49, 0.0 }
 0x919   : > { %v6437_v36 = vperm.slane %v6369_v20, %v17305_v13  ;;  %v4362_v20 = vmul.f32 %v14548_v45, %v17326_v17  ;;  %v17338_v17 = vld [vmem:[#allocation26_spill] sm:$0xff]  ;;  %v17361_v13 = vld [vmem:[#allocation24_spill] sm:$0xff] }
 0x91b   : > { %v6493_v41 = vsel %vm2042_vm7, %v6437_v36, %v6492_v15  ;;  %v17327_v36 = vld [vmem:[#allocation102_spill] sm:$0xff]  ;;  %v4519_v15 = vsel %vm673_vm1, %v4363_v29, 0.0 }
 0x91c   : > { %7000 = vperm.xlu1 %8870, %v6722_v48   ;;  %v6494_v47 = vsel %vm2044_vm8, %v6438_v12, %v6493_v41  ;;  %v6696_v12 = vmul.f32 %v17327_v36, %v6568_v27  ;;  %v4494_v48 = vrot.slane %v4493_v43, 4  ;;  %v17328_v41 = vld [vmem:[#allocation65_spill] sm:$0xff]  ;;  %v17337_v29 = vld [vmem:[#allocation38_spill] sm:$0xff] }
 0x91d   : > { %6925 = vperm.xlu2 %8869, %v6707_v22   ;;  %v6495_v62 = vsel %vm2046_vm9, %v6439_v10, %v6494_v47  ;;  %v4518_v10 = vsel %vm673_vm1, %v4362_v20, 0.0  ;;  %v4355_v22 = vmul.f32 %v14554_v58, %v17328_v41  ;;  %v6570_v47 = vperm.slane %v14422_v46, 2 }
 0x91e   : > { %v6525_v25 = vsel %vm5767_vm12, %v6495_v62, 0.0  ;;  %v4520_v62 = vadd.f32 %v4519_v15, %v4518_v10  ;;  %v14604_v20 = vrot.slane %v17338_v17, 4  ;;  %v17340_v10 = vld [vmem:[#allocation27_spill] sm:$0xff] }
 0x91f   : > { %6526 = vadd.xlane.f32.xlu0 %v6525_v25  ;;  %v17329_v25 = vld [vmem:[#allocation167_spill] sm:$0xff]  ;;  %v4483_v56 = vsel %vm673_vm1, %v4355_v22, 0.0  ;;  %v14609_v41 = vrot.slane %v17340_v10, 4 }
 0x920   : > { %v4354_v14 = vmul.f32 %v14548_v45, %v17329_v25  ;;  %v4521_v19 = vrot.slane %v4520_v62, 4  ;;  %v14575_v37 = vpop.permute.xlu2 %6755 }
 0x921   : > { %17341 = vst [vmem:[#allocation220_spill] sm:$0xff] %v14609_v41 }
 0x922   : > { %v4482_v30 = vsel %vm673_vm1, %v4354_v14, 0.0  ;;  %v4522_v8 = vadd.f32 %v4521_v19, %v4520_v62  ;;  %v17342_v62 = vld [vmem:[#allocation20_spill] sm:$0xff]  ;;  %v4573_v14 = vsel %vm673_vm1, %v4375_v38, 0.0  ;;  %v4381_v38 = vmul.f32 %v14591_v54, %v17350_v63  ;;  %v17358_v63 = vld [vmem:[#allocation35_spill] sm:$0xff] }
 0x923   : > { %v4484_v59 = vadd.f32 %v4483_v56, %v4482_v30  ;;  %v4365_v25 = vmul.f32 %v14554_v58, %v17342_v62  ;;  %v17344_v30 = vld [vmem:[#allocation32_spill] sm:$0xff] }
 0x924   : > { %v4523_v40 = vrot.slane %v4522_v8, 2 }
 0x925   : > { %6970 = vperm.xlu2 %8869, %v6716_v7   ;;  %v4495_v7 = vadd.f32 %v4494_v48, %v4493_v43  ;;  %v4485_v60 = vrot.slane %v4484_v59, 4  ;;  %v4374_v43 = vmul.f32 %v14599_v35, %v17337_v29 }
 0x926   : > { %v14618_v56 = vadd.f32 %v4523_v40, %v4522_v8 }
 0x927   : > { %v4486_v48 = vadd.f32 %v4485_v60, %v4484_v59  ;;  %v17346_v59 = vld [vmem:[#allocation41_spill] sm:$0xff]  ;;  %v4528_v60 = vsel %vm673_vm1, %v4365_v25, 0.0 }
 0x928   : > { %v14611_v22 = vpop.permute.xlu2 %6775  ;;  %v17355_v25 = vld [vmem:[#allocation33_spill] sm:$0xff] }
 0x929   : > { %v4487_v49 = vrot.slane %v4486_v48, 2 }
 0x92b   : > { %v14653_v62 = vadd.f32 %v4487_v49, %v4486_v48  ;;  %v6567_v48 = vperm.slane %v14418_v11, 7 }
 0x92d   : > { %6940 = vperm.xlu2 %8869, %v6710_v23   ;;  %v6698_v23 = vmul.f32 %v17330_v3, %v6570_v47  ;;  %v17343_v3 = vld [vmem:[#allocation23_spill] sm:$0xff] }
 0x933   : > { %6760 = vperm.xlu0 %8871, %v6674_v33   ;;  %v4496_v33 = vrot.slane %v4495_v7, 2 }
 0x935   : > { %6985 = vperm.xlu2 %8869, %v6719_v6   ;;  %v4369_v6 = vmul.f32 %v14554_v58, %v17331_v61 }
 0x937   : > { %v4546_v42 = vsel %vm673_vm1, %v4369_v6, 0.0  ;;  %v4572_v6 = vsel %vm673_vm1, %v4374_v43, 0.0 }
 0x93b   : > { %6765 = vperm.xlu0 %8871, %v6675_v9   ;;  %v6564_v9 = vperm.slane %v14418_v11, 4 }
 0x943   : > { %6780 = vperm.xlu0 %8871, %v6678_v34   ;;  %v4368_v34 = vmul.f32 %v14548_v45, %v17332_v53  ;;  %v14628_v53 = vpop.permute.xlu1 %6770 }
 0x945   : > { %v4545_v55 = vsel %vm673_vm1, %v4368_v34, 0.0  ;;  %v17347_v34 = vld [vmem:[#allocation34_spill] sm:$0xff] }
 0x946   : > { %v4547_v27 = vadd.f32 %v4546_v42, %v4545_v55  ;;  %v14631_v51 = vrot.slane %v17347_v34, 4  ;;  %v4574_v42 = vadd.f32 %v4573_v14, %v4572_v6  ;;  %v4372_v14 = vmul.f32 %v14599_v35, %v17355_v25  ;;  %v14662_v6 = vld [vmem:[%s10008_s25 + $0x28] sm:$0xff]  ;;  %v17366_v34 = vld [vmem:[#allocation44_spill] sm:$0xff] }
 0x947   : > { %v17359_v25 = vld [vmem:[#allocation67_spill] sm:$0xff] }
 0x948   : > { %v4548_v61 = vrot.slane %v4547_v27, 4  ;;  %17348 = vst [vmem:[#allocation210_spill] sm:$0xff] %v14631_v51 }
 0x94a   : > { %v14646_v43 = vadd.f32 %v4548_v61, %v4547_v27  ;;  %v4600_v61 = vsel %vm673_vm1, %v4381_v38, 0.0 }
 0x94b   : > { %6795 = vperm.xlu0 %8871, %v6681_v0   ;;  %v4497_v0 = vadd.f32 %v4496_v33, %v4495_v7  ;;  %v6573_v7 = vperm.slane %v14422_v46, 5  ;;  %v14623_v33 = vrot.slane %v17344_v30, 4  ;;  %v17367_v30 = vld [vmem:[#allocation207_spill] sm:$0xff] }
 0x94d   : > { %v4498_v36 = vrot.slane %v4497_v0, 1  ;;  %17345 = vst [vmem:[#allocation211_spill] sm:$0xff] %v14623_v33 }
 0x94f   : > { %v14633_v46 = vadd.f32 %v4498_v36, %v4497_v0  ;;  %v17353_v36 = vld [vmem:[#allocation28_spill] sm:$0xff] }
 0x953   : > { %6810 = vperm.xlu0 %8871, %v6684_v2   ;;  %v17334_v2 = vld [vmem:[#allocation169_spill] sm:$0xff] }
 0x954   : > { %v4359_v39 = vmul.f32 %v14554_v58, %v17334_v2  ;;  %v17349_v2 = vld [vmem:[#allocation30_spill] sm:$0xff] }
 0x956   : > { %v4501_v47 = vsel %vm673_vm1, %v4359_v39, 0.0  ;;  %v4364_v39 = vmul.f32 %v14548_v45, %v17349_v2 }
 0x957   : > { %v4502_v19 = vadd.f32 %v4501_v47, %v4500_v16  ;;  %v17352_v16 = vld [vmem:[#allocation39_spill] sm:$0xff] }
 0x958   : > { %v4373_v29 = vmul.f32 %v14591_v54, %v17352_v16  ;;  %v14670_v16 = vpop.permute.xlu2 %6790 }
 0x959   : > { %v4503_v55 = vrot.slane %v4502_v19, 4 }
 0x95b   : > { %6825 = vperm.xlu0 %8871, %v6687_v31   ;;  %v17336_v31 = vld [vmem:[#allocation176_spill] sm:$0xff]  ;;  %v4504_v49 = vadd.f32 %v4503_v55, %v4502_v19  ;;  %v4563_v19 = vsel %vm673_vm1, %v4372_v14, 0.0 }
 0x95c   : > { %v6692_v52 = vmul.f32 %v17336_v31, %v6564_v9  ;;  %v4361_v9 = vmul.f32 %v14554_v58, %v17346_v59  ;;  %v17351_v31 = vld [vmem:[#allocation192_spill] sm:$0xff]  ;;  %v17357_v59 = vld [vmem:[#allocation57_spill] sm:$0xff] }
 0x963   : > { %6870 = vperm.xlu0 %8871, %v6696_v12   ;;  %v17339_v12 = vld [vmem:[#allocation161_spill] sm:$0xff] }
 0x964   : > { %v4360_v15 = vmul.f32 %v14548_v45, %v17339_v12  ;;  %v4371_v12 = vmul.f32 %v14591_v54, %v17353_v36 }
 0x966   : > { %v4509_v8 = vsel %vm673_vm1, %v4360_v15, 0.0  ;;  %v17354_v15 = vld [vmem:[#allocation60_spill] sm:$0xff]  ;;  %v4555_v38 = vsel %vm673_vm1, %v4371_v12, 0.0  ;;  %v17360_v12 = vld [vmem:[#allocation191_spill] sm:$0xff] }
 0x967   : > { %v4380_v47 = vmul.f32 %v14599_v35, %v17354_v15  ;;  %v14676_v15 = vld [vmem:[%s10008_s25 + $0x20] sm:$0xff] }
 0x968   : > { %v4386_v11 = vmul.f32 %v14676_v15, %v17359_v25 }
 0x969   : > { %v4599_v36 = vsel %vm673_vm1, %v4380_v47, 0.0  ;;  %v4489_v47 = vrot.slane %v14653_v62, 1 }
 0x96a   : > { %v4601_v55 = vadd.f32 %v4600_v61, %v4599_v36 }
 0x96b   : > { %6880 = vperm.xlu0 %8871, %v6698_v23   ;;  %v4366_v23 = vmul.f32 %v14548_v45, %v17343_v3  ;;  %v4510_v45 = vsel %vm673_vm1, %v4361_v9, 0.0  ;;  %v17356_v3 = vld [vmem:[#allocation37_spill] sm:$0xff]  ;;  %v4387_v9 = vmul.f32 %v14662_v6, %v17357_v59  ;;  %v14683_v59 = vpop.permute.xlu1 %6785 }
 0x96c   : > { %v4370_v27 = vmul.f32 %v14599_v35, %v17356_v3  ;;  %v4511_v2 = vadd.f32 %v4510_v45, %v4509_v8  ;;  %v4602_v61 = vrot.slane %v4601_v55, 4 }
 0x96d   : > { %v4536_v0 = vsel %vm673_vm1, %v4366_v23, 0.0  ;;  %v4527_v23 = vsel %vm673_vm1, %v4364_v39, 0.0  ;;  %v4627_v45 = vsel %vm673_vm1, %v4387_v9, 0.0  ;;  %v4505_v39 = vrot.slane %v4504_v49, 2 }
 0x96e   : > { %v4529_v8 = vadd.f32 %v4528_v60, %v4527_v23  ;;  %v4512_v40 = vrot.slane %v4511_v2, 4  ;;  %v4377_v60 = vmul.f32 %v14591_v54, %v17361_v13 }
 0x96f   : > { %v4506_v51 = vadd.f32 %v4505_v39, %v4504_v49 }
 0x970   : > { %v4530_v23 = vrot.slane %v4529_v8, 4  ;;  %v4513_v13 = vadd.f32 %v4512_v40, %v4511_v2  ;;  %v14705_v40 = vpop.permute.xlu2 %6805 }
 0x972   : > { %v4514_v24 = vrot.slane %v4513_v13, 2 }
 0x973   : > { %6850 = vperm.xlu0 %8871, %v6692_v52   ;;  %v6701_v52 = vmul.f32 %v17351_v31, %v6573_v7  ;;  %v4575_v7 = vrot.slane %v4574_v42, 4  ;;  %v4367_v31 = vmul.f32 %v14554_v58, %v17358_v63  ;;  %v4554_v58 = vsel %vm673_vm1, %v4370_v27, 0.0 }
 0x974   : > { %v6695_v63 = vmul.f32 %v17360_v12, %v6567_v48  ;;  %v4556_v14 = vadd.f32 %v4555_v38, %v4554_v58  ;;  %v4626_v27 = vsel %vm673_vm1, %v4386_v11, 0.0  ;;  %v17363_v48 = vld [vmem:[#allocation96_spill] sm:$0xff]  ;;  %v17364_v38 = vld [vmem:[#allocation22_spill] sm:$0xff] }
 0x975   : > { %v4537_v25 = vsel %vm673_vm1, %v4367_v31, 0.0  ;;  %v4628_v9 = vadd.f32 %v4627_v45, %v4626_v27  ;;  %v6577_v31 = vperm.slane %v14462_v21, 1  ;;  %v4392_v11 = vmul.f32 %v14676_v15, %v17364_v38  ;;  %v17365_v58 = vld [vmem:[#allocation46_spill] sm:$0xff] }
 0x976   : > { %v4378_v45 = vmul.f32 %v14599_v35, %v17366_v34  ;;  %v4557_v27 = vrot.slane %v4556_v14, 4 }
 0x977   : > { %v4629_v33 = vrot.slane %v4628_v9, 4  ;;  %v4653_v41 = vsel %vm673_vm1, %v4392_v11, 0.0  ;;  %v6578_v11 = vperm.slane %v14462_v21, 2 }
 0x97b   : > { %6895 = vperm.xlu0 %8871, %v6701_v52   ;;  %v4564_v52 = vsel %vm673_vm1, %v4373_v29, 0.0  ;;  %v4576_v29 = vadd.f32 %v4575_v7, %v4574_v42  ;;  %v17362_v42 = vld [vmem:[#allocation42_spill] sm:$0xff] }
 0x97c   : > { %v4565_v3 = vadd.f32 %v4564_v52, %v4563_v19  ;;  %v4376_v7 = vmul.f32 %v14599_v35, %v17362_v42  ;;  %v4393_v52 = vmul.f32 %v14662_v6, %v17363_v48  ;;  %v4538_v19 = vadd.f32 %v4537_v25, %v4536_v0 }
 0x97d   : > { %v4577_v36 = vrot.slane %v4576_v29, 2  ;;  %v4379_v42 = vmul.f32 %v14591_v54, %v17365_v58  ;;  %v4531_v0 = vadd.f32 %v4530_v23, %v4529_v8  ;;  %v4603_v25 = vadd.f32 %v4602_v61, %v4601_v55  ;;  %v14711_v61 = vpop.permute.xlu1 %6800 }
 0x97e   : > { %v4566_v12 = vrot.slane %v4565_v3, 4  ;;  %v4581_v48 = vsel %vm673_vm1, %v4376_v7, 0.0  ;;  %v4654_v49 = vsel %vm673_vm1, %v4393_v52, 0.0  ;;  %v4539_v39 = vrot.slane %v4538_v19, 4 }
 0x97f   : > { %v4578_v2 = vadd.f32 %v4577_v36, %v4576_v29  ;;  %v6705_v58 = vmul.f32 %v17367_v30, %v6577_v31  ;;  %v4591_v34 = vsel %vm673_vm1, %v4379_v42, 0.0  ;;  %v4490_v7 = vadd.f32 %v4489_v47, %v14653_v62 }
 0x980   : > { %v4567_v38 = vadd.f32 %v4566_v12, %v4565_v3  ;;  %v4507_v8 = vrot.slane %v4506_v51, 1  ;;  %v4558_v55 = vadd.f32 %v4557_v27, %v4556_v14  ;;  %v4655_v23 = vadd.f32 %v4654_v49, %v4653_v41 }
 0x981   : > { %v4590_v29 = vsel %vm673_vm1, %v4378_v45, 0.0  ;;  %v4532_v52 = vrot.slane %v4531_v0, 2  ;;  %v4604_v3 = vrot.slane %v4603_v25, 2  ;;  %v4630_v36 = vadd.f32 %v4629_v33, %v4628_v9 }
 0x982   : > { %v4540_v30 = vadd.f32 %v4539_v39, %v4538_v19  ;;  %v4568_v12 = vrot.slane %v4567_v38, 2  ;;  %v4592_v31 = vadd.f32 %v4591_v34, %v4590_v29  ;;  %v17368_v42 = vrot.slane %v14618_v56, 1 }
 0x983   : > { %6865 = vperm.xlu0 %8871, %v6695_v63   ;;  %v4582_v63 = vsel %vm673_vm1, %v4377_v60, 0.0  ;;  %v4579_v47 = vrot.slane %v4578_v2, 1  ;;  %v4515_v41 = vadd.f32 %v4514_v24, %v4513_v13  ;;  %v14727_v33 = vsel %vm2034_vm3, %v14633_v46, %v4490_v7  ;;  %v17370_v13 = vld [vmem:[#allocation199_spill] sm:$0xff]  ;;  %v14736_v7 = vpop.permute.xlu2 %6820 }
 0x984   : > { %v4583_v60 = vadd.f32 %v4582_v63, %v4581_v48  ;;  %v14718_v62 = vadd.f32 %v17368_v42, %v14618_v56  ;;  %v17369_v63 = vrot.slane %v14646_v43, 2  ;;  %v4559_v9 = vrot.slane %v4558_v55, 2  ;;  %v17372_v42 = vld [vmem:[#allocation62_spill] sm:$0xff] }
 0x985   : > { %v4656_v19 = vrot.slane %v4655_v23, 4  ;;  %v14729_v27 = vadd.f32 %v4507_v8, %v4506_v51  ;;  %v4533_v48 = vadd.f32 %v4532_v52, %v4531_v0  ;;  %v4605_v49 = vadd.f32 %v4604_v3, %v4603_v25  ;;  %v17373_v0 = vld [vmem:[#allocation49_spill] sm:$0xff] }
 0x986   : > { %v4584_v14 = vrot.slane %v4583_v60, 4  ;;  %v14723_v45 = vadd.f32 %v17369_v63, %v14646_v43  ;;  %v4631_v56 = vrot.slane %v4630_v36, 2  ;;  %v4541_v39 = vrot.slane %v4540_v30, 2  ;;  %v17374_v3 = vld [vmem:[#allocation53_spill] sm:$0xff] }
 0x987   : > { %v4593_v24 = vrot.slane %v4592_v31, 4  ;;  %v6706_v34 = vmul.f32 %v17370_v13, %v6578_v11  ;;  %v14732_v29 = vadd.f32 %v4579_v47, %v4578_v2  ;;  %v4516_v43 = vrot.slane %v4515_v41, 1 }
 0x988   : > { %v4383_v63 = vmul.f32 %v14591_v54, %v17372_v42  ;;  %v4585_v46 = vadd.f32 %v4584_v14, %v4583_v60  ;;  %v4560_v51 = vadd.f32 %v4559_v9, %v4558_v55  ;;  %v4657_v8 = vadd.f32 %v4656_v19, %v4655_v23  ;;  %v14744_v14 = vpop.permute.xlu1 %6815  ;;  %v17377_v42 = vld [vmem:[#allocation87_spill] sm:$0xff] }
 0x989   : > { %17371 = vst [vmem:[#allocation223_spill] sm:$0xff] %v14732_v29  ;;  %v4382_v25 = vmul.f32 %v14599_v35, %v17373_v0  ;;  %v4606_v52 = vrot.slane %v4605_v49, 1  ;;  %v4384_v2 = vmul.f32 %v14599_v35, %v17374_v3  ;;  %v14742_v11 = vadd.f32 %v4541_v39, %v4540_v30  ;;  %v17380_v3 = vld [vmem:[#allocation130_spill] sm:$0xff] }
 0x98a   : > { %v4594_v60 = vadd.f32 %v4593_v24, %v4592_v31  ;;  %v6587_v55 = vperm.slane %v14448_v28, 3  ;;  %v14747_v23 = vadd.f32 %v4516_v43, %v4515_v41  ;;  %v4609_v9 = vsel %vm673_vm1, %v4383_v63, 0.0 }
 0x98b   : > { %6915 = vperm.xlu0 %8871, %v6705_v58   ;;  %v4569_v58 = vadd.f32 %v4568_v12, %v4567_v38  ;;  %v4534_v38 = vrot.slane %v4533_v48, 1  ;;  %v4632_v12 = vadd.f32 %v4631_v56, %v4630_v36  ;;  %17375 = vst [vmem:[#allocation214_spill] sm:$0xff] %v14742_v11  ;;  %v4586_v13 = vrot.slane %v4585_v46, 2 }
 0x98c   : > { %v4390_v35 = vmul.f32 %v14676_v15, %v17377_v42  ;;  %v4658_v36 = vrot.slane %v4657_v8, 2  ;;  %v4608_v30 = vsel %vm673_vm1, %v4382_v25, 0.0  ;;  %v14757_v56 = vadd.f32 %v4606_v52, %v4605_v49 }
 0x98d   : > { %v4570_v47 = vrot.slane %v4569_v58, 1  ;;  %v14755_v31 = vadd.f32 %v4534_v38, %v4533_v48  ;;  %v14760_v41 = vsel %vm673_vm1, %v4384_v2, 0.0  ;;  %v4633_v39 = vrot.slane %v4632_v12, 1 }
 0x98e   : > { %17379 = vst [vmem:[#allocation226_spill] sm:$0xff] %v14757_v56  ;;  %v4595_v0 = vrot.slane %v4594_v60, 2  ;;  %v4587_v42 = vadd.f32 %v4586_v13, %v4585_v46  ;;  %v4610_v29 = vadd.f32 %v4609_v9, %v4608_v30  ;;  %v14772_v52 = vsel %vm673_vm1, %v4390_v35, 0.0  ;;  %v17382_v9 = vld [vmem:[#allocation204_spill] sm:$0xff] }
 0x98f   : > { %17378 = vst [vmem:[#allocation213_spill] sm:$0xff] %v14755_v31  ;;  %v4571_v63 = vadd.f32 %v4570_v47, %v4569_v58  ;;  %v4659_v2 = vadd.f32 %v4658_v36, %v4657_v8  ;;  %v14774_v43 = vadd.f32 %v4633_v39, %v4632_v12  ;;  %v17381_v58 = vld [vmem:[#allocation114_spill] sm:$0xff]  ;;  %v7069_v46 = vmul.f32 %v14575_v37, %v17338_v17  ;;  %v17385_v36 = vld [vmem:[#allocation29_spill] sm:$0xff] }
 0x990   : > { %v4399_v47 = vmul.f32 %v14662_v6, %v17381_v58  ;;  %v4596_v13 = vadd.f32 %v4595_v0, %v4594_v60  ;;  %v6581_v8 = vperm.slane %v14462_v21, 5  ;;  %v4588_v12 = vrot.slane %v4587_v42, 1  ;;  %v17387_v58 = vld [vmem:[#allocation105_spill] sm:$0xff] }
 0x991   : > { %v4395_v30 = vmul.f32 %v14662_v6, %v17385_v36  ;;  %v4611_v39 = vrot.slane %v4610_v29, 4  ;;  %v7068_v60 = vmul.f32 %v14580_v26, %v17338_v17  ;;  %v7140_v0 = vsel %vm7132_vm13, %v7069_v46, 0.0  ;;  %v17389_v36 = vld [vmem:[#allocation194_spill] sm:$0xff] }
 0x992   : > { %v6527_v10 = vpop.xlane.xlu0 %6526  ;;  %v4681_v21 = vsel %vm673_vm1, %v4399_v47, 0.0  ;;  %v14806_v26 = vadd.f32 %v4588_v12, %v4587_v42  ;;  %v7072_v11 = vmul.f32 %v14628_v53, %v17338_v17  ;;  %v7141_v31 = vrot.slane %v7140_v0, 4  ;;  %v17392_v42 = vld [vmem:[#allocation212_spill] sm:$0xff] }
 0x993   : > { %9680 = vrcp.f32 %v6527_v10  ;;  %6920 = vperm.xlu0 %8871, %v6706_v34   ;;  %v17376_v10 = vld [vmem:[#allocation19_spill] sm:$0xff]  ;;  %v4561_v34 = vrot.slane %v4560_v51, 1  ;;  %v4612_v47 = vadd.f32 %v4611_v39, %v4610_v29  ;;  %v6590_v53 = vperm.slane %v14448_v28, 6 }
 0x994   : > { %v4389_v19 = vmul.f32 %v14662_v6, %v17376_v10  ;;  %v6715_v10 = vmul.f32 %v17380_v3, %v6587_v55  ;;  %v14780_v55 = vpop.permute.xlu2 %6835  ;;  %v17386_v3 = vld [vmem:[#allocation31_spill] sm:$0xff]  ;;  %17390 = vst [vmem:[#allocation215_spill] sm:$0xff] %v14806_v26 }
 0x995   : > { %v4562_v49 = vadd.f32 %v4561_v34, %v4560_v51  ;;  %v17384_v34 = vld [vmem:[#allocation200_spill] sm:$0xff]  ;;  %v4398_v37 = vmul.f32 %v14676_v15, %v17386_v3  ;;  %v6709_v3 = vmul.f32 %v17389_v36, %v6581_v8 }
 0x996   : > { %v14769_v38 = vsel %vm673_vm1, %v4389_v19, 0.0 }
 0x997   : > { %v14784_v19 = vsel %vm2034_vm3, %v4571_v63, %v4562_v49  ;;  %v14796_v63 = vpop.permute.xlu1 %6830  ;;  %v4552_v49 = vrot.slane %v14723_v45, 1  ;;  %v4680_v46 = vsel %vm673_vm1, %v4398_v37, 0.0 }
 0x998   : > { %17383 = vst [vmem:[#allocation216_spill] sm:$0xff] %v14784_v19  ;;  %v4682_v56 = vadd.f32 %v4681_v21, %v4680_v46  ;;  %v7133_v19 = vsel %vm7132_vm13, %v7068_v60, 0.0  ;;  %v4613_v21 = vrot.slane %v4612_v47, 2 }
 0x999   : > { %v14762_v24 = vpop.eup %9680 }
 0x99a   : > { %v6603_v25 = vperm.slane %v14762_v24, 3  ;;  %v6600_v48 = vperm.slane %v14762_v24, 0  ;;  %v6606_v36 = vperm.slane %v14762_v24, 6 }
 0x99b   : > { %6965 = vperm.xlu0 %8871, %v6715_v10   ;;  %v4660_v10 = vrot.slane %v4659_v2, 1 }
 0x99c   : > { %v6731_v51 = vmul.f32 %v17382_v9, %v6603_v25  ;;  %v6728_v35 = vmul.f32 %v17384_v34, %v6600_v48  ;;  %v4396_v25 = vmul.f32 %v14676_v15, %v17387_v58  ;;  %v6597_v48 = vperm.slane %v14502_v44, 5 }
 0x99d   : > { %v4597_v9 = vrot.slane %v4596_v13, 1  ;;  %v6602_v58 = vperm.slane %v14762_v24, 2 }
 0x99e   : > { %7045 = vperm.xlu1 %8870, %v6731_v51   ;;  %7030 = vperm.xlu2 %8869, %v6728_v35   ;;  %v17388_v51 = vld [vmem:[#allocation55_spill] sm:$0xff]  ;;  %v14809_v35 = vsel %vm673_vm1, %v4395_v30, 0.0  ;;  %v14818_v8 = vsel %vm673_vm1, %v4396_v25, 0.0  ;;  %v6725_v12 = vmul.f32 %v17392_v42, %v6597_v48  ;;  %v14822_v30 = vadd.f32 %v4552_v49, %v14723_v45 }
 0x99f   : > { %v4385_v34 = vmul.f32 %v14591_v54, %v17388_v51  ;;  %v14815_v54 = vadd.f32 %v4660_v10, %v4659_v2  ;;  %v14824_v29 = vadd.f32 %v4597_v9, %v4596_v13  ;;  %v6730_v60 = vmul.f32 %v14471_v32, %v6602_v58  ;;  %v17394_v2 = vld [vmem:[#allocation36_spill] sm:$0xff]  ;;  %v14831_v51 = vpop.permute.xlu2 %6840  ;;  %v14844_v46 = vpop.permute.xlu1 %6875 }
 0x9a0   : > { %v4401_v10 = vmul.f32 %v14662_v6, %v17394_v2  ;;  %v7134_v25 = vrot.slane %v7133_v19, 4  ;;  %v4683_v45 = vrot.slane %v4682_v56, 4  ;;  %v7161_v13 = vsel %vm7132_vm13, %v7072_v11, 0.0 }
 0x9a1   : > { %17391 = vst [vmem:[#allocation229_spill] sm:$0xff] %v14815_v54  ;;  %v4618_v39 = vsel %vm673_vm1, %v4385_v34, 0.0  ;;  %v7142_v49 = vadd.f32 %v7141_v31, %v7140_v0  ;;  %v7073_v9 = vmul.f32 %v14611_v22, %v17338_v17  ;;  %v7075_v32 = vmul.f32 %v14683_v59, %v17338_v17  ;;  %v17396_v31 = vld [vmem:[#allocation197_spill] sm:$0xff]  ;;  %v17399_v54 = vld [vmem:[#allocation123_spill] sm:$0xff] }
 0x9a2   : > { %17393 = vst [vmem:[#allocation219_spill] sm:$0xff] %v14824_v29  ;;  %v4619_v28 = vadd.f32 %v4618_v39, %v14760_v41  ;;  %v6718_v0 = vmul.f32 %v17396_v31, %v6590_v53  ;;  %v6596_v22 = vperm.slane %v14502_v44, 4  ;;  %v14848_v42 = vadd.f32 %v4613_v21, %v4612_v47  ;;  %v17400_v21 = vld [vmem:[#allocation209_spill] sm:$0xff] }
 0x9a3   : > { %6935 = vperm.xlu0 %8871, %v6709_v3   ;;  %v17395_v3 = vld [vmem:[#allocation83_spill] sm:$0xff]  ;;  %v14851_v41 = vsel %vm673_vm1, %v4401_v10, 0.0  ;;  %v7135_v59 = vadd.f32 %v7134_v25, %v7133_v19  ;;  %v4684_v39 = vadd.f32 %v4683_v45, %v4682_v56  ;;  %v7182_v47 = vsel %vm7132_vm13, %v7075_v32, 0.0  ;;  %v17401_v56 = vld [vmem:[#allocation205_spill] sm:$0xff] }
 0x9a4   : > { %v4388_v58 = vmul.f32 %v14676_v15, %v17395_v3  ;;  %17397 = vst [vmem:[#allocation218_spill] sm:$0xff] %v14848_v42  ;;  %v14855_v3 = vld [vmem:[%s10008_s25 + $0x30] sm:$0xff]  ;;  %v6734_v31 = vmul.f32 %v17400_v21, %v6606_v36  ;;  %v6724_v45 = vmul.f32 %v17401_v56, %v6596_v22  ;;  %v7183_v32 = vrot.slane %v7182_v47, 4 }
 0x9a5   : > { %v6761_v37 = vpop.permute.xlu0 %6760  ;;  %17398 = vst [vmem:[#allocation163_spill] sm:$0xff] %v14851_v41  ;;  %v4402_v53 = vmul.f32 %v14855_v3, %v17399_v54  ;;  %v4685_v26 = vrot.slane %v4684_v39, 2  ;;  %v7076_v22 = vmul.f32 %v14670_v16, %v14604_v20  ;;  %v6605_v56 = vperm.slane %v14762_v24, 5 }
 0x9a6   : > { %v7070_v48 = vmul.f32 %v6761_v37, %v17338_v17  ;;  %7015 = vperm.xlu1 %8870, %v6725_v12   ;;  %7040 = vperm.xlu2 %8869, %v6730_v60   ;;  %v7162_v12 = vrot.slane %v7161_v13, 4  ;;  %v7143_v37 = vrot.slane %v7142_v49, 2  ;;  %v7168_v60 = vsel %vm7132_vm13, %v7073_v9, 0.0 }
 0x9a7   : > { %v4635_v10 = vsel %vm673_vm1, %v4388_v58, 0.0  ;;  %v6592_v9 = vperm.slane %v14502_v44, 0  ;;  %v14873_v21 = vpop.permute.xlu2 %6885  ;;  %v7078_v16 = vmul.f32 %v14711_v61, %v14604_v20  ;;  %v6601_v61 = vperm.slane %v14762_v24, 1 }
 0x9a8   : > { %v7147_v34 = vsel %vm7132_vm13, %v7070_v48, 0.0  ;;  %v4620_v48 = vrot.slane %v4619_v28, 4  ;;  %v7144_v41 = vadd.f32 %v7143_v37, %v7142_v49  ;;  %v14869_v58 = vadd.f32 %v14769_v38, %v4635_v10  ;;  %v14883_v10 = vpop.permute.xlu1 %6845 }
 0x9a9   : > { %v7148_v11 = vrot.slane %v7147_v34, 4  ;;  %v14879_v49 = vsel %vm673_vm1, %v4402_v53, 0.0  ;;  %v7189_v53 = vsel %vm7132_vm13, %v7076_v22, 0.0  ;;  %v7079_v54 = vmul.f32 %v14705_v40, %v14604_v20 }
 0x9aa   : > { %v14866_v36 = vadd.f32 %v4620_v48, %v4619_v28  ;;  %17402 = vst [vmem:[#allocation222_spill] sm:$0xff] %v14879_v49  ;;  %v7184_v48 = vadd.f32 %v7183_v32, %v7182_v47  ;;  %v6733_v47 = vmul.f32 %v14476_v4, %v6605_v56  ;;  %v7190_v22 = vrot.slane %v7189_v53, 4 }
 0x9ab   : > { %v7149_v2 = vadd.f32 %v7148_v11, %v7147_v34  ;;  %6980 = vperm.xlu0 %8871, %v6718_v0   ;;  %v7136_v34 = vrot.slane %v7135_v59, 2  ;;  %v7163_v11 = vadd.f32 %v7162_v12, %v7161_v13  ;;  %v7169_v0 = vrot.slane %v7168_v60, 4 }
 0x9ac   : > { %v6599_v56 = vperm.slane %v14502_v44, 7  ;;  %v7210_v42 = vsel %vm7132_vm13, %v7079_v54, 0.0  ;;  %v7082_v54 = vmul.f32 %v14736_v7, %v14604_v20 }
 0x9ad   : > { %v7150_v19 = vrot.slane %v7149_v2, 2  ;;  %v6766_v25 = vpop.permute.xlu0 %6765  ;;  %v7137_v28 = vadd.f32 %v7136_v34, %v7135_v59  ;;  %v7164_v37 = vrot.slane %v7163_v11, 2  ;;  %v7170_v38 = vadd.f32 %v7169_v0, %v7168_v60 }
 0x9ae   : > { %v7071_v29 = vmul.f32 %v6766_v25, %v17338_v17  ;;  %7060 = vperm.xlu1 %8870, %v6734_v31   ;;  %7010 = vperm.xlu2 %8869, %v6724_v45   ;;  %v6720_v25 = vmul.f32 %v14363_v5, %v6592_v9  ;;  %v7145_v45 = vrot.slane %v7144_v41, 1 }
 0x9af   : > { %v7151_v12 = vadd.f32 %v7150_v19, %v7149_v2  ;;  %v14885_v2 = vadd.f32 %v4685_v26, %v4684_v39  ;;  %v7138_v34 = vrot.slane %v7137_v28, 1  ;;  %v7165_v0 = vadd.f32 %v7164_v37, %v7163_v11 }
 0x9b0   : > { %v7154_v13 = vsel %vm7132_vm13, %v7071_v29, 0.0  ;;  %v7171_v32 = vrot.slane %v7170_v38, 2  ;;  %v7185_v39 = vrot.slane %v7184_v48, 2  ;;  %v6729_v19 = vmul.f32 %v14388_v18, %v6601_v61  ;;  %v14910_v49 = vpop.permute.xlu1 %6890 }
 0x9b1   : > { %v7155_v31 = vrot.slane %v7154_v13, 4  ;;  %17403 = vst [vmem:[#allocation221_spill] sm:$0xff] %v14885_v2  ;;  %v7152_v59 = vrot.slane %v7151_v12, 1  ;;  %v7191_v61 = vadd.f32 %v7190_v22, %v7189_v53 }
 0x9b2   : > { %v7186_v40 = vadd.f32 %v7185_v39, %v7184_v48  ;;  %v6595_v39 = vperm.slane %v14502_v44, 3 }
 0x9b3   : > { %v7156_v29 = vadd.f32 %v7155_v31, %v7154_v13  ;;  %6990 = vperm.xlu0 %8871, %v6720_v25   ;;  %v7203_v13 = vsel %vm7132_vm13, %v7078_v16, 0.0  ;;  %v7146_v31 = vadd.f32 %v7145_v45, %v7144_v41  ;;  %v7153_v5 = vadd.f32 %v7152_v59, %v7151_v12 }
 0x9b4   : > { %v7139_v16 = vadd.f32 %v7138_v34, %v7137_v28  ;;  %v7166_v45 = vrot.slane %v7165_v0, 1  ;;  %v7204_v59 = vrot.slane %v7203_v13, 4 }
 0x9b5   : > { %v7157_v9 = vrot.slane %v7156_v29, 2  ;;  %v6781_v60 = vpop.permute.xlu0 %6780 }
 0x9b6   : > { %v7074_v26 = vmul.f32 %v6781_v60, %v17338_v17  ;;  %7055 = vperm.xlu2 %8869, %v6733_v47   ;;  %v14900_v17 = vld [vmem:[%s10008_s25 + $0x38] sm:$0xff]  ;;  %v17404_v60 = vld [vmem:[#allocation132_spill] sm:$0xff]  ;;  %v7081_v47 = vmul.f32 %v14744_v14, %v14604_v20  ;;  %v7773_v18 = vsel %vm2034_vm3, %v7146_v31, %v7139_v16  ;;  %v7167_v14 = vadd.f32 %v7166_v45, %v7165_v0 }
 0x9b7   : > { %v7158_v25 = vadd.f32 %v7157_v9, %v7156_v29  ;;  %v4405_v41 = vmul.f32 %v14900_v17, %v17404_v60  ;;  %v7172_v29 = vadd.f32 %v7171_v32, %v7170_v38  ;;  %v14904_v9 = vpop.permute.xlu2 %6855  ;;  %v7774_v28 = vsel %vm2036_vm4, %v7153_v5, %v7773_v18  ;;  %v17405_v32 = vld [vmem:[#allocation217_spill] sm:$0xff]  ;;  %v17407_v18 = vld [vmem:[#allocation40_spill] sm:$0xff] }
 0x9b8   : > { %v7175_v4 = vsel %vm7132_vm13, %v7074_v26, 0.0  ;;  %v6727_v48 = vmul.f32 %v17405_v32, %v6599_v56  ;;  %v7224_v53 = vsel %vm7132_vm13, %v7081_v47, 0.0  ;;  %v7211_v31 = vrot.slane %v7210_v42, 4 }
 0x9b9   : > { %v7159_v11 = vrot.slane %v7158_v25, 1  ;;  %v7176_v37 = vrot.slane %v7175_v4, 4  ;;  %v7187_v5 = vrot.slane %v7186_v40, 1  ;;  %v6723_v16 = vmul.f32 %v14372_v1, %v6595_v39 }
 0x9ba   : > { %v17406_v47 = vrot.slane %v14869_v58, 4  ;;  %v4404_v7 = vmul.f32 %v14855_v3, %v17407_v18  ;;  %v4708_v32 = vsel %vm673_vm1, %v4405_v41, 0.0 }
 0x9bb   : > { %v7160_v26 = vadd.f32 %v7159_v11, %v7158_v25  ;;  %v7177_v12 = vadd.f32 %v7176_v37, %v7175_v4  ;;  %7035 = vperm.xlu0 %8871, %v6729_v19   ;;  %v7173_v25 = vrot.slane %v7172_v29, 1  ;;  %v7205_v11 = vadd.f32 %v7204_v59, %v7203_v13 }
 0x9bc   : > { %v7192_v37 = vrot.slane %v7191_v61, 2  ;;  %v7231_v13 = vsel %vm7132_vm13, %v7082_v54, 0.0  ;;  %v7188_v1 = vadd.f32 %v7187_v5, %v7186_v40  ;;  %v4707_v40 = vsel %vm673_vm1, %v4404_v7, 0.0  ;;  %v14940_v5 = vpop.permute.xlu1 %6860 }
 0x9bd   : > { %v7178_v38 = vrot.slane %v7177_v12, 2  ;;  %v6796_v34 = vpop.permute.xlu0 %6795  ;;  %v7775_v19 = vsel %vm2038_vm5, %v7160_v26, %v7774_v28  ;;  %v4639_v26 = vadd.f32 %v17406_v47, %v14869_v58  ;;  %v7174_v28 = vadd.f32 %v7173_v25, %v7172_v29  ;;  %v17408_v29 = vld [vmem:[#allocation89_spill] sm:$0xff] }
 0x9be   : > { %v7077_v4 = vmul.f32 %v6796_v34, %v14604_v20  ;;  %7025 = vperm.xlu2 %8869, %v6727_v48   ;;  %v7776_v45 = vsel %vm2040_vm6, %v7167_v14, %v7775_v19  ;;  %v7206_v48 = vrot.slane %v7205_v11, 2  ;;  %v7193_v58 = vadd.f32 %v7192_v37, %v7191_v61 }
 0x9bf   : > { %v7179_v22 = vadd.f32 %v7178_v38, %v7177_v12  ;;  %v7225_v12 = vrot.slane %v7224_v53, 4  ;;  %v7212_v38 = vadd.f32 %v7211_v31, %v7210_v42  ;;  %v14930_v39 = vpop.permute.xlu2 %6900  ;;  %v7777_v14 = vsel %vm2042_vm7, %v7174_v28, %v7776_v45 }
 0x9c0   : > { %v7196_v56 = vsel %vm7132_vm13, %v7077_v4, 0.0  ;;  %v6604_v42 = vperm.slane %v14762_v24, 4  ;;  %v4391_v25 = vmul.f32 %v14662_v6, %v17408_v29  ;;  %v7232_v31 = vrot.slane %v7231_v13, 4 }
 0x9c1   : > { %v7180_v60 = vrot.slane %v7179_v22, 1  ;;  %v7197_v0 = vrot.slane %v7196_v56, 4  ;;  %v7213_v61 = vrot.slane %v7212_v38, 2 }
 0x9c2   : > { %v6732_v28 = vmul.f32 %v14394_v57, %v6604_v42 }
 0x9c3   : > { %v7181_v59 = vadd.f32 %v7180_v60, %v7179_v22  ;;  %v7198_v34 = vadd.f32 %v7197_v0, %v7196_v56  ;;  %7005 = vperm.xlu0 %8871, %v6723_v16   ;;  %v7226_v22 = vadd.f32 %v7225_v12, %v7224_v53  ;;  %v4640_v56 = vrot.slane %v4639_v26, 2 }
 0x9c4   : > { %v4709_v60 = vadd.f32 %v4708_v32, %v4707_v40  ;;  %v7207_v0 = vadd.f32 %v7206_v48, %v7205_v11  ;;  %v7194_v16 = vrot.slane %v7193_v58, 1  ;;  %v4645_v53 = vsel %vm673_vm1, %v4391_v25, 0.0 }
 0x9c5   : > { %v7199_v19 = vrot.slane %v7198_v34, 2  ;;  %v6811_v4 = vpop.permute.xlu0 %6810  ;;  %v7778_v47 = vsel %vm2044_vm8, %v7181_v59, %v7777_v14  ;;  %v7233_v12 = vadd.f32 %v7232_v31, %v7231_v13  ;;  %v7646_v59 = vsel %vm2036_vm4, %v14729_v27, %v14727_v33  ;;  %v17410_v27 = vld [vmem:[#allocation43_spill] sm:$0xff] }
 0x9c6   : > { %v7080_v54 = vmul.f32 %v6811_v4, %v14604_v20  ;;  %v7779_v41 = vsel %vm2046_vm9, %v7188_v1, %v7778_v47  ;;  %v7214_v1 = vadd.f32 %v7213_v61, %v7212_v38  ;;  %v17409_v48 = vrot.slane %v14866_v36, 2 }
 0x9c7   : > { %v7200_v37 = vadd.f32 %v7199_v19, %v7198_v34  ;;  %7829 = vrot.lane.b32.xlu1 %v7779_v41, %s9848_s20  ;;  %v7227_v34 = vrot.slane %v7226_v22, 2  ;;  %v4641_v57 = vadd.f32 %v4640_v56, %v4639_v26  ;;  %v4710_v19 = vrot.slane %v4709_v60, 4  ;;  %v14959_v31 = vpop.permute.xlu2 %6910 }
 0x9c8   : > { %v7217_v6 = vsel %vm7132_vm13, %v7080_v54, 0.0  ;;  %v14953_v14 = vadd.f32 %v17409_v48, %v14866_v36  ;;  %v7208_v4 = vrot.slane %v7207_v0, 1  ;;  %v4646_v47 = vadd.f32 %v4645_v53, %v14772_v52  ;;  %v17412_v48 = vld [vmem:[#allocation27_spill] sm:$0xff] }
 0x9c9   : > { %v7201_v45 = vrot.slane %v7200_v37, 1  ;;  %v7218_v18 = vrot.slane %v7217_v6, 4  ;;  %v7195_v13 = vadd.f32 %v7194_v16, %v7193_v58  ;;  %v6598_v33 = vperm.slane %v14502_v44, 6 }
 0x9ca   : > { %v4407_v38 = vmul.f32 %v14900_v17, %v17410_v27  ;;  %v7234_v25 = vrot.slane %v7233_v12, 2  ;;  %v7647_v36 = vsel %vm2038_vm5, %v14747_v23, %v7646_v59  ;;  %v7228_v26 = vadd.f32 %v7227_v34, %v7226_v22 }
 0x9cb   : > { %v7202_v32 = vadd.f32 %v7201_v45, %v7200_v37  ;;  %v7219_v11 = vadd.f32 %v7218_v18, %v7217_v6  ;;  %7050 = vperm.xlu0 %8871, %v6732_v28   ;;  %v7215_v41 = vrot.slane %v7214_v1, 1  ;;  %v4642_v40 = vrot.slane %v4641_v57, 1  ;;  %v14966_v6 = vpop.permute.xlu1 %6905  ;;  %v17411_v18 = vld [vmem:[#allocation140_spill] sm:$0xff] }
 0x9cc   : > { %v4711_v61 = vadd.f32 %v4710_v19, %v4709_v60  ;;  %v7209_v37 = vadd.f32 %v7208_v4, %v7207_v0  ;;  %v4647_v56 = vrot.slane %v4646_v47, 4  ;;  %v4408_v23 = vmul.f32 %v14855_v3, %v17411_v18 }
 0x9cd   : > { %v7220_v42 = vrot.slane %v7219_v11, 2  ;;  %v6826_v29 = vpop.permute.xlu0 %6825  ;;  %v7780_v52 = vsel %vm2034_vm3, %v7202_v32, %v7195_v13  ;;  %v7235_v22 = vadd.f32 %v7234_v25, %v7233_v12  ;;  %v7648_v53 = vsel %vm2040_vm6, %v14718_v62, %v7647_v36 }
 0x9ce   : > { %v7083_v54 = vmul.f32 %v6826_v29, %v14604_v20  ;;  %v6726_v20 = vmul.f32 %v14379_v50, %v6598_v33  ;;  %v7781_v28 = vsel %vm2036_vm4, %v7209_v37, %v7780_v52  ;;  %v7229_v60 = vrot.slane %v7228_v26, 1  ;;  %v17413_v50 = vld [vmem:[#allocation220_spill] sm:$0xff]  ;;  %v17414_v33 = vld [vmem:[#allocation101_spill] sm:$0xff] }
 0x9cf   : > { %v7221_v58 = vadd.f32 %v7220_v42, %v7219_v11  ;;  %v7216_v0 = vadd.f32 %v7215_v41, %v7214_v1  ;;  %v4643_v32 = vadd.f32 %v4642_v40, %v4641_v57  ;;  %v4712_v11 = vrot.slane %v4711_v61, 2  ;;  %v14998_v52 = vpop.permute.xlu2 %6955  ;;  %v17417_v40 = vld [vmem:[#allocation208_spill] sm:$0xff] }
 0x9d0   : > { %v7238_v44 = vsel %vm7132_vm13, %v7083_v54, 0.0  ;;  %v7084_v19 = vmul.f32 %v14796_v63, %v17412_v48  ;;  %v7093_v4 = vmul.f32 %v14844_v46, %v17413_v50  ;;  %v4648_v13 = vadd.f32 %v4647_v56, %v4646_v47 }
 0x9d1   : > { %v7222_v16 = vrot.slane %v7221_v58, 1  ;;  %v7239_v45 = vrot.slane %v7238_v44, 4  ;;  %v6607_v29 = vperm.slane %v14762_v24, 7  ;;  %v7782_v62 = vsel %vm2038_vm5, %v7216_v0, %v7781_v28  ;;  %v17418_v28 = vld [vmem:[#allocation45_spill] sm:$0xff] }
 0x9d2   : > { %v4394_v1 = vmul.f32 %v14676_v15, %v17414_v33  ;;  %v7236_v27 = vrot.slane %v7235_v22, 1  ;;  %v14985_v63 = vsel %vm673_vm1, %v4407_v38, 0.0  ;;  %v14988_v46 = vsel %vm673_vm1, %v4408_v23, 0.0 }
 0x9d3   : > { %v7223_v59 = vadd.f32 %v7222_v16, %v7221_v58  ;;  %v7240_v34 = vadd.f32 %v7239_v45, %v7238_v44  ;;  %7020 = vperm.xlu0 %8871, %v6726_v20   ;;  %17415 = vst [vmem:[#allocation234_spill] sm:$0xff] %v14988_v46  ;;  %v7230_v47 = vadd.f32 %v7229_v60, %v7228_v26  ;;  %v7245_v15 = vsel %vm7132_vm13, %v7084_v19, 0.0  ;;  %v15006_v20 = vpop.permute.xlu1 %6950 }
 0x9d4   : > { %v14992_v24 = vsel %vm2034_vm3, %v4643_v32, %v14774_v43  ;;  %v14994_v36 = vadd.f32 %v4712_v11, %v4711_v61  ;;  %v7308_v41 = vsel %vm7132_vm13, %v7093_v4, 0.0  ;;  %v4649_v58 = vrot.slane %v4648_v13, 2 }
 0x9d5   : > { %v7241_v12 = vrot.slane %v7240_v34, 2  ;;  %v6871_v42 = vpop.permute.xlu0 %6870  ;;  %v7783_v25 = vsel %vm2040_vm6, %v7223_v59, %v7782_v62  ;;  %17416 = vst [vmem:[#allocation225_spill] sm:$0xff] %v14992_v24  ;;  %v6735_v37 = vmul.f32 %v17417_v40, %v6607_v29  ;;  %v4662_v26 = vsel %vm673_vm1, %v4394_v1, 0.0 }
 0x9d6   : > { %v7092_v57 = vmul.f32 %v6871_v42, %v17413_v50  ;;  %v7784_v44 = vsel %vm2042_vm7, %v7230_v47, %v7783_v25  ;;  %v7237_v56 = vadd.f32 %v7236_v27, %v7235_v22  ;;  %v7085_v43 = vmul.f32 %v14780_v55, %v17412_v48 }
 0x9d7   : > { %v7242_v54 = vadd.f32 %v7241_v12, %v7240_v34  ;;  %v7246_v16 = vrot.slane %v7245_v15, 4  ;;  %v7309_v45 = vrot.slane %v7308_v41, 4  ;;  %v7086_v18 = vmul.f32 %v14831_v51, %v17412_v48  ;;  %v17419_v51 = vld [vmem:[#allocation213_spill] sm:$0xff] }
 0x9d8   : > { %v7301_v61 = vsel %vm7132_vm13, %v7092_v57, 0.0  ;;  %v4410_v60 = vmul.f32 %v14855_v3, %v17418_v28  ;;  %v7096_v22 = vmul.f32 %v14910_v49, %v17413_v50  ;;  %v7095_v55 = vmul.f32 %v14873_v21, %v17413_v50 }
 0x9d9   : > { %v7243_v38 = vrot.slane %v7242_v54, 1  ;;  %v7785_v0 = vsel %vm2044_vm8, %v7237_v56, %v7784_v44  ;;  %v7302_v34 = vrot.slane %v7301_v61, 4  ;;  %v15021_v19 = vsel %vm2042_vm7, %v17419_v51, %v7648_v53 }
 0x9da   : > { %v15023_v4 = vadd.f32 %v4649_v58, %v4648_v13  ;;  %v4664_v12 = vadd.f32 %v14809_v35, %v4662_v26  ;;  %v7252_v49 = vsel %vm7132_vm13, %v7085_v43, 0.0  ;;  %v7247_v42 = vadd.f32 %v7246_v16, %v7245_v15  ;;  %v15043_v58 = vpop.permute.xlu2 %6925 }
 0x9db   : > { %v7244_v23 = vadd.f32 %v7243_v38, %v7242_v54  ;;  %7065 = vperm.xlu0 %8871, %v6735_v37   ;;  %v7310_v29 = vadd.f32 %v7309_v45, %v7308_v41  ;;  %v7087_v62 = vmul.f32 %v14883_v10, %v17412_v48  ;;  %v7259_v33 = vsel %vm7132_vm13, %v7086_v18, 0.0  ;;  %v15051_v16 = vpop.permute.xlu1 %6960 }
 0x9dc   : > { %v7329_v53 = vsel %vm7132_vm13, %v7096_v22, 0.0  ;;  %v7099_v13 = vmul.f32 %v14966_v6, %v17413_v50  ;;  %v7322_v35 = vsel %vm7132_vm13, %v7095_v55, 0.0  ;;  %v7253_v27 = vrot.slane %v7252_v49, 4  ;;  %v17420_v6 = vld [vmem:[#allocation145_spill] sm:$0xff] }
 0x9dd   : > { %v6881_v32 = vpop.permute.xlu0 %6880  ;;  %v7786_v11 = vsel %vm2046_vm9, %v7244_v23, %v7785_v0  ;;  %v7098_v57 = vmul.f32 %v14930_v39, %v17413_v50  ;;  %v7303_v25 = vadd.f32 %v7302_v34, %v7301_v61  ;;  %v4665_v10 = vrot.slane %v4664_v12, 4 }
 0x9de   : > { %v7094_v21 = vmul.f32 %v6881_v32, %v17413_v50  ;;  %7831 = vrot.lane.b32.xlu2 %v7786_v11, %s9848_s20  ;;  %v15041_v15 = vsel %vm673_vm1, %v4410_v60, 0.0  ;;  %v7260_v41 = vrot.slane %v7259_v33, 4  ;;  %v4411_v38 = vmul.f32 %v14900_v17, %v17420_v6 }
 0x9df   : > { %v7330_v40 = vrot.slane %v7329_v53, 4  ;;  %v7323_v37 = vrot.slane %v7322_v35, 4  ;;  %v7248_v26 = vrot.slane %v7247_v42, 2  ;;  %v7311_v56 = vrot.slane %v7310_v29, 2 }
 0x9e0   : > { %v7315_v1 = vsel %vm7132_vm13, %v7094_v21, 0.0  ;;  %v7266_v39 = vsel %vm7132_vm13, %v7087_v62, 0.0  ;;  %v7089_v43 = vmul.f32 %v14904_v9, %v17412_v48  ;;  %v7350_v61 = vsel %vm7132_vm13, %v7099_v13, 0.0 }
 0x9e1   : > { %v7316_v47 = vrot.slane %v7315_v1, 4  ;;  %v7254_v45 = vadd.f32 %v7253_v27, %v7252_v49  ;;  %v7343_v18 = vsel %vm7132_vm13, %v7098_v57, 0.0  ;;  %v7304_v23 = vrot.slane %v7303_v25, 2 }
 0x9e2   : > { %v7090_v60 = vmul.f32 %v14940_v5, %v17412_v48  ;;  %v7261_v22 = vadd.f32 %v7260_v41, %v7259_v33  ;;  %v15057_v34 = vadd.f32 %v4665_v10, %v4664_v12  ;;  %v7267_v32 = vrot.slane %v7266_v39, 4 }
 0x9e3   : > { %v7317_v44 = vadd.f32 %v7316_v47, %v7315_v1  ;;  %v7331_v9 = vadd.f32 %v7330_v40, %v7329_v53  ;;  %v7324_v11 = vadd.f32 %v7323_v37, %v7322_v35  ;;  %v7351_v51 = vrot.slane %v7350_v61, 4 }
 0x9e4   : > { %v7280_v21 = vsel %vm7132_vm13, %v7089_v43, 0.0  ;;  %v7344_v49 = vrot.slane %v7343_v18, 4  ;;  %v7312_v13 = vadd.f32 %v7311_v56, %v7310_v29  ;;  %v7255_v1 = vrot.slane %v7254_v45, 2 }
 0x9e5   : > { %v6851_v28 = vpop.permute.xlu0 %6850  ;;  %v7318_v55 = vrot.slane %v7317_v44, 2  ;;  %v7305_v27 = vadd.f32 %v7304_v23, %v7303_v25  ;;  %v7249_v5 = vadd.f32 %v7248_v26, %v7247_v42  ;;  %v7287_v33 = vsel %vm7132_vm13, %v7090_v60, 0.0 }
 0x9e6   : > { %v7088_v0 = vmul.f32 %v6851_v28, %v17412_v48  ;;  %v7262_v47 = vrot.slane %v7261_v22, 2  ;;  %v7268_v12 = vadd.f32 %v7267_v32, %v7266_v39  ;;  %v7325_v10 = vrot.slane %v7324_v11, 2  ;;  %v15063_v28 = vpop.permute.xlu2 %6970  ;;  %v15066_v32 = vpop.permute.xlu1 %6930 }
 0x9e7   : > { %v7319_v41 = vadd.f32 %v7318_v55, %v7317_v44  ;;  %v7281_v6 = vrot.slane %v7280_v21, 4  ;;  %v4735_v35 = vsel %vm673_vm1, %v4411_v38, 0.0  ;;  %v7332_v40 = vrot.slane %v7331_v9, 2 }
 0x9e8   : > { %v7273_v62 = vsel %vm7132_vm13, %v7088_v0, 0.0  ;;  %v7352_v37 = vadd.f32 %v7351_v51, %v7350_v61  ;;  %v7345_v43 = vadd.f32 %v7344_v49, %v7343_v18  ;;  %v7313_v29 = vrot.slane %v7312_v13, 1 }
 0x9e9   : > { %v7274_v57 = vrot.slane %v7273_v62, 4  ;;  %v7288_v56 = vrot.slane %v7287_v33, 4  ;;  %v7256_v25 = vadd.f32 %v7255_v1, %v7254_v45  ;;  %v7306_v23 = vrot.slane %v7305_v27, 1 }
 0x9ea   : > { %v7263_v26 = vadd.f32 %v7262_v47, %v7261_v22  ;;  %v7320_v60 = vrot.slane %v7319_v41, 1  ;;  %v7250_v39 = vrot.slane %v7249_v5, 1  ;;  %v7269_v55 = vrot.slane %v7268_v12, 2 }
 0x9eb   : > { %v7275_v53 = vadd.f32 %v7274_v57, %v7273_v62  ;;  %v7326_v38 = vadd.f32 %v7325_v10, %v7324_v11  ;;  %v7282_v62 = vadd.f32 %v7281_v6, %v7280_v21  ;;  %v7333_v61 = vadd.f32 %v7332_v40, %v7331_v9 }
 0x9ec   : > { %v7353_v18 = vrot.slane %v7352_v37, 2  ;;  %v7346_v51 = vrot.slane %v7345_v43, 2  ;;  %v7289_v57 = vadd.f32 %v7288_v56, %v7287_v33  ;;  %v7257_v45 = vrot.slane %v7256_v25, 1 }
 0x9ed   : > { %v6896_v42 = vpop.permute.xlu0 %6895  ;;  %v7276_v0 = vrot.slane %v7275_v53, 2  ;;  %v7307_v1 = vadd.f32 %v7306_v23, %v7305_v27  ;;  %v7314_v22 = vadd.f32 %v7313_v29, %v7312_v13  ;;  %v7264_v47 = vrot.slane %v7263_v26, 1 }
 0x9ee   : > { %v7097_v44 = vmul.f32 %v6896_v42, %v17413_v50  ;;  %v7321_v54 = vadd.f32 %v7320_v60, %v7319_v41  ;;  %v7270_v50 = vadd.f32 %v7269_v55, %v7268_v12  ;;  %v7327_v42 = vrot.slane %v7326_v38, 1  ;;  %v15070_v23 = vpop.permute.xlu2 %6940 }
 0x9ef   : > { %v7277_v59 = vadd.f32 %v7276_v0, %v7275_v53  ;;  %v7283_v24 = vrot.slane %v7282_v62, 2  ;;  %v7251_v46 = vadd.f32 %v7250_v39, %v7249_v5  ;;  %v7334_v11 = vrot.slane %v7333_v61, 1  ;;  %v15076_v0 = vpop.permute.xlu1 %6975 }
 0x9f0   : > { %v7336_v49 = vsel %vm7132_vm13, %v7097_v44, 0.0  ;;  %v7354_v21 = vadd.f32 %v7353_v18, %v7352_v37  ;;  %v7347_v9 = vadd.f32 %v7346_v51, %v7345_v43  ;;  %v7290_v10 = vrot.slane %v7289_v57, 2  ;;  %v9727_v18 = vld [vmem:[%s10008_s25 + $0x28] sm:$0xff]  ;;  %v17421_v51 = vld [vmem:[#allocation110_spill] sm:$0xff] }
 0x9f1   : > { %v7337_v7 = vrot.slane %v7336_v49, 4  ;;  %v7258_v6 = vadd.f32 %v7257_v45, %v7256_v25  ;;  %v7794_v40 = vsel %vm2034_vm3, %v7314_v22, %v7307_v1  ;;  %v7265_v27 = vadd.f32 %v7264_v47, %v7263_v26 }
 0x9f2   : > { %v7795_v13 = vsel %vm2036_vm4, %v7321_v54, %v7794_v40  ;;  %v7278_v41 = vrot.slane %v7277_v59, 1  ;;  %v7271_v53 = vrot.slane %v7270_v50, 1  ;;  %v7284_v5 = vadd.f32 %v7283_v24, %v7282_v62 }
 0x9f3   : > { %v7338_v2 = vadd.f32 %v7337_v7, %v7336_v49  ;;  %v7328_v7 = vadd.f32 %v7327_v42, %v7326_v38  ;;  %v4736_v37 = vadd.f32 %v4735_v35, %v15041_v15  ;;  %v7355_v43 = vrot.slane %v7354_v21, 1 }
 0x9f4   : > { %v7348_v25 = vrot.slane %v7347_v9, 1  ;;  %v7787_v26 = vsel %vm2034_vm3, %v7258_v6, %v7251_v46  ;;  %v7291_v55 = vadd.f32 %v7290_v10, %v7289_v57  ;;  %v7272_v38 = vadd.f32 %v7271_v53, %v7270_v50  ;;  %v17422_v46 = vld [vmem:[#allocation214_spill] sm:$0xff]  ;;  %v17424_v10 = vld [vmem:[#allocation32_spill] sm:$0xff] }
 0x9f5   : > { %v7339_v33 = vrot.slane %v7338_v2, 2  ;;  %v6866_v56 = vpop.permute.xlu0 %6865  ;;  %v7796_v39 = vsel %vm2038_vm5, %v7328_v7, %v7795_v13  ;;  %v7788_v24 = vsel %vm2036_vm4, %v7265_v27, %v7787_v26  ;;  %v7285_v15 = vrot.slane %v7284_v5, 1 }
 0x9f6   : > { %v7091_v12 = vmul.f32 %v6866_v56, %v17412_v48  ;;  %v7335_v48 = vadd.f32 %v7334_v11, %v7333_v61  ;;  %v4397_v49 = vmul.f32 %v9727_v18, %v17421_v51  ;;  %v7349_v45 = vadd.f32 %v7348_v25, %v7347_v9  ;;  %v17427_v25 = vld [vmem:[#allocation211_spill] sm:$0xff] }
 0x9f7   : > { %v7340_v29 = vadd.f32 %v7339_v33, %v7338_v2  ;;  %v7279_v2 = vadd.f32 %v7278_v41, %v7277_v59  ;;  %v17423_v22 = vrot.slane %v17422_v46, 1  ;;  %v7356_v42 = vadd.f32 %v7355_v43, %v7354_v21  ;;  %v15106_v43 = vpop.permute.xlu2 %6985 }
 0x9f8   : > { %v7294_v60 = vsel %vm7132_vm13, %v7091_v12, 0.0  ;;  %v7797_v1 = vsel %vm2040_vm6, %v7335_v48, %v7796_v39  ;;  %v7789_v59 = vsel %vm2038_vm5, %v7272_v38, %v7788_v24  ;;  %v7292_v50 = vrot.slane %v7291_v55, 1 }
 0x9f9   : > { %v7341_v44 = vrot.slane %v7340_v29, 1  ;;  %v7295_v54 = vrot.slane %v7294_v60, 4  ;;  %v4544_v47 = vadd.f32 %v17423_v22, %v17422_v46  ;;  %v7790_v9 = vsel %vm2040_vm6, %v7279_v2, %v7789_v59  ;;  %v6946_v2 = vpop.permute.xlu1 %6945 }
 0x9fa   : > { %v4737_v33 = vrot.slane %v4736_v37, 4  ;;  %v7286_v56 = vadd.f32 %v7285_v15, %v7284_v5  ;;  %v17425_v21 = vrot.slane %v14994_v36, 1  ;;  %v17426_v12 = vrot.slane %v15023_v4, 1 }
 0x9fb   : > { %v7342_v35 = vadd.f32 %v7341_v44, %v7340_v29  ;;  %v7296_v62 = vadd.f32 %v7295_v54, %v7294_v60  ;;  %v4672_v7 = vsel %vm673_vm1, %v4397_v49, 0.0  ;;  %v7100_v29 = vmul.f32 %v14959_v31, %v17424_v10  ;;  %v17428_v44 = vld [vmem:[#allocation47_spill] sm:$0xff] }
 0x9fc   : > { %v15096_v41 = vadd.f32 %v17425_v21, %v14994_v36  ;;  %v15101_v53 = vadd.f32 %v17426_v12, %v15023_v4  ;;  %v4667_v5 = vrot.slane %v15057_v34, 2  ;;  %v7108_v36 = vmul.f32 %v15006_v20, %v17427_v25 }
 0x9fd   : > { %v7297_v61 = vrot.slane %v7296_v62, 2  ;;  %v6916_v57 = vpop.permute.xlu0 %6915  ;;  %v7798_v11 = vsel %vm2042_vm7, %v7342_v35, %v7797_v1  ;;  %v7791_v26 = vsel %vm2042_vm7, %v7286_v56, %v7790_v9  ;;  %v4413_v4 = vmul.f32 %v14900_v17, %v17428_v44  ;;  %v17430_v9 = vld [vmem:[#allocation51_spill] sm:$0xff] }
 0x9fe   : > { %v7101_v6 = vmul.f32 %v6916_v57, %v17424_v10  ;;  %v7799_v40 = vsel %vm2044_vm8, %v7349_v45, %v7798_v11  ;;  %v7293_v54 = vadd.f32 %v7292_v50, %v7291_v55  ;;  %v7650_v31 = vsel %vm2044_vm8, %v4544_v47, %v15021_v19  ;;  %v17429_v50 = vld [vmem:[#allocation119_spill] sm:$0xff] }
 0x9ff   : > { %v7298_v27 = vadd.f32 %v7297_v61, %v7296_v62  ;;  %v7800_v13 = vsel %vm2046_vm9, %v7356_v42, %v7799_v40  ;;  %v4738_v48 = vadd.f32 %v4737_v33, %v4736_v37  ;;  %v4673_v24 = vadd.f32 %v4672_v7, %v14818_v8  ;;  %v15146_v42 = vpop.permute.xlu2 %7030  ;;  %v9728_v40 = vld [vmem:[%s10008_s25 + $0x20] sm:$0xff] }
 0xa00   : > { %7835 = vrot.lane.b32.xlu1 %v7800_v13, %s9848_s20  ;;  %v7364_v39 = vsel %vm7132_vm13, %v7101_v6, 0.0  ;;  %v7109_v38 = vmul.f32 %v14998_v52, %v17427_v25  ;;  %v7110_v15 = vmul.f32 %v15051_v16, %v17427_v25  ;;  %v7357_v35 = vsel %vm7132_vm13, %v7100_v29, 0.0 }
 0xa01   : > { %v7299_v60 = vrot.slane %v7298_v27, 1  ;;  %v7103_v55 = vmul.f32 %v15043_v58, %v17424_v10  ;;  %v7792_v62 = vsel %vm2044_vm8, %v7293_v54, %v7791_v26  ;;  %v7413_v19 = vsel %vm7132_vm13, %v7108_v36, 0.0  ;;  %v15159_v7 = vpop.permute.xlu1 %6995 }
 0xa02   : > { %v7104_v8 = vmul.f32 %v15066_v32, %v17424_v10  ;;  %v7365_v37 = vrot.slane %v7364_v39, 4  ;;  %v15132_v51 = vadd.f32 %v4667_v5, %v15057_v34  ;;  %v15135_v16 = vsel %vm673_vm1, %v4413_v4, 0.0 }
 0xa03   : > { %v7300_v20 = vadd.f32 %v7299_v60, %v7298_v27  ;;  %v15141_v58 = vsel %vm2046_vm9, %v14822_v30, %v7650_v31  ;;  %v4739_v32 = vrot.slane %v4738_v48, 2  ;;  %v4674_v45 = vrot.slane %v4673_v24, 4 }
 0xa04   : > { %v7358_v1 = vrot.slane %v7357_v35, 4  ;;  %v7420_v46 = vsel %vm7132_vm13, %v7109_v38, 0.0  ;;  %v7414_v22 = vrot.slane %v7413_v19, 4  ;;  %v7427_v34 = vsel %vm7132_vm13, %v7110_v15, 0.0  ;;  %v8810_v38 = vld [vmem:[%s15966_s11 + $0x30] sm:$0xff] }
 0xa05   : > { %v6921_v18 = vpop.permute.xlu0 %6920  ;;  %v7793_v52 = vsel %vm2046_vm9, %v7300_v20, %v7792_v62  ;;  %v7378_v47 = vsel %vm7132_vm13, %v7103_v55, 0.0  ;;  %v7385_v57 = vsel %vm7132_vm13, %v7104_v8, 0.0  ;;  %v7106_v30 = vmul.f32 %v15070_v23, %v17424_v10  ;;  %v8811_v23 = vld [vmem:[%s15966_s11 + $0x38] sm:$0xff] }
 0xa06   : > { %v7102_v49 = vmul.f32 %v6921_v18, %v17424_v10  ;;  %7833 = vrot.lane.b32.xlu0 %v7793_v52, %s9848_s20  ;;  %v7366_v11 = vadd.f32 %v7365_v37, %v7364_v39  ;;  %v15154_v6 = vmul.f32 %v14855_v3, %v17429_v50  ;;  %v4400_v33 = vmul.f32 %v9728_v40, %v17430_v9 }
 0xa07   : > { %v7107_v56 = vmul.f32 %v6946_v2, %v17424_v10  ;;  %v7421_v27 = vrot.slane %v7420_v46, 4  ;;  %v7428_v13 = vrot.slane %v7427_v34, 4  ;;  %v7359_v21 = vadd.f32 %v7358_v1, %v7357_v35  ;;  %7945 = vmatpush.bf16.msrb.mxu3 %v8811_v23  ;;  %v15186_v1 = vpop.permute.xlu2 %7040 }
 0xa08   : > { %v7371_v61 = vsel %vm7132_vm13, %v7102_v49, 0.0  ;;  %v7379_v12 = vrot.slane %v7378_v47, 4  ;;  %v15164_v5 = vadd.f32 %v4739_v32, %v4738_v48  ;;  %v15166_v3 = vadd.f32 %v4674_v45, %v4673_v24 }
 0xa09   : > { %v7372_v59 = vrot.slane %v7371_v61, 4  ;;  %v7386_v36 = vrot.slane %v7385_v57, 4  ;;  %v7112_v60 = vmul.f32 %v15063_v28, %v17427_v25  ;;  %v7415_v26 = vadd.f32 %v7414_v22, %v7413_v19  ;;  %v15192_v9 = vpop.permute.xlu1 %7000 }
 0xa0a   : > { %v7113_v44 = vmul.f32 %v15076_v0, %v17427_v25  ;;  %v7399_v4 = vsel %vm7132_vm13, %v7106_v30, 0.0  ;;  %v7367_v54 = vrot.slane %v7366_v11, 2  ;;  %v7406_v31 = vsel %vm7132_vm13, %v7107_v56, 0.0 }
 0xa0b   : > { %v7373_v29 = vadd.f32 %v7372_v59, %v7371_v61  ;;  %v7422_v2 = vadd.f32 %v7421_v27, %v7420_v46  ;;  %v15179_v28 = vsel %vm673_vm1, %v4400_v33, 0.0  ;;  %v7429_v20 = vadd.f32 %v7428_v13, %v7427_v34  ;;  %7946 = vmatpush.bf16.msrb.mxu3 %v8810_v38  ;;  %v8809_v13 = vld [vmem:[%s15966_s11 + $0x28] sm:$0xff] }
 0xa0c   : > { %v7360_v0 = vrot.slane %v7359_v21, 2  ;;  %v7380_v15 = vadd.f32 %v7379_v12, %v7378_v47  ;;  %v7387_v35 = vadd.f32 %v7386_v36, %v7385_v57  ;;  %v7441_v55 = vsel %vm7132_vm13, %v7112_v60, 0.0  ;;  %v17431_v57 = vld [vmem:[#allocation139_spill] sm:$0xff] }
 0xa0d   : > { %v6966_v39 = vpop.permute.xlu0 %6965  ;;  %v7374_v48 = vrot.slane %v7373_v29, 2  ;;  %v7400_v62 = vrot.slane %v7399_v4, 4  ;;  %v7407_v8 = vrot.slane %v7406_v31, 4  ;;  %v7115_v37 = vmul.f32 %v15106_v43, %v17427_v25 }
 0xa0e   : > { %v7111_v24 = vmul.f32 %v6966_v39, %v17427_v25  ;;  %v7368_v18 = vadd.f32 %v7367_v54, %v7366_v11  ;;  %v7416_v49 = vrot.slane %v7415_v26, 2  ;;  %v7448_v32 = vsel %vm7132_vm13, %v7113_v44, 0.0  ;;  %v8808_v54 = vld [vmem:[%s15966_s11 + $0x20] sm:$0xff] }
 0xa0f   : > { %v7423_v45 = vrot.slane %v7422_v2, 2  ;;  %v7375_v46 = vadd.f32 %v7374_v48, %v7373_v29  ;;  %v7361_v22 = vadd.f32 %v7360_v0, %v7359_v21  ;;  %v7381_v34 = vrot.slane %v7380_v15, 2  ;;  %7947 = vmatpush.bf16.msrb.mxu3 %v8809_v13 }
 0xa10   : > { %v7434_v19 = vsel %vm7132_vm13, %v7111_v24, 0.0  ;;  %v7442_v47 = vrot.slane %v7441_v55, 4  ;;  %v15190_v30 = vmul.f32 %v14900_v17, %v17431_v57  ;;  %v7430_v59 = vrot.slane %v7429_v20, 2 }
 0xa11   : > { %v7435_v52 = vrot.slane %v7434_v19, 4  ;;  %v7388_v43 = vrot.slane %v7387_v35, 2  ;;  %v7401_v11 = vadd.f32 %v7400_v62, %v7399_v4  ;;  %v7449_v50 = vrot.slane %v7448_v32, 4 }
 0xa12   : > { %v7408_v40 = vadd.f32 %v7407_v8, %v7406_v31  ;;  %v7462_v33 = vsel %vm7132_vm13, %v7115_v37, 0.0  ;;  %v7369_v56 = vrot.slane %v7368_v18, 1  ;;  %v7424_v21 = vadd.f32 %v7423_v45, %v7422_v2 }
 0xa13   : > { %v7436_v61 = vadd.f32 %v7435_v52, %v7434_v19  ;;  %v7376_v12 = vrot.slane %v7375_v46, 1  ;;  %v7417_v36 = vadd.f32 %v7416_v49, %v7415_v26  ;;  %v7362_v60 = vrot.slane %v7361_v22, 1  ;;  %7948 = vmatpush.bf16.msrb.mxu3 %v8808_v54 }
 0xa14   : > { %v7382_v44 = vadd.f32 %v7381_v34, %v7380_v15  ;;  %v7443_v4 = vadd.f32 %v7442_v47, %v7441_v55  ;;  %v7389_v39 = vadd.f32 %v7388_v43, %v7387_v35  ;;  %v7402_v31 = vrot.slane %v7401_v11, 2  ;;  %v15203_v47 = vpop.permute.xlu2 %7010  ;;  %v15206_v43 = vpop.permute.xlu1 %7045 }
 0xa15   : > { %v6936_v27 = vpop.permute.xlu0 %6935  ;;  %v7437_v29 = vrot.slane %v7436_v61, 2  ;;  %v7463_v48 = vrot.slane %v7462_v33, 4  ;;  %v7450_v38 = vadd.f32 %v7449_v50, %v7448_v32  ;;  %v7409_v2 = vrot.slane %v7408_v40, 2 }
 0xa16   : > { %v7105_v23 = vmul.f32 %v6936_v27, %v17424_v10  ;;  %v7370_v0 = vadd.f32 %v7369_v56, %v7368_v18  ;;  %v7431_v19 = vadd.f32 %v7430_v59, %v7429_v20  ;;  %v7425_v10 = vrot.slane %v7424_v21, 1 }
 0xa17   : > { %v7377_v26 = vadd.f32 %v7376_v12, %v7375_v46  ;;  %v7438_v8 = vadd.f32 %v7437_v29, %v7436_v61  ;;  %v7363_v15 = vadd.f32 %v7362_v60, %v7361_v22  ;;  %v7383_v55 = vrot.slane %v7382_v44, 1 }
 0xa18   : > { %v7392_v24 = vsel %vm7132_vm13, %v7105_v23, 0.0  ;;  %v7444_v37 = vrot.slane %v7443_v4, 2  ;;  %v7418_v49 = vrot.slane %v7417_v36, 1  ;;  %v7390_v45 = vrot.slane %v7389_v39, 1 }
 0xa19   : > { %v7393_v62 = vrot.slane %v7392_v24, 4  ;;  %v7403_v35 = vadd.f32 %v7402_v31, %v7401_v11  ;;  %v7464_v34 = vadd.f32 %v7463_v48, %v7462_v33  ;;  %v7451_v57 = vrot.slane %v7450_v38, 2  ;;  %v8807_v11 = vld [vmem:[%s15966_s11 + $0x18] sm:$0xff] }
 0xa1a   : > { %v7410_v32 = vadd.f32 %v7409_v2, %v7408_v40  ;;  %v7801_v18 = vsel %vm2034_vm3, %v7370_v0, %v7363_v15  ;;  %v7426_v61 = vadd.f32 %v7425_v10, %v7424_v21  ;;  %v7439_v59 = vrot.slane %v7438_v8, 1  ;;  %7949 = vmatpush.bf16.msrb.mxu3 %v8807_v11  ;;  %v8806_v21 = vld [vmem:[%s15966_s11 + $0x10] sm:$0xff] }
 0xa1b   : > { %v7394_v52 = vadd.f32 %v7393_v62, %v7392_v24  ;;  %v7802_v22 = vsel %vm2036_vm4, %v7377_v26, %v7801_v18  ;;  %v7432_v33 = vrot.slane %v7431_v19, 1  ;;  %v7384_v56 = vadd.f32 %v7383_v55, %v7382_v44  ;;  %v15220_v10 = vld [vmem:[%s10008_s25 + $0x30] sm:$0xff] }
 0xa1c   : > { %v7445_v27 = vadd.f32 %v7444_v37, %v7443_v4  ;;  %v7419_v13 = vadd.f32 %v7418_v49, %v7417_v36  ;;  %v7404_v12 = vrot.slane %v7403_v35, 1  ;;  %v7465_v29 = vrot.slane %v7464_v34, 2  ;;  %v17432_v26 = vld [vmem:[#allocation128_spill] sm:$0xff]  ;;  %v15236_v18 = vpop.permute.xlu2 %7055 }
 0xa1d   : > { %v7395_v20 = vrot.slane %v7394_v52, 2  ;;  %v6981_v46 = vpop.permute.xlu0 %6980  ;;  %v7803_v31 = vsel %vm2038_vm5, %v7384_v56, %v7802_v22  ;;  %v7391_v48 = vadd.f32 %v7390_v45, %v7389_v39  ;;  %v7452_v44 = vadd.f32 %v7451_v57, %v7450_v38  ;;  %v8813_v57 = vld [vmem:[%s15966_s11 + $0x48] sm:$0xff]  ;;  %v17434_v56 = vld [vmem:[#allocation80_spill] sm:$0xff] }
 0xa1e   : > { %v7114_v50 = vmul.f32 %v6981_v46, %v17427_v25  ;;  %v7411_v25 = vrot.slane %v7410_v32, 1  ;;  %v7808_v4 = vsel %vm2034_vm3, %v7426_v61, %v7419_v13  ;;  %v7440_v36 = vadd.f32 %v7439_v59, %v7438_v8  ;;  %7950 = vmatpush.bf16.msrb.mxu3 %v8806_v21  ;;  %v8805_v8 = vld [vmem:[%s15966_s11 + $0x8] sm:$0xff]  ;;  %v15243_v59 = vpop.permute.xlu1 %7015  ;;  %7980 = vmatpush.bf16.msrb.mxu2 %v8813_v57  ;;  %v17435_v13 = vld [vmem:[#allocation34_spill] sm:$0xff] }
 0xa1f   : > { %v7396_v40 = vadd.f32 %v7395_v20, %v7394_v52  ;;  %v7433_v24 = vadd.f32 %v7432_v33, %v7431_v19  ;;  %v7446_v2 = vrot.slane %v7445_v27, 1  ;;  %v4416_v15 = vmul.f32 %v15220_v10, %v17432_v26  ;;  %v17433_v46 = vld [vmem:[#allocation163_spill] sm:$0xff] }
 0xa20   : > { %v7455_v23 = vsel %vm7132_vm13, %v7114_v50, 0.0  ;;  %v7405_v55 = vadd.f32 %v7404_v12, %v7403_v35  ;;  %v7466_v37 = vadd.f32 %v7465_v29, %v7464_v34  ;;  %v7804_v52 = vsel %vm2040_vm6, %v7391_v48, %v7803_v31  ;;  %v15287_v57 = vld [vmem:[%s10008_s25 + $0x48] sm:$0xff] }
 0xa21   : > { %v7397_v60 = vrot.slane %v7396_v40, 1  ;;  %v7456_v54 = vrot.slane %v7455_v23, 4  ;;  %v7412_v49 = vadd.f32 %v7411_v25, %v7410_v32  ;;  %v7809_v39 = vsel %vm2036_vm4, %v7433_v24, %v7808_v4 }
 0xa22   : > { %v4699_v35 = vsel %vm673_vm1, %v15190_v30, 0.0  ;;  %v7453_v34 = vrot.slane %v7452_v44, 1  ;;  %v7810_v32 = vsel %vm2038_vm5, %v7440_v36, %v7809_v39  ;;  %v15241_v61 = vadd.f32 %v17433_v46, %v15179_v28  ;;  %v8812_v30 = vld [vmem:[%s15966_s11 + $0x40] sm:$0xff]  ;;  %7951 = vmatpush.bf16.msrb.mxu3 %v8805_v8  ;;  %v17439_v39 = vld [vmem:[#allocation223_spill] sm:$0xff] }
 0xa23   : > { %v7398_v0 = vadd.f32 %v7397_v60, %v7396_v40  ;;  %v7457_v62 = vadd.f32 %v7456_v54, %v7455_v23  ;;  %v7447_v22 = vadd.f32 %v7446_v2, %v7445_v27  ;;  %v4417_v40 = vmul.f32 %v14900_v17, %v17434_v56  ;;  %v8804_v27 = vld [vmem:[%s15966_s11] sm:$0xff]  ;;  %7981 = vmatpush.bf16.msrb.mxu2 %v8812_v30  ;;  %v17440_v8 = vld [vmem:[#allocation107_spill] sm:$0xff] }
 0xa24   : > { %v7117_v28 = vmul.f32 %v15159_v7, %v17435_v13  ;;  %v7467_v12 = vrot.slane %v7466_v37, 1  ;;  %v15260_v29 = vsel %vm673_vm1, %v15154_v6, 0.0  ;;  %v17436_v23 = vld [vmem:[#allocation222_spill] sm:$0xff]  ;;  %v4676_v7 = vrot.slane %v15166_v3, 2 }
 0xa25   : > { %v7458_v38 = vrot.slane %v7457_v62, 2  ;;  %v6991_v45 = vpop.permute.xlu0 %6990  ;;  %v7805_v19 = vsel %vm2042_vm7, %v7398_v0, %v7804_v52  ;;  %v4700_v21 = vadd.f32 %v4699_v35, %v17436_v23  ;;  %v7811_v17 = vsel %vm2040_vm6, %v7447_v22, %v7810_v32  ;;  %v17437_v54 = vld [vmem:[#allocation98_spill] sm:$0xff]  ;;  %v17441_v35 = vld [vmem:[#allocation116_spill] sm:$0xff] }
 0xa26   : > { %v7806_v20 = vsel %vm2044_vm8, %v7405_v55, %v7805_v19  ;;  %v4406_v31 = vmul.f32 %v15220_v10, %v17437_v54  ;;  %v7454_v48 = vadd.f32 %v7453_v34, %v7452_v44  ;;  %v4761_v36 = vsel %vm673_vm1, %v4416_v15, 0.0  ;;  %7952 = vmatpush.bf16.msrb.mxu3 %v8804_v27  ;;  %v15282_v19 = vld [vmem:[%s10008_s25 + $0x40] sm:$0xff]  ;;  %v17445_v27 = vld [vmem:[#allocation219_spill] sm:$0xff]  ;;  %v17446_v54 = vld [vmem:[#allocation125_spill] sm:$0xff] }
 0xa27   : > { %v7459_v50 = vadd.f32 %v7458_v38, %v7457_v62  ;;  %v7807_v11 = vsel %vm2046_vm9, %v7412_v49, %v7806_v20  ;;  %v7116_v24 = vmul.f32 %v6991_v45, %v17435_v13  ;;  %v4762_v2 = vsel %vm673_vm1, %v4417_v40, 0.0  ;;  %v17438_v49 = vld [vmem:[#allocation216_spill] sm:$0xff]  ;;  %v17442_v32 = vld [vmem:[#allocation14_spill] sm:$0xff] }
 0xa28   : > { %7837 = vrot.lane.b32.xlu2 %v7807_v11, %s9848_s20  ;;  %v7476_v0 = vsel %vm7132_vm13, %v7117_v28, 0.0  ;;  %v7468_v62 = vadd.f32 %v7467_v12, %v7466_v37  ;;  %v7812_v26 = vsel %vm2042_vm7, %v7454_v48, %v7811_v17  ;;  %v4701_v55 = vrot.slane %v4700_v21, 4  ;;  %8779 = vmatmul.msk.bf16.vlgmr.msrb.gmra.mxu2 %vm575_vm0, %v17442_v32  ;;  %v17444_v56 = vld [vmem:[#allocation210_spill] sm:$0xff]  ;;  %v7026_v28 = vpop.permute.xlu2 %7025  ;;  %v15310_v17 = vld [vmem:[%s10008_s25 + $0x38] sm:$0xff] }
 0xa29   : > { %v7460_v25 = vrot.slane %v7459_v50, 1  ;;  %v7118_v44 = vmul.f32 %v15192_v9, %v17435_v13  ;;  %v7653_v38 = vsel %vm2036_vm4, %v17439_v39, %v17438_v49  ;;  %v4716_v45 = vsel %vm673_vm1, %v4406_v31, 0.0  ;;  %v17449_v39 = vld [vmem:[#allocation226_spill] sm:$0xff] }
 0xa2a   : > { %v4422_v37 = vmul.f32 %v15282_v19, %v17440_v8  ;;  %v4423_v9 = vmul.f32 %v15287_v57, %v17441_v35  ;;  %v7477_v20 = vrot.slane %v7476_v0, 4  ;;  %v7469_v46 = vsel %vm7132_vm13, %v7116_v24, 0.0  ;;  %v17452_v60 = vld [vmem:[#allocation182_spill] sm:$0xff] }
 0xa2b   : > { %v7461_v6 = vadd.f32 %v7460_v25, %v7459_v50  ;;  %v4624_v22 = vrot.slane %v14953_v14, 1  ;;  %v17443_v50 = vld [vmem:[#allocation215_spill] sm:$0xff]  ;;  %v15299_v30 = vadd.f32 %v4762_v2, %v4761_v36  ;;  %v7124_v40 = vmul.f32 %v15146_v42, %v17444_v56  ;;  %v7061_v36 = vpop.permute.xlu1 %7060 }
 0xa2c   : > { %v7654_v11 = vsel %vm2038_vm5, %v17443_v50, %v7653_v38  ;;  %v15307_v25 = vadd.f32 %v14985_v63, %v4716_v45  ;;  %v4409_v31 = vmul.f32 %v15310_v17, %v17446_v54  ;;  %v7483_v48 = vsel %vm7132_vm13, %v7118_v44, 0.0 }
 0xa2d   : > { %v7036_v52 = vpop.permute.xlu0 %7035  ;;  %v7813_v15 = vsel %vm2044_vm8, %v7461_v6, %v7812_v26  ;;  %v7655_v23 = vsel %vm2040_vm6, %v17445_v27, %v7654_v11  ;;  %v17447_v6 = vld [vmem:[#allocation218_spill] sm:$0xff]  ;;  %v15318_v2 = vadd.f32 %v4701_v55, %v4700_v21  ;;  %v7120_v63 = vmul.f32 %v15203_v47, %v17435_v13 }
 0xa2e   : > { %v7814_v34 = vsel %vm2046_vm9, %v7468_v62, %v7813_v15  ;;  %v7125_v12 = vmul.f32 %v7036_v52, %v17444_v56  ;;  %v17448_v42 = vrot.slane %v17447_v6, 1  ;;  %v4789_v62 = vsel %vm673_vm1, %v4423_v9, 0.0 }
 0xa2f   : > { %7839 = vrot.lane.b32.xlu0 %v7814_v34, %s9848_s20  ;;  %v7470_v26 = vrot.slane %v7469_v46, 4  ;;  %v4788_v52 = vsel %vm673_vm1, %v4422_v37, 0.0  ;;  %v7478_v15 = vadd.f32 %v7477_v20, %v7476_v0  ;;  %v4625_v49 = vadd.f32 %v4624_v22, %v14953_v14 }
 0xa30   : > { %v4616_v24 = vadd.f32 %v17448_v42, %v17447_v6  ;;  %v7656_v44 = vsel %vm2042_vm7, %v17449_v39, %v7655_v23  ;;  %v7484_v38 = vrot.slane %v7483_v48, 4  ;;  %v7525_v45 = vsel %vm7132_vm13, %v7124_v40, 0.0 }
 0xa31   : > { %v7126_v21 = vmul.f32 %v15186_v1, %v17444_v56  ;;  %v7532_v55 = vsel %vm7132_vm13, %v7125_v12, 0.0  ;;  %v4719_v8 = vrot.slane %v15307_v25, 4  ;;  %v15332_v47 = vadd.f32 %v4789_v62, %v4788_v52 }
 0xa32   : > { %v4726_v37 = vsel %vm673_vm1, %v4409_v31, 0.0  ;;  %v7657_v14 = vsel %vm2044_vm8, %v4616_v24, %v7656_v44  ;;  %v7497_v35 = vsel %vm7132_vm13, %v7120_v63, 0.0  ;;  %v7121_v9 = vmul.f32 %v15243_v59, %v17435_v13 }
 0xa33   : > { %v7471_v34 = vadd.f32 %v7470_v26, %v7469_v46  ;;  %v7479_v1 = vrot.slane %v7478_v15, 2  ;;  %v7526_v20 = vrot.slane %v7525_v45, 4  ;;  %v7533_v22 = vrot.slane %v7532_v55, 4 }
 0xa34   : > { %v7658_v50 = vsel %vm2046_vm9, %v4625_v49, %v7657_v14  ;;  %v7485_v11 = vadd.f32 %v7484_v38, %v7483_v48  ;;  %v7539_v40 = vsel %vm7132_vm13, %v7126_v21, 0.0  ;;  %v7127_v12 = vmul.f32 %v15206_v43, %v17444_v56 }
 0xa35   : > { %v7006_v0 = vpop.permute.xlu0 %7005  ;;  %v7498_v54 = vrot.slane %v7497_v35, 4  ;;  %v7123_v59 = vmul.f32 %v7026_v28, %v17435_v13  ;;  %v7504_v48 = vsel %vm7132_vm13, %v7121_v9, 0.0  ;;  %v7472_v24 = vrot.slane %v7471_v34, 2 }
 0xa36   : > { %v7119_v32 = vmul.f32 %v7006_v0, %v17435_v13  ;;  %v7527_v43 = vadd.f32 %v7526_v20, %v7525_v45  ;;  %v7534_v63 = vadd.f32 %v7533_v22, %v7532_v55  ;;  %v7480_v52 = vadd.f32 %v7479_v1, %v7478_v15  ;;  %v17450_v15 = vld [vmem:[#allocation15_spill] sm:$0xff]  ;;  %v17451_v1 = vld [vmem:[#allocation234_spill] sm:$0xff] }
 0xa37   : > { %v7540_v49 = vrot.slane %v7539_v40, 4  ;;  %v7129_v39 = vmul.f32 %v15236_v18, %v17444_v56  ;;  %v7546_v44 = vsel %vm7132_vm13, %v7127_v12, 0.0  ;;  %v7486_v38 = vrot.slane %v7485_v11, 2 }
 0xa38   : > { %v7490_v27 = vsel %vm7132_vm13, %v7119_v32, 0.0  ;;  %v7832_v23 = vpop.permute.xlu2 %7831  ;;  %v7499_v21 = vadd.f32 %v7498_v54, %v7497_v35  ;;  %v7518_v0 = vsel %vm7132_vm13, %v7123_v59, 0.0  ;;  %v7505_v14 = vrot.slane %v7504_v48, 4  ;;  %8780 = vmatmul.msk.bf16.gmra.mxu2 %vm575_vm0, %v17450_v15 }
 0xa39   : > { %v7491_v46 = vrot.slane %v7490_v27, 4  ;;  %v15347_v31 = vsel %vm673_vm1, %v7658_v50, %v7832_v23  ;;  %v7830_v6 = vpop.permute.xlu1 %7829  ;;  %v7130_v45 = vmul.f32 %v7061_v36, %v17444_v56  ;;  %v7473_v55 = vadd.f32 %v7472_v24, %v7471_v34 }
 0xa3a   : > { %v15353_v62 = vsel %vm673_vm1, %v15141_v58, %v7830_v6  ;;  %v15366_v18 = vadd.f32 %v4726_v37, %v17451_v1  ;;  %v7528_v20 = vrot.slane %v7527_v43, 2  ;;  %v7547_v22 = vrot.slane %v7546_v44, 4 }
 0xa3b   : > { %v7492_v26 = vadd.f32 %v7491_v46, %v7490_v27  ;;  %v7881_v28 = vpack.c.bf16 %v15347_v31, %v15353_v62  ;;  %v7535_v35 = vrot.slane %v7534_v63, 2  ;;  %v7541_v50 = vadd.f32 %v7540_v49, %v7539_v40 }
 0xa3c   : > { %v7560_v12 = vsel %vm7132_vm13, %v7129_v39, 0.0  ;;  %v7519_v27 = vrot.slane %v7518_v0, 4  ;;  %v7487_v36 = vadd.f32 %v7486_v38, %v7485_v11  ;;  %v7500_v34 = vrot.slane %v7499_v21, 2 }
 0xa3d   : > { %v7051_v58 = vpop.permute.xlu0 %7050  ;;  %7953 = vmatmul.bf16.vlgmr.msrb.gmra.mxu3 %v7881_v28  ;;  %v7493_v9 = vrot.slane %v7492_v26, 2  ;;  %v7506_v54 = vadd.f32 %v7505_v14, %v7504_v48  ;;  %v7481_v46 = vrot.slane %v7480_v52, 1  ;;  %v7567_v6 = vsel %vm7132_vm13, %v7130_v45, 0.0 }
 0xa3e   : > { %v7128_v32 = vmul.f32 %v7051_v58, %v17444_v56  ;;  %v7474_v24 = vrot.slane %v7473_v55, 1  ;;  %v7561_v37 = vrot.slane %v7560_v12, 4  ;;  %v7548_v58 = vadd.f32 %v7547_v22, %v7546_v44 }
 0xa3f   : > { %v7494_v28 = vadd.f32 %v7493_v9, %v7492_v26  ;;  %v7536_v15 = vadd.f32 %v7535_v35, %v7534_v63  ;;  %v4412_v40 = vmul.f32 %v15220_v10, %v17452_v60  ;;  %v7529_v49 = vadd.f32 %v7528_v20, %v7527_v43 }
 0xa40   : > { %v7553_v23 = vsel %vm7132_vm13, %v7128_v32, 0.0  ;;  %v7542_v39 = vrot.slane %v7541_v50, 2  ;;  %v7520_v33 = vadd.f32 %v7519_v27, %v7518_v0  ;;  %v7488_v32 = vrot.slane %v7487_v36, 1 }
 0xa41   : > { %v7554_v59 = vrot.slane %v7553_v23, 4  ;;  %v7501_v11 = vadd.f32 %v7500_v34, %v7499_v21  ;;  %v7507_v38 = vrot.slane %v7506_v54, 2  ;;  %v7568_v48 = vrot.slane %v7567_v6, 4 }
 0xa42   : > { %v7475_v42 = vadd.f32 %v7474_v24, %v7473_v55  ;;  %v7495_v4 = vrot.slane %v7494_v28, 1  ;;  %v7482_v9 = vadd.f32 %v7481_v46, %v7480_v52  ;;  %v7562_v44 = vadd.f32 %v7561_v37, %v7560_v12 }
 0xa43   : > { %v7555_v1 = vadd.f32 %v7554_v59, %v7553_v23  ;;  %v7549_v63 = vrot.slane %v7548_v58, 2  ;;  %v7537_v22 = vrot.slane %v7536_v15, 1  ;;  %v7530_v35 = vrot.slane %v7529_v49, 1 }
 0xa44   : > { %v7543_v23 = vadd.f32 %v7542_v39, %v7541_v50  ;;  %v7521_v10 = vrot.slane %v7520_v33, 2  ;;  %v7489_v43 = vadd.f32 %v7488_v32, %v7487_v36  ;;  %v7502_v0 = vrot.slane %v7501_v11, 1 }
 0xa45   : > { %v7021_v14 = vpop.permute.xlu0 %7020  ;;  %v7556_v45 = vrot.slane %v7555_v1, 2  ;;  %v7508_v21 = vadd.f32 %v7507_v38, %v7506_v54  ;;  %v7569_v27 = vadd.f32 %v7568_v48, %v7567_v6  ;;  %v7815_v55 = vsel %vm2034_vm3, %v7482_v9, %v7475_v42  ;;  %v17455_v9 = vld [vmem:[#allocation129_spill] sm:$0xff] }
 0xa46   : > { %v7122_v26 = vmul.f32 %v7021_v14, %v17435_v13  ;;  %v7496_v34 = vadd.f32 %v7495_v4, %v7494_v28  ;;  %v7563_v24 = vrot.slane %v7562_v44, 2  ;;  %v7550_v13 = vadd.f32 %v7549_v63, %v7548_v58  ;;  %v17453_v58 = vld [vmem:[#allocation16_spill] sm:$0xff] }
 0xa47   : > { %v7557_v59 = vadd.f32 %v7556_v45, %v7555_v1  ;;  %v7538_v52 = vadd.f32 %v7537_v22, %v7536_v15  ;;  %v4743_v46 = vsel %vm673_vm1, %v4412_v40, 0.0  ;;  %v7531_v37 = vadd.f32 %v7530_v35, %v7529_v49  ;;  %v17454_v49 = vld [vmem:[#allocation188_spill] sm:$0xff] }
 0xa48   : > { %v7511_v60 = vsel %vm7132_vm13, %v7122_v26, 0.0  ;;  %v7544_v50 = vrot.slane %v7543_v23, 1  ;;  %v7522_v39 = vadd.f32 %v7521_v10, %v7520_v33  ;;  %v7503_v14 = vadd.f32 %v7502_v0, %v7501_v11  ;;  %8781 = vmatmul.msk.bf16.gmra.mxu2 %vm575_vm0, %v17453_v58 }
 0xa49   : > { %v7512_v20 = vrot.slane %v7511_v60, 4  ;;  %v7509_v26 = vrot.slane %v7508_v21, 1  ;;  %v7816_v36 = vsel %vm2036_vm4, %v7489_v43, %v7815_v55  ;;  %v7570_v6 = vrot.slane %v7569_v27, 2 }
 0xa4a   : > { %v7817_v42 = vsel %vm2038_vm5, %v7496_v34, %v7816_v36  ;;  %v7558_v4 = vrot.slane %v7557_v59, 1  ;;  %v7564_v15 = vadd.f32 %v7563_v24, %v7562_v44  ;;  %v7551_v1 = vrot.slane %v7550_v13, 1  ;;  %v17456_v24 = vld [vmem:[#allocation186_spill] sm:$0xff] }
 0xa4b   : > { %v7513_v12 = vadd.f32 %v7512_v20, %v7511_v60  ;;  %v7822_v40 = vsel %vm2034_vm3, %v7538_v52, %v7531_v37  ;;  %v4429_v11 = vmul.f32 %v15287_v57, %v17454_v49  ;;  %v7545_v38 = vadd.f32 %v7544_v50, %v7543_v23 }
 0xa4c   : > { %v7523_v48 = vrot.slane %v7522_v39, 1  ;;  %v4415_v63 = vmul.f32 %v15310_v17, %v17455_v9  ;;  %v7818_v35 = vsel %vm2040_vm6, %v7503_v14, %v7817_v42  ;;  %v7510_v10 = vadd.f32 %v7509_v26, %v7508_v21 }
 0xa4d   : > { %v7514_v54 = vrot.slane %v7513_v12, 2  ;;  %v7066_v32 = vpop.permute.xlu0 %7065  ;;  %v7571_v44 = vadd.f32 %v7570_v6, %v7569_v27  ;;  %v7823_v60 = vsel %vm2036_vm4, %v7545_v38, %v7822_v40  ;;  %v7559_v43 = vadd.f32 %v7558_v4, %v7557_v59 }
 0xa4e   : > { %v7131_v28 = vmul.f32 %v7066_v32, %v17444_v56  ;;  %v7565_v0 = vrot.slane %v7564_v15, 1  ;;  %v7552_v20 = vadd.f32 %v7551_v1, %v7550_v13  ;;  %v4745_v23 = vadd.f32 %v15135_v16, %v4743_v46 }
 0xa4f   : > { %v7515_v33 = vadd.f32 %v7514_v54, %v7513_v12  ;;  %v4428_v52 = vmul.f32 %v15282_v19, %v17456_v24  ;;  %v7524_v12 = vadd.f32 %v7523_v48, %v7522_v39  ;;  %v7819_v17 = vsel %vm2042_vm7, %v7510_v10, %v7818_v35  ;;  %v17460_v48 = vld [vmem:[#allocation85_spill] sm:$0xff]  ;;  %v17464_v24 = vld [vmem:[#allocation144_spill] sm:$0xff] }
 0xa50   : > { %v7574_v45 = vsel %vm7132_vm13, %v7131_v28, 0.0  ;;  %v4816_v37 = vsel %vm673_vm1, %v4429_v11, 0.0  ;;  %v7824_v27 = vsel %vm2038_vm5, %v7552_v20, %v7823_v60  ;;  %v4753_v59 = vsel %vm673_vm1, %v4415_v63, 0.0  ;;  %v17459_v11 = vld [vmem:[#allocation78_spill] sm:$0xff] }
 0xa51   : > { %v7516_v22 = vrot.slane %v7515_v33, 1  ;;  %v7575_v56 = vrot.slane %v7574_v45, 4  ;;  %v7572_v13 = vrot.slane %v7571_v44, 1  ;;  %v7825_v16 = vsel %vm2040_vm6, %v7559_v43, %v7824_v27  ;;  %v17466_v27 = vld [vmem:[#allocation183_spill] sm:$0xff] }
 0xa52   : > { %v4703_v46 = vrot.slane %v15318_v2, 2  ;;  %v4728_v39 = vrot.slane %v15366_v18, 4  ;;  %v7566_v26 = vadd.f32 %v7565_v0, %v7564_v15  ;;  %v4677_v54 = vadd.f32 %v4676_v7, %v15166_v3  ;;  %v17463_v0 = vld [vmem:[#allocation17_spill] sm:$0xff] }
 0xa53   : > { %v7517_v55 = vadd.f32 %v7516_v22, %v7515_v33  ;;  %v7576_v34 = vadd.f32 %v7575_v56, %v7574_v45  ;;  %v4720_v32 = vadd.f32 %v4719_v8, %v15307_v25  ;;  %v4746_v6 = vrot.slane %v4745_v23, 4 }
 0xa54   : > { %v4815_v42 = vsel %vm673_vm1, %v4428_v52, 0.0  ;;  %v4754_v28 = vadd.f32 %v4753_v59, %v15260_v29  ;;  %v7826_v15 = vsel %vm2042_vm7, %v7566_v26, %v7825_v16  ;;  %v17457_v1 = vrot.slane %v15241_v61, 4 }
 0xa55   : > { %v7577_v50 = vrot.slane %v7576_v34, 2  ;;  %v7820_v21 = vsel %vm2044_vm8, %v7517_v55, %v7819_v17  ;;  %v4817_v4 = vadd.f32 %v4816_v37, %v4815_v42  ;;  %v4764_v33 = vrot.slane %v15299_v30, 4  ;;  %v15446_v37 = vld [vmem:[%s10008_s25 + $0x58] sm:$0xff] }
 0xa56   : > { %v7821_v14 = vsel %vm2046_vm9, %v7524_v12, %v7820_v21  ;;  %v4693_v40 = vadd.f32 %v17457_v1, %v15241_v61  ;;  %v17458_v3 = vrot.slane %v15332_v47, 4  ;;  %v7573_v25 = vadd.f32 %v7572_v13, %v7571_v44 }
 0xa57   : > { %v7578_v36 = vadd.f32 %v7577_v50, %v7576_v34  ;;  %7841 = vrot.lane.b32.xlu1 %v7821_v14, %s9848_s20  ;;  %v4704_v8 = vadd.f32 %v4703_v46, %v15318_v2  ;;  %v4729_v49 = vadd.f32 %v4728_v39, %v15366_v18  ;;  %v4418_v29 = vmul.f32 %v15282_v19, %v17459_v11  ;;  %v17465_v50 = vld [vmem:[#allocation184_spill] sm:$0xff] }
 0xa58   : > { %v4792_v7 = vadd.f32 %v17458_v3, %v15332_v47  ;;  %v4419_v45 = vmul.f32 %v15287_v57, %v17460_v48  ;;  %v4721_v9 = vrot.slane %v4720_v32, 2  ;;  %v4747_v61 = vadd.f32 %v4746_v6, %v4745_v23  ;;  %8782 = vmatmul.msk.bf16.gmra.mxu2 %vm575_vm0, %v17463_v0  ;;  %v17467_v6 = vld [vmem:[#allocation81_spill] sm:$0xff] }
 0xa59   : > { %v7579_v58 = vrot.slane %v7578_v36, 1  ;;  %v7827_v63 = vsel %vm2044_vm8, %v7573_v25, %v7826_v15  ;;  %v17461_v22 = vrot.slane %v15132_v51, 1  ;;  %v4818_v56 = vrot.slane %v4817_v4, 4  ;;  %v17470_v48 = vld [vmem:[#allocation181_spill] sm:$0xff] }
 0xa5a   : > { %v4755_v2 = vrot.slane %v4754_v28, 4  ;;  %v17462_v35 = vrot.slane %v15164_v5, 1  ;;  %v4678_v44 = vrot.slane %v4677_v54, 1  ;;  %v4765_v60 = vadd.f32 %v4764_v33, %v15299_v30 }
 0xa5b   : > { %v7580_v38 = vadd.f32 %v7579_v58, %v7578_v36  ;;  %v15429_v47 = vadd.f32 %v17461_v22, %v15132_v51  ;;  %v4793_v43 = vrot.slane %v4792_v7, 2  ;;  %v4694_v51 = vrot.slane %v4693_v40, 2  ;;  %v17468_v58 = vld [vmem:[#allocation135_spill] sm:$0xff] }
 0xa5c   : > { %v15435_v10 = vadd.f32 %v17462_v35, %v15164_v5  ;;  %v4705_v20 = vrot.slane %v4704_v8, 1  ;;  %v4730_v55 = vrot.slane %v4729_v49, 2  ;;  %v4770_v34 = vsel %vm673_vm1, %v4418_v29, 0.0 }
 0xa5d   : > { %v7828_v18 = vsel %vm2046_vm9, %v7580_v38, %v7827_v63  ;;  %v4771_v23 = vsel %vm673_vm1, %v4419_v45, 0.0  ;;  %v4420_v5 = vmul.f32 %v15282_v19, %v17464_v24  ;;  %v4722_v52 = vadd.f32 %v4721_v9, %v4720_v32  ;;  %v15457_v32 = vld [vmem:[%s10008_s25 + $0x50] sm:$0xff] }
 0xa5e   : > { %7843 = vrot.lane.b32.xlu2 %v7828_v18, %s9848_s20  ;;  %v4748_v12 = vrot.slane %v4747_v61, 2  ;;  %v4819_v30 = vadd.f32 %v4818_v56, %v4817_v4  ;;  %v4756_v17 = vadd.f32 %v4755_v2, %v4754_v28  ;;  %v4435_v21 = vmul.f32 %v15446_v37, %v17465_v50 }
 0xa5f   : > { %v4421_v59 = vmul.f32 %v15287_v57, %v17466_v27  ;;  %v15452_v13 = vadd.f32 %v4678_v44, %v4677_v54  ;;  %v4766_v14 = vrot.slane %v4765_v60, 2  ;;  %v4794_v16 = vadd.f32 %v4793_v43, %v4792_v7  ;;  %v17471_v44 = vld [vmem:[#allocation86_spill] sm:$0xff] }
 0xa60   : > { %v4772_v46 = vadd.f32 %v4771_v23, %v4770_v34  ;;  %v15454_v39 = vadd.f32 %v4694_v51, %v4693_v40  ;;  %v4706_v26 = vadd.f32 %v4705_v20, %v4704_v8  ;;  %v4731_v36 = vadd.f32 %v4730_v55, %v4729_v49  ;;  %v17469_v8 = vld [vmem:[#allocation142_spill] sm:$0xff]  ;;  %v17472_v51 = vld [vmem:[#allocation185_spill] sm:$0xff] }
 0xa61   : > { %v4434_v42 = vmul.f32 %v15457_v32, %v17467_v6  ;;  %v4779_v4 = vsel %vm673_vm1, %v4420_v5, 0.0  ;;  %v4723_v28 = vrot.slane %v4722_v52, 1  ;;  %v4425_v15 = vmul.f32 %v15287_v57, %v17468_v58  ;;  %v17473_v23 = vld [vmem:[#allocation61_spill] sm:$0xff] }
 0xa62   : > { %v4749_v54 = vadd.f32 %v4748_v12, %v4747_v61  ;;  %v4820_v1 = vrot.slane %v4819_v30, 2  ;;  %v4757_v33 = vrot.slane %v4756_v17, 2  ;;  %v4843_v3 = vsel %vm673_vm1, %v4435_v21, 0.0  ;;  %v17474_v5 = vld [vmem:[#allocation221_spill] sm:$0xff] }
 0xa63   : > { %v4780_v40 = vsel %vm673_vm1, %v4421_v59, 0.0  ;;  %v15466_v7 = vadd.f32 %v4766_v14, %v4765_v60  ;;  %v4795_v25 = vrot.slane %v4794_v16, 1  ;;  %v4426_v49 = vmul.f32 %v15282_v19, %v17469_v8  ;;  %v17476_v21 = vld [vmem:[#allocation225_spill] sm:$0xff] }
 0xa64   : > { %v4773_v11 = vrot.slane %v4772_v46, 4  ;;  %v7666_v29 = vsel %vm2034_vm3, %v15096_v41, %v4706_v26  ;;  %v4732_v38 = vrot.slane %v4731_v36, 1  ;;  %v4431_v45 = vmul.f32 %v15287_v57, %v17470_v48 }
 0xa65   : > { %v4842_v9 = vsel %vm673_vm1, %v4434_v42, 0.0  ;;  %v4798_v61 = vsel %vm673_vm1, %v4425_v15, 0.0  ;;  %v4750_v63 = vrot.slane %v4749_v54, 1  ;;  %v4781_v56 = vadd.f32 %v4780_v40, %v4779_v4  ;;  %v17478_v42 = vld [vmem:[#allocation52_spill] sm:$0xff] }
 0xa66   : > { %v4844_v22 = vadd.f32 %v4843_v3, %v4842_v9  ;;  %v4724_v2 = vadd.f32 %v4723_v28, %v4722_v52  ;;  %v15476_v18 = vadd.f32 %v4820_v1, %v4819_v30  ;;  %v4758_v35 = vadd.f32 %v4757_v33, %v4756_v17  ;;  %v17479_v28 = vld [vmem:[#allocation189_spill] sm:$0xff]  ;;  %v17480_v15 = vld [vmem:[#allocation56_spill] sm:$0xff] }
 0xa67   : > { %v4432_v60 = vmul.f32 %v15282_v19, %v17471_v44  ;;  %v15480_v43 = vadd.f32 %v4795_v25, %v4794_v16  ;;  %v4806_v41 = vsel %vm673_vm1, %v4426_v49, 0.0  ;;  %v15483_v0 = vadd.f32 %v4773_v11, %v4772_v46  ;;  %v17477_v46 = vld [vmem:[#allocation187_spill] sm:$0xff]  ;;  %v17481_v33 = vld [vmem:[#allocation229_spill] sm:$0xff] }
 0xa68   : > { %v4424_v20 = vmul.f32 %v15282_v19, %v17472_v51  ;;  %v4733_v55 = vadd.f32 %v4732_v38, %v4731_v36  ;;  %v15488_v34 = vsel %vm673_vm1, %v4431_v45, 0.0  ;;  %v4437_v24 = vmul.f32 %v15446_v37, %v17473_v23  ;;  %v17483_v44 = vld [vmem:[#allocation173_spill] sm:$0xff]  ;;  %v17484_v51 = vld [vmem:[#allocation72_spill] sm:$0xff] }
 0xa69   : > { %v17475_v52 = vrot.slane %v17474_v5, 1  ;;  %v4751_v30 = vadd.f32 %v4750_v63, %v4749_v54  ;;  %v4845_v17 = vrot.slane %v4844_v22, 4  ;;  %v4782_v50 = vrot.slane %v4781_v56, 4  ;;  %v17482_v63 = vld [vmem:[#allocation77_spill] sm:$0xff] }
 0xa6a   : > { %v7660_v27 = vsel %vm2036_vm4, %v15101_v53, %v17476_v21  ;;  %v4822_v59 = vrot.slane %v15476_v18, 1  ;;  %v4759_v14 = vrot.slane %v4758_v35, 1  ;;  %v15500_v16 = vsel %vm673_vm1, %v4432_v60, 0.0  ;;  %v17486_v21 = vld [vmem:[#allocation54_spill] sm:$0xff] }
 0xa6b   : > { %v4688_v12 = vadd.f32 %v17475_v52, %v17474_v5  ;;  %v4438_v26 = vmul.f32 %v15457_v32, %v17477_v46  ;;  %v4775_v36 = vrot.slane %v15483_v0, 2  ;;  %v4797_v6 = vsel %vm673_vm1, %v4424_v20, 0.0 }
 0xa6c   : > { %v4440_v4 = vmul.f32 %v15457_v32, %v17478_v42  ;;  %v4441_v58 = vmul.f32 %v15446_v37, %v17479_v28  ;;  %v4852_v53 = vsel %vm673_vm1, %v4437_v24, 0.0  ;;  %v4427_v54 = vmul.f32 %v15287_v57, %v17480_v15 }
 0xa6d   : > { %v7667_v1 = vsel %vm2036_vm4, %v4724_v2, %v7666_v29  ;;  %v7661_v3 = vsel %vm2038_vm5, %v17481_v33, %v7660_v27  ;;  %v15516_v40 = vadd.f32 %v4845_v17, %v4844_v22  ;;  %v4783_v25 = vadd.f32 %v4782_v50, %v4781_v56 }
 0xa6e   : > { %v7668_v8 = vsel %vm2038_vm5, %v4733_v55, %v7667_v1  ;;  %v4696_v49 = vrot.slane %v15454_v39, 1  ;;  %v4860_v11 = vsel %vm673_vm1, %v4438_v26, 0.0  ;;  %v4799_v38 = vadd.f32 %v4798_v61, %v4797_v6 }
 0xa6f   : > { %v4760_v48 = vadd.f32 %v4759_v14, %v4758_v35  ;;  %v7662_v45 = vsel %vm2040_vm6, %v15429_v47, %v7661_v3  ;;  %v4869_v9 = vsel %vm673_vm1, %v4440_v4, 0.0  ;;  %v4870_v29 = vsel %vm673_vm1, %v4441_v58, 0.0  ;;  %v17485_v35 = vld [vmem:[#allocation74_spill] sm:$0xff] }
 0xa70   : > { %v4436_v22 = vmul.f32 %v15457_v32, %v17482_v63  ;;  %v4768_v56 = vrot.slane %v15466_v7, 1  ;;  %v4807_v2 = vsel %vm673_vm1, %v4427_v54, 0.0  ;;  %v4430_v60 = vmul.f32 %v15282_v19, %v17483_v44  ;;  %v17489_v54 = vld [vmem:[#allocation92_spill] sm:$0xff] }
 0xa71   : > { %v4439_v61 = vmul.f32 %v15446_v37, %v17484_v51  ;;  %v7669_v47 = vsel %vm2040_vm6, %v15435_v10, %v7668_v8  ;;  %v4447_v20 = vmul.f32 %v15446_v37, %v17485_v35  ;;  %v4697_v23 = vadd.f32 %v4696_v49, %v15454_v39  ;;  %v17487_v39 = vld [vmem:[#allocation66_spill] sm:$0xff]  ;;  %v17491_v63 = vld [vmem:[#allocation76_spill] sm:$0xff] }
 0xa72   : > { %v7670_v55 = vsel %vm2042_vm7, %v4751_v30, %v7669_v47  ;;  %v7663_v24 = vsel %vm2042_vm7, %v15452_v13, %v7662_v45  ;;  %v4784_v5 = vrot.slane %v4783_v25, 2  ;;  %v4800_v52 = vrot.slane %v4799_v38, 4  ;;  %v7836_v46 = vpop.permute.xlu1 %7835  ;;  %v17490_v45 = vld [vmem:[#allocation82_spill] sm:$0xff] }
 0xa73   : > { %v4871_v17 = vadd.f32 %v4870_v29, %v4869_v9  ;;  %v7671_v19 = vsel %vm2044_vm8, %v4760_v48, %v7670_v55  ;;  %v4808_v50 = vadd.f32 %v4807_v2, %v4806_v41  ;;  %v4443_v27 = vmul.f32 %v15446_v37, %v17486_v21  ;;  %v17488_v41 = vld [vmem:[#allocation70_spill] sm:$0xff]  ;;  %v17492_v55 = vld [vmem:[#allocation79_spill] sm:$0xff] }
 0xa74   : > { %v4851_v10 = vsel %vm673_vm1, %v4436_v22, 0.0  ;;  %v4769_v14 = vadd.f32 %v4768_v56, %v15466_v7  ;;  %v4824_v30 = vsel %vm673_vm1, %v4430_v60, 0.0  ;;  %v4446_v26 = vmul.f32 %v15457_v32, %v17487_v39 }
 0xa75   : > { %v4861_v13 = vsel %vm673_vm1, %v4439_v61, 0.0  ;;  %v7664_v6 = vsel %vm2044_vm8, %v4688_v12, %v7663_v24  ;;  %v4897_v42 = vsel %vm673_vm1, %v4447_v20, 0.0  ;;  %v4442_v4 = vmul.f32 %v15457_v32, %v17488_v41 }
 0xa76   : > { %v7672_v28 = vsel %vm2046_vm9, %v4769_v14, %v7671_v19  ;;  %v7665_v58 = vsel %vm2046_vm9, %v4697_v23, %v7664_v6  ;;  %v4853_v15 = vadd.f32 %v4852_v53, %v4851_v10  ;;  %v4445_v1 = vmul.f32 %v15446_v37, %v17489_v54  ;;  %v17493_v19 = vld [vmem:[#allocation172_spill] sm:$0xff] }
 0xa77   : > { %v15559_v33 = vsel %vm673_vm1, %v7672_v28, %v7836_v46  ;;  %v4872_v12 = vrot.slane %v4871_v17, 4  ;;  %v4809_v8 = vrot.slane %v4808_v50, 4  ;;  %v4862_v49 = vadd.f32 %v4861_v13, %v4860_v11 }
 0xa78   : > { %v7834_v7 = vpop.permute.xlu0 %7833  ;;  %v4444_v9 = vmul.f32 %v15457_v32, %v17490_v45  ;;  %v4826_v53 = vadd.f32 %v15488_v34, %v4824_v30  ;;  %v4896_v29 = vsel %vm673_vm1, %v4446_v26, 0.0  ;;  %v4433_v22 = vmul.f32 %v15287_v57, %v17491_v63 }
 0xa79   : > { %v15562_v3 = vsel %vm673_vm1, %v7665_v58, %v7834_v7  ;;  %v4847_v56 = vrot.slane %v15516_v40, 2  ;;  %v4785_v2 = vadd.f32 %v4784_v5, %v4783_v25  ;;  %v4898_v44 = vadd.f32 %v4897_v42, %v4896_v29  ;;  %v15595_v58 = vld [vmem:[%s10008_s25 + $0x68] sm:$0xff]  ;;  %v17494_v7 = vld [vmem:[#allocation64_spill] sm:$0xff] }
 0xa7a   : > { %v7882_v48 = vpack.c.bf16 %v15559_v33, %v15562_v3  ;;  %v4878_v60 = vsel %vm673_vm1, %v4442_v4, 0.0  ;;  %v4801_v11 = vadd.f32 %v4800_v52, %v4799_v38  ;;  %v4879_v51 = vsel %vm673_vm1, %v4443_v27, 0.0 }
 0xa7b   : > { %v4854_v61 = vrot.slane %v4853_v15, 4  ;;  %v4888_v47 = vsel %vm673_vm1, %v4445_v1, 0.0  ;;  %v4873_v35 = vadd.f32 %v4872_v12, %v4871_v17  ;;  %v4810_v34 = vadd.f32 %v4809_v8, %v4808_v50 }
 0xa7c   : > { %7958 = vmatmul.bf16.gmra.mxu3 %v7882_v48  ;;  %v4863_v20 = vrot.slane %v4862_v49, 4  ;;  %v4448_v23 = vmul.f32 %v15457_v32, %v17492_v55  ;;  %v4887_v57 = vsel %vm673_vm1, %v4444_v9, 0.0  ;;  %v4827_v24 = vrot.slane %v4826_v53, 4  ;;  %v15600_v9 = vld [vmem:[%s10008_s25 + $0x60] sm:$0xff] }
 0xa7d   : > { %v4834_v25 = vsel %vm673_vm1, %v4433_v22, 0.0  ;;  %v4880_v5 = vadd.f32 %v4879_v51, %v4878_v60  ;;  %v4776_v38 = vadd.f32 %v4775_v36, %v15483_v0  ;;  %v4899_v52 = vrot.slane %v4898_v44, 4 }
 0xa7e   : > { %v4449_v21 = vmul.f32 %v15446_v37, %v17493_v19  ;;  %v4889_v17 = vadd.f32 %v4888_v47, %v4887_v57  ;;  %v15588_v50 = vadd.f32 %v4822_v59, %v15476_v18  ;;  %v4848_v32 = vadd.f32 %v4847_v56, %v15516_v40 }
 0xa7f   : > { %v4802_v27 = vrot.slane %v4801_v11, 2  ;;  %v4855_v10 = vadd.f32 %v4854_v61, %v4853_v15  ;;  %v4874_v14 = vrot.slane %v4873_v35, 2  ;;  %v4835_v46 = vadd.f32 %v4834_v25, %v15500_v16 }
 0xa80   : > { %v4864_v30 = vadd.f32 %v4863_v20, %v4862_v49  ;;  %v4905_v0 = vsel %vm673_vm1, %v4448_v23, 0.0  ;;  %v4786_v36 = vrot.slane %v4785_v2, 1  ;;  %v4811_v39 = vrot.slane %v4810_v34, 2  ;;  %v17496_v23 = vld [vmem:[#allocation50_spill] sm:$0xff] }
 0xa81   : > { %v4828_v37 = vadd.f32 %v4827_v24, %v4826_v53  ;;  %v4881_v26 = vrot.slane %v4880_v5, 4  ;;  %v4777_v13 = vrot.slane %v4776_v38, 1  ;;  %v4900_v6 = vadd.f32 %v4899_v52, %v4898_v44  ;;  %v17495_v53 = vld [vmem:[#allocation175_spill] sm:$0xff] }
 0xa82   : > { %v4906_v18 = vsel %vm673_vm1, %v4449_v21, 0.0  ;;  %v4890_v59 = vrot.slane %v4889_v17, 4  ;;  %v4849_v40 = vrot.slane %v4848_v32, 1  ;;  %v4803_v42 = vadd.f32 %v4802_v27, %v4801_v11  ;;  %v17497_v27 = vld [vmem:[#allocation177_spill] sm:$0xff] }
 0xa83   : > { %v4856_v41 = vrot.slane %v4855_v10, 2  ;;  %v4907_v4 = vadd.f32 %v4906_v18, %v4905_v0  ;;  %v4875_v28 = vadd.f32 %v4874_v14, %v4873_v35  ;;  %v4836_v16 = vrot.slane %v4835_v46, 4  ;;  %v17498_v0 = vld [vmem:[#allocation100_spill] sm:$0xff] }
 0xa84   : > { %v4453_v15 = vmul.f32 %v15595_v58, %v17494_v7  ;;  %v4865_v54 = vrot.slane %v4864_v30, 2  ;;  %v4787_v1 = vadd.f32 %v4786_v36, %v4785_v2  ;;  %v4812_v12 = vadd.f32 %v4811_v39, %v4810_v34  ;;  %v17501_v7 = vld [vmem:[#allocation174_spill] sm:$0xff] }
 0xa85   : > { %v4829_v8 = vrot.slane %v4828_v37, 2  ;;  %v4882_v49 = vadd.f32 %v4881_v26, %v4880_v5  ;;  %v4778_v48 = vadd.f32 %v4777_v13, %v4776_v38  ;;  %v4901_v45 = vrot.slane %v4900_v6, 2  ;;  %v17499_v26 = vld [vmem:[#allocation178_spill] sm:$0xff] }
 0xa86   : > { %v4452_v29 = vmul.f32 %v15600_v9, %v17495_v53  ;;  %v4891_v63 = vadd.f32 %v4890_v59, %v4889_v17  ;;  %v4850_v22 = vadd.f32 %v4849_v40, %v4848_v32  ;;  %v4804_v56 = vrot.slane %v4803_v42, 1  ;;  %v17500_v40 = vld [vmem:[#allocation179_spill] sm:$0xff] }
 0xa87   : > { %v4857_v44 = vadd.f32 %v4856_v41, %v4855_v10  ;;  %v4908_v60 = vrot.slane %v4907_v4, 4  ;;  %v4876_v11 = vrot.slane %v4875_v28, 1  ;;  %v4837_v51 = vadd.f32 %v4836_v16, %v4835_v46 }
 0xa88   : > { %v4924_v61 = vsel %vm673_vm1, %v4453_v15, 0.0  ;;  %v4866_v2 = vadd.f32 %v4865_v54, %v4864_v30  ;;  %v7673_v47 = vsel %vm2034_vm3, %v4787_v1, %v4778_v48  ;;  %v4813_v35 = vrot.slane %v4812_v12, 1  ;;  %v17502_v1 = vld [vmem:[#allocation190_spill] sm:$0xff] }
 0xa89   : > { %v15606_v34 = vadd.f32 %v4829_v8, %v4828_v37  ;;  %v4883_v20 = vrot.slane %v4882_v49, 2  ;;  %v15608_v55 = vadd.f32 %v4901_v45, %v4900_v6  ;;  %v4450_v57 = vmul.f32 %v15600_v9, %v17496_v23  ;;  %v17503_v8 = vld [vmem:[#allocation91_spill] sm:$0xff]  ;;  %v17506_v23 = vld [vmem:[#allocation84_spill] sm:$0xff] }
 0xa8a   : > { %v4923_v24 = vsel %vm673_vm1, %v4452_v29, 0.0  ;;  %v4892_v25 = vrot.slane %v4891_v63, 2  ;;  %v4805_v5 = vadd.f32 %v4804_v56, %v4803_v42  ;;  %v4858_v38 = vrot.slane %v4857_v44, 1  ;;  %v17504_v29 = vld [vmem:[#allocation103_spill] sm:$0xff]  ;;  %v17505_v56 = vld [vmem:[#allocation180_spill] sm:$0xff] }
 0xa8b   : > { %v4925_v52 = vadd.f32 %v4924_v61, %v4923_v24  ;;  %v4909_v19 = vadd.f32 %v4908_v60, %v4907_v4  ;;  %v4877_v21 = vadd.f32 %v4876_v11, %v4875_v28  ;;  %v4838_v17 = vrot.slane %v4837_v51, 2  ;;  %v17507_v24 = vld [vmem:[#allocation99_spill] sm:$0xff] }
 0xa8c   : > { %v4867_v32 = vrot.slane %v4866_v2, 1  ;;  %v4455_v10 = vmul.f32 %v15595_v58, %v17497_v27  ;;  %v4814_v14 = vadd.f32 %v4813_v35, %v4812_v12  ;;  %v4831_v46 = vrot.slane %v15606_v34, 1 }
 0xa8d   : > { %v4884_v30 = vadd.f32 %v4883_v20, %v4882_v49  ;;  %v4451_v36 = vmul.f32 %v15595_v58, %v17498_v0  ;;  %v4903_v39 = vrot.slane %v15608_v55, 1  ;;  %v4914_v37 = vsel %vm673_vm1, %v4450_v57, 0.0  ;;  %v15647_v20 = vld [vmem:[%s10008_s25 + $0x78] sm:$0xff]  ;;  %v15669_v0 = vld [vmem:[%s10008_s25 + $0x70] sm:$0xff]  ;;  %s15764_s25 = scalar_select %p533_p13, %s9940_s29, 3 }
 0xa8e   : > { %v4459_v13 = vmul.f32 %v15595_v58, %v17499_v26  ;;  %v4893_v6 = vadd.f32 %v4892_v25, %v4891_v63  ;;  %v4859_v18 = vadd.f32 %v4858_v38, %v4857_v44  ;;  %v4926_v59 = vrot.slane %v4925_v52, 4 }
 0xa8f   : > { %v4456_v42 = vmul.f32 %v15600_v9, %v17500_v40  ;;  %v4910_v41 = vrot.slane %v4909_v19, 2  ;;  %v4839_v4 = vadd.f32 %v4838_v17, %v4837_v51  ;;  %v4868_v28 = vadd.f32 %v4867_v32, %v4866_v2  ;;  %v17509_v40 = vld [vmem:[#allocation104_spill] sm:$0xff]  ;;  %s8667_s20 = sshll.u32 %s15764_s25, 3  ;;  %s17529_s25 = sld [smem:[#allocation251_spill]] }
 0xa90   : > { %v4933_v16 = vsel %vm673_vm1, %v4455_v10, 0.0  ;;  %v4458_v15 = vmul.f32 %v15600_v9, %v17501_v7  ;;  %v4885_v54 = vrot.slane %v4884_v30, 1  ;;  %v4461_v12 = vmul.f32 %v15595_v58, %v17502_v1  ;;  %v17511_v7 = vld [vmem:[#allocation136_spill] sm:$0xff]  ;;  %s536_s14 = scalar_lea.vmem %s15958_s3, %s8667_s20  ;;  %s540_s22 = scalar_lea.vmem %s15959_s4, %s8667_s20 }
 0xa91   : > { %v4462_v49 = vmul.f32 %v15600_v9, %v17503_v8  ;;  %v4915_v48 = vsel %vm673_vm1, %v4451_v36, 0.0  ;;  %v4951_v45 = vsel %vm673_vm1, %v4459_v13, 0.0  ;;  %v4894_v53 = vrot.slane %v4893_v6, 1 }
 0xa92   : > { %v4464_v63 = vmul.f32 %v15600_v9, %v17504_v29  ;;  %v4465_v44 = vmul.f32 %v15595_v58, %v17505_v56  ;;  %v7680_v60 = vsel %vm2034_vm3, %v4859_v18, %v4850_v22  ;;  %v15638_v11 = vadd.f32 %v4926_v59, %v4925_v52  ;;  %v17513_v56 = vld [vmem:[#allocation203_spill] sm:$0xff] }
 0xa93   : > { %v15641_v51 = vsel %vm673_vm1, %v4456_v42, 0.0  ;;  %v4911_v61 = vadd.f32 %v4910_v41, %v4909_v19  ;;  %v4950_v2 = vsel %vm673_vm1, %v4458_v15, 0.0  ;;  %v15644_v35 = vadd.f32 %v4915_v48, %v4914_v37  ;;  %v17510_v41 = vld [vmem:[#allocation97_spill] sm:$0xff] }
 0xa94   : > { %v4467_v57 = vmul.f32 %v15647_v20, %v17506_v23  ;;  %v4454_v25 = vmul.f32 %v15600_v9, %v17507_v24  ;;  %v4886_v22 = vadd.f32 %v4885_v54, %v4884_v30  ;;  %v15653_v38 = vadd.f32 %v4951_v45, %v4950_v2  ;;  %v17508_v30 = vld [vmem:[#allocation193_spill] sm:$0xff]  ;;  %v17515_v2 = vld [vmem:[#allocation134_spill] sm:$0xff] }
 0xa95   : > { %v15656_v52 = vsel %vm673_vm1, %v4461_v12, 0.0  ;;  %v15659_v19 = vsel %vm673_vm1, %v4462_v49, 0.0  ;;  %v4895_v17 = vadd.f32 %v4894_v53, %v4893_v6  ;;  %v15662_v32 = vsel %vm673_vm1, %v4464_v63, 0.0  ;;  %s17530_s20 = smov %s17529_s25  ;;  %s8530_s13 = scalar_lea.hbm %s17529_s25, %s8814_s19 }
 0xa96   : > { %v15665_v27 = vsel %vm673_vm1, %v4465_v44, 0.0  ;;  %v7681_v10 = vsel %vm2036_vm4, %v4868_v28, %v7680_v60  ;;  %v4468_v36 = vmul.f32 %v15669_v0, %v17508_v30  ;;  %v4840_v37 = vrot.slane %v4839_v4, 1  ;;  %v17518_v30 = vld [vmem:[#allocation90_spill] sm:$0xff]  ;;  %s9797_s19 = scalar_lea.hbm %s17530_s20, 64 }
 0xa97   : > { %v7674_v26 = vsel %vm2036_vm4, %v15480_v43, %v7673_v47  ;;  %v4912_v13 = vrot.slane %v4911_v61, 1  ;;  %v4917_v6 = vrot.slane %v15644_v35, 4  ;;  %v4987_v18 = vsel %vm673_vm1, %v4467_v57, 0.0  ;;  %v17512_v47 = vld [vmem:[#allocation111_spill] sm:$0xff] }
 0xa98   : > { %v4932_v59 = vsel %vm673_vm1, %v4454_v25, 0.0  ;;  %v4470_v42 = vmul.f32 %v15669_v0, %v17509_v40  ;;  %v4471_v28 = vmul.f32 %v15647_v20, %v17510_v41  ;;  %v4457_v15 = vmul.f32 %v15595_v58, %v17511_v7  ;;  %v17517_v25 = vld [vmem:[#allocation198_spill] sm:$0xff] }
 0xa99   : > { %v7675_v54 = vsel %vm2038_vm5, %v4805_v5, %v7674_v26  ;;  %v7682_v43 = vsel %vm2038_vm5, %v4877_v21, %v7681_v10  ;;  %v4469_v1 = vmul.f32 %v15647_v20, %v17512_v47  ;;  %v4832_v12 = vadd.f32 %v4831_v46, %v15606_v34  ;;  %v17514_v46 = vld [vmem:[#allocation95_spill] sm:$0xff] }
 0xa9a   : > { %v7676_v8 = vsel %vm2040_vm6, %v4814_v14, %v7675_v54  ;;  %v7683_v49 = vsel %vm2040_vm6, %v4886_v22, %v7682_v43  ;;  %v4995_v48 = vsel %vm673_vm1, %v4468_v36, 0.0  ;;  %v4841_v45 = vadd.f32 %v4840_v37, %v4839_v4 }
 0xa9b   : > { %v4913_v53 = vadd.f32 %v4912_v13, %v4911_v61  ;;  %v7684_v29 = vsel %vm2042_vm7, %v4895_v17, %v7683_v49  ;;  %v4934_v63 = vadd.f32 %v4933_v16, %v4932_v59  ;;  %v5004_v5 = vsel %vm673_vm1, %v4470_v42, 0.0  ;;  %v7838_v61 = vpop.permute.xlu2 %7837  ;;  %v17519_v59 = vld [vmem:[#allocation93_spill] sm:$0xff] }
 0xa9c   : > { %v4466_v21 = vmul.f32 %v15669_v0, %v17513_v56  ;;  %v4904_v44 = vadd.f32 %v4903_v39, %v15608_v55  ;;  %v5005_v34 = vsel %vm673_vm1, %v4471_v28, 0.0  ;;  %v4942_v14 = vsel %vm673_vm1, %v4457_v15, 0.0  ;;  %v17516_v39 = vld [vmem:[#allocation112_spill] sm:$0xff]  ;;  %v17521_v49 = vld [vmem:[#allocation109_spill] sm:$0xff] }
 0xa9d   : > { %v4473_v60 = vmul.f32 %v15647_v20, %v17514_v46  ;;  %v7677_v4 = vsel %vm2042_vm7, %v15588_v50, %v7676_v8  ;;  %v4996_v16 = vsel %vm673_vm1, %v4469_v1, 0.0  ;;  %v4472_v23 = vmul.f32 %v15669_v0, %v17515_v2  ;;  %v17525_v46 = vld [vmem:[#allocation106_spill] sm:$0xff] }
 0xa9e   : > { %v7678_v57 = vsel %vm2044_vm8, %v4832_v12, %v7677_v4  ;;  %v7685_v55 = vsel %vm2044_vm8, %v4904_v44, %v7684_v29  ;;  %v4460_v24 = vmul.f32 %v15600_v9, %v17516_v39  ;;  %v4475_v22 = vmul.f32 %v15647_v20, %v17517_v25  ;;  %v17520_v12 = vld [vmem:[#allocation201_spill] sm:$0xff] }
 0xa9f   : > { %v7679_v17 = vsel %vm2046_vm9, %v4841_v45, %v7678_v57  ;;  %v7686_v50 = vsel %vm2046_vm9, %v4913_v53, %v7685_v55  ;;  %v4474_v36 = vmul.f32 %v15669_v0, %v17518_v30  ;;  %v4986_v37 = vsel %vm673_vm1, %v4466_v21, 0.0  ;;  %v17522_v45 = vld [vmem:[#allocation196_spill] sm:$0xff]  ;;  %v17523_v53 = vld [vmem:[#allocation146_spill] sm:$0xff] }
 0xaa0   : > { %v15718_v26 = vsel %vm673_vm1, %v7679_v17, %v7838_v61  ;;  %v4935_v9 = vrot.slane %v4934_v63, 4  ;;  %v4463_v40 = vmul.f32 %v15595_v58, %v17519_v59  ;;  %v4997_v42 = vadd.f32 %v4996_v16, %v4995_v48 }
 0xaa1   : > { %v7840_v10 = vpop.permute.xlu0 %7839  ;;  %v5006_v28 = vadd.f32 %v5005_v34, %v5004_v5  ;;  %v4943_v7 = vadd.f32 %v4942_v14, %v15641_v51  ;;  %v5014_v15 = vsel %vm673_vm1, %v4473_v60, 0.0  ;;  %v5013_v54 = vsel %vm673_vm1, %v4472_v23, 0.0 }
 0xaa2   : > { %v15721_v13 = vsel %vm673_vm1, %v7686_v50, %v7840_v10  ;;  %v4959_v43 = vsel %vm673_vm1, %v4460_v24, 0.0  ;;  %v4988_v47 = vadd.f32 %v4987_v18, %v4986_v37  ;;  %v5023_v1 = vsel %vm673_vm1, %v4475_v22, 0.0  ;;  %v17524_v18 = vld [vmem:[#allocation143_spill] sm:$0xff] }
 0xaa3   : > { %v7883_v41 = vpack.c.bf16 %v15721_v13, %v15718_v26  ;;  %v4478_v8 = vmul.f32 %v15669_v0, %v17520_v12  ;;  %v5022_v58 = vsel %vm673_vm1, %v4474_v36, 0.0  ;;  %v4476_v48 = vmul.f32 %v15669_v0, %v17521_v49 }
 0xaa4   : > { %v4477_v51 = vmul.f32 %v15647_v20, %v17522_v45  ;;  %v4481_v29 = vmul.f32 %v15647_v20, %v17523_v53  ;;  %v4969_v5 = vsel %vm673_vm1, %v4463_v40, 0.0  ;;  %v4479_v56 = vmul.f32 %v15647_v20, %v17524_v18 }
 0xaa5   : > { %7963 = vmatmul.bf16.gmra.mxu3 %v7883_v41  ;;  %v4998_v21 = vrot.slane %v4997_v42, 4  ;;  %v5015_v44 = vadd.f32 %v5014_v15, %v5013_v54  ;;  %v4918_v34 = vadd.f32 %v4917_v6, %v15644_v35  ;;  %v4961_v14 = vadd.f32 %v15656_v52, %v4959_v43 }
 0xaa6   : > { %v4480_v60 = vmul.f32 %v15669_v0, %v17525_v46  ;;  %v5024_v4 = vadd.f32 %v5023_v1, %v5022_v58  ;;  %v4936_v61 = vadd.f32 %v4935_v9, %v4934_v63  ;;  %v4944_v16 = vrot.slane %v4943_v7, 4 }
 0xaa7   : > { %v4989_v2 = vrot.slane %v4988_v47, 4  ;;  %v5040_v23 = vsel %vm673_vm1, %v4478_v8, 0.0  ;;  %v5007_v57 = vrot.slane %v5006_v28, 4  ;;  %v5032_v55 = vsel %vm673_vm1, %v4477_v51, 0.0 }
 0xaa8   : > { %v4970_v20 = vadd.f32 %v4969_v5, %v15659_v19  ;;  %v5050_v39 = vsel %vm673_vm1, %v4481_v29, 0.0  ;;  %v5031_v35 = vsel %vm673_vm1, %v4476_v48, 0.0  ;;  %v5041_v52 = vsel %vm673_vm1, %v4479_v56, 0.0 }
 0xaa9   : > { %v4999_v6 = vadd.f32 %v4998_v21, %v4997_v42  ;;  %v5016_v0 = vrot.slane %v5015_v44, 4  ;;  %v4962_v24 = vrot.slane %v4961_v14, 4  ;;  %v5049_v63 = vsel %vm673_vm1, %v4480_v60, 0.0 }
 0xaaa   : > { %v5025_v25 = vrot.slane %v5024_v4, 4  ;;  %v5042_v22 = vadd.f32 %v5041_v52, %v5040_v23  ;;  %v4945_v17 = vadd.f32 %v4944_v16, %v4943_v7  ;;  %v5033_v50 = vadd.f32 %v5032_v55, %v5031_v35 }
 0xaab   : > { %v4990_v10 = vadd.f32 %v4989_v2, %v4988_v47  ;;  %v5051_v30 = vadd.f32 %v5050_v39, %v5049_v63  ;;  %v4953_v19 = vrot.slane %v15653_v38, 4  ;;  %v4979_v36 = vadd.f32 %v15665_v27, %v15662_v32 }
 0xaac   : > { %v4919_v37 = vrot.slane %v4918_v34, 2  ;;  %v4971_v9 = vrot.slane %v4970_v20, 4  ;;  %v4928_v59 = vrot.slane %v15638_v11, 2  ;;  %v5008_v40 = vadd.f32 %v5007_v57, %v5006_v28 }
 0xaad   : > { %v5000_v42 = vrot.slane %v4999_v6, 2  ;;  %v5017_v41 = vadd.f32 %v5016_v0, %v5015_v44  ;;  %v4937_v15 = vrot.slane %v4936_v61, 2  ;;  %v4963_v7 = vadd.f32 %v4962_v24, %v4961_v14 }
 0xaae   : > { %v5026_v54 = vadd.f32 %v5025_v25, %v5024_v4  ;;  %v5043_v43 = vrot.slane %v5042_v22, 4  ;;  %v4946_v47 = vrot.slane %v4945_v17, 2  ;;  %v5034_v1 = vrot.slane %v5033_v50, 4 }
 0xaaf   : > { %v4991_v12 = vrot.slane %v4990_v10, 2  ;;  %v5052_v8 = vrot.slane %v5051_v30, 4  ;;  %v4954_v32 = vadd.f32 %v4953_v19, %v15653_v38  ;;  %v4980_v27 = vrot.slane %v4979_v36, 4 }
 0xab0   : > { %v4920_v58 = vadd.f32 %v4919_v37, %v4918_v34  ;;  %v4972_v49 = vadd.f32 %v4971_v9, %v4970_v20  ;;  %v4929_v28 = vadd.f32 %v4928_v59, %v15638_v11  ;;  %v5009_v48 = vrot.slane %v5008_v40, 2  ;;  %v7983_v37 = vpop.f32.mrf.mxu2  ;;  %v15773_v9 = vld [vmem:[%s536_s14] sm:$0xff]  ;;  %s8534_s14 = sshll.u32 %s8530_s13, 4  ;;  %s8535_s14 = int_to_ptr.hbm [resolvable:$true] %s8534_s14 }
 0xab1   : > { %v5001_v45 = vadd.f32 %v5000_v42, %v4999_v6  ;;  %v5018_v51 = vrot.slane %v5017_v41, 2  ;;  %v4938_v53 = vadd.f32 %v4937_v15, %v4936_v61  ;;  %v4964_v29 = vrot.slane %v4963_v7, 2  ;;  %s9791_s23 = sshra.s32 %s8535_s14, 4  ;;  %s9792_s23 = int_to_ptr.hbm [resolvable:$true] %s9791_s23 }
 0xab2   : > { %v5027_v5 = vrot.slane %v5026_v54, 2  ;;  %v5044_v18 = vadd.f32 %v5043_v43, %v5042_v22  ;;  %v4947_v56 = vadd.f32 %v4946_v47, %v4945_v17  ;;  %v5035_v21 = vadd.f32 %v5034_v1, %v5033_v50  ;;  %s9793_s24 = scalar_lea.hbm %s9792_s23, 16  ;;  %p9798_p4 = scmp.lt.s32.totalorder %s9792_s23, %s17530_s20 }
 0xab3   : > { %v4992_v44 = vadd.f32 %v4991_v12, %v4990_v10  ;;  %v5053_v38 = vadd.f32 %v5052_v8, %v5051_v30  ;;  %v4955_v14 = vrot.slane %v4954_v32, 2  ;;  %v4981_v34 = vadd.f32 %v4980_v27, %v4979_v36  ;;  %p9794_p0 = scmp.ne.s32.totalorder %s9792_s23, %s9793_s24  ;;  %p9799_p5 = scmp.lt.s32.totalorder %s9797_s19, %s9793_s24 }
 0xab4   : > { %v4921_v46 = vrot.slane %v4920_v58, 1  ;;  %v4973_v60 = vrot.slane %v4972_v49, 2  ;;  %v4930_v4 = vrot.slane %v4929_v28, 1  ;;  %v5010_v11 = vadd.f32 %v5009_v48, %v5008_v40 }
 0xab5   : > { %v5002_v16 = vrot.slane %v5001_v45, 1  ;;  %v5019_v2 = vadd.f32 %v5018_v51, %v5017_v41  ;;  %v4939_v23 = vrot.slane %v4938_v53, 1  ;;  %v4965_v57 = vadd.f32 %v4964_v29, %v4963_v7  ;;  %p9795_p2 = pnand %p9794_p0, %p9968_p10  ;;  %p9800_p7 = por %p9799_p5, %p9798_p4 }
 0xab6   : > { %v5028_v61 = vadd.f32 %v5027_v5, %v5026_v54  ;;  %v5045_v55 = vrot.slane %v5044_v18, 2  ;;  %v4948_v20 = vrot.slane %v4947_v56, 1  ;;  %v5036_v39 = vrot.slane %v5035_v21, 2 }
 0xab7   : > { %v4993_v35 = vrot.slane %v4992_v44, 1  ;;  %v5054_v52 = vrot.slane %v5053_v38, 2  ;;  %v4956_v6 = vadd.f32 %v4955_v14, %v4954_v32  ;;  %v4982_v0 = vrot.slane %v4981_v34, 2  ;;  %p9796_p3 = pneg %p9795_p2 }
 0xab8   : > { %v4922_v24 = vadd.f32 %v4921_v46, %v4920_v58  ;;  %v4974_v63 = vadd.f32 %v4973_v60, %v4972_v49  ;;  %v4931_v25 = vadd.f32 %v4930_v4, %v4929_v28  ;;  %v5011_v22 = vrot.slane %v5010_v11, 1 }
 0xab9   : > { %v5003_v17 = vadd.f32 %v5002_v16, %v5001_v45  ;;  %v5020_v50 = vrot.slane %v5019_v2, 1  ;;  %v4940_v10 = vadd.f32 %v4939_v23, %v4938_v53  ;;  %v4966_v30 = vrot.slane %v4965_v57, 1  ;;  %v7985_v16 = vpop.f32.mrf.mxu2  ;;  %p9801_p8 = pnand %p9800_p7, %p9796_p3 }
 0xaba   : > { %v5029_v19 = vrot.slane %v5028_v61, 1  ;;  %v5046_v36 = vadd.f32 %v5045_v55, %v5044_v18  ;;  %v4949_v59 = vadd.f32 %v4948_v20, %v4947_v56  ;;  %v5037_v40 = vadd.f32 %v5036_v39, %v5035_v21 }
 0xabb   : > { %v4994_v42 = vadd.f32 %v4993_v35, %v4992_v44  ;;  %v5055_v41 = vadd.f32 %v5054_v52, %v5053_v38  ;;  %v4957_v15 = vrot.slane %v4956_v6, 1  ;;  %v4983_v7 = vadd.f32 %v4982_v0, %v4981_v34  ;;  %v15792_v35 = vld [vmem:[%s15967_s12] ss:$0 sm:$0xff] }
 0xabc   : > { %v7687_v54 = vsel %vm2034_vm3, %v4931_v25, %v4922_v24  ;;  %v4975_v43 = vrot.slane %v4974_v63, 1  ;;  %v5012_v47 = vadd.f32 %v5011_v22, %v5010_v11  ;;  %v5021_v12 = vadd.f32 %v5020_v50, %v5019_v2 }
 0xabd   : > { %v7694_v1 = vsel %vm2034_vm3, %v5003_v17, %v4994_v42  ;;  %v8012_v8 = vperm.slane %v15773_v9, 0  ;;  %v4967_v32 = vadd.f32 %v4966_v30, %v4965_v57  ;;  %v5030_v27 = vadd.f32 %v5029_v19, %v5028_v61  ;;  %v7844_v57 = vpop.permute.xlu2 %7843 }
 0xabe   : > { %v5047_v58 = vrot.slane %v5046_v36, 1  ;;  %v7688_v28 = vsel %vm2036_vm4, %v4940_v10, %v7687_v54  ;;  %v5038_v48 = vrot.slane %v5037_v40, 1  ;;  %v5056_v45 = vrot.slane %v5055_v41, 1 }
 0xabf   : > { %v7689_v53 = vsel %vm2038_vm5, %v4949_v59, %v7688_v28  ;;  %v4958_v29 = vadd.f32 %v4957_v15, %v4956_v6  ;;  %v7695_v5 = vsel %vm2036_vm4, %v5012_v47, %v7694_v1  ;;  %v4976_v18 = vadd.f32 %v4975_v43, %v4974_v63 }
 0xac0   : > { %v7954_v49 = vpop.f32.mrf.mxu3  ;;  %v7696_v56 = vsel %vm2038_vm5, %v5021_v12, %v7695_v5  ;;  %v8005_v44 = vrot.slane %v15773_v9, 1  ;;  %v4984_v38 = vrot.slane %v4983_v7, 1  ;;  %v5048_v14 = vadd.f32 %v5047_v58, %v5046_v36 }
 0xac1   : > { %v7984_v51 = vadd.f32 %v7983_v37, %v7954_v49  ;;  %v7697_v34 = vsel %vm2040_vm6, %v5030_v27, %v7696_v56  ;;  %v7690_v46 = vsel %vm2040_vm6, %v4958_v29, %v7689_v53  ;;  %v5039_v60 = vadd.f32 %v5038_v48, %v5037_v40  ;;  %v7988_v40 = vpop.f32.mrf.mxu2 }
 0xac2   : > { %v5057_v4 = vadd.f32 %v5056_v45, %v5055_v41  ;;  %v7691_v11 = vsel %vm2042_vm7, %v4967_v32, %v7690_v46  ;;  %v8013_v61 = vperm.slane %v8005_v44, 0  ;;  %v4985_v55 = vadd.f32 %v4984_v38, %v4983_v7 }
 0xac3   : > { %v8028_v21 = vadd.f32 %v8012_v8, %v7984_v51  ;;  %v7692_v2 = vsel %vm2044_vm8, %v4976_v18, %v7691_v11  ;;  %v7698_v23 = vsel %vm2042_vm7, %v5039_v60, %v7697_v34  ;;  %v8006_v59 = vrot.slane %v15773_v9, 2 }
 0xac4   : > { %v7699_v20 = vsel %vm2044_vm8, %v5048_v14, %v7698_v23  ;;  %v7693_v0 = vsel %vm2046_vm9, %v4985_v55, %v7692_v2  ;;  %v8007_v54 = vrot.slane %v15773_v9, 3  ;;  %v17526_v45 = vlaneseq }
 0xac5   : > { %9682 = vtanh.f32 %v8028_v21  ;;  %v7700_v52 = vsel %vm2046_vm9, %v5057_v4, %v7699_v20  ;;  %v8014_v42 = vperm.slane %v8006_v59, 0  ;;  %v8008_v53 = vrot.slane %v15773_v9, 4 }
 0xac6   : > { %v15797_v63 = vsel %vm673_vm1, %v7700_v52, %v7844_v57  ;;  %v8015_v47 = vperm.slane %v8007_v54, 0  ;;  %v8084_v51 = vshrl.u32 %v17526_v45, 7  ;;  %v8009_v44 = vrot.slane %v15773_v9, 5 }
 0xac7   : > { %v8016_v5 = vperm.slane %v8008_v53, 0  ;;  %v8010_v55 = vrot.slane %v15773_v9, 6 }
 0xac8   : > { %v7956_v39 = vpop.f32.mrf.mxu3  ;;  %8872 = vset.pattern.permute.xlu1 %v8084_v51  ;;  %8874 = vset.pattern.permute.xlu0 %v8084_v51  ;;  %v8017_v14 = vperm.slane %v8009_v44, 0 }
 0xac9   : > { %v7986_v6 = vadd.f32 %v7985_v16, %v7956_v39  ;;  %v7842_v24 = vpop.permute.xlu1 %7841  ;;  %v7990_v43 = vpop.f32.mrf.mxu2  ;;  %8873 = vset.pattern.permute.xlu2 %v8084_v51  ;;  %v8018_v52 = vperm.slane %v8010_v55, 0 }
 0xaca   : > { %v15800_v25 = vsel %vm673_vm1, %v7693_v0, %v7842_v24 }
 0xacb   : > { %v9683_v22 = vpop.eup %9682  ;;  %v8029_v17 = vadd.f32 %v8013_v61, %v7986_v6  ;;  %v7884_v50 = vpack.c.bf16 %v15797_v63, %v15800_v25  ;;  %v8080_v61 = vld [vmem:[%s540_s22] sm:$0xff] }
 0xacc   : > { %v8048_v10 = vmul.f32 %v9683_v22, %v15792_v35  ;;  %v8089_v20 = vperm.slane %v8080_v61, 1  ;;  %v8011_v22 = vrot.slane %v15773_v9, 7  ;;  %v8082_v54 = vperm.slane %v8080_v61, 0 }
 0xacd   : > { %9684 = vtanh.f32 %v8029_v17  ;;  %7968 = vmatmul.bf16.gmra.mxu3 %v7884_v50  ;;  %v8117_v17 = vperm.slane %v8080_v61, 5 }
 0xace   : > { %v8056_v30 = vsel %vm575_vm0, %v8048_v10, 0.0  ;;  %v8019_v50 = vperm.slane %v8011_v22, 0 }
 0xacf   : > { %8057 = vadd.xlane.f32.xlu0 %v8056_v30 }
 0xad1   : > { %v7993_v29 = vpop.f32.mrf.mxu2 }
 0xad3   : > { %v9685_v19 = vpop.eup %9684 }
 0xad4   : > { %v8049_v36 = vmul.f32 %v9685_v19, %v15792_v35 }
 0xad6   : > { %v8059_v37 = vsel %vm575_vm0, %v8049_v36, 0.0 }
 0xad7   : > { %8060 = vadd.xlane.f32.xlu1 %v8059_v37 }
 0xad9   : > { %v7995_v38 = vpop.f32.mrf.mxu2 }
 0xae1   : > { %v7998_v39 = vpop.f32.mrf.mxu2 }
 0xae9   : > { %v8000_v10 = vpop.f32.mrf.mxu2 }
 0xaff   : > { %v7959_v41 = vpop.f32.mrf.mxu3 }
 0xb00   : > { %v7989_v15 = vadd.f32 %v7988_v40, %v7959_v41 }
 0xb02   : > { %v8030_v7 = vadd.f32 %v8014_v42, %v7989_v15  ;;  %v17527_v42 = vmov 0  }
 0xb04   : > { %9686 = vtanh.f32 %v8030_v7  ;;  %v8096_v7 = vperm.slane %v8080_v61, 2 }
 0xb07   : > { %v7961_v1 = vpop.f32.mrf.mxu3 }
 0xb08   : > { %v7991_v12 = vadd.f32 %v7990_v43, %v7961_v1  ;;  %v8103_v43 = vperm.slane %v8080_v61, 3  ;;  %v8110_v1 = vperm.slane %v8080_v61, 4 }
 0xb0a   : > { %v9687_v8 = vpop.eup %9686  ;;  %v8031_v32 = vadd.f32 %v8015_v47, %v7991_v12  ;;  %v8131_v47 = vperm.slane %v8080_v61, 7  ;;  %v8124_v12 = vperm.slane %v8080_v61, 6  ;;  %v17528_v61 = vld [vmem:[#allocation133_spill] sm:$0xff] }
 0xb0b   : > { %v8050_v27 = vmul.f32 %v9687_v8, %v15792_v35 }
 0xb0c   : > { %9688 = vtanh.f32 %v8031_v32 }
 0xb0d   : > { %v8062_v58 = vsel %vm575_vm0, %v8050_v27, 0.0 }
 0xb0e   : > { %8063 = vadd.xlane.f32.xlu2 %v8062_v58 }
 0xb12   : > { %v9689_v49 = vpop.eup %9688 }
 0xb13   : > { %v8051_v28 = vmul.f32 %v9689_v49, %v15792_v35 }
 0xb15   : > { %v8065_v48 = vsel %vm575_vm0, %v8051_v28, 0.0 }
 0xb16   : > { %8066 = vadd.xlane.f32.xlu2 %v8065_v48 }
 0xb28   : > { %v7964_v18 = vpop.f32.mrf.mxu3 }
 0xb29   : > { %v7994_v56 = vadd.f32 %v7993_v29, %v7964_v18 }
 0xb2b   : > { %v8032_v21 = vadd.f32 %v8016_v5, %v7994_v56 }
 0xb2d   : > { %9690 = vtanh.f32 %v8032_v21 }
 0xb30   : > { %v7966_v34 = vpop.f32.mrf.mxu3 }
 0xb31   : > { %v7996_v46 = vadd.f32 %v7995_v38, %v7966_v34 }
 0xb33   : > { %v9691_v60 = vpop.eup %9690  ;;  %v8033_v4 = vadd.f32 %v8017_v14, %v7996_v46 }
 0xb34   : > { %v8052_v11 = vmul.f32 %v9691_v60, %v15792_v35 }
 0xb35   : > { %9692 = vtanh.f32 %v8033_v4 }
 0xb36   : > { %v8068_v16 = vsel %vm575_vm0, %v8052_v11, 0.0 }
 0xb37   : > { %8069 = vadd.xlane.f32.xlu1 %v8068_v16 }
 0xb3b   : > { %v9693_v2 = vpop.eup %9692 }
 0xb3c   : > { %v8053_v23 = vmul.f32 %v9693_v2, %v15792_v35 }
 0xb3e   : > { %v8071_v57 = vsel %vm575_vm0, %v8053_v23, 0.0 }
 0xb3f   : > { %8072 = vadd.xlane.f32.xlu0 %v8071_v57 }
 0xb42   : > { %v8058_v27 = vpop.xlane.xlu0 %8057 }
 0xb4a   : > { %v8061_v28 = vpop.xlane.xlu1 %8060 }
 0xb50   : > { %8094 = vperm.xlu1 %8872, %v8089_v20   ;;  %v7969_v6 = vpop.f32.mrf.mxu3 }
 0xb51   : > { %v7999_v0 = vadd.f32 %v7998_v39, %v7969_v6 }
 0xb53   : > { %v8034_v24 = vadd.f32 %v8018_v52, %v7999_v0 }
 0xb55   : > { %9694 = vtanh.f32 %v8034_v24 }
 0xb58   : > { %8122 = vperm.xlu1 %8872, %v8117_v17   ;;  %v7971_v30 = vpop.f32.mrf.mxu3 }
 0xb59   : > { %v8001_v19 = vadd.f32 %v8000_v10, %v7971_v30 }
 0xb5b   : > { %v9695_v36 = vpop.eup %9694  ;;  %v8035_v37 = vadd.f32 %v8019_v50, %v8001_v19 }
 0xb5c   : > { %v8054_v59 = vmul.f32 %v9695_v36, %v15792_v35 }
 0xb5d   : > { %9696 = vtanh.f32 %v8035_v37 }
 0xb5e   : > { %v8074_v40 = vsel %vm575_vm0, %v8054_v59, 0.0 }
 0xb5f   : > { %8075 = vadd.xlane.f32.xlu2 %v8074_v40 }
 0xb60   : > { %8875 = vset.pattern.permute.xlu1 %v17527_v42 }
 0xb63   : > { %v9697_v41 = vpop.eup %9696 }
 0xb64   : > { %v8055_v9 = vmul.f32 %v9697_v41, %v15792_v35 }
 0xb66   : > { %v8077_v15 = vsel %vm575_vm0, %v8055_v9, 0.0 }
 0xb67   : > { %8078 = vadd.xlane.f32.xlu0 %v8077_v15 }
 0xb77   : > { %8101 = vperm.xlu2 %8873, %v8096_v7  }
 0xb7b   : > { %8087 = vperm.xlu0 %8874, %v8082_v54  }
 0xb7f   : > { %8108 = vperm.xlu2 %8873, %v8103_v43  }
 0xb81   : > { %v8064_v35 = vpop.xlane.xlu2 %8063 }
 0xb83   : > { %8136 = vperm.xlu0 %8874, %v8131_v47  }
 0xb87   : > { %8115 = vperm.xlu2 %8873, %v8110_v1  }
 0xb89   : > { %v8067_v8 = vpop.xlane.xlu2 %8066 }
 0xb8b   : > { %8876 = vset.pattern.permute.xlu0 %v17527_v42 }
 0xb8f   : > { %8129 = vperm.xlu2 %8873, %v8124_v12  }
 0xb97   : > { %8877 = vset.pattern.permute.xlu2 %v17527_v42 }
 0xbaa   : > { %v8070_v53 = vpop.xlane.xlu1 %8069 }
 0xbb2   : > { %v8073_v49 = vpop.xlane.xlu0 %8072 }
 0xbc2   : > { %v8095_v44 = vpop.permute.xlu1 %8094 }
 0xbc3   : > { %v8147_v14 = vadd.f32 %v8095_v44, %v8061_v28 }
 0xbca   : > { %v8123_v46 = vpop.permute.xlu1 %8122 }
 0xbcb   : > { %v8151_v60 = vadd.f32 %v8123_v46, %v8073_v49 }
 0xbd2   : > { %v8076_v32 = vpop.xlane.xlu2 %8075 }
 0xbda   : > { %v8102_v58 = vpop.permute.xlu2 %8101  ;;  %v8079_v51 = vpop.xlane.xlu0 %8078 }
 0xbdb   : > { %v8148_v34 = vadd.f32 %v8102_v58, %v8064_v35 }
 0xbe2   : > { %v8109_v48 = vpop.permute.xlu2 %8108 }
 0xbe3   : > { %v8149_v45 = vadd.f32 %v8109_v48, %v8067_v8 }
 0xbe5   : > { %8172 = vperm.xlu0 %8876, %v8149_v45  }
 0xbea   : > { %v8116_v29 = vpop.permute.xlu2 %8115 }
 0xbeb   : > { %v15835_v5 = vadd.f32 %v8116_v29, %v8070_v53 }
 0xbed   : > { %v8088_v18 = vpop.permute.xlu0 %8087  ;;  %8175 = vperm.xlu2 %8877, %v15835_v5  }
 0xbee   : > { %v8146_v56 = vadd.f32 %v8088_v18, %v8058_v27 }
 0xbf0   : > { %8163 = vperm.xlu1 %8875, %v8146_v56  }
 0xbf2   : > { %v8130_v21 = vpop.permute.xlu2 %8129 }
 0xbf3   : > { %v15838_v38 = vadd.f32 %v8130_v21, %v8076_v32 }
 0xbf5   : > { %8181 = vperm.xlu2 %8877, %v15838_v38   ;;  %v8137_v4 = vpop.permute.xlu0 %8136 }
 0xbf6   : > { %v15841_v11 = vadd.f32 %v8137_v4, %v8079_v51 }
 0xbf8   : > { %8166 = vperm.xlu1 %8875, %v8147_v14  }
 0xc00   : > { %8169 = vperm.xlu1 %8875, %v8148_v34  }
 0xc08   : > { %8178 = vperm.xlu1 %8875, %v8151_v60  }
 0xc10   : > { %8184 = vperm.xlu1 %8875, %v15841_v11  }
 0xc47   : > { %v8176_v57 = vpop.permute.xlu2 %8175 }
 0xc48   : > { %v8190_v10 = vperm.slane %v8176_v57, %v17528_v61 }
 0xc4f   : > { %v8182_v30 = vpop.permute.xlu2 %8181 }
 0xc50   : > { %v8192_v37 = vperm.slane %v8182_v30, %v17528_v61 }
 0xc57   : > { %v8173_v52 = vpop.permute.xlu0 %8172 }
 0xc58   : > { %v8189_v22 = vperm.slane %v8173_v52, %v17528_v61 }
 0xc62   : > { %v8164_v16 = vpop.permute.xlu1 %8163 }
 0xc63   : > { %v8186_v39 = vperm.slane %v8164_v16, %v17528_v61 }
 0xc6a   : > { %v8167_v2 = vpop.permute.xlu1 %8166 }
 0xc6b   : > { %v8187_v55 = vperm.slane %v8167_v2, %v17528_v61 }
 0xc6d   : > { %v8194_v6 = vsel %vm2034_vm3, %v8187_v55, %v8186_v39 }
 0xc72   : > { %v8170_v23 = vpop.permute.xlu1 %8169 }
 0xc73   : > { %v8188_v20 = vperm.slane %v8170_v23, %v17528_v61 }
 0xc75   : > { %v8195_v0 = vsel %vm2036_vm4, %v8188_v20, %v8194_v6 }
 0xc76   : > { %v8196_v17 = vsel %vm2038_vm5, %v8189_v22, %v8195_v0 }
 0xc77   : > { %v8197_v19 = vsel %vm2040_vm6, %v8190_v10, %v8196_v17 }
 0xc7a   : > { %v8179_v24 = vpop.permute.xlu1 %8178 }
 0xc7b   : > { %v8191_v50 = vperm.slane %v8179_v24, %v17528_v61 }
 0xc7d   : > { %v8198_v36 = vsel %vm2042_vm7, %v8191_v50, %v8197_v19 }
 0xc7e   : > { %v8199_v42 = vsel %vm2044_vm8, %v8192_v37, %v8198_v36 }
 0xc82   : > { %v8185_v59 = vpop.permute.xlu1 %8184 }
 0xc83   : > { %v8193_v40 = vperm.slane %v8185_v59, %v17528_v61 }
 0xc85   : > { %v8200_v41 = vsel %vm2046_vm9, %v8193_v40, %v8199_v42 }
 0xc86   : > { %v8203_v9 = vsel %vm8202_vm14, %v8200_v41, -inf }
 0xc87   : > { %8204 = vmax.xlane.f32.xlu0 %v8203_v9 }
 0xcfa   : > { %v8205_v15 = vpop.xlane.xlu0 %8204 }
 0xcfb   : > { %v8207_v7 = vperm.slane %v8205_v15, 0  ;;  %v8208_v54 = vperm.slane %v8205_v15, 1  ;;  %v8209_v43 = vperm.slane %v8205_v15, 2  ;;  %v8210_v12 = vperm.slane %v8205_v15, 3 }
 0xcfc   : > { %v8211_v58 = vperm.slane %v8205_v15, 4  ;;  %v8212_v28 = vperm.slane %v8205_v15, 5  ;;  %v8214_v44 = vperm.slane %v8205_v15, 7 }
 0xcfd   : > { %v8223_v47 = vsub.f32 %v8146_v56, %v8207_v7  ;;  %v8224_v1 = vsub.f32 %v8147_v14, %v8208_v54  ;;  %v8225_v32 = vsub.f32 %v8148_v34, %v8209_v43  ;;  %v8226_v27 = vsub.f32 %v8149_v45, %v8210_v12 }
 0xcfe   : > { %v8227_v29 = vsub.f32 %v15835_v5, %v8211_v58  ;;  %v8228_v18 = vsub.f32 %v8151_v60, %v8212_v28  ;;  %v8213_v56 = vperm.slane %v8205_v15, 6  ;;  %v8230_v4 = vsub.f32 %v15841_v11, %v8214_v44 }
 0xcff   : > { %v8231_v35 = vmul.f32 1.442695, %v8223_v47  ;;  %v8233_v8 = vmul.f32 1.442695, %v8224_v1  ;;  %v8235_v49 = vmul.f32 1.442695, %v8225_v32 }
 0xd00   : > { %v8237_v48 = vmul.f32 1.442695, %v8226_v27  ;;  %v8239_v21 = vmul.f32 1.442695, %v8227_v29  ;;  %v8241_v45 = vmul.f32 1.442695, %v8228_v18  ;;  %v8229_v46 = vsub.f32 %v15838_v38, %v8213_v56 }
 0xd01   : > { %9698 = vpow2.f32 %v8231_v35  ;;  %v8245_v5 = vmul.f32 1.442695, %v8230_v4  ;;  %v9740_v4 = vld [vmem:[%s10018_s17] sm:$0xff] }
 0xd02   : > { %9700 = vpow2.f32 %v8233_v8  ;;  %v8243_v16 = vmul.f32 1.442695, %v8229_v46 }
 0xd03   : > { %9702 = vpow2.f32 %v8235_v49 }
 0xd04   : > { %9704 = vpow2.f32 %v8237_v48 }
 0xd05   : > { %9706 = vpow2.f32 %v8239_v21 }
 0xd06   : > { %9708 = vpow2.f32 %v8241_v45  ;;  %v9739_v45 = vld [vmem:[%s10018_s17 + $0x8] sm:$0xff] }
 0xd07   : > { %v15860_v51 = vpop.eup %9698  ;;  %9710 = vpow2.f32 %v8243_v16 }
 0xd08   : > { %v9701_v53 = vpop.eup %9700  ;;  %8256 = vperm.xlu2 %8877, %v15860_v51   ;;  %9712 = vpow2.f32 %v8245_v5 }
 0xd09   : > { %8259 = vperm.xlu1 %8875, %v9701_v53   ;;  %v9703_v14 = vpop.eup %9702 }
 0xd0a   : > { %v9705_v34 = vpop.eup %9704 }
 0xd0b   : > { %v9707_v2 = vpop.eup %9706 }
 0xd0c   : > { %v9709_v23 = vpop.eup %9708 }
 0xd0d   : > { %v9711_v60 = vpop.eup %9710 }
 0xd0e   : > { %v9713_v57 = vpop.eup %9712 }
 0xd10   : > { %8262 = vperm.xlu2 %8877, %v9703_v14  }
 0xd11   : > { %8265 = vperm.xlu1 %8875, %v9705_v34  }
 0xd18   : > { %8268 = vperm.xlu2 %8877, %v9707_v2  }
 0xd19   : > { %8271 = vperm.xlu1 %8875, %v9709_v23  }
 0xd20   : > { %8274 = vperm.xlu2 %8877, %v9711_v60  }
 0xd21   : > { %8277 = vperm.xlu1 %8875, %v9713_v57  }
 0xd62   : > { %v8257_v55 = vpop.permute.xlu2 %8256 }
 0xd63   : > { %v8279_v6 = vperm.slane %v8257_v55, %v17528_v61  ;;  %v9741_v55 = vld [vmem:[%s10018_s17 + $0x10] sm:$0xff] }
 0xd6a   : > { %v8263_v38 = vpop.permute.xlu2 %8262 }
 0xd6b   : > { %v8281_v22 = vperm.slane %v8263_v38, %v17528_v61 }
 0xd72   : > { %v8269_v52 = vpop.permute.xlu2 %8268 }
 0xd73   : > { %v8283_v19 = vperm.slane %v8269_v52, %v17528_v61 }
 0xd7a   : > { %v8275_v36 = vpop.permute.xlu2 %8274 }
 0xd7b   : > { %v8260_v20 = vpop.permute.xlu1 %8259  ;;  %v8285_v40 = vperm.slane %v8275_v36, %v17528_v61 }
 0xd7c   : > { %v8280_v11 = vperm.slane %v8260_v20, %v17528_v61 }
 0xd7e   : > { %v8287_v0 = vsel %vm2034_vm3, %v8280_v11, %v8279_v6 }
 0xd7f   : > { %v8288_v50 = vsel %vm2036_vm4, %v8281_v22, %v8287_v0  ;;  %v9742_v0 = vld [vmem:[%s10018_s17 + $0x20] sm:$0xff] }
 0xd83   : > { %v8266_v39 = vpop.permute.xlu1 %8265 }
 0xd84   : > { %v8282_v24 = vperm.slane %v8266_v39, %v17528_v61 }
 0xd86   : > { %v8289_v10 = vsel %vm2038_vm5, %v8282_v24, %v8288_v50 }
 0xd87   : > { %v8290_v37 = vsel %vm2040_vm6, %v8283_v19, %v8289_v10 }
 0xd8b   : > { %v8272_v17 = vpop.permute.xlu1 %8271 }
 0xd8c   : > { %v8284_v30 = vperm.slane %v8272_v17, %v17528_v61 }
 0xd8e   : > { %v8291_v59 = vsel %vm2042_vm7, %v8284_v30, %v8290_v37 }
 0xd8f   : > { %v8292_v9 = vsel %vm2044_vm8, %v8285_v40, %v8291_v59  ;;  %v9743_v40 = vld [vmem:[%s10018_s17 + $0x18] sm:$0xff] }
 0xd93   : > { %v8278_v42 = vpop.permute.xlu1 %8277 }
 0xd94   : > { %v8286_v41 = vperm.slane %v8278_v42, %v17528_v61 }
 0xd96   : > { %v8293_v15 = vsel %vm2046_vm9, %v8286_v41, %v8292_v9 }
 0xd97   : > { %v8295_v7 = vsel %vm8202_vm14, %v8293_v15, 0.0  ;;  %v9744_v15 = vld [vmem:[%s10018_s17 + $0x30] sm:$0xff] }
 0xd98   : > { %8296 = vadd.xlane.f32.xlu2 %v8295_v7 }
 0xe0b   : > { %v8297_v54 = vpop.xlane.xlu2 %8296 }
 0xe0c   : > { %9714 = vrcp.f32 %v8297_v54 }
 0xe12   : > { %v9715_v43 = vpop.eup %9714 }
 0xe13   : > { %v8301_v47 = vperm.slane %v9715_v43, 1  ;;  %v8300_v1 = vperm.slane %v9715_v43, 0  ;;  %v8304_v8 = vperm.slane %v9715_v43, 4  ;;  %v8302_v32 = vperm.slane %v9715_v43, 2 }
 0xe14   : > { %v8306_v58 = vperm.slane %v9715_v43, 6  ;;  %v8303_v49 = vperm.slane %v9715_v43, 3  ;;  %v8305_v29 = vperm.slane %v9715_v43, 5 }
 0xe15   : > { %v8317_v12 = vmul.f32 %v9701_v53, %v8301_v47  ;;  %v8316_v35 = vmul.f32 %v15860_v51, %v8300_v1  ;;  %v8320_v61 = vmul.f32 %v9707_v2, %v8304_v8  ;;  %v8318_v27 = vmul.f32 %v9703_v14, %v8302_v32 }
 0xe16   : > { %v8322_v28 = vmul.f32 %v9711_v60, %v8306_v58  ;;  %v8319_v48 = vmul.f32 %v9705_v34, %v8303_v49  ;;  %v8321_v53 = vmul.f32 %v9709_v23, %v8305_v29  ;;  %v8307_v51 = vperm.slane %v9715_v43, 7 }
 0xe17   : > { %8331 = vperm.xlu0 %8876, %v8317_v12   ;;  %8326 = vperm.xlu1 %8875, %v8316_v35  }
 0xe18   : > { %v8323_v18 = vmul.f32 %v9713_v57, %v8307_v51 }
 0xe1f   : > { %8346 = vperm.xlu0 %8876, %v8320_v61   ;;  %8336 = vperm.xlu1 %8875, %v8318_v27  }
 0xe27   : > { %8356 = vperm.xlu0 %8876, %v8322_v28   ;;  %8341 = vperm.xlu1 %8875, %v8319_v48  }
 0xe2f   : > { %8351 = vperm.xlu1 %8875, %v8321_v53  }
 0xe37   : > { %8361 = vperm.xlu1 %8875, %v8323_v18  }
 0xe89   : > { %v8332_v56 = vpop.permute.xlu0 %8331  ;;  %v8327_v21 = vpop.permute.xlu1 %8326 }
 0xe8a   : > { %v8366_v44 = vmul.f32 %v8332_v56, %v15347_v31  ;;  %v8367_v14 = vmul.f32 %v9739_v45, %v8332_v56  ;;  %v8364_v46 = vmul.f32 %v8327_v21, %v15353_v62  ;;  %v8365_v16 = vmul.f32 %v9740_v4, %v8327_v21  ;;  %v9745_v4 = vld [vmem:[%s10018_s17 + $0x28] sm:$0xff] }
 0xe8c   : > { %v8393_v34 = vrot.slane %v8366_v44, 4  ;;  %v8399_v23 = vsel %vm575_vm0, %v8367_v14, 0.0  ;;  %v8380_v60 = vrot.slane %v8364_v46, 4  ;;  %v8386_v57 = vsel %vm575_vm0, %v8365_v16, 0.0 }
 0xe8d   : > { %v8400_v39 = vrot.slane %v8399_v23, 4  ;;  %v8387_v52 = vrot.slane %v8386_v57, 4 }
 0xe8e   : > { %v8394_v31 = vadd.f32 %v8393_v34, %v8366_v44  ;;  %v8381_v62 = vadd.f32 %v8380_v60, %v8364_v46 }
 0xe8f   : > { %v8401_v10 = vadd.f32 %v8400_v39, %v8399_v23  ;;  %v8388_v30 = vadd.f32 %v8387_v52, %v8386_v57 }
 0xe90   : > { %v8395_v50 = vrot.slane %v8394_v31, 2 }
 0xe91   : > { %v8347_v5 = vpop.permute.xlu0 %8346  ;;  %v8337_v2 = vpop.permute.xlu1 %8336  ;;  %v8402_v43 = vrot.slane %v8401_v10, 2  ;;  %v8389_v47 = vrot.slane %v8388_v30, 2 }
 0xe92   : > { %v8369_v20 = vmul.f32 %v9741_v55, %v8337_v2  ;;  %v8368_v38 = vmul.f32 %v8337_v2, %v15562_v3  ;;  %v8372_v6 = vmul.f32 %v8347_v5, %v15718_v26  ;;  %v8373_v24 = vmul.f32 %v9742_v0, %v8347_v5 }
 0xe93   : > { %v8382_v3 = vrot.slane %v8381_v62, 2  ;;  %v8396_v54 = vadd.f32 %v8395_v50, %v8394_v31  ;;  %v8403_v29 = vadd.f32 %v8402_v43, %v8401_v10  ;;  %v8390_v53 = vadd.f32 %v8389_v47, %v8388_v30 }
 0xe94   : > { %v8412_v11 = vsel %vm575_vm0, %v8369_v20, 0.0  ;;  %v8406_v22 = vrot.slane %v8368_v38, 4  ;;  %v8432_v37 = vrot.slane %v8372_v6, 4  ;;  %v8438_v41 = vsel %vm575_vm0, %v8373_v24, 0.0 }
 0xe95   : > { %v8413_v17 = vrot.slane %v8412_v11, 4  ;;  %v8383_v12 = vadd.f32 %v8382_v3, %v8381_v62  ;;  %v8439_v61 = vrot.slane %v8438_v41, 4  ;;  %v8397_v48 = vrot.slane %v8396_v54, 1 }
 0xe96   : > { %v8407_v9 = vadd.f32 %v8406_v22, %v8368_v38  ;;  %v8433_v32 = vadd.f32 %v8432_v37, %v8372_v6  ;;  %v8404_v60 = vrot.slane %v8403_v29, 1  ;;  %v8391_v57 = vrot.slane %v8390_v53, 1 }
 0xe97   : > { %v8414_v26 = vadd.f32 %v8413_v17, %v8412_v11  ;;  %v8384_v56 = vrot.slane %v8383_v12, 1  ;;  %v8440_v14 = vadd.f32 %v8439_v61, %v8438_v41  ;;  %v8398_v62 = vadd.f32 %v8397_v48, %v8396_v54 }
 0xe98   : > { %v8408_v27 = vrot.slane %v8407_v9, 2  ;;  %v8434_v45 = vrot.slane %v8433_v32, 2  ;;  %v8405_v50 = vadd.f32 %v8404_v60, %v8403_v29  ;;  %v8392_v30 = vadd.f32 %v8391_v57, %v8390_v53 }
 0xe99   : > { %v8357_v19 = vpop.permute.xlu0 %8356  ;;  %v8342_v36 = vpop.permute.xlu1 %8341  ;;  %v8415_v58 = vrot.slane %v8414_v26, 2  ;;  %v8441_v11 = vrot.slane %v8440_v14, 2  ;;  %v8385_v10 = vadd.f32 %v8384_v56, %v8383_v12 }
 0xe9a   : > { %v8370_v59 = vmul.f32 %v8342_v36, %v15559_v33  ;;  %v8371_v42 = vmul.f32 %v9743_v40, %v8342_v36  ;;  %v8377_v7 = vmul.f32 %v9744_v15, %v8357_v19  ;;  %v8376_v35 = vmul.f32 %v8357_v19, %v15800_v25 }
 0xe9b   : > { %v8409_v34 = vadd.f32 %v8408_v27, %v8407_v9  ;;  %v8416_v5 = vadd.f32 %v8415_v58, %v8414_v26  ;;  %v9746_v26 = vld [vmem:[%s10018_s17 + $0x38] sm:$0xff]  ;;  %v8500_v58 = vsel %vm2034_vm3, %v8398_v62, %v8385_v10  ;;  %v8507_v48 = vsel %vm2034_vm3, %v8405_v50, %v8392_v30  ;;  %s8662_s17 = sshll.u32 %s10004_s16, 4 }
 0xe9c   : > { %v8419_v1 = vrot.slane %v8370_v59, 4  ;;  %v8425_v8 = vsel %vm575_vm0, %v8371_v42, 0.0  ;;  %v8464_v49 = vsel %vm575_vm0, %v8377_v7, 0.0  ;;  %v8458_v21 = vrot.slane %v8376_v35, 4  ;;  %s519_s29 = scalar_lea.vmem [#allocation5], %s8662_s17 }
 0xe9d   : > { %v8426_v28 = vrot.slane %v8425_v8, 4  ;;  %v8465_v46 = vrot.slane %v8464_v49, 4  ;;  %v8410_v0 = vrot.slane %v8409_v34, 1  ;;  %v8417_v24 = vrot.slane %v8416_v5, 1  ;;  %s8532_s27 = sshll.u32 %s519_s29, 4  ;;  %s8533_s27 = int_to_ptr.vmem [resolvable:$true] %s8532_s27 }
 0xe9e   : > { %v8420_v33 = vadd.f32 %v8419_v1, %v8370_v59  ;;  %v8459_v38 = vadd.f32 %v8458_v21, %v8376_v35  ;;  %v8442_v42 = vadd.f32 %v8441_v11, %v8440_v14 }
 0xe9f   : > { %v8427_v44 = vadd.f32 %v8426_v28, %v8425_v8  ;;  %v8466_v6 = vadd.f32 %v8465_v46, %v8464_v49  ;;  %v8411_v54 = vadd.f32 %v8410_v0, %v8409_v34  ;;  %v8418_v43 = vadd.f32 %v8417_v24, %v8416_v5 }
 0xea0   : > { %v8421_v51 = vrot.slane %v8420_v33, 2  ;;  %v8460_v3 = vrot.slane %v8459_v38, 2 }
 0xea1   : > { %v8352_v18 = vpop.permute.xlu1 %8351  ;;  %v8428_v2 = vrot.slane %v8427_v44, 2  ;;  %v8467_v41 = vrot.slane %v8466_v6, 2  ;;  %v8501_v53 = vsel %vm2036_vm4, %v8411_v54, %v8500_v58 }
 0xea2   : > { %v8374_v25 = vmul.f32 %v8352_v18, %v15721_v13  ;;  %v8375_v16 = vmul.f32 %v9745_v4, %v8352_v18  ;;  %v8422_v55 = vadd.f32 %v8421_v51, %v8420_v33  ;;  %v8435_v13 = vadd.f32 %v8434_v45, %v8433_v32 }
 0xea3   : > { %v8429_v31 = vadd.f32 %v8428_v2, %v8427_v44  ;;  %v8461_v32 = vadd.f32 %v8460_v3, %v8459_v38  ;;  %v8468_v49 = vadd.f32 %v8467_v41, %v8466_v6  ;;  %v8508_v18 = vsel %vm2036_vm4, %v8418_v43, %v8507_v48 }
 0xea4   : > { %v8445_v23 = vrot.slane %v8374_v25, 4  ;;  %v8451_v20 = vsel %vm575_vm0, %v8375_v16, 0.0  ;;  %v8423_v19 = vrot.slane %v8422_v55, 1  ;;  %v8436_v7 = vrot.slane %v8435_v13, 1 }
 0xea5   : > { %v8452_v52 = vrot.slane %v8451_v20, 4  ;;  %v8430_v37 = vrot.slane %v8429_v31, 1  ;;  %v8469_v16 = vrot.slane %v8468_v49, 1 }
 0xea6   : > { %v8446_v39 = vadd.f32 %v8445_v23, %v8374_v25  ;;  %v8424_v1 = vadd.f32 %v8423_v19, %v8422_v55  ;;  %v8437_v29 = vadd.f32 %v8436_v7, %v8435_v13  ;;  %v8462_v25 = vrot.slane %v8461_v32, 1 }
 0xea7   : > { %v8453_v17 = vadd.f32 %v8452_v52, %v8451_v20  ;;  %v8431_v61 = vadd.f32 %v8430_v37, %v8429_v31  ;;  %v8470_v31 = vadd.f32 %v8469_v16, %v8468_v49 }
 0xea8   : > { %v8447_v22 = vrot.slane %v8446_v39, 2  ;;  %v8502_v56 = vsel %vm2038_vm5, %v8424_v1, %v8501_v53  ;;  %v8463_v55 = vadd.f32 %v8462_v25, %v8461_v32 }
 0xea9   : > { %v8362_v36 = vpop.permute.xlu1 %8361  ;;  %v8454_v40 = vrot.slane %v8453_v17, 2  ;;  %v8509_v45 = vsel %vm2038_vm5, %v8431_v61, %v8508_v18  ;;  %v8503_v5 = vsel %vm2040_vm6, %v8437_v29, %v8502_v56 }
 0xeaa   : > { %v8448_v59 = vadd.f32 %v8447_v22, %v8446_v39  ;;  %v8378_v9 = vmul.f32 %v8362_v36, %v15797_v63  ;;  %v8379_v15 = vmul.f32 %v9746_v26, %v8362_v36  ;;  %v8443_v63 = vrot.slane %v8442_v42, 1 }
 0xeab   : > { %v8455_v47 = vadd.f32 %v8454_v40, %v8453_v17 }
 0xeac   : > { %v8449_v12 = vrot.slane %v8448_v59, 1  ;;  %v8471_v35 = vrot.slane %v8378_v9, 4  ;;  %v8477_v8 = vsel %vm575_vm0, %v8379_v15, 0.0  ;;  %v8444_v4 = vadd.f32 %v8443_v63, %v8442_v42 }
 0xead   : > { %v8456_v33 = vrot.slane %v8455_v47, 1  ;;  %v8478_v27 = vrot.slane %v8477_v8, 4 }
 0xeae   : > { %v8472_v28 = vadd.f32 %v8471_v35, %v8378_v9  ;;  %v8450_v21 = vadd.f32 %v8449_v12, %v8448_v59  ;;  %v8510_v23 = vsel %vm2040_vm6, %v8444_v4, %v8509_v45 }
 0xeaf   : > { %v8479_v51 = vadd.f32 %v8478_v27, %v8477_v8  ;;  %v8457_v14 = vadd.f32 %v8456_v33, %v8455_v47 }
 0xeb0   : > { %v8473_v44 = vrot.slane %v8472_v28, 2  ;;  %v8504_v60 = vsel %vm2042_vm7, %v8450_v21, %v8503_v5 }
 0xeb1   : > { %v8480_v46 = vrot.slane %v8479_v51, 2  ;;  %v8511_v20 = vsel %vm2042_vm7, %v8457_v14, %v8510_v23  ;;  %v8505_v62 = vsel %vm2044_vm8, %v8463_v55, %v8504_v60 }
 0xeb2   : > { %v8474_v34 = vadd.f32 %v8473_v44, %v8472_v28  ;;  %v8512_v13 = vsel %vm2044_vm8, %v8470_v31, %v8511_v20 }
 0xeb3   : > { %v8481_v2 = vadd.f32 %v8480_v46, %v8479_v51 }
 0xeb4   : > { %v8475_v57 = vrot.slane %v8474_v34, 1 }
 0xeb5   : > { %v8482_v38 = vrot.slane %v8481_v2, 1 }
 0xeb6   : > { %v8476_v39 = vadd.f32 %v8475_v57, %v8474_v34 }
 0xeb7   : > { %v8483_v52 = vadd.f32 %v8482_v38, %v8481_v2 }
 0xeb8   : > { %v8506_v11 = vsel %vm2046_vm9, %v8476_v39, %v8505_v62 }
 0xeb9   : > { %v8513_v6 = vsel %vm2046_vm9, %v8483_v52, %v8512_v13  ;;  %8516 = vst [vmem:[%s519_s29] sm:$0xff] %v8506_v11 }
 0xeba   : > { %8517 = vst.msk [vmem:[%s519_s29 + $0x8] sm:$0xff] %vm575_vm0, %v8513_v6 }
 0xebb   : > { %9804 = shalt.err (!%p9801_p8)
}
 0xebc   : > { %8821 = dma.vmem_to_hbm [thread:$0]  (%p9968_p10), %s8533_s27, 256, %s8535_s14, %s8519_s18  }
 0xebd PF: > { %s17532_s16 = sld [smem:[#allocation8_spill]]  ;;  %p8832_p9 = scmp.ge.s32.totalorder %s9843_s28, 2 }
 0xebf   : > { %p8828_p1 = pnand %p8832_p9, %p9972_p11 }
 0xec1   : > { %p8829_p12 = pneg %p8828_p1 }
 0xec3   : > { %s8546_s13 = sand.u32 1, %s17532_s16  }
 0xec4   : > { %s8547_s29 = scalar_lea.sflag [#allocation4], %s8546_s13 }
 0xec5   : > { %9826 = dma.done.wait (%p8829_p12), %s8547_s29, 256  }
 0xec6   : > { %9828 = vsyncadd (%p8829_p12), %s8547_s29, 4294967040  ;;  %s17534_s28 = sld [smem:[#allocation10_spill]]  ;;  %s17537_s25 = smov %s9835_s26 }
 0xec7   : > { %s17535_s23 = sld [smem:[#allocation9_spill]] }
 0xec8   : > { %s17536_s27 = sld [smem:[#allocation11_spill]] }
 0xecc   : > { %p26_p6 = scmp.ge.s32.totalorder %s17534_s28, 6  }
 0xecd   : > { %s17538_s26 = smov %s17535_s23 }
 0xece   :  { %28 = sbr.rel (!%p26_p6) target bundleno = 7 (0x7), region = 129 }
 0xed3   :  { %8553 = vsyncpa [#allocation3], 1 }
 0xed4   :  { %8555 = vsyncpa [#allocation3 + $0x1], 1 }
 0xed5   :  { %8556 = vsyncpa [#allocation4], 1 }
 0xed6   :  { %8558 = vsyncpa [#allocation4 + $0x1], 1 }

</bundles_post_ra>
